<compile_context>
chip_gen: v5e
topology: v5e:2x2
jax: 0.10.0
libtpu: 0.0.40
codegen_flags: <defaults>
</compile_context>

<pallas_src>
import jax
import jax.numpy as jnp
from jax.experimental import pallas as pl
from jax.experimental.pallas import tpu as pltpu


def _round_up(n, m):
    return ((n + m - 1) // m) * m


def _pick_time_block(T, bb, Hp):
    """Timesteps per grid step.

    Returns either T (whole sequence) or a multiple-of-8 divisor of T, so the
    BlockSpec (8,128) rule holds and the in-kernel reshape is layout-free.
    The per-block f32 gate projection (bb*TT, 4*Hp) is kept under ~4 MiB.
    """
    budget = 4 << 20
    cap = max(8, budget // (bb * 4 * Hp * 4))
    if T <= cap:
        return T
    best = 0
    for tt in range(8, cap + 1, 8):
        if T % tt == 0:
            best = tt
    return best if best else T


def _lstm_cls_kernel(x_ref, w_ih_ref, w_hh_ref, b_ref, w_fc_ref, b_fc_ref,
                     out_ref, h_scr, c_scr):
    """One grid step == one (batch block, time block). Recurrent state in VMEM scratch."""
    bb, TT, I = x_ref.shape
    Hp = w_hh_ref.shape[0]

    tb = pl.program_id(1)  # time-block index (innermost, 'arbitrary')

    @pl.when(tb == 0)
    def _():
        h_scr[...] = jnp.zeros_like(h_scr)
        c_scr[...] = jnp.zeros_like(c_scr)

    # ---- Hoisted input projection: one big bf16 MXU matmul for the whole block ----
    # (bb, TT, I) -> (bb*TT, I): layout-free reshape (TT % 8 == 0 or TT == T).
    x2 = x_ref[...].astype(jnp.bfloat16).reshape(bb * TT, I)
    gx = (jnp.dot(x2, w_ih_ref[...], preferred_element_type=jnp.float32)
          + b_ref[...])                       # bias (b_ih + b_hh) folded in once, f32
    gx = gx.reshape(bb, TT, 4 * Hp)
    # Pre-slice every timestep's projected gates: these depend only on gx, so the
    # scheduler keeps them off the serial h -> h critical path.
    gx_t = [gx[:, s, :] for s in range(TT)]

    w_hh = w_hh_ref[...]                      # (Hp, 4Hp) bf16, read once per block
    h = h_scr[...]                            # (bb, Hp) f32
    c = c_scr[...]                            # (bb, Hp) f32

    # ---- Serial recurrence over the TT timesteps (statically unrolled) ----
    for s in range(TT):
        gates = gx_t[s] + jnp.dot(h.astype(jnp.bfloat16), w_hh,
                                  preferred_element_type=jnp.float32)
        # Gate order follows PyTorch [i, f, g, o]; each slice spans a whole Hp
        # (multiple of 128) lane group -> lane-aligned, free slicing.
        i_g = jax.nn.sigmoid(gates[:, 0 * Hp:1 * Hp])
        f_g = jax.nn.sigmoid(gates[:, 1 * Hp:2 * Hp])
        g_g = jnp.tanh(gates[:, 2 * Hp:3 * Hp])
        o_g = jax.nn.sigmoid(gates[:, 3 * Hp:4 * Hp])
        c = f_g * c + i_g * g_g
        h = o_g * jnp.tanh(c)

    h_scr[...] = h
    c_scr[...] = c

    # Final time block: classifier head on h_T (== h_n[-1] in PyTorch).
    @pl.when(tb == pl.num_programs(1) - 1)
    def _():
        logits = (jnp.dot(h.astype(jnp.bfloat16), w_fc_ref[...],
                          preferred_element_type=jnp.float32)
                  + b_fc_ref[...])
        out_ref[...] = logits.astype(out_ref.dtype)


def _prepare_padded_params(params, Hp):
    """Pad hidden dim H -> Hp gate-block-wise (zeros are exact no-ops for the LSTM)
    and cast the matmul operands to bf16. Biases stay f32 (added post-matmul)."""
    w_ih, w_hh, b_all, w_fc, b_fc = params
    I = w_ih.shape[0]
    H = w_hh.shape[0]
    C = w_fc.shape[1]

    def pad_gate_cols(w, n_rows_out):
        # w: (rows, 4H) in PyTorch gate order [i,f,g,o] -> (n_rows_out, 4*Hp)
        rows = w.shape[0]
        out = jnp.zeros((n_rows_out, 4 * Hp), w.dtype)
        for g in range(4):
            out = out.at[:rows, g * Hp:g * Hp + H].set(w[:, g * H:(g + 1) * H])
        return out

    w_ih_p = pad_gate_cols(w_ih, I).astype(jnp.bfloat16)
    w_hh_p = pad_gate_cols(w_hh, Hp).astype(jnp.bfloat16)
    b_p = pad_gate_cols(b_all, 1)                                  # f32
    w_fc_p = jnp.zeros((Hp, C), w_fc.dtype).at[:H, :].set(w_fc).astype(jnp.bfloat16)
    return w_ih_p, w_hh_p, b_p, w_fc_p, b_fc


def lstm_classifier_forward(x_btI, params):
    """x_btI: (B, T, I) float32, PyTorch batch_first convention. Returns (B, C) f32."""
    _, w_hh, _, w_fc, _ = params
    B, T, I = x_btI.shape
    H = w_hh.shape[0]
    C = w_fc.shape[1]

    Hp = _round_up(H, 128)                 # lane-aligned gate blocks
    Bp = _round_up(B, 8)                   # sublane-aligned batch
    if Bp > 128:                           # large batch: 128-row blocks, sharded
        Bp = _round_up(B, 128)             # across TensorCores (megacore) via 'parallel'
        bb = 128
    else:
        bb = Bp
    nb = Bp // bb
    TT = _pick_time_block(T, bb, Hp)
    nt = T // TT

    w_ih_p, w_hh_p, b_p, w_fc_p, b_fc_p = _prepare_padded_params(params, Hp)
    x_p = x_btI if Bp == B else jnp.pad(x_btI, ((0, Bp - B), (0, 0), (0, 0)))

    out = pl.pallas_call(
        _lstm_cls_kernel,
        out_shape=jax.ShapeDtypeStruct((Bp, C), jnp.float32),
        grid_spec=pltpu.PrefetchScalarGridSpec(
            num_scalar_prefetch=0,
            grid=(nb, nt),                                           # (batch, time)
            in_specs=[
                pl.BlockSpec((bb, TT, I), lambda b, t: (b, t, 0)),   # x, batch_first
                pl.BlockSpec((I, 4 * Hp), lambda b, t: (0, 0)),      # W_ih^T (bf16)
                pl.BlockSpec((Hp, 4 * Hp), lambda b, t: (0, 0)),     # W_hh^T (bf16)
                pl.BlockSpec((1, 4 * Hp), lambda b, t: (0, 0)),      # b_ih + b_hh (f32)
                pl.BlockSpec((Hp, C), lambda b, t: (0, 0)),          # W_fc^T (bf16)
                pl.BlockSpec((1, C), lambda b, t: (0, 0)),           # b_fc (f32)
            ],
            out_specs=pl.BlockSpec((bb, C), lambda b, t: (b, 0)),
            scratch_shapes=[
                pltpu.VMEM((bb, Hp), jnp.float32),   # h state
                pltpu.VMEM((bb, Hp), jnp.float32),   # c state
            ],
        ),
        compiler_params=pltpu.CompilerParams(
            dimension_semantics=("parallel", "arbitrary"),  # batch parallel, time serial
        ),
    )(x_p, w_ih_p, w_hh_p, b_p, w_fc_p, b_fc_p)

    return out[:B]


def make_params(key, input_size, hidden_size, num_classes):
    """Deterministic PyTorch-style uniform(-1/sqrt(H), 1/sqrt(H)) init (fp32, unpadded)."""
    ks = jax.random.split(key, 6)
    bound = 1.0 / jnp.sqrt(hidden_size)
    u = lambda k, shape: jax.random.uniform(k, shape, jnp.float32, -bound, bound)
    w_ih = u(ks[0], (input_size, 4 * hidden_size))       # = weight_ih_l0.T
    w_hh = u(ks[1], (hidden_size, 4 * hidden_size))      # = weight_hh_l0.T
    b_ih = u(ks[2], (1, 4 * hidden_size))
    b_hh = u(ks[3], (1, 4 * hidden_size))
    w_fc = u(ks[4], (hidden_size, num_classes))          # = fc.weight.T
    b_fc = u(ks[5], (1, num_classes))
    return (w_ih, w_hh, b_ih + b_hh, w_fc, b_fc)


def reference_forward(x_btI, params):
    """Pure-JAX fp32 reference (lax.scan) matching PyTorch nn.LSTM + Linear."""
    w_ih, w_hh, b_all, w_fc, b_fc = params
    H = w_hh.shape[0]
    B = x_btI.shape[0]

    def step(carry, x_t):
        h, c = carry
        gates = x_t @ w_ih + h @ w_hh + b_all
        i = jax.nn.sigmoid(gates[:, 0 * H:1 * H])
        f = jax.nn.sigmoid(gates[:, 1 * H:2 * H])
        g = jnp.tanh(gates[:, 2 * H:3 * H])
        o = jax.nn.sigmoid(gates[:, 3 * H:4 * H])
        c_new = f * c + i * g
        h_new = o * jnp.tanh(c_new)
        return (h_new, c_new), None

    init = (jnp.zeros((B, H), jnp.float32), jnp.zeros((B, H), jnp.float32))
    (h_T, _), _ = jax.lax.scan(step, init, jnp.transpose(x_btI, (1, 0, 2)))
    return h_T @ w_fc + b_fc


if __name__ == "__main__":
    B, T, I, H, C = 2, 8, 16, 32, 4

    key = jax.random.PRNGKey(0)
    k_x, k_p = jax.random.split(key)
    x = jax.random.normal(k_x, (B, T, I), jnp.float32)
    params = make_params(k_p, I, H, C)

    out = lstm_classifier_forward(x, params)
    out = jax.block_until_ready(out)

    ref = reference_forward(x, params)
    assert out.shape == (B, C)
    # bf16 MXU operands vs. fp32 reference -> slightly looser tolerance.
    assert jnp.allclose(out, ref, atol=2e-2, rtol=2e-2), (out, ref)

    print("KERNEL_OK")
</pallas_src>

<mosaic_0001>
module attributes {stable_mosaic.version = 11 : i64} {
  func.func @_lstm_cls_kernel(%arg0: i32, %arg1: i32, %arg2: memref<8x8x16xf32, #tpu.memory_space<vmem>>, %arg3: memref<16x512xbf16, #tpu.memory_space<vmem>>, %arg4: memref<128x512xbf16, #tpu.memory_space<vmem>>, %arg5: memref<1x512xf32, #tpu.memory_space<vmem>>, %arg6: memref<128x4xbf16, #tpu.memory_space<vmem>>, %arg7: memref<1x4xf32, #tpu.memory_space<vmem>>, %arg8: memref<8x4xf32, #tpu.memory_space<vmem>>, %arg9: memref<8x128xf32, #tpu.memory_space<vmem>>, %arg10: memref<8x128xf32, #tpu.memory_space<vmem>>) attributes {dimension_semantics = [#tpu.dimension_semantics<parallel>, #tpu.dimension_semantics<arbitrary>], iteration_bounds = array<i64: 1, 1>, scalar_prefetch = 0 : i64, scratch_operands = 2 : i64, tpu.core_type = #tpu.core_type<tc>, window_params = [{transform_indices = @transform_0, window_bounds = array<i64: 8, 8, 16>}, {pipeline_mode = #tpu.pipeline_mode<synchronous>, transform_indices = @transform_1, window_bounds = array<i64: 16, 512>}, {pipeline_mode = #tpu.pipeline_mode<synchronous>, transform_indices = @transform_2, window_bounds = array<i64: 128, 512>}, {pipeline_mode = #tpu.pipeline_mode<synchronous>, transform_indices = @transform_3, window_bounds = array<i64: 1, 512>}, {pipeline_mode = #tpu.pipeline_mode<synchronous>, transform_indices = @transform_4, window_bounds = array<i64: 128, 4>}, {pipeline_mode = #tpu.pipeline_mode<synchronous>, transform_indices = @transform_5, window_bounds = array<i64: 1, 4>}, {transform_indices = @transform_6, window_bounds = array<i64: 8, 4>}]} {
    %c0_i32 = arith.constant 0 : i32
    %0 = arith.cmpi eq, %arg1, %c0_i32 : i32
    %1 = arith.extui %0 : i1 to i32
    %c0_i32_0 = arith.constant 0 : i32
    %2 = arith.cmpi ne, %1, %c0_i32_0 : i32
    scf.if %2 {
      %cst_51 = arith.constant 0.000000e+00 : f32
      %260 = vector.broadcast %cst_51 : f32 to vector<8x128xf32>
      %c0_52 = arith.constant 0 : index
      %c0_53 = arith.constant 0 : index
      %261 = vector.load %arg9[%c0_52, %c0_53] : memref<8x128xf32, #tpu.memory_space<vmem>>, vector<8x128xf32>
      tpu.vector_store %arg9[%c0_52, %c0_53], %260 {strides = array<i32>} : memref<8x128xf32, #tpu.memory_space<vmem>>, vector<8x128xf32>,
      %cst_54 = arith.constant 0.000000e+00 : f32
      %262 = vector.broadcast %cst_54 : f32 to vector<8x128xf32>
      %c0_55 = arith.constant 0 : index
      %c0_56 = arith.constant 0 : index
      %263 = vector.load %arg10[%c0_55, %c0_56] : memref<8x128xf32, #tpu.memory_space<vmem>>, vector<8x128xf32>
      tpu.vector_store %arg10[%c0_55, %c0_56], %262 {strides = array<i32>} : memref<8x128xf32, #tpu.memory_space<vmem>>, vector<8x128xf32>,
    } else {
    }
    %c0 = arith.constant 0 : index
    %c0_1 = arith.constant 0 : index
    %c0_2 = arith.constant 0 : index
    %3 = vector.load %arg2[%c0, %c0_1, %c0_2] : memref<8x8x16xf32, #tpu.memory_space<vmem>>, vector<8x8x16xf32>
    %4 = arith.truncf %3 : vector<8x8x16xf32> to vector<8x8x16xbf16>
    %5 = vector.shape_cast %4 : vector<8x8x16xbf16> to vector<64x16xbf16>
    %c0_3 = arith.constant 0 : index
    %c0_4 = arith.constant 0 : index
    %6 = vector.load %arg3[%c0_3, %c0_4] : memref<16x512xbf16, #tpu.memory_space<vmem>>, vector<16x512xbf16>
    %cst = arith.constant dense<0.000000e+00> : vector<64x512xf32>
    %7 = tpu.matmul %5, %6, %cst {dimension_numbers = #tpu.dot_dimension_numbers<[1], [0], [0], [1], [0, 0, 1, 1], [], []>} : vector<64x16xbf16>, vector<16x512xbf16>, vector<64x512xf32> -> vector<64x512xf32>
    %c0_5 = arith.constant 0 : index
    %c0_6 = arith.constant 0 : index
    %8 = vector.load %arg5[%c0_5, %c0_6] : memref<1x512xf32, #tpu.memory_space<vmem>>, vector<1x512xf32>
    %9 = vector.broadcast %8 : vector<1x512xf32> to vector<64x512xf32>
    %10 = arith.addf %7, %9 : vector<64x512xf32>
    %11 = vector.shape_cast %10 : vector<64x512xf32> to vector<8x8x512xf32>
    %12 = vector.extract_strided_slice %11 {offsets = [0, 0, 0], sizes = [8, 1, 512], strides = [1, 1, 1]} : vector<8x8x512xf32> to vector<8x1x512xf32>
    %13 = vector.shape_cast %12 : vector<8x1x512xf32> to vector<8x512xf32>
    %14 = vector.extract_strided_slice %11 {offsets = [0, 1, 0], sizes = [8, 1, 512], strides = [1, 1, 1]} : vector<8x8x512xf32> to vector<8x1x512xf32>
    %15 = vector.shape_cast %14 : vector<8x1x512xf32> to vector<8x512xf32>
    %16 = vector.extract_strided_slice %11 {offsets = [0, 2, 0], sizes = [8, 1, 512], strides = [1, 1, 1]} : vector<8x8x512xf32> to vector<8x1x512xf32>
    %17 = vector.shape_cast %16 : vector<8x1x512xf32> to vector<8x512xf32>
    %18 = vector.extract_strided_slice %11 {offsets = [0, 3, 0], sizes = [8, 1, 512], strides = [1, 1, 1]} : vector<8x8x512xf32> to vector<8x1x512xf32>
    %19 = vector.shape_cast %18 : vector<8x1x512xf32> to vector<8x512xf32>
    %20 = vector.extract_strided_slice %11 {offsets = [0, 4, 0], sizes = [8, 1, 512], strides = [1, 1, 1]} : vector<8x8x512xf32> to vector<8x1x512xf32>
    %21 = vector.shape_cast %20 : vector<8x1x512xf32> to vector<8x512xf32>
    %22 = vector.extract_strided_slice %11 {offsets = [0, 5, 0], sizes = [8, 1, 512], strides = [1, 1, 1]} : vector<8x8x512xf32> to vector<8x1x512xf32>
    %23 = vector.shape_cast %22 : vector<8x1x512xf32> to vector<8x512xf32>
    %24 = vector.extract_strided_slice %11 {offsets = [0, 6, 0], sizes = [8, 1, 512], strides = [1, 1, 1]} : vector<8x8x512xf32> to vector<8x1x512xf32>
    %25 = vector.shape_cast %24 : vector<8x1x512xf32> to vector<8x512xf32>
    %26 = vector.extract_strided_slice %11 {offsets = [0, 7, 0], sizes = [8, 1, 512], strides = [1, 1, 1]} : vector<8x8x512xf32> to vector<8x1x512xf32>
    %27 = vector.shape_cast %26 : vector<8x1x512xf32> to vector<8x512xf32>
    %c0_7 = arith.constant 0 : index
    %c0_8 = arith.constant 0 : index
    %28 = vector.load %arg4[%c0_7, %c0_8] : memref<128x512xbf16, #tpu.memory_space<vmem>>, vector<128x512xbf16>
    %c0_9 = arith.constant 0 : index
    %c0_10 = arith.constant 0 : index
    %29 = vector.load %arg9[%c0_9, %c0_10] : memref<8x128xf32, #tpu.memory_space<vmem>>, vector<8x128xf32>
    %c0_11 = arith.constant 0 : index
    %c0_12 = arith.constant 0 : index
    %30 = vector.load %arg10[%c0_11, %c0_12] : memref<8x128xf32, #tpu.memory_space<vmem>>, vector<8x128xf32>
    %31 = arith.truncf %29 : vector<8x128xf32> to vector<8x128xbf16>
    %cst_13 = arith.constant dense<0.000000e+00> : vector<8x512xf32>
    %32 = tpu.matmul %31, %28, %cst_13 {dimension_numbers = #tpu.dot_dimension_numbers<[1], [0], [0], [1], [0, 0, 1, 1], [], []>} : vector<8x128xbf16>, vector<128x512xbf16>, vector<8x512xf32> -> vector<8x512xf32>
    %33 = arith.addf %13, %32 : vector<8x512xf32>
    %34 = vector.extract_strided_slice %33 {offsets = [0, 0], sizes = [8, 128], strides = [1, 1]} : vector<8x512xf32> to vector<8x128xf32>
    %35 = arith.negf %34 : vector<8x128xf32>
    %36 = math.exp %35 : vector<8x128xf32>
    %cst_14 = arith.constant 1.000000e+00 : f32
    %37 = vector.broadcast %cst_14 : f32 to vector<8x128xf32>
    %38 = arith.addf %37, %36 : vector<8x128xf32>
    %39 = arith.divf %37, %38 : vector<8x128xf32>
    %40 = vector.extract_strided_slice %33 {offsets = [0, 128], sizes = [8, 128], strides = [1, 1]} : vector<8x512xf32> to vector<8x128xf32>
    %41 = arith.negf %40 : vector<8x128xf32>
    %42 = math.exp %41 : vector<8x128xf32>
    %cst_15 = arith.constant 1.000000e+00 : f32
    %43 = vector.broadcast %cst_15 : f32 to vector<8x128xf32>
    %44 = arith.addf %43, %42 : vector<8x128xf32>
    %45 = arith.divf %43, %44 : vector<8x128xf32>
    %46 = vector.extract_strided_slice %33 {offsets = [0, 256], sizes = [8, 128], strides = [1, 1]} : vector<8x512xf32> to vector<8x128xf32>
    %47 = math.tanh %46 : vector<8x128xf32>
    %48 = vector.extract_strided_slice %33 {offsets = [0, 384], sizes = [8, 128], strides = [1, 1]} : vector<8x512xf32> to vector<8x128xf32>
    %49 = arith.negf %48 : vector<8x128xf32>
    %50 = math.exp %49 : vector<8x128xf32>
    %cst_16 = arith.constant 1.000000e+00 : f32
    %51 = vector.broadcast %cst_16 : f32 to vector<8x128xf32>
    %52 = arith.addf %51, %50 : vector<8x128xf32>
    %53 = arith.divf %51, %52 : vector<8x128xf32>
    %54 = arith.mulf %45, %30 : vector<8x128xf32>
    %55 = arith.mulf %39, %47 : vector<8x128xf32>
    %56 = arith.addf %54, %55 : vector<8x128xf32>
    %57 = math.tanh %56 : vector<8x128xf32>
    %58 = arith.mulf %53, %57 : vector<8x128xf32>
    %59 = arith.truncf %58 : vector<8x128xf32> to vector<8x128xbf16>
    %cst_17 = arith.constant dense<0.000000e+00> : vector<8x512xf32>
    %60 = tpu.matmul %59, %28, %cst_17 {dimension_numbers = #tpu.dot_dimension_numbers<[1], [0], [0], [1], [0, 0, 1, 1], [], []>} : vector<8x128xbf16>, vector<128x512xbf16>, vector<8x512xf32> -> vector<8x512xf32>
    %61 = arith.addf %15, %60 : vector<8x512xf32>
    %62 = vector.extract_strided_slice %61 {offsets = [0, 0], sizes = [8, 128], strides = [1, 1]} : vector<8x512xf32> to vector<8x128xf32>
    %63 = arith.negf %62 : vector<8x128xf32>
    %64 = math.exp %63 : vector<8x128xf32>
    %cst_18 = arith.constant 1.000000e+00 : f32
    %65 = vector.broadcast %cst_18 : f32 to vector<8x128xf32>
    %66 = arith.addf %65, %64 : vector<8x128xf32>
    %67 = arith.divf %65, %66 : vector<8x128xf32>
    %68 = vector.extract_strided_slice %61 {offsets = [0, 128], sizes = [8, 128], strides = [1, 1]} : vector<8x512xf32> to vector<8x128xf32>
    %69 = arith.negf %68 : vector<8x128xf32>
    %70 = math.exp %69 : vector<8x128xf32>
    %cst_19 = arith.constant 1.000000e+00 : f32
    %71 = vector.broadcast %cst_19 : f32 to vector<8x128xf32>
    %72 = arith.addf %71, %70 : vector<8x128xf32>
    %73 = arith.divf %71, %72 : vector<8x128xf32>
    %74 = vector.extract_strided_slice %61 {offsets = [0, 256], sizes = [8, 128], strides = [1, 1]} : vector<8x512xf32> to vector<8x128xf32>
    %75 = math.tanh %74 : vector<8x128xf32>
    %76 = vector.extract_strided_slice %61 {offsets = [0, 384], sizes = [8, 128], strides = [1, 1]} : vector<8x512xf32> to vector<8x128xf32>
    %77 = arith.negf %76 : vector<8x128xf32>
    %78 = math.exp %77 : vector<8x128xf32>
    %cst_20 = arith.constant 1.000000e+00 : f32
    %79 = vector.broadcast %cst_20 : f32 to vector<8x128xf32>
    %80 = arith.addf %79, %78 : vector<8x128xf32>
    %81 = arith.divf %79, %80 : vector<8x128xf32>
    %82 = arith.mulf %73, %56 : vector<8x128xf32>
    %83 = arith.mulf %67, %75 : vector<8x128xf32>
    %84 = arith.addf %82, %83 : vector<8x128xf32>
    %85 = math.tanh %84 : vector<8x128xf32>
    %86 = arith.mulf %81, %85 : vector<8x128xf32>
    %87 = arith.truncf %86 : vector<8x128xf32> to vector<8x128xbf16>
    %cst_21 = arith.constant dense<0.000000e+00> : vector<8x512xf32>
    %88 = tpu.matmul %87, %28, %cst_21 {dimension_numbers = #tpu.dot_dimension_numbers<[1], [0], [0], [1], [0, 0, 1, 1], [], []>} : vector<8x128xbf16>, vector<128x512xbf16>, vector<8x512xf32> -> vector<8x512xf32>
    %89 = arith.addf %17, %88 : vector<8x512xf32>
    %90 = vector.extract_strided_slice %89 {offsets = [0, 0], sizes = [8, 128], strides = [1, 1]} : vector<8x512xf32> to vector<8x128xf32>
    %91 = arith.negf %90 : vector<8x128xf32>
    %92 = math.exp %91 : vector<8x128xf32>
    %cst_22 = arith.constant 1.000000e+00 : f32
    %93 = vector.broadcast %cst_22 : f32 to vector<8x128xf32>
    %94 = arith.addf %93, %92 : vector<8x128xf32>
    %95 = arith.divf %93, %94 : vector<8x128xf32>
    %96 = vector.extract_strided_slice %89 {offsets = [0, 128], sizes = [8, 128], strides = [1, 1]} : vector<8x512xf32> to vector<8x128xf32>
    %97 = arith.negf %96 : vector<8x128xf32>
    %98 = math.exp %97 : vector<8x128xf32>
    %cst_23 = arith.constant 1.000000e+00 : f32
    %99 = vector.broadcast %cst_23 : f32 to vector<8x128xf32>
    %100 = arith.addf %99, %98 : vector<8x128xf32>
    %101 = arith.divf %99, %100 : vector<8x128xf32>
    %102 = vector.extract_strided_slice %89 {offsets = [0, 256], sizes = [8, 128], strides = [1, 1]} : vector<8x512xf32> to vector<8x128xf32>
    %103 = math.tanh %102 : vector<8x128xf32>
    %104 = vector.extract_strided_slice %89 {offsets = [0, 384], sizes = [8, 128], strides = [1, 1]} : vector<8x512xf32> to vector<8x128xf32>
    %105 = arith.negf %104 : vector<8x128xf32>
    %106 = math.exp %105 : vector<8x128xf32>
    %cst_24 = arith.constant 1.000000e+00 : f32
    %107 = vector.broadcast %cst_24 : f32 to vector<8x128xf32>
    %108 = arith.addf %107, %106 : vector<8x128xf32>
    %109 = arith.divf %107, %108 : vector<8x128xf32>
    %110 = arith.mulf %101, %84 : vector<8x128xf32>
    %111 = arith.mulf %95, %103 : vector<8x128xf32>
    %112 = arith.addf %110, %111 : vector<8x128xf32>
    %113 = math.tanh %112 : vector<8x128xf32>
    %114 = arith.mulf %109, %113 : vector<8x128xf32>
    %115 = arith.truncf %114 : vector<8x128xf32> to vector<8x128xbf16>
    %cst_25 = arith.constant dense<0.000000e+00> : vector<8x512xf32>
    %116 = tpu.matmul %115, %28, %cst_25 {dimension_numbers = #tpu.dot_dimension_numbers<[1], [0], [0], [1], [0, 0, 1, 1], [], []>} : vector<8x128xbf16>, vector<128x512xbf16>, vector<8x512xf32> -> vector<8x512xf32>
    %117 = arith.addf %19, %116 : vector<8x512xf32>
    %118 = vector.extract_strided_slice %117 {offsets = [0, 0], sizes = [8, 128], strides = [1, 1]} : vector<8x512xf32> to vector<8x128xf32>
    %119 = arith.negf %118 : vector<8x128xf32>
    %120 = math.exp %119 : vector<8x128xf32>
    %cst_26 = arith.constant 1.000000e+00 : f32
    %121 = vector.broadcast %cst_26 : f32 to vector<8x128xf32>
    %122 = arith.addf %121, %120 : vector<8x128xf32>
    %123 = arith.divf %121, %122 : vector<8x128xf32>
    %124 = vector.extract_strided_slice %117 {offsets = [0, 128], sizes = [8, 128], strides = [1, 1]} : vector<8x512xf32> to vector<8x128xf32>
    %125 = arith.negf %124 : vector<8x128xf32>
    %126 = math.exp %125 : vector<8x128xf32>
    %cst_27 = arith.constant 1.000000e+00 : f32
    %127 = vector.broadcast %cst_27 : f32 to vector<8x128xf32>
    %128 = arith.addf %127, %126 : vector<8x128xf32>
    %129 = arith.divf %127, %128 : vector<8x128xf32>
    %130 = vector.extract_strided_slice %117 {offsets = [0, 256], sizes = [8, 128], strides = [1, 1]} : vector<8x512xf32> to vector<8x128xf32>
    %131 = math.tanh %130 : vector<8x128xf32>
    %132 = vector.extract_strided_slice %117 {offsets = [0, 384], sizes = [8, 128], strides = [1, 1]} : vector<8x512xf32> to vector<8x128xf32>
    %133 = arith.negf %132 : vector<8x128xf32>
    %134 = math.exp %133 : vector<8x128xf32>
    %cst_28 = arith.constant 1.000000e+00 : f32
    %135 = vector.broadcast %cst_28 : f32 to vector<8x128xf32>
    %136 = arith.addf %135, %134 : vector<8x128xf32>
    %137 = arith.divf %135, %136 : vector<8x128xf32>
    %138 = arith.mulf %129, %112 : vector<8x128xf32>
    %139 = arith.mulf %123, %131 : vector<8x128xf32>
    %140 = arith.addf %138, %139 : vector<8x128xf32>
    %141 = math.tanh %140 : vector<8x128xf32>
    %142 = arith.mulf %137, %141 : vector<8x128xf32>
    %143 = arith.truncf %142 : vector<8x128xf32> to vector<8x128xbf16>
    %cst_29 = arith.constant dense<0.000000e+00> : vector<8x512xf32>
    %144 = tpu.matmul %143, %28, %cst_29 {dimension_numbers = #tpu.dot_dimension_numbers<[1], [0], [0], [1], [0, 0, 1, 1], [], []>} : vector<8x128xbf16>, vector<128x512xbf16>, vector<8x512xf32> -> vector<8x512xf32>
    %145 = arith.addf %21, %144 : vector<8x512xf32>
    %146 = vector.extract_strided_slice %145 {offsets = [0, 0], sizes = [8, 128], strides = [1, 1]} : vector<8x512xf32> to vector<8x128xf32>
    %147 = arith.negf %146 : vector<8x128xf32>
    %148 = math.exp %147 : vector<8x128xf32>
    %cst_30 = arith.constant 1.000000e+00 : f32
    %149 = vector.broadcast %cst_30 : f32 to vector<8x128xf32>
    %150 = arith.addf %149, %148 : vector<8x128xf32>
    %151 = arith.divf %149, %150 : vector<8x128xf32>
    %152 = vector.extract_strided_slice %145 {offsets = [0, 128], sizes = [8, 128], strides = [1, 1]} : vector<8x512xf32> to vector<8x128xf32>
    %153 = arith.negf %152 : vector<8x128xf32>
    %154 = math.exp %153 : vector<8x128xf32>
    %cst_31 = arith.constant 1.000000e+00 : f32
    %155 = vector.broadcast %cst_31 : f32 to vector<8x128xf32>
    %156 = arith.addf %155, %154 : vector<8x128xf32>
    %157 = arith.divf %155, %156 : vector<8x128xf32>
    %158 = vector.extract_strided_slice %145 {offsets = [0, 256], sizes = [8, 128], strides = [1, 1]} : vector<8x512xf32> to vector<8x128xf32>
    %159 = math.tanh %158 : vector<8x128xf32>
    %160 = vector.extract_strided_slice %145 {offsets = [0, 384], sizes = [8, 128], strides = [1, 1]} : vector<8x512xf32> to vector<8x128xf32>
    %161 = arith.negf %160 : vector<8x128xf32>
    %162 = math.exp %161 : vector<8x128xf32>
    %cst_32 = arith.constant 1.000000e+00 : f32
    %163 = vector.broadcast %cst_32 : f32 to vector<8x128xf32>
    %164 = arith.addf %163, %162 : vector<8x128xf32>
    %165 = arith.divf %163, %164 : vector<8x128xf32>
    %166 = arith.mulf %157, %140 : vector<8x128xf32>
    %167 = arith.mulf %151, %159 : vector<8x128xf32>
    %168 = arith.addf %166, %167 : vector<8x128xf32>
    %169 = math.tanh %168 : vector<8x128xf32>
    %170 = arith.mulf %165, %169 : vector<8x128xf32>
    %171 = arith.truncf %170 : vector<8x128xf32> to vector<8x128xbf16>
    %cst_33 = arith.constant dense<0.000000e+00> : vector<8x512xf32>
    %172 = tpu.matmul %171, %28, %cst_33 {dimension_numbers = #tpu.dot_dimension_numbers<[1], [0], [0], [1], [0, 0, 1, 1], [], []>} : vector<8x128xbf16>, vector<128x512xbf16>, vector<8x512xf32> -> vector<8x512xf32>
    %173 = arith.addf %23, %172 : vector<8x512xf32>
    %174 = vector.extract_strided_slice %173 {offsets = [0, 0], sizes = [8, 128], strides = [1, 1]} : vector<8x512xf32> to vector<8x128xf32>
    %175 = arith.negf %174 : vector<8x128xf32>
    %176 = math.exp %175 : vector<8x128xf32>
    %cst_34 = arith.constant 1.000000e+00 : f32
    %177 = vector.broadcast %cst_34 : f32 to vector<8x128xf32>
    %178 = arith.addf %177, %176 : vector<8x128xf32>
    %179 = arith.divf %177, %178 : vector<8x128xf32>
    %180 = vector.extract_strided_slice %173 {offsets = [0, 128], sizes = [8, 128], strides = [1, 1]} : vector<8x512xf32> to vector<8x128xf32>
    %181 = arith.negf %180 : vector<8x128xf32>
    %182 = math.exp %181 : vector<8x128xf32>
    %cst_35 = arith.constant 1.000000e+00 : f32
    %183 = vector.broadcast %cst_35 : f32 to vector<8x128xf32>
    %184 = arith.addf %183, %182 : vector<8x128xf32>
    %185 = arith.divf %183, %184 : vector<8x128xf32>
    %186 = vector.extract_strided_slice %173 {offsets = [0, 256], sizes = [8, 128], strides = [1, 1]} : vector<8x512xf32> to vector<8x128xf32>
    %187 = math.tanh %186 : vector<8x128xf32>
    %188 = vector.extract_strided_slice %173 {offsets = [0, 384], sizes = [8, 128], strides = [1, 1]} : vector<8x512xf32> to vector<8x128xf32>
    %189 = arith.negf %188 : vector<8x128xf32>
    %190 = math.exp %189 : vector<8x128xf32>
    %cst_36 = arith.constant 1.000000e+00 : f32
    %191 = vector.broadcast %cst_36 : f32 to vector<8x128xf32>
    %192 = arith.addf %191, %190 : vector<8x128xf32>
    %193 = arith.divf %191, %192 : vector<8x128xf32>
    %194 = arith.mulf %185, %168 : vector<8x128xf32>
    %195 = arith.mulf %179, %187 : vector<8x128xf32>
    %196 = arith.addf %194, %195 : vector<8x128xf32>
    %197 = math.tanh %196 : vector<8x128xf32>
    %198 = arith.mulf %193, %197 : vector<8x128xf32>
    %199 = arith.truncf %198 : vector<8x128xf32> to vector<8x128xbf16>
    %cst_37 = arith.constant dense<0.000000e+00> : vector<8x512xf32>
    %200 = tpu.matmul %199, %28, %cst_37 {dimension_numbers = #tpu.dot_dimension_numbers<[1], [0], [0], [1], [0, 0, 1, 1], [], []>} : vector<8x128xbf16>, vector<128x512xbf16>, vector<8x512xf32> -> vector<8x512xf32>
    %201 = arith.addf %25, %200 : vector<8x512xf32>
    %202 = vector.extract_strided_slice %201 {offsets = [0, 0], sizes = [8, 128], strides = [1, 1]} : vector<8x512xf32> to vector<8x128xf32>
    %203 = arith.negf %202 : vector<8x128xf32>
    %204 = math.exp %203 : vector<8x128xf32>
    %cst_38 = arith.constant 1.000000e+00 : f32
    %205 = vector.broadcast %cst_38 : f32 to vector<8x128xf32>
    %206 = arith.addf %205, %204 : vector<8x128xf32>
    %207 = arith.divf %205, %206 : vector<8x128xf32>
    %208 = vector.extract_strided_slice %201 {offsets = [0, 128], sizes = [8, 128], strides = [1, 1]} : vector<8x512xf32> to vector<8x128xf32>
    %209 = arith.negf %208 : vector<8x128xf32>
    %210 = math.exp %209 : vector<8x128xf32>
    %cst_39 = arith.constant 1.000000e+00 : f32
    %211 = vector.broadcast %cst_39 : f32 to vector<8x128xf32>
    %212 = arith.addf %211, %210 : vector<8x128xf32>
    %213 = arith.divf %211, %212 : vector<8x128xf32>
    %214 = vector.extract_strided_slice %201 {offsets = [0, 256], sizes = [8, 128], strides = [1, 1]} : vector<8x512xf32> to vector<8x128xf32>
    %215 = math.tanh %214 : vector<8x128xf32>
    %216 = vector.extract_strided_slice %201 {offsets = [0, 384], sizes = [8, 128], strides = [1, 1]} : vector<8x512xf32> to vector<8x128xf32>
    %217 = arith.negf %216 : vector<8x128xf32>
    %218 = math.exp %217 : vector<8x128xf32>
    %cst_40 = arith.constant 1.000000e+00 : f32
    %219 = vector.broadcast %cst_40 : f32 to vector<8x128xf32>
    %220 = arith.addf %219, %218 : vector<8x128xf32>
    %221 = arith.divf %219, %220 : vector<8x128xf32>
    %222 = arith.mulf %213, %196 : vector<8x128xf32>
    %223 = arith.mulf %207, %215 : vector<8x128xf32>
    %224 = arith.addf %222, %223 : vector<8x128xf32>
    %225 = math.tanh %224 : vector<8x128xf32>
    %226 = arith.mulf %221, %225 : vector<8x128xf32>
    %227 = arith.truncf %226 : vector<8x128xf32> to vector<8x128xbf16>
    %cst_41 = arith.constant dense<0.000000e+00> : vector<8x512xf32>
    %228 = tpu.matmul %227, %28, %cst_41 {dimension_numbers = #tpu.dot_dimension_numbers<[1], [0], [0], [1], [0, 0, 1, 1], [], []>} : vector<8x128xbf16>, vector<128x512xbf16>, vector<8x512xf32> -> vector<8x512xf32>
    %229 = arith.addf %27, %228 : vector<8x512xf32>
    %230 = vector.extract_strided_slice %229 {offsets = [0, 0], sizes = [8, 128], strides = [1, 1]} : vector<8x512xf32> to vector<8x128xf32>
    %231 = arith.negf %230 : vector<8x128xf32>
    %232 = math.exp %231 : vector<8x128xf32>
    %cst_42 = arith.constant 1.000000e+00 : f32
    %233 = vector.broadcast %cst_42 : f32 to vector<8x128xf32>
    %234 = arith.addf %233, %232 : vector<8x128xf32>
    %235 = arith.divf %233, %234 : vector<8x128xf32>
    %236 = vector.extract_strided_slice %229 {offsets = [0, 128], sizes = [8, 128], strides = [1, 1]} : vector<8x512xf32> to vector<8x128xf32>
    %237 = arith.negf %236 : vector<8x128xf32>
    %238 = math.exp %237 : vector<8x128xf32>
    %cst_43 = arith.constant 1.000000e+00 : f32
    %239 = vector.broadcast %cst_43 : f32 to vector<8x128xf32>
    %240 = arith.addf %239, %238 : vector<8x128xf32>
    %241 = arith.divf %239, %240 : vector<8x128xf32>
    %242 = vector.extract_strided_slice %229 {offsets = [0, 256], sizes = [8, 128], strides = [1, 1]} : vector<8x512xf32> to vector<8x128xf32>
    %243 = math.tanh %242 : vector<8x128xf32>
    %244 = vector.extract_strided_slice %229 {offsets = [0, 384], sizes = [8, 128], strides = [1, 1]} : vector<8x512xf32> to vector<8x128xf32>
    %245 = arith.negf %244 : vector<8x128xf32>
    %246 = math.exp %245 : vector<8x128xf32>
    %cst_44 = arith.constant 1.000000e+00 : f32
    %247 = vector.broadcast %cst_44 : f32 to vector<8x128xf32>
    %248 = arith.addf %247, %246 : vector<8x128xf32>
    %249 = arith.divf %247, %248 : vector<8x128xf32>
    %250 = arith.mulf %241, %224 : vector<8x128xf32>
    %251 = arith.mulf %235, %243 : vector<8x128xf32>
    %252 = arith.addf %250, %251 : vector<8x128xf32>
    %253 = math.tanh %252 : vector<8x128xf32>
    %254 = arith.mulf %249, %253 : vector<8x128xf32>
    %c0_45 = arith.constant 0 : index
    %c0_46 = arith.constant 0 : index
    %255 = vector.load %arg9[%c0_45, %c0_46] : memref<8x128xf32, #tpu.memory_space<vmem>>, vector<8x128xf32>
    tpu.vector_store %arg9[%c0_45, %c0_46], %254 {strides = array<i32>} : memref<8x128xf32, #tpu.memory_space<vmem>>, vector<8x128xf32>,
    %c0_47 = arith.constant 0 : index
    %c0_48 = arith.constant 0 : index
    %256 = vector.load %arg10[%c0_47, %c0_48] : memref<8x128xf32, #tpu.memory_space<vmem>>, vector<8x128xf32>
    tpu.vector_store %arg10[%c0_47, %c0_48], %252 {strides = array<i32>} : memref<8x128xf32, #tpu.memory_space<vmem>>, vector<8x128xf32>,
    %c0_i32_49 = arith.constant 0 : i32
    %257 = arith.cmpi eq, %arg1, %c0_i32_49 : i32
    %258 = arith.extui %257 : i1 to i32
    %c0_i32_50 = arith.constant 0 : i32
    %259 = arith.cmpi ne, %258, %c0_i32_50 : i32
    scf.if %259 {
      %260 = arith.truncf %254 : vector<8x128xf32> to vector<8x128xbf16>
      %c0_51 = arith.constant 0 : index
      %c0_52 = arith.constant 0 : index
      %261 = vector.load %arg6[%c0_51, %c0_52] : memref<128x4xbf16, #tpu.memory_space<vmem>>, vector<128x4xbf16>
      %cst_53 = arith.constant dense<0.000000e+00> : vector<8x4xf32>
      %262 = tpu.matmul %260, %261, %cst_53 {dimension_numbers = #tpu.dot_dimension_numbers<[1], [0], [0], [1], [0, 0, 1, 1], [], []>} : vector<8x128xbf16>, vector<128x4xbf16>, vector<8x4xf32> -> vector<8x4xf32>
      %c0_54 = arith.constant 0 : index
      %c0_55 = arith.constant 0 : index
      %263 = vector.load %arg7[%c0_54, %c0_55] : memref<1x4xf32, #tpu.memory_space<vmem>>, vector<1x4xf32>
      %264 = vector.broadcast %263 : vector<1x4xf32> to vector<8x4xf32>
      %265 = arith.addf %262, %264 : vector<8x4xf32>
      %c0_56 = arith.constant 0 : index
      %c0_57 = arith.constant 0 : index
      %266 = vector.load %arg8[%c0_56, %c0_57] : memref<8x4xf32, #tpu.memory_space<vmem>>, vector<8x4xf32>
      tpu.vector_store %arg8[%c0_56, %c0_57], %265 {strides = array<i32>} : memref<8x4xf32, #tpu.memory_space<vmem>>, vector<8x4xf32>,
    } else {
    }
    return
  }
  func.func @transform_0(%arg0: i32, %arg1: i32) -> (i32, i32, i32) {
    %c0_i32 = arith.constant 0 : i32
    %c0_i32_0 = arith.constant 0 : i32
    return %arg0, %arg1, %c0_i32 : i32, i32, i32
  }
  func.func @transform_1(%arg0: i32, %arg1: i32) -> (i32, i32) {
    %c0_i32 = arith.constant 0 : i32
    %c0_i32_0 = arith.constant 0 : i32
    %c0_i32_1 = arith.constant 0 : i32
    return %c0_i32, %c0_i32_0 : i32, i32
  }
  func.func @transform_2(%arg0: i32, %arg1: i32) -> (i32, i32) {
    %c0_i32 = arith.constant 0 : i32
    %c0_i32_0 = arith.constant 0 : i32
    %c0_i32_1 = arith.constant 0 : i32
    return %c0_i32, %c0_i32_0 : i32, i32
  }
  func.func @transform_3(%arg0: i32, %arg1: i32) -> (i32, i32) {
    %c0_i32 = arith.constant 0 : i32
    %c0_i32_0 = arith.constant 0 : i32
    %c0_i32_1 = arith.constant 0 : i32
    return %c0_i32, %c0_i32_0 : i32, i32
  }
  func.func @transform_4(%arg0: i32, %arg1: i32) -> (i32, i32) {
    %c0_i32 = arith.constant 0 : i32
    %c0_i32_0 = arith.constant 0 : i32
    %c0_i32_1 = arith.constant 0 : i32
    return %c0_i32, %c0_i32_0 : i32, i32
  }
  func.func @transform_5(%arg0: i32, %arg1: i32) -> (i32, i32) {
    %c0_i32 = arith.constant 0 : i32
    %c0_i32_0 = arith.constant 0 : i32
    %c0_i32_1 = arith.constant 0 : i32
    return %c0_i32, %c0_i32_0 : i32, i32
  }
  func.func @transform_6(%arg0: i32, %arg1: i32) -> (i32, i32) {
    %c0_i32 = arith.constant 0 : i32
    %c0_i32_0 = arith.constant 0 : i32
    return %arg0, %c0_i32 : i32, i32
  }
}

</mosaic_0001>

<bundles_post_ra>
// kernel: tpu_custom_call.1
= control target key start
LH: loop header
LB: loop body
LE: loop exit
PB: predicated region body
PF: predicated region fallthrough
CT: control target
= control target key end

     0   :  { %11 = vsyncpa [#allocation5], 0  ;;  %s14853_s0 = inlined_call_operand.vmem [shape: f32[8,8,16], index: 0, kind: input, shape index: {}]   ;;  %s14854_s1 = inlined_call_operand.hbm [shape: bf16[16,512], index: 1, kind: input, shape index: {}]   ;;  %s14855_s2 = inlined_call_operand.hbm [shape: bf16[128,512], index: 2, kind: input, shape index: {}]   ;;  %s14856_s3 = inlined_call_operand.hbm [shape: f32[1,512], index: 3, kind: input, shape index: {}]   ;;  %s14857_s4 = inlined_call_operand.vmem [shape: bf16[128,4], index: 4, kind: input, shape index: {}]   ;;  %s14858_s5 = inlined_call_operand.vmem [shape: f32[1,4], index: 5, kind: input, shape index: {}]   ;;  %s14859_s6 = inlined_call_operand.vmem [shape: f32[8,4], index: 6, kind: output, shape index: {}]  }
   0x1   :  { %12 = vsyncpa [#allocation7], 0  ;;  %s32_s23 = sshll.u32 %s14855_s2, 4  ;;  %s7875_s24 = smov [#allocation6]   ;;  %s33_s23 = int_to_ptr.hbm [resolvable:$true] %s32_s23 }
   0x2   :  { %s34_s25 = sshll.u32 %s7875_s24, 4  ;;  %s19_s28 = sshll.u32 %s14854_s1, 4  ;;  %s35_s25 = int_to_ptr.vmem [resolvable:$true] %s34_s25  ;;  %s20_s28 = int_to_ptr.hbm [resolvable:$true] %s19_s28 }
   0x3   :  { %s7876_s29 = smov 256   ;;  %s7877_s30 = smov 16  }
   0x4   :  { %40 = dma.hbm_to_vmem [thread:$0]  %s33_s23, 4096, %s35_s25, [#allocation7], %s7876_s29, %s7876_s29, %s7877_s30  }
   0x5   :  { %s7878_s7 = smov [#allocation4]   ;;  %s46_s11 = sshll.u32 %s14856_s3, 4  ;;  %s47_s11 = int_to_ptr.hbm [resolvable:$true] %s46_s11 }
   0x6   :  { %s21_s8 = sshll.u32 %s7878_s7, 4  ;;  %s7879_s2 = smov [#allocation8]   ;;  %s22_s8 = int_to_ptr.vmem [resolvable:$true] %s21_s8 }
   0x7   :  { %27 = dma.hbm_to_vmem [thread:$0]  %s20_s28, 512, %s22_s8, [#allocation5], %s7876_s29, %s7876_s29, %s7877_s30  }
   0x8   :  { %s48_s12 = sshll.u32 %s7879_s2, 4  ;;  %s49_s12 = int_to_ptr.vmem [resolvable:$true] %s48_s12 }
   0x9   :  { %51 = dma.hbm_to_vmem [thread:$0]  %s47_s11, 64, %s49_s12, [#allocation7]  }
   0xa   :  { %7871 = dma.done.wait [#allocation5], 512  }
   0xb   :  { %7872 = vsyncadd [#allocation5], 4294966784 }
   0xc   :  { %7873 = dma.done.wait [#allocation7], 4160  }
   0xd   :  { %7874 = vsyncadd [#allocation7], 4294963136  ;;  %v6340_v0 = vld [vmem:[#allocation4] sm:$0xf]  ;;  %v6724_v1 = vld [vmem:[#allocation4 + $0xc] sm:$0xf0] }
   0xe   :  { %v6348_v2 = vld [vmem:[#allocation4 + $0x8] sm:$0xf]  ;;  %v6341_v3 = vor.u32 %v6724_v1, %v6340_v0  ;;  %v6725_v4 = vld [vmem:[#allocation4 + $0x14] sm:$0xf0]  ;;  %v6723_v5 = vld [vmem:[#allocation4 + $0xc] sm:$0xf] }
   0xf   :  { %v6350_v6 = vld [vmem:[#allocation4 + $0x18] sm:$0xf0]  ;;  %v6349_v7 = vor.u32 %v6725_v4, %v6348_v2  ;;  %v76_v10 = vld [vmem:[%s14853_s0 + $0x8] sm:$0xff]  ;;  %v81_v11 = vld [vmem:[%s14853_s0 + $0x30] sm:$0xff]  ;;  %vm145_vm0 = vcmask 130048  }
  0x10   :  { %v6353_v8 = vor.u32 %v6723_v5, %v6350_v6  ;;  %v75_v9 = vld [vmem:[%s14853_s0] sm:$0xff]  ;;  %165 = vmatpush.bf16.msra.mxu0 %v6341_v3  ;;  %6766 = vmatpush.bf16.msra.mxu1 %v6341_v3  ;;  %v84_v13 = vpack.c.bf16 %v76_v10, %v76_v10  ;;  %v82_v14 = vld [vmem:[%s14853_s0 + $0x38] sm:$0xff]  ;;  %v89_v15 = vpack.c.bf16 %v81_v11, %v81_v11  ;;  %v6722_v16 = vld [vmem:[#allocation4 + $0x4] sm:$0xf] }
  0x11   :  { %v83_v12 = vpack.c.bf16 %v75_v9, %v75_v9  ;;  %v6342_v17 = vld [vmem:[#allocation4 + $0x10] sm:$0xf0]  ;;  %223 = vmatpush.bf16.msra.mxu2 %v6349_v7  ;;  %v90_v18 = vpack.c.bf16 %v82_v14, %v82_v14  ;;  %v6754_v20 = vld [vmem:[#allocation6 + $0xe4] sm:$0xf]  ;;  %v6484_v25 = vld [vmem:[#allocation6 + $0xe0] sm:$0xf] }
  0x12   :  { %252 = vmatpush.bf16.msra.mxu3 %v6353_v8  ;;  %v6345_v19 = vor.u32 %v6722_v16, %v6342_v17  ;;  %v114_v22 = vunpack.c.l.b16 %v84_v13  ;;  %v119_v23 = vunpack.c.l.b16 %v89_v15  ;;  %v6486_v24 = vld [vmem:[#allocation6 + $0xf0] sm:$0xf0]  ;;  %v6756_v26 = vld [vmem:[#allocation6 + $0xec] sm:$0xf0]  ;;  %v6468_v29 = vld [vmem:[#allocation6 + $0xc0] sm:$0xf] }
  0x13   :  { %v113_v21 = vunpack.c.l.b16 %v83_v12  ;;  %v120_v27 = vunpack.c.l.b16 %v90_v18  ;;  %v7938_v28 = vor.u32 %v6756_v26, %v6484_v25  ;;  %v6752_v30 = vld [vmem:[#allocation6 + $0xcc] sm:$0xf0]  ;;  %v6755_v31 = vld [vmem:[#allocation6 + $0xec] sm:$0xf]  ;;  %v7942_v33 = vor.u32 %v6754_v20, %v6486_v24  ;;  %v6494_v34 = vld [vmem:[#allocation6 + $0xf8] sm:$0xf0] }
  0x14   :  { %194 = vmatpush.bf16.msrb.mxu1 %v6345_v19  ;;  %v77_v36 = vld [vmem:[%s14853_s0 + $0x10] sm:$0xff]  ;;  %v7950_v37 = vor.u32 %v6752_v30, %v6468_v29  ;;  %v7952_v38 = vor.u32 %v6755_v31, %v6494_v34  ;;  %v6750_v39 = vld [vmem:[#allocation6 + $0xc4] sm:$0xf]  ;;  %v6470_v40 = vld [vmem:[#allocation6 + $0xd0] sm:$0xf0]  ;;  %v7880_v25 = vmov 0.0  }
  0x15   :  { %15129 = vst [vmem:[#allocation11_spill] sm:$0xff] %v7938_v28  ;;  %v7940_v32 = vpack.c.b16 %v114_v22, %v113_v21  ;;  %v7944_v35 = vpack.c.b16 %v120_v27, %v119_v23  ;;  %469 = vmatpush.bf16.msrb.mxu0 %v7938_v28  ;;  %v6452_v41 = vld [vmem:[#allocation6 + $0xa0] sm:$0xf]  ;;  %v6748_v42 = vld [vmem:[#allocation6 + $0xac] sm:$0xf0]  ;;  %v7967_v48 = vor.u32 %v6750_v39, %v6470_v40  ;;  %v79_v29 = vld [vmem:[%s14853_s0 + $0x20] sm:$0xff] }
  0x16   :  { %15130 = vst [vmem:[#allocation12_spill] sm:$0xff] %v7942_v33  ;;  %v6751_v43 = vld [vmem:[#allocation6 + $0xcc] sm:$0xf]  ;;  %v6478_v44 = vld [vmem:[#allocation6 + $0xd8] sm:$0xf0]  ;;  %v78_v45 = vld [vmem:[%s14853_s0 + $0x18] sm:$0xff]  ;;  %508 = vmatpush.bf16.msrb.mxu3 %v7952_v38  ;;  %v7974_v51 = vor.u32 %v6748_v42, %v6452_v41  ;;  %v85_v55 = vpack.c.bf16 %v77_v36, %v77_v36 }
  0x17   :  { %15131 = vst [vmem:[#allocation13_spill] sm:$0xff] %v7950_v37  ;;  %6354 = vmatmul.msk.bf16.vlgmr.msra.gmra.mxu0 %vm145_vm0, %v7940_v32  ;;  %6362 = vmatmul.msk.bf16.vlgmr.msra.gmra.mxu2 %vm145_vm0, %v7940_v32  ;;  %v6492_v46 = vld [vmem:[#allocation6 + $0xe8] sm:$0xf]  ;;  %v6757_v47 = vld [vmem:[#allocation6 + $0xf4] sm:$0xf0]  ;;  %v7969_v49 = vor.u32 %v6751_v43, %v6478_v44  ;;  %v86_v56 = vpack.c.bf16 %v78_v45, %v78_v45  ;;  %v80_v34 = vld [vmem:[%s14853_s0 + $0x28] sm:$0xff] }
  0x18   :  { %15132 = vst [vmem:[#allocation14_spill] sm:$0xff] %v7952_v38  ;;  %6357 = vmatmul.msk.bf16.vlgmr.msra.gmra.mxu1 %vm145_vm0, %v7944_v35  ;;  %6366 = vmatmul.msk.bf16.vlgmr.msra.gmra.mxu3 %vm145_vm0, %v7940_v32  ;;  %v7971_v50 = vor.u32 %v6757_v47, %v6492_v46  ;;  %v6436_v52 = vld [vmem:[#allocation6 + $0x80] sm:$0xf]  ;;  %v6746_v53 = vld [vmem:[#allocation6 + $0xa4] sm:$0xf]  ;;  %v115_v6 = vunpack.c.l.b16 %v85_v55  ;;  %v87_v55 = vpack.c.bf16 %v79_v29, %v79_v29 }
  0x19   :  { %482 = vmatpush.bf16.msra.mxu1 %v7942_v33  ;;  %15133 = vst [vmem:[#allocation15_spill] sm:$0xff] %v7967_v48  ;;  %470 = vmatpush.bf16.msrb.mxu0 %v7950_v37  ;;  %v6454_v54 = vld [vmem:[#allocation6 + $0xb0] sm:$0xf0]  ;;  %v6744_v57 = vld [vmem:[#allocation6 + $0x8c] sm:$0xf0]  ;;  %v116_v7 = vunpack.c.l.b16 %v86_v56  ;;  %v88_v56 = vpack.c.bf16 %v80_v34, %v80_v34 }
  0x1a   :  { %15134 = vst [vmem:[#allocation16_spill] sm:$0xff] %v7969_v49  ;;  %495 = vmatpush.bf16.msrb.mxu2 %v7971_v50  ;;  %v6476_v58 = vld [vmem:[#allocation6 + $0xc8] sm:$0xf]  ;;  %v6753_v59 = vld [vmem:[#allocation6 + $0xd4] sm:$0xf0]  ;;  %509 = vmatpush.bf16.msrb.mxu3 %v7969_v49  ;;  %v7981_v63 = vor.u32 %v6746_v53, %v6454_v54  ;;  %v7986_v2 = vor.u32 %v6744_v57, %v6436_v52 }
  0x1b   :  { %15135 = vst [vmem:[#allocation17_spill] sm:$0xff] %v7971_v50  ;;  %v7977_v60 = vor.u32 %v6753_v59, %v6476_v58  ;;  %v6747_v61 = vld [vmem:[#allocation6 + $0xac] sm:$0xf]  ;;  %v6462_v62 = vld [vmem:[#allocation6 + $0xb8] sm:$0xf0]  ;;  %v8000_v18 = vpack.c.b16 %v116_v7, %v115_v6  ;;  %v117_v6 = vunpack.c.l.b16 %v87_v55  ;;  %v118_v7 = vunpack.c.l.b16 %v88_v56 }
  0x1c   :  { %15136 = vst [vmem:[#allocation18_spill] sm:$0xff] %v7974_v51  ;;  %v7983_v0 = vor.u32 %v6747_v61, %v6462_v62  ;;  %v6742_v1 = vld [vmem:[#allocation6 + $0x84] sm:$0xf]  ;;  %v6438_v3 = vld [vmem:[#allocation6 + $0x90] sm:$0xf0] }
  0x1d   :  { %15137 = vst [vmem:[#allocation19_spill] sm:$0xff] %v7977_v60  ;;  %483 = vmatpush.bf16.msra.mxu1 %v7967_v48  ;;  %471 = vmatpush.bf16.msrb.mxu0 %v7974_v51  ;;  %v6460_v4 = vld [vmem:[#allocation6 + $0xa8] sm:$0xf]  ;;  %v6749_v5 = vld [vmem:[#allocation6 + $0xb4] sm:$0xf0]  ;;  %v7993_v13 = vor.u32 %v6742_v1, %v6438_v3 }
  0x1e   :  { %15138 = vst [vmem:[#allocation20_spill] sm:$0xff] %v7981_v63  ;;  %v6420_v8 = vld [vmem:[#allocation6 + $0x60] sm:$0xf]  ;;  %v6740_v9 = vld [vmem:[#allocation6 + $0x6c] sm:$0xf0]  ;;  %496 = vmatpush.bf16.msrb.mxu2 %v7977_v60  ;;  %v7989_v10 = vor.u32 %v6749_v5, %v6460_v4  ;;  %510 = vmatpush.bf16.msrb.mxu3 %v7983_v0 }
  0x1f   :  { %15139 = vst [vmem:[#allocation21_spill] sm:$0xff] %v7983_v0  ;;  %v6743_v11 = vld [vmem:[#allocation6 + $0x8c] sm:$0xf]  ;;  %v6446_v12 = vld [vmem:[#allocation6 + $0x98] sm:$0xf0]  ;;  %v7998_v15 = vor.u32 %v6740_v9, %v6420_v8 }
  0x20   :  { %15140 = vst [vmem:[#allocation22_spill] sm:$0xff] %v7986_v2  ;;  %v7995_v14 = vor.u32 %v6743_v11, %v6446_v12  ;;  %v6444_v16 = vld [vmem:[#allocation6 + $0x88] sm:$0xf]  ;;  %v6745_v17 = vld [vmem:[#allocation6 + $0x94] sm:$0xf0] }
  0x21   :  { %15141 = vst [vmem:[#allocation23_spill] sm:$0xff] %v7989_v10  ;;  %484 = vmatpush.bf16.msra.mxu1 %v7981_v63  ;;  %472 = vmatpush.bf16.msrb.mxu0 %v7986_v2  ;;  %v6404_v19 = vld [vmem:[#allocation6 + $0x40] sm:$0xf]  ;;  %v6736_v20 = vld [vmem:[#allocation6 + $0x4c] sm:$0xf0]  ;;  %v8004_v23 = vor.u32 %v6745_v17, %v6444_v16 }
  0x22   :  { %15142 = vst [vmem:[#allocation24_spill] sm:$0xff] %v7993_v13  ;;  %497 = vmatpush.bf16.msrb.mxu2 %v7989_v10  ;;  %v6388_v21 = vld [vmem:[#allocation6 + $0x20] sm:$0xf]  ;;  %v6732_v22 = vld [vmem:[#allocation6 + $0x2c] sm:$0xf0]  ;;  %511 = vmatpush.bf16.msrb.mxu3 %v7995_v14  ;;  %v8008_v24 = vor.u32 %v6736_v20, %v6404_v19  ;;  %v123_v19 = vpack.c.b16 %v118_v7, %v117_v6 }
  0x23   :  { %15143 = vst [vmem:[#allocation25_spill] sm:$0xff] %v7995_v14  ;;  %v6428_v26 = vld [vmem:[#allocation6 + $0x68] sm:$0xf]  ;;  %v6741_v27 = vld [vmem:[#allocation6 + $0x74] sm:$0xf0]  ;;  %v8032_v46 = vor.u32 %v6732_v22, %v6388_v21 }
  0x24   :  { %15144 = vst [vmem:[#allocation26_spill] sm:$0xff] %v7998_v15  ;;  %v6739_v30 = vld [vmem:[#allocation6 + $0x6c] sm:$0xf]  ;;  %v6430_v31 = vld [vmem:[#allocation6 + $0x78] sm:$0xf0]  ;;  %v8029_v43 = vor.u32 %v6741_v27, %v6428_v26 }
  0x25   :  { %485 = vmatpush.bf16.msra.mxu1 %v7993_v13  ;;  %15145 = vst [vmem:[#allocation27_spill] sm:$0xff] %v8004_v23  ;;  %473 = vmatpush.bf16.msrb.mxu0 %v7998_v15  ;;  %v6738_v36 = vld [vmem:[#allocation6 + $0x64] sm:$0xf]  ;;  %v6422_v39 = vld [vmem:[#allocation6 + $0x70] sm:$0xf0]  ;;  %v8024_v40 = vor.u32 %v6739_v30, %v6430_v31 }
  0x26   :  { %15146 = vst [vmem:[#allocation28_spill] sm:$0xff] %v8008_v24  ;;  %v6372_v41 = vld [vmem:[#allocation6] sm:$0xf]  ;;  %498 = vmatpush.bf16.msrb.mxu2 %v8004_v23  ;;  %v8027_v42 = vor.u32 %v6738_v36, %v6422_v39  ;;  %v6412_v44 = vld [vmem:[#allocation6 + $0x48] sm:$0xf] }
  0x27   :  { %73 = vst [vmem:[#allocation2] sm:$0xff] %v7880_v25  ;;  %6355 = vmatmul.msk.bf16.gmra.mxu0 %vm145_vm0, %v8000_v18  ;;  %6363 = vmatmul.msk.bf16.gmra.mxu2 %vm145_vm0, %v8000_v18  ;;  %v6414_v45 = vld [vmem:[#allocation6 + $0x58] sm:$0xf0]  ;;  %v6737_v47 = vld [vmem:[#allocation6 + $0x54] sm:$0xf0] }
  0x28   :  { %6358 = vmatmul.msk.bf16.vlgmr.msrb.gmra.mxu1 %vm145_vm0, %v7940_v32  ;;  %6367 = vmatmul.msk.bf16.gmra.mxu3 %vm145_vm0, %v8000_v18  ;;  %15147 = vst [vmem:[#allocation29_spill] sm:$0xff] %v8024_v40  ;;  %v6735_v32 = vld [vmem:[#allocation6 + $0x4c] sm:$0xf]  ;;  %v6734_v53 = vld [vmem:[#allocation6 + $0x44] sm:$0xf]  ;;  %v8041_v62 = vor.u32 %v6737_v47, %v6412_v44 }
  0x29   :  { %15148 = vst [vmem:[#allocation30_spill] sm:$0xff] %v8027_v42  ;;  %474 = vmatpush.bf16.msrb.mxu0 %v8008_v24  ;;  %512 = vmatpush.bf16.msrb.mxu3 %v8024_v40  ;;  %v8035_v52 = vor.u32 %v6735_v32, %v6414_v45  ;;  %v6406_v54 = vld [vmem:[#allocation6 + $0x50] sm:$0xf0]  ;;  %v6728_v57 = vld [vmem:[#allocation6 + $0xc] sm:$0xf0] }
  0x2a   :  { %15149 = vst [vmem:[#allocation31_spill] sm:$0xff] %v8029_v43  ;;  %486 = vmatpush.bf16.msra.mxu1 %v8027_v42  ;;  %v8038_v58 = vor.u32 %v6734_v53, %v6406_v54  ;;  %v6731_v59 = vld [vmem:[#allocation6 + $0x2c] sm:$0xf]  ;;  %v6398_v61 = vld [vmem:[#allocation6 + $0x38] sm:$0xf0]  ;;  %499 = vmatpush.bf16.msrb.mxu2 %v8029_v43  ;;  %v8044_v1 = vor.u32 %v6728_v57, %v6372_v41 }
  0x2b   :  { %15150 = vst [vmem:[#allocation32_spill] sm:$0xff] %v8032_v46  ;;  %v6396_v3 = vld [vmem:[#allocation6 + $0x28] sm:$0xf]  ;;  %v6733_v4 = vld [vmem:[#allocation6 + $0x34] sm:$0xf0]  ;;  %v8047_v5 = vor.u32 %v6731_v59, %v6398_v61 }
  0x2c   :  { %15151 = vst [vmem:[#allocation33_spill] sm:$0xff] %v8035_v52  ;;  %v6727_v8 = vld [vmem:[#allocation6 + $0xc] sm:$0xf]  ;;  %v6382_v9 = vld [vmem:[#allocation6 + $0x18] sm:$0xf0]  ;;  %v8051_v11 = vor.u32 %v6733_v4, %v6396_v3 }
  0x2d   :  { %15152 = vst [vmem:[#allocation34_spill] sm:$0xff] %v8038_v58  ;;  %475 = vmatpush.bf16.msrb.mxu0 %v8032_v46  ;;  %513 = vmatpush.bf16.msrb.mxu3 %v8035_v52  ;;  %v6380_v12 = vld [vmem:[#allocation6 + $0x8] sm:$0xf]  ;;  %v6729_v16 = vld [vmem:[#allocation6 + $0x14] sm:$0xf0]  ;;  %v8055_v17 = vor.u32 %v6727_v8, %v6382_v9 }
  0x2e   :  { %15153 = vst [vmem:[#allocation35_spill] sm:$0xff] %v8041_v62  ;;  %487 = vmatpush.bf16.msra.mxu1 %v8038_v58  ;;  %500 = vmatpush.bf16.msrb.mxu2 %v8041_v62  ;;  %v8059_v20 = vor.u32 %v6729_v16, %v6380_v12  ;;  %v6730_v21 = vld [vmem:[#allocation6 + $0x24] sm:$0xf]  ;;  %v6390_v22 = vld [vmem:[#allocation6 + $0x30] sm:$0xf0] }
  0x2f   :  { %15154 = vst [vmem:[#allocation36_spill] sm:$0xff] %v8044_v1  ;;  %v6726_v25 = vld [vmem:[#allocation6 + $0x4] sm:$0xf]  ;;  %v8068_v26 = vor.u32 %v6730_v21, %v6390_v22  ;;  %v6374_v27 = vld [vmem:[#allocation6 + $0x10] sm:$0xf0] }
  0x30   :  { %15155 = vst [vmem:[#allocation37_spill] sm:$0xff] %v8047_v5  ;;  %v8074_v29 = vor.u32 %v6726_v25, %v6374_v27  ;;  %v95_v8 = vld [vmem:[#allocation8] sm:$0xf] }
  0x31   :  { %15156 = vst [vmem:[#allocation38_spill] sm:$0xff] %v8051_v11  ;;  %476 = vmatpush.bf16.msrb.mxu0 %v8044_v1  ;;  %514 = vmatpush.bf16.msrb.mxu3 %v8047_v5  ;;  %v97_v9 = vperm.slane %v95_v8, 0 }
  0x32   :  { %15157 = vst [vmem:[#allocation39_spill] sm:$0xff] %v8055_v17  ;;  %501 = vmatpush.bf16.msrb.mxu2 %v8051_v11  ;;  %488 = vmatpush.bf16.msra.mxu1 %v8068_v26 }
  0x33   :  { %15158 = vst [vmem:[#allocation40_spill] sm:$0xff] %v8059_v20 }
  0x34   :  { %15159 = vst [vmem:[#allocation41_spill] sm:$0xff] %v8068_v26 }
  0x35   :  { %1184 = vmatpush.bf16.msra.mxu0 %v7938_v28  ;;  %515 = vmatpush.bf16.msrb.mxu3 %v8055_v17  ;;  %15160 = vst [vmem:[#allocation42_spill] sm:$0xff] %v8074_v29 }
  0x36   :  { %502 = vmatpush.bf16.msrb.mxu2 %v8059_v20  ;;  %489 = vmatpush.bf16.msra.mxu1 %v8074_v29 }
  0x37   :  { %6356 = vmatmul.msk.bf16.gmra.mxu0 %vm145_vm0, %v123_v19  ;;  %6364 = vmatmul.msk.bf16.gmra.mxu2 %vm145_vm0, %v123_v19 }
  0x38   :  { %6359 = vmatmul.msk.bf16.gmra.mxu1 %vm145_vm0, %v8000_v18  ;;  %6368 = vmatmul.msk.bf16.gmra.mxu3 %vm145_vm0, %v123_v19  ;;  %v7881_v18 = vmov 0.0|0.0  }
  0x39   :  { %1223 = vmatpush.bf16.msra.mxu3 %v7952_v38  ;;  %1185 = vmatpush.bf16.msra.mxu0 %v7950_v37 }
  0x3a   :  { %1210 = vmatpush.bf16.msra.mxu2 %v7971_v50  ;;  %1197 = vmatpush.bf16.msrb.mxu1 %v7942_v33 }
  0x3d   :  { %1224 = vmatpush.bf16.msra.mxu3 %v7969_v49  ;;  %1186 = vmatpush.bf16.msra.mxu0 %v7974_v51 }
  0x3e   :  { %1211 = vmatpush.bf16.msra.mxu2 %v7977_v60  ;;  %1198 = vmatpush.bf16.msrb.mxu1 %v7967_v48 }
  0x41   :  { %1225 = vmatpush.bf16.msra.mxu3 %v7983_v0  ;;  %1187 = vmatpush.bf16.msra.mxu0 %v7986_v2 }
  0x42   :  { %1212 = vmatpush.bf16.msra.mxu2 %v7989_v10  ;;  %1199 = vmatpush.bf16.msrb.mxu1 %v7981_v63 }
  0x45   :  { %1226 = vmatpush.bf16.msra.mxu3 %v7995_v14  ;;  %1188 = vmatpush.bf16.msra.mxu0 %v7998_v15 }
  0x46   :  { %1213 = vmatpush.bf16.msra.mxu2 %v8004_v23  ;;  %1200 = vmatpush.bf16.msrb.mxu1 %v7993_v13 }
  0x47   :  { %6365 = vmatmul.msk.bf16.gmra.mxu2 %vm145_vm0, %v7944_v35  ;;  %477 = vmatmul.bf16.vlgmr.msrb.gmra.mxu0 %v7881_v18 }
  0x48   :  { %6360 = vmatmul.msk.bf16.gmra.mxu1 %vm145_vm0, %v123_v19  ;;  %6369 = vmatmul.msk.bf16.gmra.mxu3 %vm145_vm0, %v7944_v35 }
  0x49   :  { %1227 = vmatpush.bf16.msra.mxu3 %v8024_v40  ;;  %1189 = vmatpush.bf16.msra.mxu0 %v8008_v24 }
  0x4a   :  { %1214 = vmatpush.bf16.msra.mxu2 %v8029_v43  ;;  %1201 = vmatpush.bf16.msrb.mxu1 %v8027_v42 }
  0x4d   :  { %1228 = vmatpush.bf16.msra.mxu3 %v8035_v52  ;;  %1190 = vmatpush.bf16.msra.mxu0 %v8032_v46 }
  0x4e   :  { %1215 = vmatpush.bf16.msra.mxu2 %v8041_v62  ;;  %1202 = vmatpush.bf16.msrb.mxu1 %v8038_v58 }
  0x51   :  { %1229 = vmatpush.bf16.msra.mxu3 %v8047_v5  ;;  %1191 = vmatpush.bf16.msra.mxu0 %v8044_v1 }
  0x52   :  { %1216 = vmatpush.bf16.msra.mxu2 %v8051_v11  ;;  %1203 = vmatpush.bf16.msrb.mxu1 %v8068_v26 }
  0x55   :  { %1900 = vmatpush.bf16.msrb.mxu0 %v7938_v28  ;;  %1230 = vmatpush.bf16.msra.mxu3 %v8055_v17 }
  0x56   :  { %1217 = vmatpush.bf16.msra.mxu2 %v8059_v20  ;;  %1204 = vmatpush.bf16.msrb.mxu1 %v8074_v29 }
  0x57   :  { %503 = vmatmul.bf16.vlgmr.msrb.gmra.mxu2 %v7881_v18 }
  0x58   :  { %6361 = vmatmul.msk.bf16.gmra.mxu1 %vm145_vm0, %v7944_v35  ;;  %516 = vmatmul.bf16.vlgmr.msrb.gmra.mxu3 %v7881_v18 }
  0x59   :  { %1901 = vmatpush.bf16.msrb.mxu0 %v7950_v37  ;;  %1939 = vmatpush.bf16.msrb.mxu3 %v7952_v38 }
  0x5a   :  { %1926 = vmatpush.bf16.msrb.mxu2 %v7971_v50 }
  0x5d   :  { %1902 = vmatpush.bf16.msrb.mxu0 %v7974_v51  ;;  %1940 = vmatpush.bf16.msrb.mxu3 %v7969_v49 }
  0x5e   :  { %1927 = vmatpush.bf16.msrb.mxu2 %v7977_v60 }
  0x61   :  { %1903 = vmatpush.bf16.msrb.mxu0 %v7986_v2  ;;  %1941 = vmatpush.bf16.msrb.mxu3 %v7983_v0 }
  0x62   :  { %1928 = vmatpush.bf16.msrb.mxu2 %v7989_v10 }
  0x65   :  { %1904 = vmatpush.bf16.msrb.mxu0 %v7998_v15  ;;  %1942 = vmatpush.bf16.msrb.mxu3 %v7995_v14 }
  0x66   :  { %1929 = vmatpush.bf16.msrb.mxu2 %v8004_v23 }
  0x68   :  { %490 = vmatmul.bf16.vlgmr.msra.gmra.mxu1 %v7881_v18 }
  0x69   :  { %1905 = vmatpush.bf16.msrb.mxu0 %v8008_v24  ;;  %1913 = vmatpush.bf16.msra.mxu1 %v7942_v33 }
  0x6a   :  { %1930 = vmatpush.bf16.msrb.mxu2 %v8029_v43  ;;  %1943 = vmatpush.bf16.msrb.mxu3 %v8024_v40 }
  0x6d   :  { %1906 = vmatpush.bf16.msrb.mxu0 %v8032_v46  ;;  %1914 = vmatpush.bf16.msra.mxu1 %v7967_v48 }
  0x6e   :  { %1931 = vmatpush.bf16.msrb.mxu2 %v8041_v62  ;;  %1944 = vmatpush.bf16.msrb.mxu3 %v8035_v52 }
  0x71   :  { %1907 = vmatpush.bf16.msrb.mxu0 %v8044_v1  ;;  %1915 = vmatpush.bf16.msra.mxu1 %v7981_v63 }
  0x72   :  { %1932 = vmatpush.bf16.msrb.mxu2 %v8051_v11  ;;  %1945 = vmatpush.bf16.msrb.mxu3 %v8047_v5 }
  0x75   :  { %1916 = vmatpush.bf16.msra.mxu1 %v7993_v13 }
  0x76   :  { %1933 = vmatpush.bf16.msrb.mxu2 %v8059_v20  ;;  %1946 = vmatpush.bf16.msrb.mxu3 %v8055_v17 }
  0x79   :  { %1917 = vmatpush.bf16.msra.mxu1 %v8027_v42 }
  0x7d   :  { %1918 = vmatpush.bf16.msra.mxu1 %v8038_v58 }
  0x81   :  { %1919 = vmatpush.bf16.msra.mxu1 %v8068_v26 }
  0x85   :  { %1920 = vmatpush.bf16.msra.mxu1 %v8074_v29 }
  0x94   :  { %v167_v35 = vpop.f32.mrf.mxu0 }
  0x95   :  { %v182_v30 = vpop.f32.mrf.mxu1  ;;  %v8180_v22 = vadd.f32 %v167_v35, %v97_v9 }
  0x96   :  { %v8194_v46 = vadd.f32 %v182_v30, %v97_v9 }
  0x97   :  { %15163 = vst [vmem:[#allocation45_spill] sm:$0xff] %v8180_v22 }
  0x98   :  { %15167 = vst [vmem:[#allocation49_spill] sm:$0xff] %v8194_v46 }
  0x9a   :  { %v8144_v31 = vpop.f32.mrf.mxu2 }
  0x9b   :  { %v8146_v34 = vpop.f32.mrf.mxu3 }
  0x9c   :  { %v169_v36 = vpop.f32.mrf.mxu0 }
  0x9d   :  { %v184_v39 = vpop.f32.mrf.mxu1  ;;  %v8182_v25 = vadd.f32 %v169_v36, %v97_v9 }
  0x9f   :  { %15164 = vst [vmem:[#allocation46_spill] sm:$0xff] %v8182_v25 }
  0xa2   :  { %v8148_v41 = vpop.f32.mrf.mxu2 }
  0xa3   :  { %v8150_v44 = vpop.f32.mrf.mxu3 }
  0xa4   :  { %v172_v32 = vpop.f32.mrf.mxu0 }
  0xa5   :  { %v8152_v45 = vpop.f32.mrf.mxu1  ;;  %v8174_v16 = vadd.f32 %v172_v32, %v97_v9 }
  0xa7   :  { %15161 = vst [vmem:[#allocation43_spill] sm:$0xff] %v8174_v16 }
  0xaa   :  { %v8154_v47 = vpop.f32.mrf.mxu2 }
  0xab   :  { %v8156_v53 = vpop.f32.mrf.mxu3 }
  0xac   :  { %v174_v54 = vpop.f32.mrf.mxu0 }
  0xad   :  { %v8158_v55 = vpop.f32.mrf.mxu1  ;;  %v8176_v19 = vadd.f32 %v174_v54, %v97_v9 }
  0xaf   :  { %15162 = vst [vmem:[#allocation44_spill] sm:$0xff] %v8176_v19 }
  0xb2   :  { %v8160_v56 = vpop.f32.mrf.mxu2 }
  0xb3   :  { %v8162_v57 = vpop.f32.mrf.mxu3 }
  0xb4   :  { %v177_v59 = vpop.f32.mrf.mxu0 }
  0xb5   :  { %v8164_v61 = vpop.f32.mrf.mxu1  ;;  %v8184_v27 = vadd.f32 %v177_v59, %v97_v9 }
  0xb7   :  { %15165 = vst [vmem:[#allocation47_spill] sm:$0xff] %v8184_v27 }
  0xba   :  { %v8166_v3 = vpop.f32.mrf.mxu2 }
  0xbb   :  { %v8168_v4 = vpop.f32.mrf.mxu3 }
  0xbc   :  { %v179_v6 = vpop.f32.mrf.mxu0 }
  0xbd   :  { %v8170_v7 = vpop.f32.mrf.mxu1  ;;  %v8186_v18 = vadd.f32 %v179_v6, %v97_v9 }
  0xbf   :  { %15166 = vst [vmem:[#allocation48_spill] sm:$0xff] %v8186_v18 }
  0xc2   :  { %v8172_v12 = vpop.f32.mrf.mxu2 }
  0xc3   :  { %v8178_v21 = vpop.f32.mrf.mxu3 }
  0xc4   :  { %v478_v17 = vpop.f32.mrf.mxu0 }
  0xc5   :  { %v8188_v20 = vpop.f32.mrf.mxu1  ;;  %v525_v29 = vrot.slane %v478_v17, 1  ;;  %v529_v1 = vrot.slane %v478_v17, 2  ;;  %v533_v5 = vrot.slane %v478_v17, 3  ;;  %v537_v32 = vrot.slane %v478_v17, 4 }
  0xc6   :  { %v541_v11 = vrot.slane %v478_v17, 5  ;;  %v545_v54 = vrot.slane %v478_v17, 6  ;;  %v585_v26 = vadd.f32 %v478_v17, %v8180_v22 }
  0xc7   :  { %v589_v35 = vadd.f32 %v525_v29, %v8182_v25  ;;  %v593_v36 = vadd.f32 %v529_v1, %v8174_v16  ;;  %v597_v59 = vadd.f32 %v533_v5, %v8176_v19  ;;  %v601_v6 = vadd.f32 %v537_v32, %v8184_v27 }
  0xc8   :  { %v605_v52 = vadd.f32 %v541_v11, %v8186_v18  ;;  %v6498_v62 = vmul.f32 -1.442695, %v585_v26  ;;  %v609_v40 = vadd.f32 %v545_v54, %v8194_v46  ;;  %v549_v19 = vrot.slane %v478_v17, 7 }
  0xc9   :  { %v6499_v58 = vmul.f32 -1.442695, %v589_v35  ;;  %v6500_v24 = vmul.f32 -1.442695, %v593_v36  ;;  %v6501_v43 = vmul.f32 -1.442695, %v597_v59  ;;  %v8201_v11 = vadd.f32 %v184_v39, %v97_v9 }
  0xca   :  { %v240_v42 = vpop.f32.mrf.mxu2  ;;  %6774 = vpow2.f32 %v6498_v62  ;;  %v6502_v22 = vmul.f32 -1.442695, %v601_v6  ;;  %v6503_v5 = vmul.f32 -1.442695, %v605_v52  ;;  %v6504_v32 = vmul.f32 -1.442695, %v609_v40 }
  0xcb   :  { %v269_v29 = vpop.f32.mrf.mxu3  ;;  %6776 = vpow2.f32 %v6499_v58  ;;  %15168 = vst [vmem:[#allocation50_spill] sm:$0xff] %v8201_v11  ;;  %v99_v35 = vperm.slane %v95_v8, 2  ;;  %v100_v54 = vperm.slane %v95_v8, 3  ;;  %v613_v62 = vadd.f32 %v549_v19, %v8201_v11 }
  0xcc   :  { %v480_v1 = vpop.f32.mrf.mxu0  ;;  %6778 = vpow2.f32 %v6500_v24  ;;  %v8208_v40 = vperm.slane %v95_v8, 1 }
  0xcd   :  { %v8199_v30 = vpop.f32.mrf.mxu1  ;;  %6780 = vpow2.f32 %v6501_v43  ;;  %v8217_v19 = vadd.f32 %v8146_v34, %v100_v54  ;;  %v8225_v8 = vadd.f32 %v8148_v41, %v99_v35  ;;  %v8234_v34 = vadd.f32 %v8154_v47, %v99_v35 }
  0xce   :  { %6782 = vpow2.f32 %v6502_v22  ;;  %v8214_v22 = vadd.f32 %v8144_v31, %v99_v35  ;;  %v8231_v31 = vadd.f32 %v8150_v44, %v100_v54  ;;  %v8241_v41 = vadd.f32 %v8160_v56, %v99_v35 }
  0xcf   :  { %6784 = vpow2.f32 %v6503_v5  ;;  %15170 = vst [vmem:[#allocation52_spill] sm:$0xff] %v8217_v19  ;;  %v6505_v5 = vmul.f32 -1.442695, %v613_v62  ;;  %v8244_v62 = vadd.f32 %v8162_v57, %v100_v54  ;;  %v8251_v44 = vadd.f32 %v8168_v4, %v100_v54 }
  0xd0   :  { %v6775_v26 = vpop.eup %6774  ;;  %6786 = vpow2.f32 %v6504_v32  ;;  %15169 = vst [vmem:[#allocation51_spill] sm:$0xff] %v8214_v22  ;;  %v8254_v47 = vadd.f32 %v8172_v12, %v99_v35  ;;  %v8266_v11 = vadd.f32 %v269_v29, %v100_v54 }
  0xd1   :  { %v6777_v36 = vpop.eup %6776  ;;  %v8204_v58 = vadd.f32 1.0, %v6775_v26  ;;  %15171 = vst [vmem:[#allocation53_spill] sm:$0xff] %v8225_v8 }
  0xd2   :  { %v242_v24 = vpop.f32.mrf.mxu2  ;;  %v6779_v52 = vpop.eup %6778  ;;  %v8206_v59 = vadd.f32 1.0, %v6777_v36  ;;  %15172 = vst [vmem:[#allocation54_spill] sm:$0xff] %v8231_v31  ;;  %v8237_v36 = vadd.f32 %v8156_v53, %v100_v54  ;;  %v8257_v53 = vadd.f32 %v8178_v21, %v100_v54 }
  0xd3   :  { %v271_v17 = vpop.f32.mrf.mxu3  ;;  %v6781_v43 = vpop.eup %6780  ;;  %v8210_v39 = vadd.f32 1.0, %v6779_v52  ;;  %6788 = vrcp.f32 %v8204_v58  ;;  %15173 = vst [vmem:[#allocation55_spill] sm:$0xff] %v8234_v34  ;;  %v660_v56 = vand.u32 2147483648, %v8204_v58  ;;  %v8276_v18 = vadd.f32 %v242_v24, %v99_v35 }
  0xd4   :  { %v6783_v9 = vpop.eup %6782  ;;  %v8219_v6 = vadd.f32 1.0, %v6781_v43  ;;  %6790 = vrcp.f32 %v8206_v59  ;;  %15174 = vst [vmem:[#allocation56_spill] sm:$0xff] %v8237_v36  ;;  %v8247_v43 = vadd.f32 %v8166_v3, %v99_v35  ;;  %v8264_v3 = vadd.f32 %v240_v42, %v99_v35 }
  0xd5   :  { %v8222_v1 = vpop.f32.mrf.mxu1  ;;  %v8227_v32 = vadd.f32 1.0, %v6783_v9  ;;  %6792 = vrcp.f32 %v8210_v39  ;;  %v6785_v26 = vpop.eup %6784  ;;  %15175 = vst [vmem:[#allocation57_spill] sm:$0xff] %v8241_v41  ;;  %v658_v27 = vand.u32 2147483647, %v8204_v58  ;;  %v8285_v29 = vadd.f32 %v271_v17, %v100_v54 }
  0xd6   :  { %6794 = vrcp.f32 %v8219_v6  ;;  %v6787_v52 = vpop.eup %6786  ;;  %15176 = vst [vmem:[#allocation58_spill] sm:$0xff] %v8244_v62  ;;  %v8262_v57 = vadd.f32 1.0, %v6785_v26  ;;  %vm654_vm1 = vweird.f32 %v8204_v58  ;;  %v661_v24 = vor.u32 1.1754944e-38, %v660_v56 }
  0xd7   :  { %15177 = vst [vmem:[#allocation59_spill] sm:$0xff] %v8247_v43  ;;  %6796 = vrcp.f32 %v8227_v32  ;;  %v8272_v12 = vadd.f32 1.0, %v6787_v52  ;;  %v675_v52 = vand.u32 2147483648, %v8206_v59  ;;  %vm669_vm2 = vweird.f32 %v8206_v59 }
  0xd8   :  { %15178 = vst [vmem:[#allocation60_spill] sm:$0xff] %v8251_v44  ;;  %6798 = vpow2.f32 %v6505_v5  ;;  %v673_v25 = vand.u32 2147483647, %v8206_v59  ;;  %vm8303_vm3 = vcmp.eq.f32.partialorder %v658_v27, 8.507059e+37  ;;  %vm684_vm4 = vweird.f32 %v8210_v39 }
  0xd9   :  { %15179 = vst [vmem:[#allocation61_spill] sm:$0xff] %v8254_v47  ;;  %v8260_v9 = vpop.eup %6788  ;;  %6800 = vrcp.f32 %v8262_v57  ;;  %v688_v2 = vand.u32 2147483647, %v8210_v39  ;;  %v676_v10 = vor.u32 1.1754944e-38, %v675_v52  ;;  %vm699_vm12 = vweird.f32 %v8219_v6 }
  0xda   :  { %15180 = vst [vmem:[#allocation62_spill] sm:$0xff] %v8257_v53  ;;  %v8268_v46 = vpop.f32.mrf.mxu2  ;;  %v8270_v4 = vpop.eup %6790  ;;  %v650_v21 = vmul.f32 %v8260_v9, %v8204_v58  ;;  %6802 = vrcp.f32 %v8272_v12  ;;  %vm655_vm5 = vweird.f32 %v8260_v9  ;;  %vm8322_vm6 = vcmp.eq.f32.partialorder %v673_v25, 8.507059e+37 }
  0xdb   :  { %15181 = vst [vmem:[#allocation63_spill] sm:$0xff] %v8264_v3  ;;  %v8279_v5 = vpop.f32.mrf.mxu3  ;;  %v8281_v26 = vpop.eup %6792  ;;  %v665_v42 = vmul.f32 %v8270_v4, %v8206_v59  ;;  %v531_v27 = vrot.slane %v8268_v46, 2  ;;  %v535_v51 = vrot.slane %v8268_v46, 3  ;;  %v539_v49 = vrot.slane %v8268_v46, 4  ;;  %vm656_vm8 = vmor %vm654_vm1, %vm655_vm5 }
  0xdc   :  { %15182 = vst [vmem:[#allocation64_spill] sm:$0xff] %v8266_v11  ;;  %v8289_v16 = vpop.eup %6794  ;;  %v680_v35 = vmul.f32 %v8281_v26, %v8210_v39  ;;  %v651_v54 = vsub.f32 1.0, %v650_v21  ;;  %v587_v50 = vadd.f32 %v8268_v46, %v8214_v22  ;;  %vm670_vm7 = vweird.f32 %v8270_v4 }
  0xdd   :  { %15183 = vst [vmem:[#allocation65_spill] sm:$0xff] %v8276_v18  ;;  %v8295_v15 = vpop.f32.mrf.mxu1  ;;  %v8297_v14 = vpop.eup %6796  ;;  %v666_v17 = vsub.f32 1.0, %v665_v42  ;;  %v695_v23 = vmul.f32 %v8289_v16, %v8219_v6  ;;  %v527_v42 = vrot.slane %v8268_v46, 1  ;;  %vm685_vm9 = vweird.f32 %v8281_v26  ;;  %vm8355_vm10 = vmor %vm669_vm2, %vm670_vm7 }
  0xde   :  { %15184 = vst [vmem:[#allocation66_spill] sm:$0xff] %v8285_v29  ;;  %v681_v13 = vsub.f32 1.0, %v680_v35  ;;  %v8309_v0 = vpop.eup %6798  ;;  %v710_v21 = vmul.f32 %v8297_v14, %v8227_v32  ;;  %v690_v35 = vand.u32 2147483648, %v8210_v39  ;;  %v652_v48 = vmul.f32 %v8260_v9, %v651_v54  ;;  %vm8372_vm14 = vmor %vm684_vm4, %vm685_vm9 }
  0xdf   :  { %15185 = vst [vmem:[#allocation67_spill] sm:$0xff] %v8295_v15  ;;  %v696_v63 = vsub.f32 1.0, %v695_v23  ;;  %v667_v37 = vmul.f32 %v8270_v4, %v666_v17  ;;  %v8331_v54 = vpop.eup %6800  ;;  %v591_v17 = vadd.f32 %v527_v42, %v8225_v8  ;;  %v595_v23 = vadd.f32 %v531_v27, %v8234_v34 }
  0xe0   :  { %v682_v60 = vmul.f32 %v8281_v26, %v681_v13  ;;  %v711_v28 = vsub.f32 1.0, %v710_v21  ;;  %v653_v25 = vadd.f32 %v8260_v9, %v652_v48  ;;  %v599_v48 = vadd.f32 %v535_v51, %v8241_v41 }
  0xe1   :  { %v668_v15 = vadd.f32 %v8270_v4, %v667_v37  ;;  %v697_v13 = vmul.f32 %v8289_v16, %v696_v63  ;;  %v603_v37 = vadd.f32 %v539_v49, %v8247_v43  ;;  %vm8359_vm11 = vcmp.eq.f32.partialorder %v688_v2, 8.507059e+37 }
  0xe2   :  { %v506_v52 = vpop.f32.mrf.mxu2  ;;  %v657_v42 = vsel %vm656_vm8, %v8260_v9, %v653_v25  ;;  %v691_v63 = vor.u32 1.1754944e-38, %v690_v35  ;;  %vm700_vm13 = vweird.f32 %v8289_v16  ;;  %v703_v2 = vand.u32 2147483647, %v8219_v6 }
  0xe3   :  { %v519_v33 = vpop.f32.mrf.mxu3  ;;  %v8336_v52 = vpop.eup %6802  ;;  %v672_v51 = vsel %vm8355_vm10, %v8270_v4, %v668_v15  ;;  %v662_v49 = vsel %vm8303_vm3, %v661_v24, %v657_v42  ;;  %v705_v9 = vand.u32 2147483648, %v8219_v6  ;;  %v712_v15 = vmul.f32 %v8297_v14, %v711_v28  ;;  %vm8402_vm2 = vmor %vm699_vm12, %vm700_vm13 }
  0xe4   :  { %v683_v33 = vadd.f32 %v8281_v26, %v682_v60  ;;  %v698_v35 = vadd.f32 %v8289_v16, %v697_v13  ;;  %vm714_vm15 = vweird.f32 %v8227_v32  ;;  %vm715_vm0 = vweird.f32 %v8297_v14 }
  0xe5   :  { %v8346_v21 = vpop.f32.mrf.mxu1  ;;  %v713_v39 = vadd.f32 %v8297_v14, %v712_v15  ;;  %v718_v24 = vand.u32 2147483647, %v8227_v32  ;;  %v720_v56 = vand.u32 2147483648, %v8227_v32  ;;  %6804 = vtanh.f32 %v587_v50  ;;  %vm8390_vm1 = vmor %vm714_vm15, %vm715_vm0 }
  0xe6   :  { %v687_v4 = vsel %vm8372_vm14, %v8281_v26, %v683_v33  ;;  %v677_v28 = vsel %vm8322_vm6, %v676_v10, %v672_v51  ;;  %6806 = vtanh.f32 %v591_v17  ;;  %v528_v26 = vrot.slane %v8279_v5, 1 }
  0xe7   :  { %v532_v25 = vrot.slane %v8279_v5, 2  ;;  %v692_v33 = vsel %vm8359_vm11, %v691_v63, %v687_v4  ;;  %v706_v38 = vor.u32 1.1754944e-38, %v705_v9  ;;  %6808 = vtanh.f32 %v595_v23 }
  0xe8   :  { %v536_v10 = vrot.slane %v8279_v5, 3  ;;  %v702_v32 = vsel %vm8402_vm2, %v8289_v16, %v698_v35  ;;  %v721_v17 = vor.u32 1.1754944e-38, %v720_v56  ;;  %6810 = vtanh.f32 %v599_v48 }
  0xe9   :  { %v540_v13 = vrot.slane %v8279_v5, 4  ;;  %v717_v6 = vsel %vm8390_vm1, %v8297_v14, %v713_v39  ;;  %vm719_vm3 = vcmp.eq.f32.partialorder %v718_v24, 8.507059e+37  ;;  %6812 = vtanh.f32 %v603_v37 }
  0xea   :  { %v588_v23 = vadd.f32 %v8279_v5, %v8217_v19  ;;  %vm704_vm4 = vcmp.eq.f32.partialorder %v703_v2, 8.507059e+37  ;;  %v592_v58 = vadd.f32 %v528_v26, %v8231_v31  ;;  %v596_v60 = vadd.f32 %v532_v25, %v8237_v36 }
  0xeb   :  { %v600_v16 = vadd.f32 %v536_v10, %v8244_v62  ;;  %v6805_v48 = vpop.eup %6804  ;;  %v707_v51 = vsel %vm704_vm4, %v706_v38, %v702_v32  ;;  %v544_v63 = vrot.slane %v8279_v5, 5  ;;  %v548_v59 = vrot.slane %v8279_v5, 6 }
  0xec   :  { %v604_v14 = vadd.f32 %v540_v13, %v8251_v44  ;;  %v6807_v9 = vpop.eup %6806  ;;  %v722_v37 = vsel %vm719_vm3, %v721_v17, %v717_v6  ;;  %v8422_v15 = vmul.f32 %v6805_v48, %v662_v49  ;;  %v552_v2 = vrot.slane %v8279_v5, 7 }
  0xed   :  { %v493_v42 = vpop.f32.mrf.mxu1  ;;  %v6514_v4 = vmul.f32 -1.442695, %v588_v23  ;;  %v6809_v35 = vpop.eup %6808  ;;  %v8425_v39 = vmul.f32 %v6807_v9, %v677_v28  ;;  %v6515_v24 = vmul.f32 -1.442695, %v592_v58  ;;  %v6516_v56 = vmul.f32 -1.442695, %v596_v60 }
  0xee   :  { %15200 = vst [vmem:[#allocation68_spill] sm:$0xff] %v8422_v15  ;;  %v6517_v27 = vmul.f32 -1.442695, %v600_v16  ;;  %v6811_v26 = vpop.eup %6810  ;;  %v551_v25 = vrot.slane %v8268_v46, 7  ;;  %v8428_v50 = vmul.f32 %v6809_v35, %v692_v33  ;;  %v6518_v38 = vmul.f32 -1.442695, %v604_v14 }
  0xef   :  { %15201 = vst [vmem:[#allocation69_spill] sm:$0xff] %v8425_v39  ;;  %6814 = vpow2.f32 %v6514_v4  ;;  %v6813_v10 = vpop.eup %6812  ;;  %v8431_v49 = vadd.f32 1.0, %v8309_v0  ;;  %v8433_v32 = vmul.f32 %v6811_v26, %v707_v51  ;;  %v608_v5 = vadd.f32 %v544_v63, %v8257_v53 }
  0xf0   :  { %15202 = vst [vmem:[#allocation70_spill] sm:$0xff] %v8428_v50  ;;  %6816 = vpow2.f32 %v6515_v24  ;;  %v15204_v28 = vrot.slane %v8268_v46, 5  ;;  %v8439_v13 = vmul.f32 %v6813_v10, %v722_v37  ;;  %v612_v33 = vadd.f32 %v548_v59, %v8266_v11 }
  0xf1   :  { %15203 = vst [vmem:[#allocation71_spill] sm:$0xff] %v8433_v32  ;;  %6818 = vpow2.f32 %v6516_v56  ;;  %v15206_v42 = vrot.slane %v8268_v46, 6  ;;  %v616_v0 = vadd.f32 %v552_v2, %v8285_v29  ;;  %v8448_v23 = vadd.f32 %v8152_v45, %v8208_v40 }
  0xf2   :  { %v607_v17 = vadd.f32 %v15204_v28, %v8254_v47  ;;  %15205 = vst [vmem:[#allocation72_spill] sm:$0xff] %v8439_v13  ;;  %6820 = vpow2.f32 %v6517_v27  ;;  %v615_v58 = vadd.f32 %v551_v25, %v8276_v18  ;;  %v8453_v60 = vadd.f32 %v8158_v55, %v8208_v40 }
  0xf3   :  { %v611_v6 = vadd.f32 %v15206_v42, %v8264_v3  ;;  %15207 = vst [vmem:[#allocation73_spill] sm:$0xff] %v8448_v23  ;;  %6822 = vpow2.f32 %v6518_v38  ;;  %v8457_v16 = vadd.f32 %v8164_v61, %v8208_v40  ;;  %v6519_v46 = vmul.f32 -1.442695, %v608_v5 }
  0xf4   :  { %15208 = vst [vmem:[#allocation74_spill] sm:$0xff] %v8453_v60  ;;  %6824 = vrcp.f32 %v8431_v49  ;;  %v8462_v51 = vadd.f32 %v8170_v7, %v8208_v40  ;;  %v6520_v45 = vmul.f32 -1.442695, %v612_v33  ;;  %v526_v63 = vrot.slane %v8346_v21, 1 }
  0xf5   :  { %15209 = vst [vmem:[#allocation75_spill] sm:$0xff] %v8457_v16  ;;  %v6815_v48 = vpop.eup %6814  ;;  %6826 = vtanh.f32 %v607_v17  ;;  %v8467_v55 = vadd.f32 %v8188_v20, %v8208_v40  ;;  %v6521_v61 = vmul.f32 -1.442695, %v616_v0  ;;  %v530_v14 = vrot.slane %v8346_v21, 2 }
  0xf6   :  { %15210 = vst [vmem:[#allocation76_spill] sm:$0xff] %v8462_v51  ;;  %v6817_v59 = vpop.eup %6816  ;;  %6828 = vtanh.f32 %v611_v6  ;;  %v8472_v37 = vadd.f32 %v8199_v30, %v8208_v40  ;;  %v8474_v7 = vadd.f32 1.0, %v6815_v48  ;;  %v534_v2 = vrot.slane %v8346_v21, 3 }
  0xf7   :  { %15211 = vst [vmem:[#allocation77_spill] sm:$0xff] %v8467_v55  ;;  %v6819_v9 = vpop.eup %6818  ;;  %6830 = vtanh.f32 %v615_v58  ;;  %v8477_v35 = vadd.f32 1.0, %v6817_v59  ;;  %v538_v20 = vrot.slane %v8346_v21, 4  ;;  %v586_v24 = vadd.f32 %v8346_v21, %v8448_v23 }
  0xf8   :  { %15212 = vst [vmem:[#allocation78_spill] sm:$0xff] %v8472_v37  ;;  %v6821_v4 = vpop.eup %6820  ;;  %6832 = vpow2.f32 %v6519_v46  ;;  %v8482_v27 = vadd.f32 1.0, %v6819_v9  ;;  %v542_v30 = vrot.slane %v8346_v21, 5  ;;  %v590_v26 = vadd.f32 %v526_v63, %v8453_v60 }
  0xf9   :  { %v6823_v56 = vpop.eup %6822  ;;  %6834 = vpow2.f32 %v6520_v45  ;;  %v8488_v38 = vadd.f32 1.0, %v6821_v4  ;;  %v546_v10 = vrot.slane %v8346_v21, 6  ;;  %v594_v5 = vadd.f32 %v530_v14, %v8457_v16 }
  0xfa   :  { %v8486_v25 = vpop.eup %6824  ;;  %6836 = vpow2.f32 %v6521_v61  ;;  %v8496_v17 = vadd.f32 %v8222_v1, %v8208_v40  ;;  %v8498_v33 = vadd.f32 1.0, %v6823_v56  ;;  %v598_v42 = vadd.f32 %v534_v2, %v8462_v51 }
  0xfb   :  { %v8492_v28 = vpop.eup %6826  ;;  %6838 = vrcp.f32 %v8474_v7  ;;  %v725_v0 = vmul.f32 %v8331_v54, %v8262_v57  ;;  %v602_v58 = vadd.f32 %v538_v20, %v8467_v55  ;;  %v6506_v46 = vmul.f32 -1.442695, %v586_v24 }
  0xfc   :  { %15213 = vst [vmem:[#allocation79_spill] sm:$0xff] %v8496_v17  ;;  %v8502_v6 = vpop.eup %6828  ;;  %6840 = vrcp.f32 %v8477_v35  ;;  %v606_v1 = vadd.f32 %v542_v30, %v8472_v37  ;;  %v6507_v45 = vmul.f32 -1.442695, %v590_v26  ;;  %v610_v59 = vadd.f32 %v546_v10, %v8496_v17  ;;  %v15216_v26 = vld [vmem:[#allocation67_spill] sm:$0xff] }
  0xfd   :  { %15214 = vst [vmem:[#allocation80_spill] sm:$0xff] %v8502_v6  ;;  %v8508_v48 = vpop.eup %6830  ;;  %6842 = vrcp.f32 %v8482_v27  ;;  %v6508_v61 = vmul.f32 -1.442695, %v594_v5  ;;  %v550_v9 = vrot.slane %v8346_v21, 7  ;;  %v6509_v2 = vmul.f32 -1.442695, %v598_v42 }
  0xfe   :  { %15215 = vst [vmem:[#allocation81_spill] sm:$0xff] %v8508_v48  ;;  %v6833_v63 = vpop.eup %6832  ;;  %6844 = vrcp.f32 %v8488_v38  ;;  %v726_v20 = vsub.f32 1.0, %v725_v0  ;;  %v6510_v24 = vmul.f32 -1.442695, %v602_v58  ;;  %v740_v30 = vmul.f32 %v8336_v52, %v8272_v12 }
  0xff   :  { %v6835_v14 = vpop.eup %6834  ;;  %6846 = vrcp.f32 %v8498_v33  ;;  %v8522_v29 = vadd.f32 %v15216_v26, %v8208_v40  ;;  %v6511_v10 = vmul.f32 -1.442695, %v606_v1  ;;  %v6512_v21 = vmul.f32 -1.442695, %v610_v59 }
 0x100   :  { %v6837_v4 = vpop.eup %6836  ;;  %6848 = vpow2.f32 %v6506_v46  ;;  %v8528_v0 = vadd.f32 1.0, %v6833_v63  ;;  %v8533_v18 = vadd.f32 1.0, %v6835_v14  ;;  %v727_v40 = vmul.f32 %v8331_v54, %v726_v20 }
 0x101   :  { %v8516_v56 = vpop.eup %6838  ;;  %15217 = vst [vmem:[#allocation67_spill] sm:$0xff] %v8522_v29  ;;  %6850 = vpow2.f32 %v6507_v45  ;;  %v614_v58 = vadd.f32 %v550_v9, %v8522_v29  ;;  %v741_v1 = vsub.f32 1.0, %v740_v30  ;;  %vm729_vm5 = vweird.f32 %v8262_v57 }
 0x102   :  { %v8524_v5 = vpop.eup %6840  ;;  %6852 = vpow2.f32 %v6508_v61  ;;  %vm730_vm6 = vweird.f32 %v8331_v54  ;;  %v728_v20 = vadd.f32 %v8331_v54, %v727_v40  ;;  %v8564_v44 = vadd.f32 1.0, %v6837_v4 }
 0x103   :  { %v8526_v42 = vpop.eup %6842  ;;  %6854 = vpow2.f32 %v6509_v2  ;;  %v6513_v59 = vmul.f32 -1.442695, %v614_v58  ;;  %vm8551_vm7 = vmor %vm729_vm5, %vm730_vm6  ;;  %v742_v58 = vmul.f32 %v8336_v52, %v741_v1  ;;  %vm745_vm9 = vweird.f32 %v8336_v52 }
 0x104   :  { %v8531_v46 = vpop.eup %6844  ;;  %6856 = vpow2.f32 %v6510_v24  ;;  %v733_v24 = vand.u32 2147483647, %v8262_v57  ;;  %vm744_vm10 = vweird.f32 %v8272_v12  ;;  %v765_v47 = vand.u32 2147483648, %v8431_v49 }
 0x105   :  { %v8536_v45 = vpop.eup %6846  ;;  %6858 = vpow2.f32 %v6511_v10  ;;  %vm8608_vm11 = vmor %vm744_vm10, %vm745_vm9  ;;  %vm760_vm13 = vweird.f32 %v8486_v25  ;;  %vm759_vm14 = vweird.f32 %v8431_v49 }
 0x106   :  { %v6849_v61 = vpop.eup %6848  ;;  %6860 = vpow2.f32 %v6512_v21  ;;  %v735_v21 = vand.u32 2147483648, %v8262_v57  ;;  %v732_v57 = vsel %vm8551_vm7, %v8331_v54, %v728_v20  ;;  %vm8572_vm8 = vcmp.eq.f32.partialorder %v733_v24, 8.507059e+37  ;;  %vm8707_vm10 = vmor %vm759_vm14, %vm760_vm13 }
 0x107   :  { %v6851_v63 = vpop.eup %6850  ;;  %6862 = vrcp.f32 %v8528_v0  ;;  %v8541_v9 = vadd.f32 1.0, %v6849_v61  ;;  %v750_v24 = vand.u32 2147483648, %v8272_v12  ;;  %v8639_v29 = vor.u32 1.1754944e-38, %v765_v47 }
 0x108   :  { %v6853_v14 = vpop.eup %6852  ;;  %6864 = vrcp.f32 %v8533_v18  ;;  %v8544_v2 = vadd.f32 1.0, %v6851_v63  ;;  %v962_v63 = vmul.f32 %v8516_v56, %v8474_v7  ;;  %v736_v62 = vor.u32 1.1754944e-38, %v735_v21 }
 0x109   :  { %v6855_v30 = vpop.eup %6854  ;;  %v8548_v26 = vadd.f32 1.0, %v6853_v14  ;;  %6866 = vrcp.f32 %v8541_v9  ;;  %v8595_v21 = vmul.f32 %v8524_v5, %v8477_v35  ;;  %v751_v41 = vor.u32 1.1754944e-38, %v750_v24 }
 0x10a   :  { %v6857_v61 = vpop.eup %6856  ;;  %v8559_v40 = vadd.f32 1.0, %v6855_v30  ;;  %6868 = vrcp.f32 %v8544_v2  ;;  %v963_v36 = vsub.f32 1.0, %v962_v63  ;;  %v812_v8 = vand.u32 2147483648, %v8541_v9 }
 0x10b   :  { %v6859_v14 = vpop.eup %6858  ;;  %6870 = vpow2.f32 %v6513_v59  ;;  %v8562_v11 = vadd.f32 1.0, %v6857_v61  ;;  %v743_v59 = vadd.f32 %v8336_v52, %v742_v58  ;;  %v755_v61 = vmul.f32 %v8486_v25, %v8431_v49 }
 0x10c   :  { %v6861_v53 = vpop.eup %6860  ;;  %6872 = vrcp.f32 %v8548_v26  ;;  %v8581_v31 = vadd.f32 1.0, %v6859_v14  ;;  %v748_v58 = vand.u32 2147483647, %v8272_v12  ;;  %v8606_v14 = vsel %vm8572_vm8, %v736_v62, %v732_v57 }
 0x10d   :  { %v8570_v1 = vpop.eup %6862  ;;  %6874 = vrcp.f32 %v8559_v40  ;;  %v8587_v20 = vadd.f32 1.0, %v6861_v53  ;;  %v8602_v53 = vmul.f32 %v8526_v42, %v8482_v27  ;;  %v756_v3 = vsub.f32 1.0, %v755_v61 }
 0x10e   :  { %v8579_v4 = vpop.eup %6864  ;;  %6876 = vrcp.f32 %v8562_v11  ;;  %v747_v30 = vsel %vm8608_vm11, %v8336_v52, %v743_v59  ;;  %v964_v62 = vmul.f32 %v8516_v56, %v963_v36  ;;  %vm749_vm12 = vcmp.eq.f32.partialorder %v748_v58, 8.507059e+37 }
 0x10f   :  { %v8585_v54 = vpop.eup %6866  ;;  %6878 = vrcp.f32 %v8564_v44  ;;  %v8635_v36 = vsel %vm749_vm12, %v751_v41, %v747_v30  ;;  %v757_v52 = vmul.f32 %v8486_v25, %v756_v3  ;;  %v763_v59 = vand.u32 2147483647, %v8431_v49 }
 0x110   :  { %v8591_v10 = vpop.eup %6868  ;;  %v802_v12 = vmul.f32 %v8585_v54, %v8541_v9  ;;  %6880 = vrcp.f32 %v8581_v31  ;;  %15224 = vst [vmem:[#allocation82_spill] sm:$0xff] %v8635_v36  ;;  %v8646_v58 = vadd.f32 %v8516_v56, %v964_v62  ;;  %vm806_vm15 = vweird.f32 %v8541_v9 }
 0x111   :  { %v6871_v63 = vpop.eup %6870  ;;  %v817_v57 = vmul.f32 %v8591_v10, %v8544_v2  ;;  %6882 = vrcp.f32 %v8587_v20  ;;  %v827_v55 = vand.u32 2147483648, %v8544_v2  ;;  %vm821_vm0 = vweird.f32 %v8544_v2 }
 0x112   :  { %v8613_v43 = vpop.eup %6872  ;;  %v8630_v22 = vadd.f32 1.0, %v6871_v63  ;;  %v803_v17 = vsub.f32 1.0, %v802_v12  ;;  %v810_v12 = vand.u32 2147483647, %v8541_v9  ;;  %v842_v63 = vand.u32 2147483648, %v8548_v26 }
 0x113   :  { %v832_v61 = vmul.f32 %v8613_v43, %v8548_v26  ;;  %v8627_v34 = vpop.eup %6874  ;;  %v818_v41 = vsub.f32 1.0, %v817_v57  ;;  %v825_v57 = vand.u32 2147483647, %v8544_v2  ;;  %v813_v16 = vor.u32 1.1754944e-38, %v812_v8 }
 0x114   :  { %v8633_v19 = vpop.eup %6876  ;;  %v847_v3 = vmul.f32 %v8627_v34, %v8559_v40  ;;  %6884 = vrcp.f32 %v8630_v22  ;;  %v804_v51 = vmul.f32 %v8585_v54, %v803_v17  ;;  %vm836_vm1 = vweird.f32 %v8548_v26 }
 0x115   :  { %v8641_v24 = vpop.eup %6878  ;;  %v833_v30 = vsub.f32 1.0, %v832_v61  ;;  %v862_v47 = vmul.f32 %v8633_v19, %v8562_v11  ;;  %v840_v61 = vand.u32 2147483647, %v8548_v26  ;;  %v819_v23 = vmul.f32 %v8591_v10, %v818_v41 }
 0x116   :  { %v8653_v37 = vpop.eup %6880  ;;  %v848_v32 = vsub.f32 1.0, %v847_v3  ;;  %vm8671_vm2 = vcmp.eq.f32.partialorder %v763_v59, 8.507059e+37  ;;  %vm8675_vm3 = vcmp.eq.f32.partialorder %v810_v12, 8.507059e+37  ;;  %v828_v8 = vor.u32 1.1754944e-38, %v827_v55 }
 0x117   :  { %v8659_v62 = vpop.eup %6882  ;;  %v877_v60 = vmul.f32 %v8653_v37, %v8581_v31  ;;  %v834_v13 = vmul.f32 %v8613_v43, %v833_v30  ;;  %v863_v50 = vsub.f32 1.0, %v862_v47  ;;  %vm851_vm4 = vweird.f32 %v8559_v40 }
 0x118   :  { %v855_v17 = vand.u32 2147483647, %v8559_v40  ;;  %v892_v41 = vmul.f32 %v8659_v62, %v8587_v20  ;;  %vm807_vm5 = vweird.f32 %v8585_v54  ;;  %vm8684_vm6 = vcmp.eq.f32.partialorder %v825_v57, 8.507059e+37 }
 0x119   :  { %vm8688_vm7 = vcmp.eq.f32.partialorder %v840_v61, 8.507059e+37  ;;  %v843_v3 = vor.u32 1.1754944e-38, %v842_v63  ;;  %v857_v55 = vand.u32 2147483648, %v8559_v40  ;;  %v758_v47 = vadd.f32 %v8486_v25, %v757_v52  ;;  %vm8715_vm11 = vmor %vm806_vm15, %vm807_vm5 }
 0x11a   :  { %v8694_v12 = vpop.eup %6884  ;;  %v805_v48 = vadd.f32 %v8585_v54, %v804_v51  ;;  %vm822_vm8 = vweird.f32 %v8591_v10  ;;  %vm837_vm9 = vweird.f32 %v8613_v43  ;;  %v878_v57 = vsub.f32 1.0, %v877_v60 }
 0x11b   :  { %v820_v6 = vadd.f32 %v8591_v10, %v819_v23  ;;  %v835_v61 = vadd.f32 %v8613_v43, %v834_v13  ;;  %v849_v36 = vmul.f32 %v8627_v34, %v848_v32  ;;  %v864_v63 = vmul.f32 %v8633_v19, %v863_v50  ;;  %vm8724_vm13 = vmor %vm821_vm0, %vm822_vm8 }
 0x11c   :  { %vm866_vm12 = vweird.f32 %v8562_v11  ;;  %v872_v50 = vand.u32 2147483648, %v8562_v11  ;;  %v893_v32 = vsub.f32 1.0, %v892_v41  ;;  %v870_v13 = vand.u32 2147483647, %v8562_v11  ;;  %vm8744_vm15 = vmor %vm836_vm1, %vm837_vm9 }
 0x11d   :  { %v858_v60 = vor.u32 1.1754944e-38, %v857_v55  ;;  %v762_v51 = vsel %vm8707_vm10, %v8486_v25, %v758_v47  ;;  %vm8731_vm14 = vcmp.eq.f32.partialorder %v855_v17, 8.507059e+37  ;;  %v907_v41 = vmul.f32 %v8694_v12, %v8630_v22 }
 0x11e   :  { %v809_v2 = vsel %vm8715_vm11, %v8585_v54, %v805_v48  ;;  %vm852_vm0 = vweird.f32 %v8627_v34  ;;  %vm867_vm5 = vweird.f32 %v8633_v19  ;;  %v879_v25 = vmul.f32 %v8653_v37, %v878_v57 }
 0x11f   :  { %vm967_vm8 = vweird.f32 %v8516_v56  ;;  %v824_v48 = vsel %vm8724_vm13, %v8591_v10, %v820_v6  ;;  %v839_v26 = vsel %vm8744_vm15, %v8613_v43, %v835_v61  ;;  %v850_v54 = vadd.f32 %v8627_v34, %v849_v36  ;;  %vm8777_vm10 = vmor %vm851_vm4, %vm852_vm0 }
 0x120   :  { %v865_v17 = vadd.f32 %v8633_v19, %v864_v63  ;;  %v8763_v47 = vsel %vm8671_vm2, %v8639_v29, %v762_v51  ;;  %vm8765_vm1 = vcmp.eq.f32.partialorder %v870_v13, 8.507059e+37  ;;  %v873_v52 = vor.u32 1.1754944e-38, %v872_v50 }
 0x121   :  { %v894_v6 = vmul.f32 %v8659_v62, %v893_v32  ;;  %vm966_vm9 = vweird.f32 %v8474_v7  ;;  %v8773_v43 = vsel %vm8675_vm3, %v813_v16, %v809_v2  ;;  %vm881_vm2 = vweird.f32 %v8581_v31  ;;  %vm8795_vm3 = vmor %vm866_vm12, %vm867_vm5 }
 0x122   :  { %v885_v29 = vand.u32 2147483647, %v8581_v31  ;;  %v908_v39 = vsub.f32 1.0, %v907_v41  ;;  %v8785_v36 = vsel %vm8684_vm6, %v828_v8, %v824_v48  ;;  %v8789_v15 = vsel %vm8688_vm7, %v843_v3, %v839_v26 }
 0x123   :  { %v880_v40 = vadd.f32 %v8653_v37, %v879_v25  ;;  %vm882_vm4 = vweird.f32 %v8653_v37  ;;  %v854_v8 = vsel %vm8777_vm10, %v8627_v34, %v850_v54  ;;  %v869_v30 = vsel %vm8795_vm3, %v8633_v19, %v865_v17 }
 0x124   :  { %v887_v59 = vand.u32 2147483648, %v8581_v31  ;;  %v900_v11 = vand.u32 2147483647, %v8587_v20  ;;  %v895_v3 = vadd.f32 %v8659_v62, %v894_v6  ;;  %vm897_vm6 = vweird.f32 %v8659_v62  ;;  %vm8815_vm7 = vmor %vm881_vm2, %vm882_vm4 }
 0x125   :  { %v902_v61 = vand.u32 2147483648, %v8587_v20  ;;  %v993_v63 = vsub.f32 1.0, %v8602_v53  ;;  %vm8819_vm11 = vcmp.eq.f32.partialorder %v885_v29, 8.507059e+37  ;;  %vm896_vm12 = vweird.f32 %v8587_v20 }
 0x126   :  { %v909_v23 = vmul.f32 %v8694_v12, %v908_v39  ;;  %v915_v50 = vand.u32 2147483647, %v8630_v22  ;;  %v8828_v32 = vsel %vm8731_vm14, %v858_v60, %v854_v8  ;;  %v8832_v31 = vsel %vm8765_vm1, %v873_v52, %v869_v30  ;;  %vm8840_vm13 = vmor %vm896_vm12, %vm897_vm6 }
 0x127   :  { %v884_v53 = vsel %vm8815_vm7, %v8653_v37, %v880_v40  ;;  %v15253_v13 = vsub.f32 1.0, %v8595_v21  ;;  %v888_v49 = vor.u32 1.1754944e-38, %v887_v59  ;;  %vm8844_vm15 = vcmp.eq.f32.partialorder %v900_v11, 8.507059e+37  ;;  %vm8869_vm1 = vmor %vm966_vm9, %vm967_vm8 }
 0x128   :  { %vm911_vm14 = vweird.f32 %v8630_v22  ;;  %vm912_vm0 = vweird.f32 %v8694_v12  ;;  %v899_v37 = vsel %vm8840_vm13, %v8659_v62, %v895_v3  ;;  %v903_v21 = vor.u32 1.1754944e-38, %v902_v61 }
 0x129   :  { %v979_v20 = vmul.f32 %v8524_v5, %v15253_v13  ;;  %v994_v9 = vmul.f32 %v8526_v42, %v993_v63  ;;  %v1007_v41 = vmul.f32 %v8531_v46, %v8488_v38  ;;  %v8858_v2 = vsel %vm8819_vm11, %v888_v49, %v884_v53  ;;  %vm8893_vm8 = vmor %vm911_vm14, %vm912_vm0 }
 0x12a   :  { %v910_v55 = vadd.f32 %v8694_v12, %v909_v23  ;;  %vm8861_vm5 = vcmp.eq.f32.partialorder %v915_v50, 8.507059e+37  ;;  %v972_v48 = vand.u32 2147483648, %v8474_v7  ;;  %v917_v26 = vand.u32 2147483648, %v8630_v22 }
 0x12b   :  { %v969_v54 = vsel %vm8869_vm1, %v8516_v56, %v8646_v58  ;;  %v980_v17 = vadd.f32 %v8524_v5, %v979_v20  ;;  %vm982_vm10 = vweird.f32 %v8524_v5  ;;  %v8883_v57 = vsel %vm8844_vm15, %v903_v21, %v899_v37  ;;  %v7798_v37 = vld [vmem:[#allocation2] sm:$0xff] }
 0x12c   :  { %v985_v52 = vand.u32 2147483647, %v8477_v35  ;;  %v987_v6 = vand.u32 2147483648, %v8477_v35  ;;  %v1022_v10 = vmul.f32 %v8536_v45, %v8498_v33  ;;  %vm981_vm9 = vweird.f32 %v8477_v35 }
 0x12d   :  { %v995_v58 = vadd.f32 %v8526_v42, %v994_v9  ;;  %vm997_vm2 = vweird.f32 %v8526_v42  ;;  %v1008_v29 = vsub.f32 1.0, %v1007_v41  ;;  %v914_v39 = vsel %vm8893_vm8, %v8694_v12, %v910_v55  ;;  %vm8903_vm3 = vmor %vm981_vm9, %vm982_vm10 }
 0x12e   :  { %v973_v16 = vor.u32 1.1754944e-38, %v972_v48  ;;  %v1000_v22 = vand.u32 2147483647, %v8482_v27  ;;  %v1002_v8 = vand.u32 2147483648, %v8482_v27  ;;  %v918_v30 = vor.u32 1.1754944e-38, %v917_v26 }
 0x12f   :  { %v15266_v35 = vand.u32 2147483647, %v8474_v7  ;;  %v984_v59 = vsel %vm8903_vm3, %v8524_v5, %v980_v17  ;;  %vm996_vm6 = vweird.f32 %v8482_v27  ;;  %vm986_vm7 = vcmp.eq.f32.partialorder %v985_v52, 8.507059e+37 }
 0x130   :  { %v988_v11 = vor.u32 1.1754944e-38, %v987_v6  ;;  %vm998_vm11 = vmor %vm996_vm6, %vm997_vm2  ;;  %v1023_v3 = vsub.f32 1.0, %v1022_v10  ;;  %v919_v61 = vsel %vm8861_vm5, %v918_v30, %v914_v39  ;;  %v1009_v7 = vmul.f32 %v8531_v46, %v1008_v29 }
 0x131   :  { %vm971_vm4 = vcmp.eq.f32.partialorder %v15266_v35, 8.507059e+37  ;;  %v999_v63 = vsel %vm998_vm11, %v8526_v42, %v995_v58  ;;  %v1017_v34 = vand.u32 2147483648, %v8488_v38  ;;  %vm1001_vm12 = vcmp.eq.f32.partialorder %v1000_v22, 8.507059e+37  ;;  %v15271_v35 = vld [vmem:[#allocation82_spill] sm:$0xff] }
 0x132   :  { %v8915_v12 = vsel %vm971_vm4, %v973_v16, %v969_v54  ;;  %v8922_v19 = vsel %vm986_vm7, %v988_v11, %v984_v59  ;;  %v1003_v5 = vor.u32 1.1754944e-38, %v1002_v8  ;;  %v1037_v27 = vmul.f32 %v8570_v1, %v8528_v0  ;;  %v15272_v59 = vld [vmem:[#allocation80_spill] sm:$0xff] }
 0x133   :  { %vm1012_vm13 = vweird.f32 %v8531_v46  ;;  %v1015_v23 = vand.u32 2147483647, %v8488_v38  ;;  %v1032_v50 = vand.u32 2147483648, %v8498_v33  ;;  %v1052_v42 = vmul.f32 %v8579_v4, %v8533_v18 }
 0x134   :  { %v8931_v53 = vsel %vm1001_vm12, %v1003_v5, %v999_v63  ;;  %v1024_v13 = vmul.f32 %v8536_v45, %v1023_v3  ;;  %vm1027_vm15 = vweird.f32 %v8536_v45  ;;  %v1067_v20 = vmul.f32 %v8641_v24, %v8564_v44  ;;  %v15273_v3 = vld [vmem:[#allocation81_spill] sm:$0xff]  ;;  %v15274_v63 = vld [vmem:[#allocation68_spill] sm:$0xff] }
 0x135   :  { %v8938_v49 = vadd.f32 %v8531_v46, %v1009_v7  ;;  %vm1011_vm14 = vweird.f32 %v8488_v38  ;;  %v8941_v51 = vor.u32 1.1754944e-38, %v1017_v34  ;;  %v1030_v60 = vand.u32 2147483647, %v8498_v33  ;;  %v15276_v34 = vld [vmem:[#allocation70_spill] sm:$0xff] }
 0x136   :  { %v1082_v21 = vrot.slane %v7798_v37, 1  ;;  %vm1026_vm0 = vweird.f32 %v8498_v33  ;;  %v1038_v9 = vsub.f32 1.0, %v1037_v27  ;;  %v1045_v41 = vand.u32 2147483647, %v8528_v0  ;;  %v15277_v27 = vld [vmem:[#allocation71_spill] sm:$0xff]  ;;  %vm8993_vm9 = vmor %vm1011_vm14, %vm1012_vm13 }
 0x137   :  { %v1083_v55 = vrot.slane %v7798_v37, 2  ;;  %v1084_v25 = vrot.slane %v7798_v37, 3  ;;  %v1033_v62 = vor.u32 1.1754944e-38, %v1032_v50  ;;  %vm1042_vm5 = vweird.f32 %v8570_v1  ;;  %vm9012_vm2 = vmor %vm1026_vm0, %vm1027_vm15 }
 0x138   :  { %v1053_v48 = vsub.f32 1.0, %v1052_v42  ;;  %v1085_v26 = vrot.slane %v7798_v37, 4  ;;  %v1086_v54 = vrot.slane %v7798_v37, 5  ;;  %v1025_v17 = vadd.f32 %v8536_v45, %v1024_v13  ;;  %v15280_v42 = vld [vmem:[#allocation72_spill] sm:$0xff] }
 0x139   :  { %v1068_v52 = vsub.f32 1.0, %v1067_v20  ;;  %v1087_v6 = vrot.slane %v7798_v37, 6  ;;  %v1088_v10 = vrot.slane %v7798_v37, 7  ;;  %vm1041_vm1 = vweird.f32 %v8528_v0 }
 0x13a   :  { %v1097_v56 = vmul.f32 %v7798_v37, %v8773_v43  ;;  %v1098_v58 = vmul.f32 %v1082_v21, %v8785_v36  ;;  %v1099_v29 = vmul.f32 %v1083_v55, %v8789_v15  ;;  %v1100_v39 = vmul.f32 %v1084_v25, %v8828_v32  ;;  %vm9036_vm11 = vmor %vm1041_vm1, %vm1042_vm5 }
 0x13b   :  { %vm8953_vm10 = vcmp.eq.f32.partialorder %v1015_v23, 8.507059e+37  ;;  %v1039_v40 = vmul.f32 %v8570_v1, %v1038_v9  ;;  %v1101_v22 = vmul.f32 %v1085_v26, %v8832_v31  ;;  %v1102_v8 = vmul.f32 %v1086_v54, %v8858_v2 }
 0x13c   :  { %v1103_v30 = vmul.f32 %v1087_v6, %v8883_v57  ;;  %vm8961_vm8 = vcmp.eq.f32.partialorder %v1030_v60, 8.507059e+37  ;;  %v1054_v36 = vmul.f32 %v8579_v4, %v1053_v48  ;;  %v1104_v15 = vmul.f32 %v1088_v10, %v919_v61  ;;  %v15275_v57 = vld [vmem:[#allocation69_spill] sm:$0xff] }
 0x13d   :  { %v1110_v32 = vmul.f32 %v8492_v28, %v8606_v14  ;;  %v1111_v11 = vmul.f32 %v15272_v59, %v15271_v35  ;;  %v1112_v31 = vmul.f32 %v15273_v3, %v8763_v47  ;;  %v8973_v2 = vadd.f32 %v15274_v63, %v1097_v56 }
 0x13e   :  { %v8976_v7 = vadd.f32 %v15275_v57, %v1098_v58  ;;  %v8979_v5 = vadd.f32 %v15276_v34, %v1099_v29  ;;  %v1069_v61 = vmul.f32 %v8641_v24, %v1068_v52  ;;  %v8983_v23 = vadd.f32 %v15277_v27, %v1100_v39 }
 0x13f   :  { %v8985_v28 = vadd.f32 %v1110_v32, %v1102_v8  ;;  %v8987_v14 = vadd.f32 %v1111_v11, %v1103_v30  ;;  %v1047_v50 = vand.u32 2147483648, %v8528_v0  ;;  %v8999_v13 = vadd.f32 %v15280_v42, %v1101_v22 }
 0x140   :  { %v9001_v20 = vadd.f32 %v1112_v31, %v1104_v15  ;;  %6886 = vtanh.f32 %v8973_v2  ;;  %v1014_v60 = vsel %vm8993_vm9, %v8531_v46, %v8938_v49  ;;  %vm9016_vm3 = vcmp.eq.f32.partialorder %v1045_v41, 8.507059e+37 }
 0x141   :  { %vm1056_vm4 = vweird.f32 %v8533_v18  ;;  %6888 = vtanh.f32 %v8976_v7  ;;  %v1029_v46 = vsel %vm9012_vm2, %v8536_v45, %v1025_v17  ;;  %v1040_v49 = vadd.f32 %v8570_v1, %v1039_v40 }
 0x142   :  { %vm1057_vm6 = vweird.f32 %v8579_v4  ;;  %6890 = vtanh.f32 %v8979_v5  ;;  %v1055_v33 = vadd.f32 %v8579_v4, %v1054_v36  ;;  %v1070_v21 = vadd.f32 %v8641_v24, %v1069_v61 }
 0x143   :  { %vm1072_vm7 = vweird.f32 %v8641_v24  ;;  %6892 = vtanh.f32 %v8983_v23  ;;  %v1060_v9 = vand.u32 2147483647, %v8533_v18  ;;  %v1062_v41 = vand.u32 2147483648, %v8533_v18  ;;  %vm9049_vm12 = vmor %vm1056_vm4, %vm1057_vm6  ;;  %v15293_v18 = vld [vmem:[#allocation17_spill] sm:$0xff] }
 0x144   :  { %v1077_v55 = vand.u32 2147483648, %v8564_v44  ;;  %6894 = vtanh.f32 %v8999_v13  ;;  %v1019_v25 = vsel %vm8953_vm10, %v8941_v51, %v1014_v60  ;;  %vm1071_vm13 = vweird.f32 %v8564_v44 }
 0x145   :  { %v1075_v48 = vand.u32 2147483647, %v8564_v44  ;;  %6896 = vtanh.f32 %v8985_v28  ;;  %v1034_v54 = vsel %vm8961_vm8, %v1033_v62, %v1029_v46  ;;  %v1044_v51 = vsel %vm9036_vm11, %v8570_v1, %v1040_v49  ;;  %vm9063_vm15 = vmor %vm1071_vm13, %vm1072_vm7 }
 0x146   :  { %v6887_v26 = vpop.eup %6886  ;;  %v1048_v17 = vor.u32 1.1754944e-38, %v1047_v50  ;;  %6898 = vtanh.f32 %v8987_v14  ;;  %v1059_v52 = vsel %vm9049_vm12, %v8579_v4, %v1055_v33  ;;  %v1074_v62 = vsel %vm9063_vm15, %v8641_v24, %v1070_v21 }
 0x147   :  { %v6889_v44 = vpop.eup %6888  ;;  %6900 = vtanh.f32 %v9001_v20  ;;  %v1129_v1 = vmul.f32 %v6887_v26, %v8915_v12  ;;  %vm1061_vm14 = vcmp.eq.f32.partialorder %v1060_v9, 8.507059e+37  ;;  %v1063_v10 = vor.u32 1.1754944e-38, %v1062_v41 }
 0x148   :  { %v6891_v6 = vpop.eup %6890  ;;  %v1078_v56 = vor.u32 1.1754944e-38, %v1077_v55  ;;  %v1130_v58 = vmul.f32 %v6889_v44, %v8922_v19  ;;  %v1049_v39 = vsel %vm9016_vm3, %v1048_v17, %v1044_v51  ;;  %vm1076_vm0 = vcmp.eq.f32.partialorder %v1075_v48, 8.507059e+37  ;;  %v15291_v51 = vld [vmem:[#allocation11_spill] sm:$0xff]  ;;  %v15292_v17 = vld [vmem:[#allocation12_spill] sm:$0xff]  ;;  %v15294_v44 = vld [vmem:[#allocation14_spill] sm:$0xff] }
 0x149   :  { %v6893_v29 = vpop.eup %6892  ;;  %v1131_v4 = vmul.f32 %v6891_v6, %v8931_v53  ;;  %v1137_v16 = vpack.c.bf16 %v1129_v1, %v1129_v1  ;;  %v1064_v24 = vsel %vm1061_vm14, %v1063_v10, %v1059_v52  ;;  %vm15026_vm5 = vcmask 1041409   ;;  %v15295_v52 = vld [vmem:[#allocation13_spill] sm:$0xff]  ;;  %v15297_v1 = vld [vmem:[#allocation19_spill] sm:$0xff]  ;;  %v15298_v6 = vld [vmem:[#allocation16_spill] sm:$0xff] }
 0x14a   :  { %v6895_v40 = vpop.eup %6894  ;;  %v1079_v22 = vsel %vm1076_vm0, %v1078_v56, %v1074_v62  ;;  %v1132_v8 = vmul.f32 %v6893_v29, %v1019_v25  ;;  %v1138_v30 = vpack.c.bf16 %v1130_v58, %v1130_v58  ;;  %vm15004_vm1 = vcmask 1042434   ;;  %v15296_v62 = vld [vmem:[#allocation15_spill] sm:$0xff]  ;;  %v15299_v10 = vld [vmem:[#allocation18_spill] sm:$0xff]  ;;  %v15300_v56 = vld [vmem:[#allocation20_spill] sm:$0xff] }
 0x14b   :  { %v6897_v12 = vpop.eup %6896  ;;  %v1133_v43 = vmul.f32 %v6895_v40, %v1034_v54  ;;  %v1139_v36 = vpack.c.bf16 %v1131_v4, %v1131_v4  ;;  %vm15003_vm10 = vcmask 1043459   ;;  %v1153_v53 = vunpack.c.l.b16 %v1137_v16  ;;  %v15301_v58 = vld [vmem:[#allocation23_spill] sm:$0xff]  ;;  %v15302_v29 = vld [vmem:[#allocation21_spill] sm:$0xff]  ;;  %v15304_v4 = vld [vmem:[#allocation24_spill] sm:$0xff] }
 0x14c   :  { %v6899_v15 = vpop.eup %6898  ;;  %v1134_v19 = vmul.f32 %v6897_v12, %v1049_v39  ;;  %v1140_v32 = vpack.c.bf16 %v1132_v8, %v1132_v8  ;;  %v1154_v35 = vunpack.c.l.b16 %v1138_v30  ;;  %vm15000_vm8 = vcmask 1044484   ;;  %v15303_v39 = vld [vmem:[#allocation22_spill] sm:$0xff]  ;;  %v15305_v16 = vld [vmem:[#allocation27_spill] sm:$0xff]  ;;  %v15306_v40 = vld [vmem:[#allocation25_spill] sm:$0xff] }
 0x14d   :  { %v6901_v59 = vpop.eup %6900  ;;  %v1135_v11 = vmul.f32 %v6899_v15, %v1064_v24  ;;  %v1141_v3 = vpack.c.bf16 %v1133_v43, %v1133_v43  ;;  %v1155_v31 = vunpack.c.l.b16 %v1139_v36  ;;  %vm14995_vm9 = vcmask 1045509   ;;  %v15307_v24 = vld [vmem:[#allocation26_spill] sm:$0xff]  ;;  %v15309_v8 = vld [vmem:[#allocation31_spill] sm:$0xff]  ;;  %v15310_v30 = vld [vmem:[#allocation29_spill] sm:$0xff] }
 0x14e   :  { %v1136_v63 = vmul.f32 %v6901_v59, %v1079_v22  ;;  %v1142_v57 = vpack.c.bf16 %v1134_v19, %v1134_v19  ;;  %v1156_v34 = vunpack.c.l.b16 %v1140_v32  ;;  %v1161_v61 = vrot.slane %v1154_v35, 7  ;;  %v15308_v22 = vld [vmem:[#allocation30_spill] sm:$0xff]  ;;  %v15311_v12 = vld [vmem:[#allocation28_spill] sm:$0xff]  ;;  %v15313_v36 = vld [vmem:[#allocation35_spill] sm:$0xff] }
 0x14f   :  { %v1143_v27 = vpack.c.bf16 %v1135_v11, %v1135_v11  ;;  %v1157_v47 = vunpack.c.l.b16 %v1141_v3  ;;  %v1164_v50 = vrot.slane %v1155_v31, 6  ;;  %vm14994_vm2 = vcmask 1046534   ;;  %v15312_v43 = vld [vmem:[#allocation34_spill] sm:$0xff]  ;;  %v15314_v15 = vld [vmem:[#allocation33_spill] sm:$0xff]  ;;  %v15315_v19 = vld [vmem:[#allocation32_spill] sm:$0xff] }
 0x150   :  { %v1144_v42 = vpack.c.bf16 %v1136_v63, %v1136_v63  ;;  %v1158_v60 = vunpack.c.l.b16 %v1142_v57  ;;  %v1163_v38 = vsel %vm15026_vm5, %v1161_v61, %v1153_v53  ;;  %v1167_v37 = vrot.slane %v1156_v34, 5  ;;  %v15316_v32 = vld [vmem:[#allocation41_spill] sm:$0xff]  ;;  %v15317_v35 = vld [vmem:[#allocation38_spill] sm:$0xff]  ;;  %v15319_v11 = vld [vmem:[#allocation36_spill] sm:$0xff] }
 0x151   :  { %v1159_v46 = vunpack.c.l.b16 %v1143_v27  ;;  %v1166_v49 = vsel %vm15004_vm1, %v1164_v50, %v1163_v38  ;;  %v1170_v33 = vrot.slane %v1157_v47, 4  ;;  %vm14993_vm3 = vcmask 1047559   ;;  %v15318_v59 = vld [vmem:[#allocation37_spill] sm:$0xff]  ;;  %v15320_v3 = vld [vmem:[#allocation42_spill] sm:$0xff]  ;;  %v15321_v53 = vld [vmem:[#allocation40_spill] sm:$0xff] }
 0x152   :  { %v1160_v21 = vunpack.c.l.b16 %v1144_v42  ;;  %v1169_v45 = vsel %vm15003_vm10, %v1167_v37, %v1166_v49  ;;  %v1173_v9 = vrot.slane %v1158_v60, 3  ;;  %v15322_v31 = vld [vmem:[#allocation39_spill] sm:$0xff]  ;;  %v15323_v38 = vld [vmem:[#allocation46_spill] sm:$0xff] }
 0x153   :  { %v1172_v41 = vsel %vm15000_vm8, %v1170_v33, %v1169_v45  ;;  %v1176_v55 = vrot.slane %v1159_v46, 2  ;;  %v15324_v46 = vld [vmem:[#allocation45_spill] sm:$0xff]  ;;  %v15325_v33 = vld [vmem:[#allocation43_spill] sm:$0xff]  ;;  %v15326_v45 = vld [vmem:[#allocation44_spill] sm:$0xff] }
 0x154   :  { %v1175_v25 = vsel %vm14995_vm9, %v1173_v9, %v1172_v41  ;;  %v1179_v0 = vrot.slane %v1160_v21, 1  ;;  %v15327_v41 = vld [vmem:[#allocation47_spill] sm:$0xff] }
 0x155   :  { %v1178_v48 = vsel %vm14994_vm2, %v1176_v55, %v1175_v25  ;;  %v15328_v25 = vld [vmem:[#allocation48_spill] sm:$0xff] }
 0x156   :  { %v1181_v26 = vsel %vm14993_vm3, %v1179_v0, %v1178_v48  ;;  %v15329_v48 = vld [vmem:[#allocation49_spill] sm:$0xff] }
 0x157   :  { %v1182_v54 = vpack.c.b16 %v1181_v26, %v1181_v26 }
 0x159   :  { %1192 = vmatmul.bf16.vlgmr.msra.gmra.mxu0 %v1182_v54  ;;  %1205 = vmatmul.bf16.vlgmr.msrb.gmra.mxu1 %v1182_v54 }
 0x15a   :  { %1218 = vmatmul.bf16.vlgmr.msra.gmra.mxu2 %v1182_v54  ;;  %1231 = vmatmul.bf16.vlgmr.msra.gmra.mxu3 %v1182_v54 }
 0x15b   :  { %2616 = vmatpush.bf16.msra.mxu0 %v15291_v51  ;;  %2629 = vmatpush.bf16.msrb.mxu1 %v15292_v17 }
 0x15c   :  { %2642 = vmatpush.bf16.msra.mxu2 %v15293_v18  ;;  %2655 = vmatpush.bf16.msra.mxu3 %v15294_v44 }
 0x15f   :  { %2617 = vmatpush.bf16.msra.mxu0 %v15295_v52  ;;  %2630 = vmatpush.bf16.msrb.mxu1 %v15296_v62 }
 0x160   :  { %2643 = vmatpush.bf16.msra.mxu2 %v15297_v1  ;;  %2656 = vmatpush.bf16.msra.mxu3 %v15298_v6 }
 0x163   :  { %2618 = vmatpush.bf16.msra.mxu0 %v15299_v10  ;;  %2631 = vmatpush.bf16.msrb.mxu1 %v15300_v56 }
 0x164   :  { %2644 = vmatpush.bf16.msra.mxu2 %v15301_v58  ;;  %2657 = vmatpush.bf16.msra.mxu3 %v15302_v29 }
 0x167   :  { %2619 = vmatpush.bf16.msra.mxu0 %v15303_v39  ;;  %2632 = vmatpush.bf16.msrb.mxu1 %v15304_v4 }
 0x168   :  { %2645 = vmatpush.bf16.msra.mxu2 %v15305_v16  ;;  %2658 = vmatpush.bf16.msra.mxu3 %v15306_v40 }
 0x16b   :  { %2620 = vmatpush.bf16.msra.mxu0 %v15307_v24  ;;  %2633 = vmatpush.bf16.msrb.mxu1 %v15308_v22  ;;  %v15346_v24 = vld [vmem:[#allocation61_spill] sm:$0xff] }
 0x16c   :  { %2646 = vmatpush.bf16.msra.mxu2 %v15309_v8  ;;  %2659 = vmatpush.bf16.msra.mxu3 %v15310_v30 }
 0x16f   :  { %2621 = vmatpush.bf16.msra.mxu0 %v15311_v12  ;;  %2634 = vmatpush.bf16.msrb.mxu1 %v15312_v43 }
 0x170   :  { %2647 = vmatpush.bf16.msra.mxu2 %v15313_v36  ;;  %2660 = vmatpush.bf16.msra.mxu3 %v15314_v15  ;;  %v15341_v15 = vld [vmem:[#allocation51_spill] sm:$0xff] }
 0x171   :  { %v15343_v36 = vld [vmem:[#allocation55_spill] sm:$0xff] }
 0x173   :  { %2622 = vmatpush.bf16.msra.mxu0 %v15315_v19  ;;  %2635 = vmatpush.bf16.msrb.mxu1 %v15316_v32  ;;  %v15344_v19 = vld [vmem:[#allocation57_spill] sm:$0xff] }
 0x174   :  { %2648 = vmatpush.bf16.msra.mxu2 %v15317_v35  ;;  %2661 = vmatpush.bf16.msra.mxu3 %v15318_v59 }
 0x177   :  { %2623 = vmatpush.bf16.msra.mxu0 %v15319_v11  ;;  %2636 = vmatpush.bf16.msrb.mxu1 %v15320_v3  ;;  %v15330_v11 = vld [vmem:[#allocation50_spill] sm:$0xff] }
 0x178   :  { %2649 = vmatpush.bf16.msra.mxu2 %v15321_v53  ;;  %2662 = vmatpush.bf16.msra.mxu3 %v15322_v31 }
 0x1d6   :  { %v1193_v63 = vpop.f32.mrf.mxu0  ;;  %v9119_v57 = vpop.f32.mrf.mxu1 }
 0x1d7   :  { %v1240_v34 = vrot.slane %v1193_v63, 7  ;;  %v1244_v61 = vrot.slane %v1193_v63, 1  ;;  %v1248_v27 = vrot.slane %v1193_v63, 2  ;;  %v1252_v47 = vrot.slane %v1193_v63, 3 }
 0x1d8   :  { %v1256_v50 = vrot.slane %v1193_v63, 4  ;;  %v1260_v42 = vrot.slane %v1193_v63, 5  ;;  %v1264_v60 = vrot.slane %v1193_v63, 6  ;;  %v1304_v37 = vadd.f32 %v1193_v63, %v15323_v38 }
 0x1d9   :  { %v1300_v49 = vadd.f32 %v1240_v34, %v15324_v46  ;;  %v1308_v21 = vadd.f32 %v1244_v61, %v15325_v33  ;;  %v1312_v9 = vadd.f32 %v1248_v27, %v15326_v45  ;;  %v1316_v55 = vadd.f32 %v1252_v47, %v15327_v41 }
 0x1da   :  { %v1320_v0 = vadd.f32 %v1256_v50, %v15328_v25  ;;  %v1324_v26 = vadd.f32 %v1260_v42, %v15329_v48  ;;  %v6523_v54 = vmul.f32 -1.442695, %v1304_v37  ;;  %v1328_v59 = vadd.f32 %v1264_v60, %v15330_v11  ;;  %v15331_v42 = vld [vmem:[#allocation73_spill] sm:$0xff]  ;;  %v15334_v11 = vld [vmem:[#allocation76_spill] sm:$0xff] }
 0x1db   :  { %v6522_v31 = vmul.f32 -1.442695, %v1300_v49  ;;  %v6524_v53 = vmul.f32 -1.442695, %v1308_v21  ;;  %v6525_v3 = vmul.f32 -1.442695, %v1312_v9 }
 0x1dc   :  { %6902 = vpow2.f32 %v6523_v54  ;;  %v6526_v63 = vmul.f32 -1.442695, %v1316_v55  ;;  %v6527_v34 = vmul.f32 -1.442695, %v1320_v0  ;;  %v1241_v61 = vrot.slane %v9119_v57, 7 }
 0x1dd   :  { %6904 = vpow2.f32 %v6522_v31  ;;  %v9130_v38 = vpop.f32.mrf.mxu2  ;;  %v6528_v27 = vmul.f32 -1.442695, %v1324_v26  ;;  %v6529_v49 = vmul.f32 -1.442695, %v1328_v59  ;;  %v1245_v60 = vrot.slane %v9119_v57, 1 }
 0x1de   :  { %6906 = vpow2.f32 %v6524_v53  ;;  %v1195_v47 = vpop.f32.mrf.mxu0  ;;  %v1208_v50 = vpop.f32.mrf.mxu1  ;;  %v1301_v37 = vadd.f32 %v1241_v61, %v15331_v42  ;;  %v1249_v0 = vrot.slane %v9119_v57, 2  ;;  %v1257_v59 = vrot.slane %v9119_v57, 4 }
 0x1df   :  { %6908 = vpow2.f32 %v6525_v3  ;;  %v1253_v3 = vrot.slane %v9119_v57, 3 }
 0x1e0   :  { %6910 = vpow2.f32 %v6526_v63  ;;  %v6530_v31 = vmul.f32 -1.442695, %v1301_v37  ;;  %v1261_v37 = vrot.slane %v9119_v57, 5 }
 0x1e1   :  { %6912 = vpow2.f32 %v6527_v34  ;;  %v15332_v34 = vld [vmem:[#allocation74_spill] sm:$0xff] }
 0x1e2   :  { %v6903_v21 = vpop.eup %6902  ;;  %6914 = vpow2.f32 %v6528_v27  ;;  %v1305_v61 = vadd.f32 %v9119_v57, %v15332_v34  ;;  %v1313_v34 = vadd.f32 %v1249_v0, %v15334_v11 }
 0x1e3   :  { %v6905_v9 = vpop.eup %6904  ;;  %v9134_v55 = vadd.f32 1.0, %v6903_v21  ;;  %6916 = vpow2.f32 %v6529_v49  ;;  %v15333_v49 = vld [vmem:[#allocation75_spill] sm:$0xff] }
 0x1e4   :  { %v6907_v53 = vpop.eup %6906  ;;  %v9137_v26 = vadd.f32 1.0, %v6905_v9  ;;  %6918 = vpow2.f32 %v6530_v31  ;;  %v1309_v21 = vadd.f32 %v1245_v60, %v15333_v49  ;;  %v15337_v60 = vld [vmem:[#allocation78_spill] sm:$0xff]  ;;  %v6531_v49 = vmul.f32 -1.442695, %v1305_v61 }
 0x1e5   :  { %v6909_v54 = vpop.eup %6908  ;;  %v9140_v63 = vadd.f32 1.0, %v6907_v53  ;;  %v1221_v27 = vpop.f32.mrf.mxu2  ;;  %v1265_v53 = vrot.slane %v9119_v57, 6  ;;  %v15338_v57 = vld [vmem:[#allocation79_spill] sm:$0xff]  ;;  %v6533_v33 = vmul.f32 -1.442695, %v1313_v34  ;;  %vm1384_vm14 = vweird.f32 %v9134_v55 }
 0x1e6   :  { %v6911_v47 = vpop.eup %6910  ;;  %v9145_v50 = vadd.f32 1.0, %v6909_v54  ;;  %6920 = vrcp.f32 %v9137_v26  ;;  %v15336_v54 = vld [vmem:[#allocation77_spill] sm:$0xff]  ;;  %v1325_v45 = vadd.f32 %v1261_v37, %v15338_v57  ;;  %v6532_v0 = vmul.f32 -1.442695, %v1309_v21 }
 0x1e7   :  { %v6913_v9 = vpop.eup %6912  ;;  %v9150_v42 = vadd.f32 1.0, %v6911_v47  ;;  %6922 = vrcp.f32 %v9134_v55  ;;  %v1317_v48 = vadd.f32 %v1253_v3, %v15336_v54  ;;  %v1321_v47 = vadd.f32 %v1257_v59, %v15337_v60 }
 0x1e8   :  { %v6915_v31 = vpop.eup %6914  ;;  %v9155_v27 = vadd.f32 1.0, %v6913_v9  ;;  %6924 = vrcp.f32 %v9140_v63  ;;  %v15339_v9 = vld [vmem:[#allocation67_spill] sm:$0xff]  ;;  %v6536_v57 = vmul.f32 -1.442695, %v1325_v45  ;;  %v1242_v60 = vrot.slane %v9130_v38, 7 }
 0x1e9   :  { %v9159_v25 = vadd.f32 1.0, %v6915_v31  ;;  %6926 = vrcp.f32 %v9145_v50  ;;  %v6917_v41 = vpop.eup %6916  ;;  %v1329_v46 = vadd.f32 %v1265_v53, %v15339_v9  ;;  %v6534_v31 = vmul.f32 -1.442695, %v1317_v48 }
 0x1ea   :  { %15335 = vst [vmem:[#allocation82_spill] sm:$0xff] %v9155_v27  ;;  %6928 = vrcp.f32 %v9150_v42  ;;  %v6919_v11 = vpop.eup %6918  ;;  %v6535_v37 = vmul.f32 -1.442695, %v1321_v47  ;;  %v1246_v59 = vrot.slane %v9130_v38, 1  ;;  %v1250_v47 = vrot.slane %v9130_v38, 2 }
 0x1eb   :  { %6930 = vrcp.f32 %v9155_v27  ;;  %v6537_v48 = vmul.f32 -1.442695, %v1329_v46  ;;  %v9191_v53 = vadd.f32 1.0, %v6917_v41  ;;  %v1254_v46 = vrot.slane %v9130_v38, 3 }
 0x1ec   :  { %v9167_v3 = vpop.eup %6920  ;;  %6932 = vrcp.f32 %v9159_v25  ;;  %v9202_v41 = vadd.f32 %v1242_v60, %v15341_v15  ;;  %v9209_v43 = vadd.f32 %v1246_v59, %v15343_v36  ;;  %vm1369_vm4 = vweird.f32 %v9137_v26 }
 0x1ed   :  { %v9170_v54 = vpop.eup %6922  ;;  %v1365_v61 = vmul.f32 %v9167_v3, %v9137_v26  ;;  %6934 = vpow2.f32 %v6531_v49  ;;  %v9185_v49 = vadd.f32 1.0, %v6919_v11  ;;  %15340 = vst [vmem:[#allocation80_spill] sm:$0xff] %v9191_v53  ;;  %v1258_v11 = vrot.slane %v9130_v38, 4 }
 0x1ee   :  { %v9175_v21 = vpop.eup %6924  ;;  %6936 = vpow2.f32 %v6532_v0  ;;  %vm1370_vm6 = vweird.f32 %v9167_v3  ;;  %v1375_v56 = vand.u32 2147483648, %v9137_v26  ;;  %vm1385_vm13 = vweird.f32 %v9170_v54 }
 0x1ef   :  { %v9179_v9 = vpop.eup %6926  ;;  %6938 = vpow2.f32 %v6533_v33  ;;  %v1366_v34 = vsub.f32 1.0, %v1365_v61  ;;  %v9194_v33 = vpop.f32.mrf.mxu3  ;;  %v15342_v61 = vld [vmem:[#allocation53_spill] sm:$0xff]  ;;  %vm9282_vm7 = vmor %vm1369_vm4, %vm1370_vm6  ;;  %vm1521_vm15 = vweird.f32 %v9185_v49  ;;  %vm1400_vm3 = vweird.f32 %v9175_v21 }
 0x1f0   :  { %v9183_v35 = vpop.eup %6928  ;;  %6940 = vpow2.f32 %v6534_v31  ;;  %v1262_v31 = vrot.slane %v9130_v38, 5  ;;  %v9237_v40 = vmul.f32 %v9179_v9, %v9145_v50  ;;  %vm1399_vm9 = vweird.f32 %v9140_v63 }
 0x1f1   :  { %v9189_v0 = vpop.eup %6930  ;;  %6942 = vpow2.f32 %v6535_v37  ;;  %v9206_v37 = vadd.f32 %v9130_v38, %v15342_v61  ;;  %v1527_v61 = vand.u32 2147483648, %v9185_v49  ;;  %v1367_v59 = vmul.f32 %v9167_v3, %v1366_v34  ;;  %v15347_v34 = vld [vmem:[#allocation63_spill] sm:$0xff] }
 0x1f2   :  { %v9196_v32 = vpop.eup %6932  ;;  %6944 = vpow2.f32 %v6536_v57  ;;  %v1380_v57 = vmul.f32 %v9170_v54, %v9134_v55  ;;  %v9266_v6 = vmul.f32 %v9189_v0, %v9155_v27  ;;  %vm1414_vm8 = vweird.f32 %v9145_v50 }
 0x1f3   :  { %v6935_v45 = vpop.eup %6934  ;;  %6946 = vpow2.f32 %v6537_v48  ;;  %v9217_v48 = vadd.f32 %v1250_v47, %v15344_v19  ;;  %v9231_v47 = vadd.f32 %v1258_v11, %v15346_v24  ;;  %v9249_v24 = vor.u32 1.1754944e-38, %v1527_v61 }
 0x1f4   :  { %v6937_v12 = vpop.eup %6936  ;;  %v9213_v30 = vadd.f32 1.0, %v6935_v45  ;;  %6948 = vrcp.f32 %v9185_v49  ;;  %v15345_v45 = vld [vmem:[#allocation59_spill] sm:$0xff]  ;;  %v1381_v4 = vsub.f32 1.0, %v1380_v57 }
 0x1f5   :  { %v6939_v60 = vpop.eup %6938  ;;  %6950 = vrcp.f32 %v9191_v53  ;;  %v9220_v15 = vadd.f32 1.0, %v6937_v12  ;;  %v9228_v22 = vadd.f32 %v1254_v46, %v15345_v45  ;;  %v1395_v12 = vmul.f32 %v9175_v21, %v9140_v63 }
 0x1f6   :  { %v6941_v36 = vpop.eup %6940  ;;  %v9224_v8 = vadd.f32 1.0, %v6939_v60  ;;  %6952 = vrcp.f32 %v9213_v30  ;;  %v9241_v60 = vadd.f32 %v1262_v31, %v15347_v34  ;;  %v9245_v46 = vmul.f32 %v9183_v35, %v9150_v42 }
 0x1f7   :  { %v6943_v19 = vpop.eup %6942  ;;  %6954 = vrcp.f32 %v9220_v15  ;;  %v1368_v45 = vadd.f32 %v9167_v3, %v1367_v59  ;;  %v1373_v31 = vand.u32 2147483647, %v9137_v26  ;;  %v1234_v34 = vpop.f32.mrf.mxu3  ;;  %v9256_v57 = vadd.f32 1.0, %v6941_v36 }
 0x1f8   :  { %v6945_v16 = vpop.eup %6944  ;;  %6956 = vrcp.f32 %v9224_v8  ;;  %v1542_v29 = vand.u32 2147483648, %v9213_v30  ;;  %v1557_v58 = vand.u32 2147483648, %v9220_v15  ;;  %v1396_v61 = vsub.f32 1.0, %v1395_v12 }
 0x1f9   :  { %v6947_v11 = vpop.eup %6946  ;;  %v1411_v59 = vsub.f32 1.0, %v9237_v40  ;;  %v9268_v34 = vadd.f32 1.0, %v6943_v19  ;;  %v1426_v36 = vsub.f32 1.0, %v9245_v46  ;;  %v9273_v62 = vadd.f32 1.0, %v6945_v16 }
 0x1fa   :  { %v9254_v39 = vpop.eup %6948  ;;  %v1572_v44 = vand.u32 2147483648, %v9224_v8  ;;  %v9288_v12 = vadd.f32 1.0, %v6947_v11  ;;  %v1372_v16 = vsel %vm9282_vm7, %v9167_v3, %v1368_v45  ;;  %vm9293_vm11 = vcmp.eq.f32.partialorder %v1373_v31, 8.507059e+37 }
 0x1fb   :  { %v9261_v10 = vpop.eup %6950  ;;  %15349 = vst [vmem:[#allocation68_spill] sm:$0xff] %v9273_v62  ;;  %v1517_v52 = vmul.f32 %v9254_v39, %v9185_v49  ;;  %v1382_v18 = vmul.f32 %v9170_v54, %v1381_v4  ;;  %v9300_v26 = vor.u32 1.1754944e-38, %v1542_v29  ;;  %v9302_v51 = vor.u32 1.1754944e-38, %v1557_v58 }
 0x1fc   :  { %15348 = vst [vmem:[#allocation81_spill] sm:$0xff] %v9261_v10  ;;  %v9270_v1 = vpop.eup %6952  ;;  %6958 = vrcp.f32 %v9256_v57  ;;  %v1376_v11 = vor.u32 1.1754944e-38, %v1375_v56  ;;  %vm1522_vm12 = vweird.f32 %v9254_v39  ;;  %v9313_v29 = vor.u32 1.1754944e-38, %v1572_v44 }
 0x1fd   :  { %v9286_v19 = vpop.eup %6954  ;;  %15352 = vst [vmem:[#allocation69_spill] sm:$0xff] %v9288_v12  ;;  %v1532_v10 = vmul.f32 %v9270_v1, %v9213_v30  ;;  %6960 = vrcp.f32 %v9268_v34  ;;  %v1518_v4 = vsub.f32 1.0, %v1517_v52  ;;  %v1383_v56 = vadd.f32 %v9170_v54, %v1382_v18 }
 0x1fe   :  { %v9298_v17 = vpop.eup %6956  ;;  %v1547_v3 = vmul.f32 %v9286_v19, %v9220_v15  ;;  %6962 = vrcp.f32 %v9273_v62  ;;  %v1397_v58 = vmul.f32 %v9175_v21, %v1396_v61  ;;  %v9323_v31 = vsel %vm9293_vm11, %v1376_v11, %v1372_v16  ;;  %vm9337_vm11 = vmor %vm1384_vm14, %vm1385_vm13 }
 0x1ff   :  { %v1562_v45 = vmul.f32 %v9298_v17, %v9224_v8  ;;  %6964 = vrcp.f32 %v9288_v12  ;;  %v1388_v44 = vand.u32 2147483647, %v9134_v55  ;;  %v1390_v52 = vand.u32 2147483648, %v9134_v55 }
 0x200   :  { %v1533_v40 = vsub.f32 1.0, %v1532_v10  ;;  %vm1536_vm0 = vweird.f32 %v9213_v30  ;;  %vm1537_vm4 = vweird.f32 %v9270_v1  ;;  %v1548_v18 = vsub.f32 1.0, %v1547_v3 }
 0x201   :  { %v1563_v12 = vsub.f32 1.0, %v1562_v45  ;;  %v1519_v62 = vmul.f32 %v9254_v39, %v1518_v4  ;;  %vm1551_vm6 = vweird.f32 %v9220_v15  ;;  %vm1552_vm7 = vweird.f32 %v9286_v19  ;;  %vm1538_vm10 = vmor %vm1536_vm0, %vm1537_vm4 }
 0x202   :  { %v9330_v61 = vpop.eup %6958  ;;  %v9342_v10 = vadd.f32 %v9175_v21, %v1397_v58  ;;  %vm1567_vm2 = vweird.f32 %v9298_v17  ;;  %v1387_v46 = vsel %vm9337_vm11, %v9170_v54, %v1383_v56  ;;  %v1405_v11 = vand.u32 2147483648, %v9140_v63  ;;  %vm9365_vm11 = vmor %vm1399_vm9, %vm1400_vm3 }
 0x203   :  { %v9345_v55 = vpop.eup %6960  ;;  %v1412_v3 = vmul.f32 %v9179_v9, %v1411_v59  ;;  %vm1566_vm13 = vweird.f32 %v9224_v8  ;;  %vm1389_vm14 = vcmp.eq.f32.partialorder %v1388_v44, 8.507059e+37  ;;  %v1391_v4 = vor.u32 1.1754944e-38, %v1390_v52 }
 0x204   :  { %v9353_v45 = vpop.eup %6962  ;;  %v1420_v58 = vand.u32 2147483648, %v9145_v50  ;;  %v1534_v27 = vmul.f32 %v9270_v1, %v1533_v40  ;;  %v1549_v54 = vmul.f32 %v9286_v19, %v1548_v18  ;;  %v1564_v56 = vmul.f32 %v9298_v17, %v1563_v12  ;;  %vm9418_vm4 = vmor %vm1566_vm13, %vm1567_vm2 }
 0x205   :  { %15357 = vst [vmem:[#allocation70_spill] sm:$0xff] %v9353_v45  ;;  %v9358_v53 = vpop.eup %6964  ;;  %v1427_v44 = vmul.f32 %v9183_v35, %v1426_v36  ;;  %v9370_v52 = vsel %vm1389_vm14, %v1391_v4, %v1387_v46  ;;  %v1402_v16 = vsel %vm9365_vm11, %v9175_v21, %v9342_v10  ;;  %v1403_v40 = vand.u32 2147483647, %v9140_v63  ;;  %vm1523_vm14 = vmor %vm1521_vm15, %vm1522_vm12 }
 0x206   :  { %15358 = vst [vmem:[#allocation71_spill] sm:$0xff] %v9358_v53  ;;  %v1406_v12 = vor.u32 1.1754944e-38, %v1405_v11  ;;  %v1413_v18 = vadd.f32 %v9179_v9, %v1412_v3  ;;  %vm1415_vm9 = vweird.f32 %v9179_v9  ;;  %v1418_v53 = vand.u32 2147483647, %v9145_v50  ;;  %vm1553_vm15 = vmor %vm1551_vm6, %vm1552_vm7 }
 0x207   :  { %v1421_v45 = vor.u32 1.1754944e-38, %v1420_v58  ;;  %vm1429_vm3 = vweird.f32 %v9150_v42  ;;  %v1520_v36 = vadd.f32 %v9254_v39, %v1519_v62  ;;  %v1525_v46 = vand.u32 2147483647, %v9185_v49  ;;  %vm9437_vm2 = vmor %vm1414_vm8, %vm1415_vm9  ;;  %v15376_v62 = vld [vmem:[#allocation58_spill] sm:$0xff] }
 0x208   :  { %v1428_v63 = vadd.f32 %v9183_v35, %v1427_v44  ;;  %vm1430_vm11 = vweird.f32 %v9183_v35  ;;  %v1535_v21 = vadd.f32 %v9270_v1, %v1534_v27  ;;  %v1540_v10 = vand.u32 2147483647, %v9213_v30 }
 0x209   :  { %vm9396_vm1 = vcmp.eq.f32.partialorder %v1403_v40, 8.507059e+37  ;;  %v1433_v49 = vand.u32 2147483647, %v9150_v42  ;;  %v1524_v11 = vsel %vm1523_vm14, %v9254_v39, %v1520_v36  ;;  %vm1526_vm12 = vcmp.eq.f32.partialorder %v1525_v46, 8.507059e+37  ;;  %vm9452_vm8 = vmor %vm1429_vm3, %vm1430_vm11 }
 0x20a   :  { %v1550_v3 = vadd.f32 %v9286_v19, %v1549_v54  ;;  %v1529_v27 = vsel %vm1526_vm12, %v9249_v24, %v1524_v11  ;;  %v1539_v30 = vsel %vm1538_vm10, %v9270_v1, %v1535_v21  ;;  %vm1541_vm0 = vcmp.eq.f32.partialorder %v1540_v10, 8.507059e+37 }
 0x20b   :  { %v1555_v4 = vand.u32 2147483647, %v9220_v15  ;;  %v1435_v58 = vand.u32 2147483648, %v9150_v42  ;;  %v1544_v59 = vsel %vm1541_vm0, %v9300_v26, %v1539_v30  ;;  %v1565_v54 = vadd.f32 %v9298_v17, %v1564_v56 }
 0x20c   :  { %v1554_v39 = vsel %vm1553_vm15, %v9286_v19, %v1550_v3  ;;  %v1570_v1 = vand.u32 2147483647, %v9224_v8  ;;  %6966 = vtanh.f32 %v9202_v41  ;;  %v15365_v24 = vrot.slane %v8973_v2, 7  ;;  %v15375_v3 = vld [vmem:[#allocation56_spill] sm:$0xff] }
 0x20d   :  { %vm1556_vm10 = vcmp.eq.f32.partialorder %v1555_v4, 8.507059e+37  ;;  %v1569_v26 = vsel %vm9418_vm4, %v9298_v17, %v1565_v54  ;;  %6968 = vtanh.f32 %v9206_v37  ;;  %v15366_v56 = vrot.slane %v8976_v7, 7 }
 0x20e   :  { %v1820_v15 = vmul.f32 %v15365_v24, %v1529_v27  ;;  %v1559_v19 = vsel %vm1556_vm10, %v9302_v51, %v1554_v39  ;;  %vm1571_vm6 = vcmp.eq.f32.partialorder %v1570_v1, 8.507059e+37  ;;  %6970 = vtanh.f32 %v9209_v43  ;;  %v15377_v39 = vld [vmem:[#allocation60_spill] sm:$0xff] }
 0x20f   :  { %v1821_v40 = vmul.f32 %v15366_v56, %v1544_v59  ;;  %v15369_v2 = vrot.slane %v8979_v5, 7  ;;  %v1243_v17 = vrot.slane %v9194_v33, 7  ;;  %v1417_v7 = vsel %vm9437_vm2, %v9179_v9, %v1413_v18  ;;  %v15378_v56 = vld [vmem:[#allocation62_spill] sm:$0xff] }
 0x210   :  { %v1574_v41 = vsel %vm1571_vm6, %v9313_v29, %v1569_v26  ;;  %6972 = vtanh.f32 %v9217_v48  ;;  %v1247_v5 = vrot.slane %v9194_v33, 1  ;;  %v1432_v43 = vsel %vm9452_vm8, %v9183_v35, %v1428_v63  ;;  %v15373_v29 = vld [vmem:[#allocation52_spill] sm:$0xff]  ;;  %v15374_v35 = vld [vmem:[#allocation54_spill] sm:$0xff] }
 0x211   :  { %v1822_v51 = vmul.f32 %v15369_v2, %v1559_v19  ;;  %6974 = vtanh.f32 %v9228_v22  ;;  %v15372_v9 = vrot.slane %v8983_v23, 7  ;;  %v1251_v42 = vrot.slane %v9194_v33, 2 }
 0x212   :  { %vm1419_vm7 = vcmp.eq.f32.partialorder %v1418_v53, 8.507059e+37  ;;  %v1436_v18 = vor.u32 1.1754944e-38, %v1435_v58  ;;  %v1255_v36 = vrot.slane %v9194_v33, 3  ;;  %v1303_v46 = vadd.f32 %v1243_v17, %v15373_v29  ;;  %v6967_v48 = vpop.eup %6966  ;;  %v15379_v17 = vld [vmem:[#allocation64_spill] sm:$0xff] }
 0x213   :  { %v1823_v37 = vmul.f32 %v15372_v9, %v1574_v41  ;;  %v1407_v21 = vsel %vm9396_vm1, %v1406_v12, %v1402_v16  ;;  %v1422_v10 = vsel %vm1419_vm7, %v1421_v45, %v1417_v7  ;;  %vm1434_vm13 = vcmp.eq.f32.partialorder %v1433_v49, 8.507059e+37  ;;  %v6969_v63 = vpop.eup %6968  ;;  %v15382_v9 = vld [vmem:[#allocation66_spill] sm:$0xff] }
 0x214   :  { %v1307_v22 = vadd.f32 %v9194_v33, %v15374_v35  ;;  %v1437_v23 = vsel %vm1434_vm13, %v1436_v18, %v1432_v43  ;;  %v1828_v11 = vmul.f32 %v6967_v48, %v9323_v31  ;;  %v1259_v53 = vrot.slane %v9194_v33, 4  ;;  %v6971_v30 = vpop.eup %6970 }
 0x215   :  { %v1311_v27 = vadd.f32 %v1247_v5, %v15375_v3  ;;  %v1829_v4 = vmul.f32 %v6969_v63, %v9370_v52  ;;  %v1263_v58 = vrot.slane %v9194_v33, 5  ;;  %v1315_v16 = vadd.f32 %v1251_v42, %v15376_v62  ;;  %v15380_v5 = vld [vmem:[#allocation65_spill] sm:$0xff] }
 0x216   :  { %v6538_v45 = vmul.f32 -1.442695, %v1303_v46  ;;  %v6973_v12 = vpop.eup %6972  ;;  %v1830_v49 = vmul.f32 %v6971_v30, %v1407_v21  ;;  %v9478_v59 = vadd.f32 %v1828_v11, %v1820_v15  ;;  %v1319_v54 = vadd.f32 %v1255_v36, %v15377_v39 }
 0x217   :  { %v6539_v44 = vmul.f32 -1.442695, %v1307_v22  ;;  %v6975_v31 = vpop.eup %6974  ;;  %v1831_v1 = vmul.f32 %v6973_v12, %v1422_v10  ;;  %v9481_v24 = vadd.f32 %v1829_v4, %v1821_v40  ;;  %v1267_v19 = vrot.slane %v9194_v33, 6  ;;  %v15383_v4 = vld [vmem:[#allocation82_spill] sm:$0xff]  ;;  %v15400_v10 = vld [vmem:[#allocation69_spill] sm:$0xff] }
 0x218   :  { %6976 = vpow2.f32 %v6538_v45  ;;  %v9484_v52 = vmul.f32 %v6975_v31, %v1437_v23  ;;  %v9486_v26 = vadd.f32 %v1830_v49, %v1822_v51  ;;  %v1323_v8 = vadd.f32 %v1259_v53, %v15378_v56  ;;  %v15385_v45 = vld [vmem:[#allocation81_spill] sm:$0xff] }
 0x219   :  { %v6540_v2 = vmul.f32 -1.442695, %v1311_v27  ;;  %6978 = vtanh.f32 %v9231_v47  ;;  %v9490_v15 = vadd.f32 %v1831_v1, %v1823_v37  ;;  %v1327_v7 = vadd.f32 %v1263_v58, %v15379_v17 }
 0x21a   :  { %v6541_v50 = vmul.f32 -1.442695, %v1315_v16  ;;  %v1441_v40 = vsub.f32 1.0, %v9266_v6  ;;  %v1455_v33 = vmul.f32 %v9196_v32, %v9159_v25  ;;  %6980 = vpow2.f32 %v6539_v44  ;;  %v15384_v16 = vld [vmem:[#allocation80_spill] sm:$0xff] }
 0x21b   :  { %v6542_v41 = vmul.f32 -1.442695, %v1319_v54  ;;  %v15381_v51 = vrot.slane %v9130_v38, 6  ;;  %6982 = vtanh.f32 %v9241_v60  ;;  %v1577_v47 = vmul.f32 %v9330_v61, %v9256_v57  ;;  %v15401_v60 = vld [vmem:[#allocation71_spill] sm:$0xff] }
 0x21c   :  { %v1331_v37 = vadd.f32 %v1267_v19, %v15382_v9  ;;  %6984 = vpow2.f32 %v6540_v2  ;;  %v6543_v42 = vmul.f32 -1.442695, %v1323_v8  ;;  %v6544_v36 = vmul.f32 -1.442695, %v1327_v7  ;;  %v15386_v19 = vld [vmem:[#allocation68_spill] sm:$0xff]  ;;  %v15387_v8 = vld [vmem:[#allocation70_spill] sm:$0xff] }
 0x21d   :  { %v1330_v43 = vadd.f32 %v15381_v51, %v15380_v5  ;;  %6986 = vpow2.f32 %v6541_v50  ;;  %v1456_v48 = vsub.f32 1.0, %v1455_v33  ;;  %v1442_v38 = vmul.f32 %v9189_v0, %v1441_v40 }
 0x21e   :  { %v6977_v18 = vpop.eup %6976  ;;  %6988 = vpow2.f32 %v6542_v41  ;;  %v1578_v23 = vsub.f32 1.0, %v1577_v47  ;;  %v9514_v11 = vmul.f32 %v9345_v55, %v9268_v34  ;;  %v6545_v53 = vmul.f32 -1.442695, %v1331_v37 }
 0x21f   :  { %v9506_v21 = vpop.eup %6978  ;;  %6990 = vtanh.f32 %v1330_v43  ;;  %v9510_v22 = vadd.f32 1.0, %v6977_v18  ;;  %v1450_v58 = vand.u32 2147483648, %v15383_v4  ;;  %v1470_v12 = vmul.f32 %v15385_v45, %v15384_v16 }
 0x220   :  { %v6981_v63 = vpop.eup %6980  ;;  %6992 = vpow2.f32 %v6543_v42  ;;  %v1443_v54 = vadd.f32 %v9189_v0, %v1442_v38  ;;  %vm1445_vm1 = vweird.f32 %v9189_v0  ;;  %v1457_v44 = vmul.f32 %v9196_v32, %v1456_v48 }
 0x221   :  { %v9516_v27 = vpop.eup %6982  ;;  %6994 = vpow2.f32 %v6544_v36  ;;  %v9518_v30 = vadd.f32 1.0, %v6981_v63  ;;  %v1587_v1 = vand.u32 2147483648, %v9256_v57  ;;  %v1607_v2 = vmul.f32 %v15387_v8, %v15386_v19 }
 0x222   :  { %v6985_v49 = vpop.eup %6984  ;;  %6996 = vtanh.f32 %v9478_v59  ;;  %v1471_v7 = vsub.f32 1.0, %v1470_v12  ;;  %v1593_v40 = vsub.f32 1.0, %v9514_v11  ;;  %vm1444_vm9 = vweird.f32 %v15383_v4 }
 0x223   :  { %v6987_v31 = vpop.eup %6986  ;;  %6998 = vrcp.f32 %v9510_v22  ;;  %v1448_v33 = vand.u32 2147483647, %v15383_v4  ;;  %v1579_v51 = vmul.f32 %v9330_v61, %v1578_v23  ;;  %v9537_v43 = vadd.f32 1.0, %v6985_v49  ;;  %vm9542_vm3 = vmor %vm1444_vm9, %vm1445_vm1 }
 0x224   :  { %v6989_v50 = vpop.eup %6988  ;;  %7000 = vpow2.f32 %v6545_v53  ;;  %v1451_v37 = vor.u32 1.1754944e-38, %v1450_v58  ;;  %vm1581_vm14 = vweird.f32 %v9256_v57  ;;  %v9547_v18 = vadd.f32 1.0, %v6987_v31 }
 0x225   :  { %v9534_v41 = vpop.eup %6990  ;;  %7002 = vrcp.f32 %v9518_v30  ;;  %v1447_v36 = vsel %vm9542_vm3, %v9189_v0, %v1443_v54  ;;  %v9553_v48 = vadd.f32 %v9196_v32, %v1457_v44  ;;  %vm1460_vm11 = vweird.f32 %v9196_v32 }
 0x226   :  { %v6993_v42 = vpop.eup %6992  ;;  %v9556_v63 = vadd.f32 1.0, %v6989_v50  ;;  %v1463_v23 = vand.u32 2147483647, %v9159_v25  ;;  %v1465_v11 = vand.u32 2147483648, %v9159_v25  ;;  %v1472_v53 = vmul.f32 %v15385_v45, %v1471_v7 }
 0x227   :  { %v6995_v38 = vpop.eup %6994  ;;  %v1608_v58 = vsub.f32 1.0, %v1607_v2  ;;  %7004 = vtanh.f32 %v9481_v24  ;;  %vm1449_vm12 = vcmp.eq.f32.partialorder %v1448_v33, 8.507059e+37  ;;  %vm1459_vm15 = vweird.f32 %v9159_v25 }
 0x228   :  { %v9561_v4 = vpop.eup %6996  ;;  %v9567_v12 = vadd.f32 1.0, %v6993_v42  ;;  %7006 = vrcp.f32 %v9537_v43  ;;  %v9570_v49 = vsel %vm1449_vm12, %v1451_v37, %v1447_v36  ;;  %vm9574_vm0 = vmor %vm1459_vm15, %vm1460_vm11  ;;  %v1478_v44 = vand.u32 2147483647, %v15384_v16 }
 0x229   :  { %v9565_v0 = vpop.eup %6998  ;;  %v9579_v2 = vadd.f32 1.0, %v6995_v38  ;;  %7008 = vrcp.f32 %v9547_v18  ;;  %v1462_v25 = vsel %vm9574_vm0, %v9196_v32, %v9553_v48  ;;  %v1480_v7 = vand.u32 2147483648, %v15384_v16 }
 0x22a   :  { %v7001_v31 = vpop.eup %7000  ;;  %7010 = vrcp.f32 %v9556_v63  ;;  %vm9590_vm4 = vcmp.eq.f32.partialorder %v1463_v23, 8.507059e+37  ;;  %v1466_v47 = vor.u32 1.1754944e-38, %v1465_v11  ;;  %v1473_v37 = vadd.f32 %v15385_v45, %v1472_v53 }
 0x22b   :  { %v9587_v50 = vpop.eup %7002  ;;  %vm1475_vm10 = vweird.f32 %v15385_v45  ;;  %v1677_v42 = vmul.f32 %v9565_v0, %v9510_v22  ;;  %v1580_v32 = vadd.f32 %v9330_v61, %v1579_v51  ;;  %vm1582_vm2 = vweird.f32 %v9330_v61 }
 0x22c   :  { %v1594_v36 = vmul.f32 %v9345_v55, %v1593_v40  ;;  %7012 = vrcp.f32 %v9567_v12  ;;  %vm1474_vm6 = vweird.f32 %v15384_v16  ;;  %vm9603_vm8 = vcmp.eq.f32.partialorder %v1478_v44, 8.507059e+37  ;;  %vm9626_vm13 = vmor %vm1581_vm14, %vm1582_vm2 }
 0x22d   :  { %v1609_v38 = vmul.f32 %v15387_v8, %v1608_v58  ;;  %v9608_v23 = vpop.eup %7004  ;;  %v9610_v11 = vadd.f32 1.0, %v7001_v31  ;;  %v1692_v51 = vmul.f32 %v9587_v50, %v9518_v30  ;;  %7014 = vrcp.f32 %v9579_v2  ;;  %vm9615_vm7 = vmor %vm1474_vm6, %vm1475_vm10 }
 0x22e   :  { %v1481_v16 = vor.u32 1.1754944e-38, %v1480_v7  ;;  %v9619_v53 = vpop.eup %7006  ;;  %v1477_v58 = vsel %vm9615_vm7, %v15385_v45, %v1473_v37  ;;  %v1585_v44 = vand.u32 2147483647, %v9256_v57  ;;  %v1588_v31 = vor.u32 1.1754944e-38, %v1587_v1 }
 0x22f   :  { %v1622_v7 = vmul.f32 %v15401_v60, %v15400_v10  ;;  %v9635_v46 = vpop.eup %7008  ;;  %v1678_v6 = vsub.f32 1.0, %v1677_v42  ;;  %v1584_v45 = vsel %vm9626_vm13, %v9330_v61, %v1580_v32  ;;  %v1595_v37 = vadd.f32 %v9345_v55, %v1594_v36 }
 0x230   :  { %vm1597_vm1 = vweird.f32 %v9345_v55  ;;  %v9642_v40 = vpop.eup %7010  ;;  %vm1596_vm9 = vweird.f32 %v9268_v34  ;;  %v1600_v57 = vand.u32 2147483647, %v9268_v34  ;;  %v1610_v1 = vadd.f32 %v15387_v8, %v1609_v38 }
 0x231   :  { %vm1612_vm3 = vweird.f32 %v15387_v8  ;;  %v1693_v9 = vsub.f32 1.0, %v1692_v51  ;;  %v1602_v42 = vand.u32 2147483648, %v9268_v34  ;;  %v1617_v54 = vand.u32 2147483648, %v15386_v19  ;;  %vm9654_vm11 = vmor %vm1596_vm9, %vm1597_vm1 }
 0x232   :  { %v1623_v61 = vsub.f32 1.0, %v1622_v7  ;;  %v9650_v32 = vpop.eup %7012  ;;  %v1707_v36 = vmul.f32 %v9619_v53, %v9537_v43  ;;  %vm1586_vm14 = vcmp.eq.f32.partialorder %v1585_v44, 8.507059e+37  ;;  %vm1611_vm12 = vweird.f32 %v15386_v19 }
 0x233   :  { %v1615_v38 = vand.u32 2147483647, %v15386_v19  ;;  %v9660_v51 = vpop.eup %7014  ;;  %7016 = vrcp.f32 %v9610_v11  ;;  %v9665_v34 = vsel %vm9590_vm4, %v1466_v47, %v1462_v25  ;;  %v9669_v7 = vsel %vm9603_vm8, %v1481_v16, %v1477_v58  ;;  %vm1613_vm15 = vmor %vm1611_vm12, %vm1612_vm3 }
 0x234   :  { %v9671_v44 = vsel %vm1586_vm14, %v1588_v31, %v1584_v45  ;;  %v1599_v19 = vsel %vm9654_vm11, %v9345_v55, %v1595_v37  ;;  %vm1601_vm0 = vcmp.eq.f32.partialorder %v1600_v57, 8.507059e+37  ;;  %v1614_v56 = vsel %vm1613_vm15, %v15387_v8, %v1610_v1 }
 0x235   :  { %v1679_v33 = vmul.f32 %v9565_v0, %v1678_v6  ;;  %v1603_v25 = vor.u32 1.1754944e-38, %v1602_v42  ;;  %v1618_v47 = vor.u32 1.1754944e-38, %v1617_v54  ;;  %v1624_v48 = vmul.f32 %v15401_v60, %v1623_v61 }
 0x236   :  { %v1694_v16 = vmul.f32 %v9587_v50, %v1693_v9  ;;  %vm1616_vm4 = vcmp.eq.f32.partialorder %v1615_v38, 8.507059e+37  ;;  %vm1626_vm10 = vweird.f32 %v15400_v10  ;;  %v1630_v58 = vand.u32 2147483647, %v15400_v10 }
 0x237   :  { %v1708_v31 = vsub.f32 1.0, %v1707_v36  ;;  %v9684_v45 = vsel %vm1601_vm0, %v1603_v25, %v1599_v19  ;;  %v9686_v55 = vsel %vm1616_vm4, %v1618_v47, %v1614_v56  ;;  %vm1627_vm2 = vweird.f32 %v15401_v60 }
 0x238   :  { %v1632_v17 = vand.u32 2147483648, %v15400_v10  ;;  %v1680_v6 = vadd.f32 %v9565_v0, %v1679_v33  ;;  %vm1682_vm6 = vweird.f32 %v9565_v0  ;;  %v1685_v9 = vand.u32 2147483647, %v9510_v22  ;;  %vm9703_vm7 = vmor %vm1626_vm10, %vm1627_vm2 }
 0x239   :  { %v1687_v8 = vand.u32 2147483648, %v9510_v22  ;;  %v9694_v37 = vpop.eup %7016  ;;  %v1625_v57 = vadd.f32 %v15401_v60, %v1624_v48  ;;  %v1695_v1 = vadd.f32 %v9587_v50, %v1694_v16  ;;  %vm1697_vm8 = vweird.f32 %v9587_v50 }
 0x23a   :  { %v1722_v56 = vmul.f32 %v9635_v46, %v9547_v18  ;;  %vm9707_vm13 = vcmp.eq.f32.partialorder %v1630_v58, 8.507059e+37  ;;  %vm1681_vm1 = vweird.f32 %v9510_v22  ;;  %v1702_v61 = vand.u32 2147483648, %v9518_v30 }
 0x23b   :  { %v1709_v36 = vmul.f32 %v9619_v53, %v1708_v31  ;;  %vm9714_vm9 = vmor %vm1681_vm1, %vm1682_vm6  ;;  %vm1696_vm3 = vweird.f32 %v9518_v30  ;;  %v1700_v10 = vand.u32 2147483647, %v9518_v30  ;;  %v1737_v33 = vmul.f32 %v9642_v40, %v9556_v63 }
 0x23c   :  { %v1723_v19 = vsub.f32 1.0, %v1722_v56  ;;  %v1633_v25 = vor.u32 1.1754944e-38, %v1632_v17  ;;  %v1684_v22 = vsel %vm9714_vm9, %v9565_v0, %v1680_v6  ;;  %vm9725_vm14 = vcmp.eq.f32.partialorder %v1685_v9, 8.507059e+37  ;;  %vm9731_vm11 = vmor %vm1696_vm3, %vm1697_vm8 }
 0x23d   :  { %v1688_v48 = vor.u32 1.1754944e-38, %v1687_v8  ;;  %v1629_v30 = vsel %vm9703_vm7, %v15401_v60, %v1625_v57  ;;  %v1699_v58 = vsel %vm9731_vm11, %v9587_v50, %v1695_v1  ;;  %v1738_v31 = vsub.f32 1.0, %v1737_v33 }
 0x23e   :  { %v1724_v0 = vmul.f32 %v9635_v46, %v1723_v19  ;;  %v1703_v17 = vor.u32 1.1754944e-38, %v1702_v61  ;;  %v1710_v6 = vadd.f32 %v9619_v53, %v1709_v36  ;;  %vm1712_vm12 = vweird.f32 %v9619_v53 }
 0x23f   :  { %v1715_v9 = vand.u32 2147483647, %v9537_v43  ;;  %vm1701_vm15 = vcmp.eq.f32.partialorder %v1700_v10, 8.507059e+37  ;;  %vm1711_vm0 = vweird.f32 %v9537_v43  ;;  %v1717_v8 = vand.u32 2147483648, %v9537_v43 }
 0x240   :  { %v1730_v60 = vand.u32 2147483647, %v9547_v18  ;;  %v1634_v50 = vsel %vm9707_vm13, %v1633_v25, %v1629_v30  ;;  %v1689_v57 = vsel %vm9725_vm14, %v1688_v48, %v1684_v22  ;;  %v1704_v1 = vsel %vm1701_vm15, %v1703_v17, %v1699_v58  ;;  %vm9754_vm4 = vmor %vm1711_vm0, %vm1712_vm12 }
 0x241   :  { %v1752_v56 = vmul.f32 %v9650_v32, %v9567_v12  ;;  %v1725_v61 = vadd.f32 %v9635_v46, %v1724_v0  ;;  %vm1727_vm10 = vweird.f32 %v9635_v46  ;;  %v1739_v43 = vmul.f32 %v9642_v40, %v1738_v31 }
 0x242   :  { %v1767_v54 = vmul.f32 %v9660_v51, %v9579_v2  ;;  %v1714_v36 = vsel %vm9754_vm4, %v9619_v53, %v1710_v6  ;;  %vm1716_vm2 = vcmp.eq.f32.partialorder %v1715_v9, 8.507059e+37  ;;  %vm1726_vm6 = vweird.f32 %v9547_v18 }
 0x243   :  { %v1732_v38 = vand.u32 2147483648, %v9547_v18  ;;  %v1718_v10 = vor.u32 1.1754944e-38, %v1717_v8  ;;  %vm9768_vm8 = vcmp.eq.f32.partialorder %v1730_v60, 8.507059e+37  ;;  %vm1741_vm7 = vweird.f32 %v9556_v63  ;;  %vm9774_vm13 = vmor %vm1726_vm6, %vm1727_vm10 }
 0x244   :  { %v1747_v33 = vand.u32 2147483648, %v9556_v63  ;;  %vm1742_vm1 = vweird.f32 %v9642_v40  ;;  %v1745_v53 = vand.u32 2147483647, %v9556_v63  ;;  %v1753_v22 = vsub.f32 1.0, %v1752_v56 }
 0x245   :  { %v1782_v18 = vmul.f32 %v9694_v37, %v9610_v11  ;;  %v9782_v47 = vsel %vm1716_vm2, %v1718_v10, %v1714_v36  ;;  %v1729_v48 = vsel %vm9774_vm13, %v9635_v46, %v1725_v61  ;;  %v1740_v16 = vadd.f32 %v9642_v40, %v1739_v43  ;;  %vm9804_vm14 = vmor %vm1741_vm7, %vm1742_vm1 }
 0x246   :  { %v1768_v30 = vsub.f32 1.0, %v1767_v54  ;;  %v1733_v58 = vor.u32 1.1754944e-38, %v1732_v38  ;;  %vm1757_vm9 = vweird.f32 %v9650_v32  ;;  %v1760_v0 = vand.u32 2147483647, %v9567_v12 }
 0x247   :  { %v1783_v31 = vsub.f32 1.0, %v1782_v18  ;;  %v1748_v17 = vor.u32 1.1754944e-38, %v1747_v33  ;;  %vm1756_vm3 = vweird.f32 %v9567_v12  ;;  %v1762_v6 = vand.u32 2147483648, %v9567_v12  ;;  %v15444_v12 = vld [vmem:[#allocation11_spill] sm:$0xff] }
 0x248   :  { %v15420_v9 = vrot.slane %v8999_v13, 7  ;;  %v15421_v46 = vrot.slane %v8985_v28, 7  ;;  %v1734_v56 = vsel %vm9768_vm8, %v1733_v58, %v1729_v48  ;;  %v1754_v61 = vmul.f32 %v9650_v32, %v1753_v22  ;;  %vm9861_vm10 = vmor %vm1756_vm3, %vm1757_vm9 }
 0x249   :  { %vm1771_vm11 = vweird.f32 %v9579_v2  ;;  %v15424_v13 = vrot.slane %v8987_v14, 7  ;;  %vm9816_vm12 = vcmp.eq.f32.partialorder %v1745_v53, 8.507059e+37  ;;  %v1769_v63 = vmul.f32 %v9660_v51, %v1768_v30 }
 0x24a   :  { %v1824_v8 = vmul.f32 %v15420_v9, %v9671_v44  ;;  %v1825_v60 = vmul.f32 %v15421_v46, %v9684_v45  ;;  %v1744_v44 = vsel %vm9804_vm14, %v9642_v40, %v1740_v16  ;;  %v15427_v43 = vrot.slane %v9001_v20, 7 }
 0x24b   :  { %v1826_v28 = vmul.f32 %v15424_v13, %v9686_v55  ;;  %v1833_v36 = vmul.f32 %v9506_v21, %v9570_v49  ;;  %v1784_v38 = vmul.f32 %v9694_v37, %v1783_v31  ;;  %v1834_v14 = vmul.f32 %v9516_v27, %v9665_v34 }
 0x24c   :  { %v1827_v54 = vmul.f32 %v15427_v43, %v1634_v50  ;;  %v1835_v40 = vmul.f32 %v9534_v41, %v9669_v7  ;;  %v9831_v55 = vadd.f32 %v9484_v52, %v1824_v8  ;;  %vm9833_vm15 = vcmp.eq.f32.partialorder %v1760_v0, 8.507059e+37 }
 0x24d   :  { %v9837_v20 = vadd.f32 %v1833_v36, %v1825_v60  ;;  %7018 = vtanh.f32 %v9486_v26  ;;  %v1852_v21 = vmul.f32 %v9561_v4, %v1689_v57  ;;  %v1853_v49 = vmul.f32 %v9608_v23, %v1704_v1 }
 0x24e   :  { %vm1772_vm0 = vweird.f32 %v9660_v51  ;;  %v9843_v27 = vadd.f32 %v1834_v14, %v1826_v28  ;;  %v9845_v41 = vadd.f32 %v1835_v40, %v1827_v54  ;;  %7020 = vtanh.f32 %v9490_v15 }
 0x24f   :  { %v1755_v52 = vadd.f32 %v9650_v32, %v1754_v61  ;;  %7022 = vtanh.f32 %v9831_v55  ;;  %v1860_v34 = vpack.c.bf16 %v1852_v21, %v1852_v21  ;;  %v1861_v7 = vpack.c.bf16 %v1853_v49, %v1853_v49  ;;  %vm9875_vm6 = vmor %vm1771_vm11, %vm1772_vm0 }
 0x250   :  { %15430 = vst [vmem:[#allocation72_spill] sm:$0xff] %v9843_v27  ;;  %v1770_v50 = vadd.f32 %v9660_v51, %v1769_v63  ;;  %v1775_v4 = vand.u32 2147483647, %v9579_v2  ;;  %v1777_v23 = vand.u32 2147483648, %v9579_v2  ;;  %7024 = vtanh.f32 %v9837_v20  ;;  %v15451_v2 = vld [vmem:[#allocation16_spill] sm:$0xff] }
 0x251   :  { %15431 = vst [vmem:[#allocation52_spill] sm:$0xff] %v9845_v41  ;;  %v1785_v57 = vadd.f32 %v9694_v37, %v1784_v38  ;;  %vm1787_vm4 = vweird.f32 %v9694_v37  ;;  %7026 = vtanh.f32 %v9843_v27  ;;  %v1876_v1 = vunpack.c.l.b16 %v1860_v34 }
 0x252   :  { %v1763_v33 = vor.u32 1.1754944e-38, %v1762_v6  ;;  %vm1786_vm2 = vweird.f32 %v9610_v11  ;;  %v1792_v25 = vand.u32 2147483648, %v9610_v11  ;;  %7028 = vtanh.f32 %v9845_v41 }
 0x253   :  { %v7019_v53 = vpop.eup %7018  ;;  %v1759_v22 = vsel %vm9861_vm10, %v9650_v32, %v1755_v52  ;;  %v1790_v18 = vand.u32 2147483647, %v9610_v11  ;;  %v1877_v48 = vunpack.c.l.b16 %v1861_v7  ;;  %v1884_v16 = vrot.slane %v1876_v1, 1  ;;  %vm9887_vm7 = vmor %vm1786_vm2, %vm1787_vm4 }
 0x254   :  { %v7021_v30 = vpop.eup %7020  ;;  %v1749_v58 = vsel %vm9816_vm12, %v1748_v17, %v1744_v44  ;;  %v1774_v32 = vsel %vm9875_vm6, %v9660_v51, %v1770_v50  ;;  %vm1776_vm8 = vcmp.eq.f32.partialorder %v1775_v4, 8.507059e+37  ;;  %v1854_v0 = vmul.f32 %v7019_v53, %v9782_v47 }
 0x255   :  { %v7023_v11 = vpop.eup %7022  ;;  %v1778_v31 = vor.u32 1.1754944e-38, %v1777_v23  ;;  %v1789_v6 = vsel %vm9887_vm7, %v9694_v37, %v1785_v57  ;;  %v1855_v17 = vmul.f32 %v7021_v30, %v1734_v56  ;;  %v1885_v9 = vsel %vm15026_vm5, %v1877_v48, %v1884_v16  ;;  %v15446_v48 = vld [vmem:[#allocation17_spill] sm:$0xff]  ;;  %v15447_v16 = vld [vmem:[#allocation14_spill] sm:$0xff] }
 0x256   :  { %v7025_v8 = vpop.eup %7024  ;;  %v1764_v51 = vsel %vm9833_vm15, %v1763_v33, %v1759_v22  ;;  %v1793_v46 = vor.u32 1.1754944e-38, %v1792_v25  ;;  %v1856_v60 = vmul.f32 %v7023_v11, %v1749_v58  ;;  %v1862_v42 = vpack.c.bf16 %v1854_v0, %v1854_v0  ;;  %v15448_v30 = vld [vmem:[#allocation13_spill] sm:$0xff]  ;;  %v15449_v58 = vld [vmem:[#allocation15_spill] sm:$0xff]  ;;  %v15452_v0 = vld [vmem:[#allocation18_spill] sm:$0xff] }
 0x257   :  { %v7027_v61 = vpop.eup %7026  ;;  %v1779_v13 = vsel %vm1776_vm8, %v1778_v31, %v1774_v32  ;;  %vm1791_vm13 = vcmp.eq.f32.partialorder %v1790_v18, 8.507059e+37  ;;  %v1857_v47 = vmul.f32 %v7025_v8, %v1764_v51  ;;  %v1863_v28 = vpack.c.bf16 %v1855_v17, %v1855_v17  ;;  %v15445_v18 = vld [vmem:[#allocation12_spill] sm:$0xff]  ;;  %v15450_v32 = vld [vmem:[#allocation19_spill] sm:$0xff]  ;;  %v15456_v17 = vld [vmem:[#allocation22_spill] sm:$0xff] }
 0x258   :  { %v7029_v44 = vpop.eup %7028  ;;  %v1794_v45 = vsel %vm1791_vm13, %v1793_v46, %v1789_v6  ;;  %v1858_v63 = vmul.f32 %v7027_v61, %v1779_v13  ;;  %v1864_v43 = vpack.c.bf16 %v1856_v60, %v1856_v60  ;;  %v1878_v37 = vunpack.c.l.b16 %v1862_v42  ;;  %v15453_v11 = vld [vmem:[#allocation20_spill] sm:$0xff]  ;;  %v15454_v31 = vld [vmem:[#allocation23_spill] sm:$0xff]  ;;  %v15455_v6 = vld [vmem:[#allocation21_spill] sm:$0xff] }
 0x259   :  { %v1859_v56 = vmul.f32 %v7029_v44, %v1794_v45  ;;  %v1865_v54 = vpack.c.bf16 %v1857_v47, %v1857_v47  ;;  %v1879_v36 = vunpack.c.l.b16 %v1863_v28  ;;  %vm15438_vm1 = vcmask 1042434   ;;  %v15458_v8 = vld [vmem:[#allocation27_spill] sm:$0xff]  ;;  %v15459_v51 = vld [vmem:[#allocation25_spill] sm:$0xff]  ;;  %v15460_v46 = vld [vmem:[#allocation26_spill] sm:$0xff] }
 0x25a   :  { %v1866_v38 = vpack.c.bf16 %v1858_v63, %v1858_v63  ;;  %v1880_v14 = vunpack.c.l.b16 %v1864_v43  ;;  %v1886_v40 = vrot.slane %v1878_v37, 7  ;;  %vm15439_vm9 = vcmask 1043459   ;;  %v15461_v60 = vld [vmem:[#allocation30_spill] sm:$0xff]  ;;  %v15462_v42 = vld [vmem:[#allocation31_spill] sm:$0xff]  ;;  %v15463_v61 = vld [vmem:[#allocation29_spill] sm:$0xff] }
 0x25b   :  { %v1867_v10 = vpack.c.bf16 %v1859_v56, %v1859_v56  ;;  %v1881_v21 = vunpack.c.l.b16 %v1865_v54  ;;  %v1888_v49 = vrot.slane %v1879_v36, 6  ;;  %vm15440_vm3 = vcmask 1044484   ;;  %v15464_v13 = vld [vmem:[#allocation28_spill] sm:$0xff]  ;;  %v15465_v47 = vld [vmem:[#allocation34_spill] sm:$0xff]  ;;  %v15466_v28 = vld [vmem:[#allocation35_spill] sm:$0xff] }
 0x25c   :  { %v1882_v52 = vunpack.c.l.b16 %v1866_v38  ;;  %v1887_v34 = vsel %vm15438_vm1, %v1886_v40, %v1885_v9  ;;  %v1890_v7 = vrot.slane %v1880_v14, 5  ;;  %vm15441_vm14 = vcmask 1045509   ;;  %v15457_v9 = vld [vmem:[#allocation24_spill] sm:$0xff]  ;;  %v15467_v44 = vld [vmem:[#allocation33_spill] sm:$0xff]  ;;  %v15470_v43 = vld [vmem:[#allocation38_spill] sm:$0xff] }
 0x25d   :  { %v1883_v50 = vunpack.c.l.b16 %v1867_v10  ;;  %v1889_v4 = vsel %vm15439_vm9, %v1888_v49, %v1887_v34  ;;  %v1892_v23 = vrot.slane %v1881_v21, 4  ;;  %vm15442_vm11 = vcmask 1046534   ;;  %v15468_v45 = vld [vmem:[#allocation32_spill] sm:$0xff]  ;;  %v15469_v63 = vld [vmem:[#allocation41_spill] sm:$0xff]  ;;  %v15473_v54 = vld [vmem:[#allocation42_spill] sm:$0xff] }
 0x25e   :  { %v1891_v57 = vsel %vm15440_vm3, %v1890_v7, %v1889_v4  ;;  %v1894_v1 = vrot.slane %v1882_v52, 3  ;;  %vm15443_vm12 = vcmask 1047559   ;;  %v15471_v37 = vld [vmem:[#allocation37_spill] sm:$0xff]  ;;  %v15472_v56 = vld [vmem:[#allocation36_spill] sm:$0xff]  ;;  %v15475_v38 = vld [vmem:[#allocation39_spill] sm:$0xff] }
 0x25f   :  { %v1893_v19 = vsel %vm15441_vm14, %v1892_v23, %v1891_v57  ;;  %v1896_v33 = vrot.slane %v1883_v50, 2  ;;  %v15474_v36 = vld [vmem:[#allocation40_spill] sm:$0xff]  ;;  %v15476_v4 = vld [vmem:[#allocation43_spill] sm:$0xff]  ;;  %v15477_v57 = vld [vmem:[#allocation45_spill] sm:$0xff] }
 0x260   :  { %v1895_v25 = vsel %vm15442_vm11, %v1894_v1, %v1893_v19  ;;  %v15478_v19 = vld [vmem:[#allocation46_spill] sm:$0xff] }
 0x261   :  { %v1897_v53 = vsel %vm15443_vm12, %v1896_v33, %v1895_v25  ;;  %v15479_v25 = vld [vmem:[#allocation44_spill] sm:$0xff] }
 0x262   :  { %v1898_v22 = vpack.c.b16 %v1897_v53, %v1897_v53 }
 0x264   :  { %1908 = vmatmul.bf16.vlgmr.msrb.gmra.mxu0 %v1898_v22  ;;  %1921 = vmatmul.bf16.vlgmr.msra.gmra.mxu1 %v1898_v22 }
 0x265   :  { %1934 = vmatmul.bf16.vlgmr.msrb.gmra.mxu2 %v1898_v22  ;;  %1947 = vmatmul.bf16.vlgmr.msrb.gmra.mxu3 %v1898_v22  ;;  %v15480_v22 = vld [vmem:[#allocation47_spill] sm:$0xff] }
 0x266   :  { %3332 = vmatpush.bf16.msrb.mxu0 %v15444_v12  ;;  %3345 = vmatpush.bf16.msra.mxu1 %v15445_v18 }
 0x267   :  { %3358 = vmatpush.bf16.msrb.mxu2 %v15446_v48  ;;  %3371 = vmatpush.bf16.msrb.mxu3 %v15447_v16 }
 0x26a   :  { %3333 = vmatpush.bf16.msrb.mxu0 %v15448_v30  ;;  %3346 = vmatpush.bf16.msra.mxu1 %v15449_v58 }
 0x26b   :  { %3359 = vmatpush.bf16.msrb.mxu2 %v15450_v32  ;;  %3372 = vmatpush.bf16.msrb.mxu3 %v15451_v2 }
 0x26e   :  { %3334 = vmatpush.bf16.msrb.mxu0 %v15452_v0  ;;  %3347 = vmatpush.bf16.msra.mxu1 %v15453_v11 }
 0x26f   :  { %3360 = vmatpush.bf16.msrb.mxu2 %v15454_v31  ;;  %3373 = vmatpush.bf16.msrb.mxu3 %v15455_v6 }
 0x272   :  { %3335 = vmatpush.bf16.msrb.mxu0 %v15456_v17  ;;  %3348 = vmatpush.bf16.msra.mxu1 %v15457_v9  ;;  %v15499_v9 = vld [vmem:[#allocation57_spill] sm:$0xff] }
 0x273   :  { %3361 = vmatpush.bf16.msrb.mxu2 %v15458_v8  ;;  %3374 = vmatpush.bf16.msrb.mxu3 %v15459_v51  ;;  %v15497_v8 = vld [vmem:[#allocation53_spill] sm:$0xff] }
 0x276   :  { %3336 = vmatpush.bf16.msrb.mxu0 %v15460_v46  ;;  %3349 = vmatpush.bf16.msra.mxu1 %v15461_v60  ;;  %v15496_v46 = vld [vmem:[#allocation51_spill] sm:$0xff] }
 0x277   :  { %3362 = vmatpush.bf16.msrb.mxu2 %v15462_v42  ;;  %3375 = vmatpush.bf16.msrb.mxu3 %v15463_v61 }
 0x27a   :  { %3337 = vmatpush.bf16.msrb.mxu0 %v15464_v13  ;;  %3350 = vmatpush.bf16.msra.mxu1 %v15465_v47 }
 0x27b   :  { %3363 = vmatpush.bf16.msrb.mxu2 %v15466_v28  ;;  %3376 = vmatpush.bf16.msrb.mxu3 %v15467_v44 }
 0x27e   :  { %3338 = vmatpush.bf16.msrb.mxu0 %v15468_v45  ;;  %3351 = vmatpush.bf16.msra.mxu1 %v15469_v63  ;;  %v15483_v63 = vld [vmem:[#allocation50_spill] sm:$0xff] }
 0x27f   :  { %3364 = vmatpush.bf16.msrb.mxu2 %v15470_v43  ;;  %3377 = vmatpush.bf16.msrb.mxu3 %v15471_v37 }
 0x282   :  { %3339 = vmatpush.bf16.msrb.mxu0 %v15472_v56  ;;  %3352 = vmatpush.bf16.msra.mxu1 %v15473_v54  ;;  %v15482_v56 = vld [vmem:[#allocation49_spill] sm:$0xff] }
 0x283   :  { %3365 = vmatpush.bf16.msrb.mxu2 %v15474_v36  ;;  %3378 = vmatpush.bf16.msrb.mxu3 %v15475_v38  ;;  %v15481_v36 = vld [vmem:[#allocation48_spill] sm:$0xff] }
 0x2e1   :  { %v1909_v14 = vpop.f32.mrf.mxu0  ;;  %v9936_v40 = vpop.f32.mrf.mxu1 }
 0x2e2   :  { %v1956_v10 = vrot.slane %v1909_v14, 6  ;;  %v1960_v21 = vrot.slane %v1909_v14, 7  ;;  %v1964_v49 = vrot.slane %v1909_v14, 1  ;;  %v1968_v52 = vrot.slane %v1909_v14, 2 }
 0x2e3   :  { %v1972_v34 = vrot.slane %v1909_v14, 3  ;;  %v1976_v7 = vrot.slane %v1909_v14, 4  ;;  %v1980_v50 = vrot.slane %v1909_v14, 5  ;;  %v2024_v23 = vadd.f32 %v1909_v14, %v15476_v4 }
 0x2e4   :  { %v2016_v1 = vadd.f32 %v1956_v10, %v15477_v57  ;;  %v2020_v33 = vadd.f32 %v1960_v21, %v15478_v19  ;;  %v2028_v53 = vadd.f32 %v1964_v49, %v15479_v25  ;;  %v2032_v38 = vadd.f32 %v1968_v52, %v15480_v22 }
 0x2e5   :  { %v2036_v54 = vadd.f32 %v1972_v34, %v15481_v36  ;;  %v2040_v37 = vadd.f32 %v1976_v7, %v15482_v56  ;;  %v6548_v43 = vmul.f32 -1.442695, %v2024_v23  ;;  %v2044_v45 = vadd.f32 %v1980_v50, %v15483_v63  ;;  %v15484_v23 = vld [vmem:[#allocation73_spill] sm:$0xff]  ;;  %v15491_v36 = vld [vmem:[#allocation78_spill] sm:$0xff] }
 0x2e6   :  { %v6546_v44 = vmul.f32 -1.442695, %v2016_v1  ;;  %v6547_v28 = vmul.f32 -1.442695, %v2020_v33  ;;  %v6549_v47 = vmul.f32 -1.442695, %v2028_v53 }
 0x2e7   :  { %7030 = vpow2.f32 %v6548_v43  ;;  %v6550_v14 = vmul.f32 -1.442695, %v2032_v38  ;;  %v6551_v10 = vmul.f32 -1.442695, %v2036_v54  ;;  %v1957_v21 = vrot.slane %v9936_v40, 6  ;;  %v15485_v53 = vld [vmem:[#allocation74_spill] sm:$0xff] }
 0x2e8   :  { %7032 = vpow2.f32 %v6546_v44  ;;  %v9947_v4 = vpop.f32.mrf.mxu2  ;;  %v6552_v49 = vmul.f32 -1.442695, %v2040_v37  ;;  %v6553_v7 = vmul.f32 -1.442695, %v2044_v45  ;;  %v1961_v50 = vrot.slane %v9936_v40, 7 }
 0x2e9   :  { %7034 = vpow2.f32 %v6547_v28  ;;  %v1911_v52 = vpop.f32.mrf.mxu0  ;;  %v1924_v34 = vpop.f32.mrf.mxu1  ;;  %v2017_v56 = vadd.f32 %v1957_v21, %v15484_v23  ;;  %v1965_v28 = vrot.slane %v9936_v40, 1  ;;  %v1969_v33 = vrot.slane %v9936_v40, 2 }
 0x2ea   :  { %7036 = vpow2.f32 %v6549_v47  ;;  %v15486_v52 = vld [vmem:[#allocation75_spill] sm:$0xff]  ;;  %v1966_v61 = vrot.slane %v9947_v4, 1  ;;  %v1978_v60 = vrot.slane %v9947_v4, 4 }
 0x2eb   :  { %7038 = vpow2.f32 %v6550_v14  ;;  %v6554_v44 = vmul.f32 -1.442695, %v2017_v56  ;;  %v2021_v14 = vadd.f32 %v1961_v50, %v15485_v53  ;;  %v2025_v34 = vadd.f32 %v9936_v40, %v15486_v52  ;;  %v15487_v50 = vld [vmem:[#allocation76_spill] sm:$0xff] }
 0x2ec   :  { %7040 = vpow2.f32 %v6551_v10  ;;  %v10030_v17 = vadd.f32 %v1966_v61, %v15499_v9 }
 0x2ed   :  { %v7031_v43 = vpop.eup %7030  ;;  %7042 = vpow2.f32 %v6552_v49  ;;  %v1973_v49 = vrot.slane %v9936_v40, 3  ;;  %v6555_v63 = vmul.f32 -1.442695, %v2021_v14 }
 0x2ee   :  { %v7033_v54 = vpop.eup %7032  ;;  %7044 = vpow2.f32 %v6553_v7  ;;  %v9951_v38 = vadd.f32 1.0, %v7031_v43 }
 0x2ef   :  { %v7035_v37 = vpop.eup %7034  ;;  %v9954_v1 = vadd.f32 1.0, %v7033_v54  ;;  %7046 = vpow2.f32 %v6554_v44  ;;  %v1977_v54 = vrot.slane %v9936_v40, 4  ;;  %v2029_v44 = vadd.f32 %v1965_v28, %v15487_v50 }
 0x2f0   :  { %v7037_v47 = vpop.eup %7036  ;;  %v9956_v45 = vadd.f32 1.0, %v7035_v37  ;;  %v1937_v10 = vpop.f32.mrf.mxu2  ;;  %v2037_v22 = vadd.f32 %v1973_v49, %v15491_v36  ;;  %v6556_v28 = vmul.f32 -1.442695, %v2025_v34  ;;  %v15494_v49 = vld [vmem:[#allocation67_spill] sm:$0xff] }
 0x2f1   :  { %v7039_v21 = vpop.eup %7038  ;;  %v9960_v56 = vadd.f32 1.0, %v7037_v47  ;;  %7048 = vrcp.f32 %v9954_v1  ;;  %v1981_v47 = vrot.slane %v9936_v40, 5  ;;  %v6557_v57 = vmul.f32 -1.442695, %v2029_v44 }
 0x2f2   :  { %v7041_v7 = vpop.eup %7040  ;;  %v9966_v43 = vadd.f32 1.0, %v7039_v21  ;;  %7050 = vrcp.f32 %v9951_v38  ;;  %v15490_v21 = vld [vmem:[#allocation77_spill] sm:$0xff]  ;;  %vm2085_vm15 = vweird.f32 %v9954_v1  ;;  %vm2100_vm13 = vweird.f32 %v9956_v45 }
 0x2f3   :  { %v7043_v37 = vpop.eup %7042  ;;  %v9971_v10 = vadd.f32 1.0, %v7041_v7  ;;  %7052 = vrcp.f32 %v9956_v45  ;;  %v2033_v52 = vadd.f32 %v1969_v33, %v15490_v21  ;;  %v15492_v7 = vld [vmem:[#allocation79_spill] sm:$0xff]  ;;  %v2045_v34 = vadd.f32 %v1981_v47, %v15494_v49 }
 0x2f4   :  { %v7045_v53 = vpop.eup %7044  ;;  %v9975_v23 = vadd.f32 1.0, %v7043_v37  ;;  %7054 = vrcp.f32 %v9960_v56  ;;  %v2041_v19 = vadd.f32 %v1977_v54, %v15492_v7  ;;  %v6559_v37 = vmul.f32 -1.442695, %v2037_v22  ;;  %v10013_v7 = vpop.f32.mrf.mxu3 }
 0x2f5   :  { %15488 = vst [vmem:[#allocation82_spill] sm:$0xff] %v9971_v10  ;;  %7056 = vrcp.f32 %v9966_v43  ;;  %v7047_v50 = vpop.eup %7046  ;;  %v9987_v13 = vadd.f32 1.0, %v7045_v53  ;;  %v6558_v54 = vmul.f32 -1.442695, %v2033_v52  ;;  %v1958_v53 = vrot.slane %v9947_v4, 6 }
 0x2f6   :  { %15489 = vst [vmem:[#allocation80_spill] sm:$0xff] %v9975_v23  ;;  %7058 = vrcp.f32 %v9971_v10  ;;  %v6560_v36 = vmul.f32 -1.442695, %v2041_v19  ;;  %v1962_v21 = vrot.slane %v9947_v4, 7  ;;  %v1970_v52 = vrot.slane %v9947_v4, 2 }
 0x2f7   :  { %v9983_v40 = vpop.eup %7048  ;;  %15493 = vst [vmem:[#allocation81_spill] sm:$0xff] %v9987_v13  ;;  %7060 = vrcp.f32 %v9975_v23  ;;  %v1974_v19 = vrot.slane %v9947_v4, 3  ;;  %v10020_v51 = vadd.f32 %v1958_v53, %v15496_v46  ;;  %v15503_v46 = vld [vmem:[#allocation63_spill] sm:$0xff] }
 0x2f8   :  { %v9990_v33 = vpop.eup %7050  ;;  %v2081_v14 = vmul.f32 %v9983_v40, %v9954_v1  ;;  %7062 = vpow2.f32 %v6555_v63  ;;  %v10006_v63 = vadd.f32 1.0, %v7047_v50  ;;  %v1982_v50 = vrot.slane %v9947_v4, 5 }
 0x2f9   :  { %v9995_v44 = vpop.eup %7052  ;;  %7064 = vpow2.f32 %v6556_v28  ;;  %v10034_v6 = vmul.f32 %v9990_v33, %v9951_v38  ;;  %v10066_v11 = vadd.f32 %v1978_v60, %v15503_v46  ;;  %vm2086_vm0 = vweird.f32 %v9983_v40 }
 0x2fa   :  { %v9999_v25 = vpop.eup %7054  ;;  %7066 = vpow2.f32 %v6557_v57  ;;  %v2082_v28 = vsub.f32 1.0, %v2081_v14  ;;  %v6561_v57 = vmul.f32 -1.442695, %v2045_v34  ;;  %v10023_v14 = vadd.f32 %v1962_v21, %v15497_v8  ;;  %v15498_v34 = vld [vmem:[#allocation55_spill] sm:$0xff]  ;;  %vm10107_vm4 = vmor %vm2085_vm15, %vm2086_vm0 }
 0x2fb   :  { %v10003_v42 = vpop.eup %7056  ;;  %7068 = vrcp.f32 %v9987_v13  ;;  %v10071_v2 = vadd.f32 %v1982_v50, %v15380_v5  ;;  %v2091_v5 = vand.u32 2147483648, %v9954_v1  ;;  %vm2101_vm6 = vweird.f32 %v9995_v44 }
 0x2fc   :  { %v10010_v47 = vpop.eup %7058  ;;  %7070 = vpow2.f32 %v6558_v54  ;;  %v10027_v54 = vadd.f32 %v9947_v4, %v15498_v34  ;;  %v2096_v4 = vmul.f32 %v9995_v44, %v9956_v45  ;;  %v2083_v61 = vmul.f32 %v9983_v40, %v2082_v28  ;;  %v15502_v28 = vld [vmem:[#allocation61_spill] sm:$0xff]  ;;  %v1950_v60 = vpop.f32.mrf.mxu3  ;;  %vm10163_vm11 = vmor %vm2100_vm13, %vm2101_vm6 }
 0x2fd   :  { %v10015_v49 = vpop.eup %7060  ;;  %7072 = vpow2.f32 %v6559_v37  ;;  %vm2237_vm8 = vweird.f32 %v10006_v63  ;;  %vm2116_vm12 = vweird.f32 %v9990_v33  ;;  %vm2130_vm6 = vweird.f32 %v9960_v56 }
 0x2fe   :  { %15495 = vst [vmem:[#allocation68_spill] sm:$0xff] %v10015_v49  ;;  %v7063_v22 = vpop.eup %7062  ;;  %7074 = vpow2.f32 %v6560_v36  ;;  %v15500_v36 = vld [vmem:[#allocation59_spill] sm:$0xff]  ;;  %v2097_v58 = vsub.f32 1.0, %v2096_v4  ;;  %v2084_v30 = vadd.f32 %v9983_v40, %v2083_v61  ;;  %v10087_v61 = vmul.f32 %v10010_v47, %v9971_v10 }
 0x2ff   :  { %v7065_v37 = vpop.eup %7064  ;;  %v10036_v31 = vadd.f32 1.0, %v7063_v22  ;;  %7076 = vrcp.f32 %v10006_v63  ;;  %v10040_v53 = vadd.f32 %v1970_v52, %v15500_v36  ;;  %v10051_v22 = vmul.f32 %v9999_v25, %v9960_v56 }
 0x300   :  { %v7067_v21 = vpop.eup %7066  ;;  %7078 = vpow2.f32 %v6561_v57  ;;  %v10044_v34 = vadd.f32 1.0, %v7065_v37  ;;  %v2243_v52 = vand.u32 2147483648, %v10006_v63  ;;  %v10059_v57 = vmul.f32 %v10003_v42, %v9966_v43 }
 0x301   :  { %v10047_v9 = vpop.eup %7068  ;;  %v10053_v8 = vadd.f32 1.0, %v7067_v21  ;;  %7080 = vrcp.f32 %v10036_v31  ;;  %v10063_v37 = vadd.f32 %v1974_v19, %v15502_v28  ;;  %v2112_v21 = vsub.f32 1.0, %v10034_v6 }
 0x302   :  { %15501 = vst [vmem:[#allocation70_spill] sm:$0xff] %v10047_v9  ;;  %v7071_v36 = vpop.eup %7070  ;;  %7082 = vrcp.f32 %v10044_v34  ;;  %v2089_v19 = vand.u32 2147483647, %v9954_v1  ;;  %v10080_v28 = vor.u32 1.1754944e-38, %v2243_v52  ;;  %v2258_v50 = vand.u32 2147483648, %v10036_v31 }
 0x303   :  { %v7073_v0 = vpop.eup %7072  ;;  %7084 = vrcp.f32 %v10053_v8  ;;  %v10089_v48 = vadd.f32 1.0, %v7071_v36  ;;  %v2273_v60 = vand.u32 2147483648, %v10044_v34  ;;  %v10096_v52 = vmul.f32 %v10015_v49, %v9975_v23 }
 0x304   :  { %v7075_v32 = vpop.eup %7074  ;;  %v10098_v6 = vadd.f32 1.0, %v7073_v0  ;;  %v2288_v4 = vand.u32 2147483648, %v10053_v8  ;;  %v2088_v0 = vsel %vm10107_vm4, %v9983_v40, %v2084_v30  ;;  %vm10118_vm10 = vcmp.eq.f32.partialorder %v2089_v19, 8.507059e+37 }
 0x305   :  { %v10077_v46 = vpop.eup %7076  ;;  %v10113_v9 = vadd.f32 1.0, %v7075_v32  ;;  %v2098_v13 = vmul.f32 %v9995_v44, %v2097_v58  ;;  %v10129_v27 = vor.u32 1.1754944e-38, %v2258_v50  ;;  %v2092_v32 = vor.u32 1.1754944e-38, %v2091_v5 }
 0x306   :  { %v7079_v16 = vpop.eup %7078  ;;  %15504 = vst [vmem:[#allocation69_spill] sm:$0xff] %v10098_v6  ;;  %v2233_v12 = vmul.f32 %v10077_v46, %v10006_v63  ;;  %v10133_v30 = vor.u32 1.1754944e-38, %v2273_v60  ;;  %7086 = vrcp.f32 %v10089_v48  ;;  %vm2238_vm2 = vweird.f32 %v10077_v46 }
 0x307   :  { %v10092_v18 = vpop.eup %7080  ;;  %15507 = vst [vmem:[#allocation71_spill] sm:$0xff] %v10113_v9  ;;  %v10125_v1 = vadd.f32 1.0, %v7079_v16  ;;  %v10139_v16 = vor.u32 1.1754944e-38, %v2288_v4  ;;  %7088 = vrcp.f32 %v10098_v6  ;;  %v2099_v5 = vadd.f32 %v9995_v44, %v2098_v13 }
 0x308   :  { %v10111_v10 = vpop.eup %7082  ;;  %v2248_v41 = vmul.f32 %v10092_v18, %v10036_v31  ;;  %v2234_v58 = vsub.f32 1.0, %v2233_v12  ;;  %7090 = vrcp.f32 %v10113_v9  ;;  %v2113_v19 = vmul.f32 %v9990_v33, %v2112_v21 }
 0x309   :  { %v10123_v49 = vpop.eup %7084  ;;  %15510 = vst [vmem:[#allocation83_spill] sm:$0xff] %v10125_v1  ;;  %v2263_v36 = vmul.f32 %v10111_v10, %v10044_v34  ;;  %7092 = vrcp.f32 %v10125_v1  ;;  %v2104_v12 = vand.u32 2147483647, %v9956_v45  ;;  %v2106_v4 = vand.u32 2147483648, %v9956_v45 }
 0x30a   :  { %v2278_v40 = vmul.f32 %v10123_v49, %v10053_v8  ;;  %v2249_v50 = vsub.f32 1.0, %v2248_v41  ;;  %vm2252_vm7 = vweird.f32 %v10036_v31  ;;  %v10153_v13 = vsel %vm10118_vm10, %v2092_v32, %v2088_v0 }
 0x30b   :  { %v2264_v60 = vsub.f32 1.0, %v2263_v36  ;;  %v2235_v21 = vmul.f32 %v10077_v46, %v2234_v58  ;;  %vm2253_vm1 = vweird.f32 %v10092_v18  ;;  %vm2267_vm9 = vweird.f32 %v10044_v34 }
 0x30c   :  { %v2279_v6 = vsub.f32 1.0, %v2278_v40  ;;  %vm2268_vm3 = vweird.f32 %v10111_v10  ;;  %vm2283_vm14 = vweird.f32 %v10123_v49  ;;  %v10167_v23 = vpop.eup %7086  ;;  %v2103_v45 = vsel %vm10163_vm11, %v9995_v44, %v2099_v5 }
 0x30d   :  { %v10173_v0 = vadd.f32 %v9990_v33, %v2113_v19  ;;  %v2121_v32 = vand.u32 2147483648, %v9951_v38  ;;  %v10177_v36 = vpop.eup %7088  ;;  %v2250_v40 = vmul.f32 %v10092_v18, %v2249_v50  ;;  %vm2282_vm15 = vweird.f32 %v10053_v8 }
 0x30e   :  { %15513 = vst [vmem:[#allocation84_spill] sm:$0xff] %v10177_v36  ;;  %vm2105_vm0 = vcmp.eq.f32.partialorder %v2104_v12, 8.507059e+37  ;;  %v2107_v58 = vor.u32 1.1754944e-38, %v2106_v4  ;;  %v15514_v1 = vsub.f32 1.0, %v10051_v22  ;;  %v10184_v44 = vpop.eup %7090  ;;  %v2265_v5 = vmul.f32 %v10111_v10, %v2264_v60 }
 0x30f   :  { %v2280_v19 = vmul.f32 %v10123_v49, %v2279_v6  ;;  %vm2115_vm4 = vweird.f32 %v9951_v38  ;;  %v15515_v9 = vsub.f32 1.0, %v10059_v57  ;;  %v10192_v36 = vpop.eup %7092  ;;  %v2134_v6 = vand.u32 2147483647, %v9960_v56 }
 0x310   :  { %v2128_v41 = vmul.f32 %v9999_v25, %v15514_v1  ;;  %v10194_v12 = vsel %vm2105_vm0, %v2107_v58, %v2103_v45  ;;  %vm10198_vm10 = vmor %vm2115_vm4, %vm2116_vm12  ;;  %v2119_v1 = vand.u32 2147483647, %v9951_v38  ;;  %v2122_v57 = vor.u32 1.1754944e-38, %v2121_v32 }
 0x311   :  { %v2143_v50 = vmul.f32 %v10003_v42, %v15515_v9  ;;  %v2118_v9 = vsel %vm10198_vm10, %v9990_v33, %v10173_v0  ;;  %vm2131_vm13 = vweird.f32 %v9999_v25  ;;  %v2136_v4 = vand.u32 2147483648, %v9960_v56  ;;  %vm2239_vm12 = vmor %vm2237_vm8, %vm2238_vm2 }
 0x312   :  { %v2129_v60 = vadd.f32 %v9999_v25, %v2128_v41  ;;  %vm2145_vm11 = vweird.f32 %v9966_v43  ;;  %v2236_v38 = vadd.f32 %v10077_v46, %v2235_v21  ;;  %v2241_v45 = vand.u32 2147483647, %v10006_v63  ;;  %vm2254_vm4 = vmor %vm2252_vm7, %vm2253_vm1 }
 0x313   :  { %v2144_v33 = vadd.f32 %v10003_v42, %v2143_v50  ;;  %vm2146_vm0 = vweird.f32 %v10003_v42  ;;  %v2251_v0 = vadd.f32 %v10092_v18, %v2250_v40  ;;  %v2256_v32 = vand.u32 2147483647, %v10036_v31  ;;  %vm2269_vm8 = vmor %vm2267_vm9, %vm2268_vm3 }
 0x314   :  { %vm10227_vm10 = vcmp.eq.f32.partialorder %v2119_v1, 8.507059e+37  ;;  %vm10231_vm5 = vcmp.eq.f32.partialorder %v2134_v6, 8.507059e+37  ;;  %v2149_v58 = vand.u32 2147483647, %v9966_v43  ;;  %v2240_v41 = vsel %vm2239_vm12, %v10077_v46, %v2236_v38  ;;  %vm10253_vm1 = vmor %vm2282_vm15, %vm2283_vm14 }
 0x315   :  { %vm2242_vm2 = vcmp.eq.f32.partialorder %v2241_v45, 8.507059e+37  ;;  %v2266_v40 = vadd.f32 %v10111_v10, %v2265_v5  ;;  %v2255_v50 = vsel %vm2254_vm4, %v10092_v18, %v2251_v0  ;;  %vm2257_vm7 = vcmp.eq.f32.partialorder %v2256_v32, 8.507059e+37  ;;  %vm10272_vm3 = vmor %vm2130_vm6, %vm2131_vm13 }
 0x316   :  { %v2245_v31 = vsel %vm2242_vm2, %v10080_v28, %v2240_v41  ;;  %v2271_v22 = vand.u32 2147483647, %v10044_v34  ;;  %v2151_v1 = vand.u32 2147483648, %v9966_v43  ;;  %v2260_v6 = vsel %vm2257_vm7, %v10129_v27, %v2255_v50  ;;  %vm10287_vm15 = vmor %vm2145_vm11, %vm2146_vm0 }
 0x317   :  { %v2270_v46 = vsel %vm2269_vm8, %v10111_v10, %v2266_v40  ;;  %v2281_v5 = vadd.f32 %v10123_v49, %v2280_v19  ;;  %v2286_v18 = vand.u32 2147483647, %v10053_v8  ;;  %7094 = vtanh.f32 %v10020_v51  ;;  %v15533_v8 = vld [vmem:[#allocation64_spill] sm:$0xff] }
 0x318   :  { %vm2272_vm9 = vcmp.eq.f32.partialorder %v2271_v22, 8.507059e+37  ;;  %v15524_v34 = vrot.slane %v9478_v59, 7  ;;  %7096 = vtanh.f32 %v10023_v14  ;;  %v15525_v19 = vrot.slane %v9481_v24, 7 }
 0x319   :  { %v2275_v10 = vsel %vm2272_vm9, %v10133_v30, %v2270_v46  ;;  %v2285_v28 = vsel %vm10253_vm1, %v10123_v49, %v2281_v5  ;;  %vm2287_vm14 = vcmp.eq.f32.partialorder %v2286_v18, 8.507059e+37  ;;  %7098 = vtanh.f32 %v10027_v54 }
 0x31a   :  { %v2536_v27 = vmul.f32 %v15524_v34, %v2245_v31  ;;  %v2537_v45 = vmul.f32 %v15525_v19, %v2260_v6  ;;  %v15528_v59 = vrot.slane %v9486_v26, 7  ;;  %v1959_v49 = vrot.slane %v10013_v7, 6 }
 0x31b   :  { %v2133_v24 = vsel %vm10272_vm3, %v9999_v25, %v2129_v60  ;;  %v2290_v14 = vsel %vm2287_vm14, %v10139_v16, %v2285_v28  ;;  %7100 = vtanh.f32 %v10030_v17  ;;  %v1963_v26 = vrot.slane %v10013_v7, 7 }
 0x31c   :  { %v2538_v51 = vmul.f32 %v15528_v59, %v2275_v10  ;;  %v2137_v54 = vor.u32 1.1754944e-38, %v2136_v4  ;;  %v2148_v30 = vsel %vm10287_vm15, %v10003_v42, %v2144_v33  ;;  %7102 = vtanh.f32 %v10040_v53 }
 0x31d   :  { %v15531_v25 = vrot.slane %v9490_v15, 7  ;;  %v2152_v60 = vor.u32 1.1754944e-38, %v2151_v1  ;;  %v1967_v0 = vrot.slane %v10013_v7, 1  ;;  %v1971_v32 = vrot.slane %v10013_v7, 2  ;;  %v7095_v17 = vpop.eup %7094 }
 0x31e   :  { %v2019_v16 = vadd.f32 %v1959_v49, %v15373_v29  ;;  %v2123_v4 = vsel %vm10227_vm10, %v2122_v57, %v2118_v9  ;;  %v2138_v41 = vsel %vm10231_vm5, %v2137_v54, %v2133_v24  ;;  %vm2150_vm6 = vcmp.eq.f32.partialorder %v2149_v58, 8.507059e+37  ;;  %v7097_v53 = vpop.eup %7096 }
 0x31f   :  { %v2539_v43 = vmul.f32 %v15531_v25, %v2290_v14  ;;  %v2023_v42 = vadd.f32 %v1963_v26, %v15374_v35  ;;  %v2153_v15 = vsel %vm2150_vm6, %v2152_v60, %v2148_v30  ;;  %v2544_v33 = vmul.f32 %v7095_v17, %v10153_v13  ;;  %v7099_v50 = vpop.eup %7098  ;;  %v15535_v25 = vld [vmem:[#allocation72_spill] sm:$0xff]  ;;  %v15536_v60 = vld [vmem:[#allocation69_spill] sm:$0xff] }
 0x320   :  { %v1975_v40 = vrot.slane %v10013_v7, 3  ;;  %v2027_v31 = vadd.f32 %v10013_v7, %v15375_v3  ;;  %v2545_v22 = vmul.f32 %v7097_v53, %v10194_v12  ;;  %v1979_v9 = vrot.slane %v10013_v7, 4  ;;  %v15538_v17 = vld [vmem:[#allocation52_spill] sm:$0xff] }
 0x321   :  { %v1983_v57 = vrot.slane %v10013_v7, 5  ;;  %v6562_v21 = vmul.f32 -1.442695, %v2019_v16  ;;  %v7101_v63 = vpop.eup %7100  ;;  %v2546_v58 = vmul.f32 %v7099_v50, %v2123_v4  ;;  %v10315_v1 = vadd.f32 %v2544_v33, %v2536_v27  ;;  %v15532_v7 = vld [vmem:[#allocation62_spill] sm:$0xff] }
 0x322   :  { %v2031_v6 = vadd.f32 %v1967_v0, %v15376_v62  ;;  %v2035_v13 = vadd.f32 %v1971_v32, %v15377_v39  ;;  %v7103_v46 = vpop.eup %7102  ;;  %v2547_v5 = vmul.f32 %v7101_v63, %v2138_v41  ;;  %v10319_v38 = vadd.f32 %v2545_v22, %v2537_v45  ;;  %v15534_v45 = vld [vmem:[#allocation66_spill] sm:$0xff]  ;;  %v15537_v0 = vld [vmem:[#allocation84_spill] sm:$0xff] }
 0x323   :  { %7104 = vpow2.f32 %v6562_v21  ;;  %v6563_v18 = vmul.f32 -1.442695, %v2023_v42  ;;  %v10321_v12 = vmul.f32 %v7103_v46, %v2153_v15  ;;  %v10323_v34 = vadd.f32 %v2546_v58, %v2538_v51  ;;  %v15539_v15 = vld [vmem:[#allocation71_spill] sm:$0xff] }
 0x324   :  { %v2039_v10 = vadd.f32 %v1975_v40, %v15532_v7  ;;  %v6564_v28 = vmul.f32 -1.442695, %v2027_v31  ;;  %v2157_v27 = vsub.f32 1.0, %v10087_v61  ;;  %7106 = vtanh.f32 %v10063_v37  ;;  %v15540_v40 = vld [vmem:[#allocation68_spill] sm:$0xff] }
 0x325   :  { %v10328_v19 = vadd.f32 %v2547_v5, %v2539_v43  ;;  %v2043_v59 = vadd.f32 %v1979_v9, %v15533_v8  ;;  %7108 = vtanh.f32 %v10066_v11  ;;  %v2047_v49 = vadd.f32 %v1983_v57, %v15534_v45  ;;  %v15541_v9 = vld [vmem:[#allocation81_spill] sm:$0xff]  ;;  %v15542_v57 = vld [vmem:[#allocation70_spill] sm:$0xff] }
 0x326   :  { %v6565_v24 = vmul.f32 -1.442695, %v2031_v6  ;;  %7110 = vpow2.f32 %v6563_v18  ;;  %v6566_v51 = vmul.f32 -1.442695, %v2035_v13  ;;  %v2172_v14 = vsub.f32 1.0, %v10096_v52  ;;  %v15543_v13 = vld [vmem:[#allocation82_spill] sm:$0xff] }
 0x327   :  { %v2293_v61 = vmul.f32 %v10167_v23, %v10089_v48  ;;  %7112 = vpow2.f32 %v6564_v28  ;;  %v6567_v37 = vmul.f32 -1.442695, %v2039_v10  ;;  %v6568_v11 = vmul.f32 -1.442695, %v2043_v59 }
 0x328   :  { %7114 = vtanh.f32 %v10071_v2  ;;  %v2158_v30 = vmul.f32 %v10010_v47, %v2157_v27  ;;  %v10343_v32 = vmul.f32 %v15537_v0, %v15536_v60  ;;  %v6569_v52 = vmul.f32 -1.442695, %v2047_v49 }
 0x329   :  { %v7105_v26 = vpop.eup %7104  ;;  %7116 = vpow2.f32 %v6565_v24  ;;  %v2303_v41 = vand.u32 2147483648, %v10089_v48  ;;  %v2294_v53 = vsub.f32 1.0, %v2293_v61  ;;  %v10355_v33 = vmul.f32 %v10184_v44, %v15539_v15 }
 0x32a   :  { %v10345_v16 = vpop.eup %7106  ;;  %7118 = vpow2.f32 %v6566_v51  ;;  %v10349_v42 = vadd.f32 1.0, %v7105_v26  ;;  %v2173_v31 = vmul.f32 %v15540_v40, %v2172_v14  ;;  %v2159_v22 = vadd.f32 %v10010_v47, %v2158_v30 }
 0x32b   :  { %v10351_v2 = vpop.eup %7108  ;;  %7120 = vpow2.f32 %v6567_v37  ;;  %vm2161_vm5 = vweird.f32 %v10010_v47  ;;  %v2186_v21 = vmul.f32 %v15542_v57, %v15541_v9  ;;  %v2309_v58 = vsub.f32 1.0, %v10343_v32 }
 0x32c   :  { %v7111_v50 = vpop.eup %7110  ;;  %7122 = vpow2.f32 %v6568_v11  ;;  %v2166_v46 = vand.u32 2147483648, %v15543_v13  ;;  %vm2160_vm13 = vweird.f32 %v15543_v13  ;;  %v2164_v18 = vand.u32 2147483647, %v15543_v13  ;;  %v15546_v11 = vld [vmem:[#allocation80_spill] sm:$0xff] }
 0x32d   :  { %v7113_v63 = vpop.eup %7112  ;;  %7124 = vpow2.f32 %v6569_v52  ;;  %v10363_v6 = vadd.f32 1.0, %v7111_v50  ;;  %v2187_v10 = vsub.f32 1.0, %v2186_v21  ;;  %vm10376_vm11 = vmor %vm2160_vm13, %vm2161_vm5  ;;  %v2174_v49 = vadd.f32 %v15540_v40, %v2173_v31 }
 0x32e   :  { %v10366_v5 = vpop.eup %7114  ;;  %7126 = vrcp.f32 %v10349_v42  ;;  %v10372_v27 = vadd.f32 1.0, %v7113_v63  ;;  %vm2176_vm12 = vweird.f32 %v15540_v40  ;;  %v2295_v51 = vmul.f32 %v10167_v23, %v2294_v53 }
 0x32f   :  { %v7117_v28 = vpop.eup %7116  ;;  %7128 = vtanh.f32 %v10315_v1  ;;  %vm2297_vm0 = vweird.f32 %v10089_v48  ;;  %v2163_v14 = vsel %vm10376_vm11, %v10010_v47, %v2159_v22  ;;  %v2188_v61 = vmul.f32 %v15542_v57, %v2187_v10 }
 0x330   :  { %v7119_v24 = vpop.eup %7118  ;;  %7130 = vtanh.f32 %v10319_v38  ;;  %v2167_v26 = vor.u32 1.1754944e-38, %v2166_v46  ;;  %vm2175_vm4 = vweird.f32 %v15546_v11  ;;  %v2181_v30 = vand.u32 2147483648, %v15546_v11 }
 0x331   :  { %v7121_v37 = vpop.eup %7120  ;;  %7132 = vrcp.f32 %v10363_v6  ;;  %v2324_v52 = vsub.f32 1.0, %v10355_v33  ;;  %vm2165_vm10 = vcmp.eq.f32.partialorder %v2164_v18, 8.507059e+37  ;;  %vm10396_vm2 = vmor %vm2175_vm4, %vm2176_vm12  ;;  %v2179_v53 = vand.u32 2147483647, %v15546_v11 }
 0x332   :  { %v7123_v32 = vpop.eup %7122  ;;  %7134 = vtanh.f32 %v10323_v34  ;;  %v10401_v50 = vadd.f32 1.0, %v7117_v28  ;;  %v10404_v22 = vsel %vm2165_vm10, %v2167_v26, %v2163_v14  ;;  %v2178_v33 = vsel %vm10396_vm2, %v15540_v40, %v2174_v49 }
 0x333   :  { %v7125_v31 = vpop.eup %7124  ;;  %7136 = vrcp.f32 %v10372_v27  ;;  %v10411_v63 = vadd.f32 1.0, %v7119_v24  ;;  %v2189_v13 = vadd.f32 %v15542_v57, %v2188_v61  ;;  %vm2191_vm8 = vweird.f32 %v15542_v57 }
 0x334   :  { %v10409_v21 = vpop.eup %7126  ;;  %v2194_v46 = vand.u32 2147483647, %v15541_v9  ;;  %v10418_v10 = vadd.f32 1.0, %v7121_v37  ;;  %v2182_v28 = vor.u32 1.1754944e-38, %v2181_v30  ;;  %vm2190_vm7 = vweird.f32 %v15541_v9 }
 0x335   :  { %v10416_v18 = vpop.eup %7128  ;;  %v2196_v59 = vand.u32 2147483648, %v15541_v9  ;;  %v10424_v49 = vadd.f32 1.0, %v7123_v32  ;;  %vm2180_vm1 = vcmp.eq.f32.partialorder %v2179_v53, 8.507059e+37  ;;  %v2296_v24 = vadd.f32 %v10167_v23, %v2295_v51  ;;  %vm10439_vm3 = vmor %vm2190_vm7, %vm2191_vm8 }
 0x336   :  { %v10422_v40 = vpop.eup %7130  ;;  %vm2298_vm9 = vweird.f32 %v10167_v23  ;;  %v10430_v61 = vadd.f32 1.0, %v7125_v31  ;;  %v2393_v37 = vmul.f32 %v10409_v21, %v10349_v42  ;;  %7138 = vrcp.f32 %v10401_v50 }
 0x337   :  { %v10428_v14 = vpop.eup %7132  ;;  %v10435_v26 = vsel %vm2180_vm1, %v2182_v28, %v2178_v33  ;;  %7140 = vrcp.f32 %v10411_v63  ;;  %v2193_v11 = vsel %vm10439_vm3, %v15542_v57, %v2189_v13  ;;  %vm2195_vm14 = vcmp.eq.f32.partialorder %v2194_v46, 8.507059e+37  ;;  %vm10457_vm15 = vmor %vm2297_vm0, %vm2298_vm9 }
 0x338   :  { %v10443_v51 = vpop.eup %7134  ;;  %v2310_v30 = vmul.f32 %v15537_v0, %v2309_v58  ;;  %7142 = vrcp.f32 %v10418_v10  ;;  %v2197_v47 = vor.u32 1.1754944e-38, %v2196_v59  ;;  %v2301_v31 = vand.u32 2147483647, %v10089_v48  ;;  %v15553_v59 = vld [vmem:[#allocation83_spill] sm:$0xff] }
 0x339   :  { %v10450_v32 = vpop.eup %7136  ;;  %v2325_v57 = vmul.f32 %v10184_v44, %v2324_v52  ;;  %v2408_v58 = vmul.f32 %v10428_v14, %v10363_v6  ;;  %7144 = vrcp.f32 %v10424_v49  ;;  %v2300_v33 = vsel %vm10457_vm15, %v10167_v23, %v2296_v24 }
 0x33a   :  { %v2304_v13 = vor.u32 1.1754944e-38, %v2303_v41  ;;  %v2394_v46 = vsub.f32 1.0, %v2393_v37  ;;  %7146 = vrcp.f32 %v10430_v61  ;;  %v10472_v28 = vsel %vm2195_vm14, %v2197_v47, %v2193_v11 }
 0x33b   :  { %v2338_v52 = vmul.f32 %v10192_v36, %v15553_v59  ;;  %v2423_v9 = vmul.f32 %v10450_v32, %v10372_v27  ;;  %v2311_v4 = vadd.f32 %v15537_v0, %v2310_v30  ;;  %vm2313_vm6 = vweird.f32 %v15537_v0 }
 0x33c   :  { %v2316_v23 = vand.u32 2147483647, %v15536_v60  ;;  %v10481_v24 = vpop.eup %7138  ;;  %v2318_v48 = vand.u32 2147483648, %v15536_v60  ;;  %v2326_v41 = vadd.f32 %v10184_v44, %v2325_v57  ;;  %vm2328_vm5 = vweird.f32 %v10184_v44 }
 0x33d   :  { %v2339_v37 = vsub.f32 1.0, %v2338_v52  ;;  %v10486_v11 = vpop.eup %7140  ;;  %v2409_v47 = vsub.f32 1.0, %v2408_v58  ;;  %vm2302_vm13 = vcmp.eq.f32.partialorder %v2301_v31, 8.507059e+37  ;;  %vm2312_vm11 = vweird.f32 %v15536_v60 }
 0x33e   :  { %v2333_v30 = vand.u32 2147483648, %v15539_v15  ;;  %v10490_v53 = vpop.eup %7142  ;;  %v10492_v43 = vsel %vm2302_vm13, %v2304_v13, %v2300_v33  ;;  %vm10494_vm12 = vmor %vm2312_vm11, %vm2313_vm6  ;;  %vm2327_vm0 = vweird.f32 %v15539_v15  ;;  %v2331_v57 = vand.u32 2147483647, %v15539_v15 }
 0x33f   :  { %v2395_v52 = vmul.f32 %v10409_v21, %v2394_v46  ;;  %v10501_v58 = vpop.eup %7144  ;;  %v2424_v31 = vsub.f32 1.0, %v2423_v9  ;;  %v2315_v60 = vsel %vm10494_vm12, %v15537_v0, %v2311_v4  ;;  %vm10506_vm4 = vcmp.eq.f32.partialorder %v2316_v23, 8.507059e+37  ;;  %vm10512_vm10 = vmor %vm2327_vm0, %vm2328_vm5 }
 0x340   :  { %v2346_v15 = vand.u32 2147483647, %v15553_v59  ;;  %v10517_v46 = vpop.eup %7146  ;;  %v2319_v56 = vor.u32 1.1754944e-38, %v2318_v48  ;;  %v2330_v54 = vsel %vm10512_vm10, %v10184_v44, %v2326_v41  ;;  %v2340_v0 = vmul.f32 %v10192_v36, %v2339_v37 }
 0x341   :  { %vm2342_vm2 = vweird.f32 %v15553_v59  ;;  %v2334_v4 = vor.u32 1.1754944e-38, %v2333_v30  ;;  %v2348_v9 = vand.u32 2147483648, %v15553_v59  ;;  %v2401_v23 = vand.u32 2147483647, %v10349_v42 }
 0x342   :  { %v2410_v45 = vmul.f32 %v10428_v14, %v2409_v47  ;;  %vm2332_vm8 = vcmp.eq.f32.partialorder %v2331_v57, 8.507059e+37  ;;  %vm2343_vm7 = vweird.f32 %v10192_v36  ;;  %v2396_v48 = vadd.f32 %v10409_v21, %v2395_v52 }
 0x343   :  { %vm2398_vm1 = vweird.f32 %v10409_v21  ;;  %v10532_v44 = vsel %vm10506_vm4, %v2319_v56, %v2315_v60  ;;  %v10534_v41 = vsel %vm2332_vm8, %v2334_v4, %v2330_v54  ;;  %vm10536_vm9 = vcmp.eq.f32.partialorder %v2346_v15, 8.507059e+37  ;;  %vm10565_vm13 = vmor %vm2342_vm2, %vm2343_vm7 }
 0x344   :  { %v2403_v30 = vand.u32 2147483648, %v10349_v42  ;;  %v2341_v47 = vadd.f32 %v10192_v36, %v2340_v0  ;;  %vm2397_vm3 = vweird.f32 %v10349_v42  ;;  %v2425_v57 = vmul.f32 %v10450_v32, %v2424_v31 }
 0x345   :  { %v2438_v52 = vmul.f32 %v10481_v24, %v10401_v50  ;;  %v2349_v33 = vor.u32 1.1754944e-38, %v2348_v9  ;;  %vm10546_vm14 = vmor %vm2397_vm3, %vm2398_vm1  ;;  %vm10550_vm15 = vcmp.eq.f32.partialorder %v2401_v23, 8.507059e+37  ;;  %v2411_v13 = vadd.f32 %v10428_v14, %v2410_v45 }
 0x346   :  { %vm2413_vm6 = vweird.f32 %v10428_v14  ;;  %v2400_v42 = vsel %vm10546_vm14, %v10409_v21, %v2396_v48  ;;  %vm2412_vm5 = vweird.f32 %v10363_v6  ;;  %v2418_v31 = vand.u32 2147483648, %v10363_v6 }
 0x347   :  { %v2439_v15 = vsub.f32 1.0, %v2438_v52  ;;  %v2404_v45 = vor.u32 1.1754944e-38, %v2403_v30  ;;  %v2416_v0 = vand.u32 2147483647, %v10363_v6  ;;  %vm2427_vm11 = vweird.f32 %v10372_v27  ;;  %vm10576_vm12 = vmor %vm2412_vm5, %vm2413_vm6 }
 0x348   :  { %v2453_v21 = vmul.f32 %v10486_v11, %v10411_v63  ;;  %v2345_v4 = vsel %vm10565_vm13, %v10192_v36, %v2341_v47  ;;  %v2426_v59 = vadd.f32 %v10450_v32, %v2425_v57  ;;  %vm2428_vm0 = vweird.f32 %v10450_v32 }
 0x349   :  { %v2440_v23 = vmul.f32 %v10481_v24, %v2439_v15  ;;  %v2405_v6 = vsel %vm10550_vm15, %v2404_v45, %v2400_v42  ;;  %v2415_v48 = vsel %vm10576_vm12, %v10428_v14, %v2411_v13  ;;  %v2431_v30 = vand.u32 2147483647, %v10372_v27  ;;  %vm10597_vm10 = vmor %vm2427_vm11, %vm2428_vm0 }
 0x34a   :  { %v2433_v36 = vand.u32 2147483648, %v10372_v27  ;;  %v2419_v47 = vor.u32 1.1754944e-38, %v2418_v31  ;;  %v2446_v52 = vand.u32 2147483647, %v10401_v50  ;;  %v2454_v56 = vsub.f32 1.0, %v2453_v21 }
 0x34b   :  { %v2468_v57 = vmul.f32 %v10490_v53, %v10418_v10  ;;  %v2350_v15 = vsel %vm10536_vm9, %v2349_v33, %v2345_v4  ;;  %vm2417_vm4 = vcmp.eq.f32.partialorder %v2416_v0, 8.507059e+37  ;;  %v2441_v14 = vadd.f32 %v10481_v24, %v2440_v23 }
 0x34c   :  { %vm2443_vm2 = vweird.f32 %v10481_v24  ;;  %v2420_v13 = vsel %vm2417_vm4, %v2419_v47, %v2415_v48  ;;  %v2430_v42 = vsel %vm10597_vm10, %v10450_v32, %v2426_v59  ;;  %vm2442_vm8 = vweird.f32 %v10401_v50 }
 0x34d   :  { %v2448_v37 = vand.u32 2147483648, %v10401_v50  ;;  %vm2432_vm7 = vcmp.eq.f32.partialorder %v2431_v30, 8.507059e+37  ;;  %v2434_v33 = vor.u32 1.1754944e-38, %v2433_v36  ;;  %v2463_v27 = vand.u32 2147483648, %v10411_v63  ;;  %vm10611_vm1 = vmor %vm2442_vm8, %vm2443_vm2 }
 0x34e   :  { %v2483_v31 = vmul.f32 %v10501_v58, %v10424_v49  ;;  %vm10615_vm9 = vcmp.eq.f32.partialorder %v2446_v52, 8.507059e+37  ;;  %v2455_v32 = vmul.f32 %v10486_v11, %v2454_v56  ;;  %vm2457_vm3 = vweird.f32 %v10411_v63 }
 0x34f   :  { %v2469_v50 = vsub.f32 1.0, %v2468_v57  ;;  %v2445_v0 = vsel %vm10611_vm1, %v10481_v24, %v2441_v14  ;;  %v2461_v21 = vand.u32 2147483647, %v10411_v63  ;;  %v2478_v4 = vand.u32 2147483648, %v10418_v10 }
 0x350   :  { %v2498_v9 = vmul.f32 %v10517_v46, %v10430_v61  ;;  %v2435_v59 = vsel %vm2432_vm7, %v2434_v33, %v2430_v42  ;;  %v2449_v23 = vor.u32 1.1754944e-38, %v2448_v37  ;;  %vm2458_vm14 = vweird.f32 %v10486_v11 }
 0x351   :  { %vm2473_vm15 = vweird.f32 %v10490_v53  ;;  %v2464_v48 = vor.u32 1.1754944e-38, %v2463_v27  ;;  %vm2472_vm6 = vweird.f32 %v10418_v10  ;;  %v2476_v30 = vand.u32 2147483647, %v10418_v10  ;;  %vm10678_vm0 = vmor %vm2457_vm3, %vm2458_vm14 }
 0x352   :  { %v2484_v36 = vsub.f32 1.0, %v2483_v31  ;;  %v2499_v24 = vsub.f32 1.0, %v2498_v9  ;;  %v2450_v47 = vsel %vm10615_vm9, %v2449_v23, %v2445_v0  ;;  %v2456_v52 = vadd.f32 %v10486_v11, %v2455_v32  ;;  %vm10700_vm10 = vmor %vm2472_vm6, %vm2473_vm15  ;;  %v15605_v23 = vld [vmem:[#allocation13_spill] sm:$0xff] }
 0x353   :  { %v2470_v56 = vmul.f32 %v10490_v53, %v2469_v50  ;;  %v15576_v57 = vrot.slane %v9831_v55, 7  ;;  %vm10639_vm5 = vcmp.eq.f32.partialorder %v2461_v21, 8.507059e+37  ;;  %v2479_v42 = vor.u32 1.1754944e-38, %v2478_v4 }
 0x354   :  { %vm2487_vm13 = vweird.f32 %v10424_v49  ;;  %vm2488_vm11 = vweird.f32 %v10501_v58  ;;  %v15579_v37 = vrot.slane %v9837_v20, 7  ;;  %v15580_v27 = vrot.slane %v15535_v25, 7 }
 0x355   :  { %v2540_v60 = vmul.f32 %v15576_v57, %v10492_v43  ;;  %v2491_v55 = vand.u32 2147483647, %v10424_v49  ;;  %v2493_v43 = vand.u32 2147483648, %v10424_v49  ;;  %v15581_v54 = vrot.slane %v15538_v17, 7  ;;  %vm10717_vm2 = vmor %vm2487_vm13, %vm2488_vm11 }
 0x356   :  { %v2541_v33 = vmul.f32 %v15579_v37, %v10532_v44  ;;  %v2542_v31 = vmul.f32 %v15580_v27, %v10534_v41  ;;  %v2549_v32 = vmul.f32 %v10345_v16, %v10404_v22  ;;  %vm10657_vm12 = vcmp.eq.f32.partialorder %v2476_v30, 8.507059e+37 }
 0x357   :  { %v2543_v45 = vmul.f32 %v15581_v54, %v2350_v15  ;;  %v2485_v20 = vmul.f32 %v10501_v58, %v2484_v36  ;;  %v2500_v44 = vmul.f32 %v10517_v46, %v2499_v24  ;;  %v2550_v25 = vmul.f32 %v10351_v2, %v10435_v26 }
 0x358   :  { %v2551_v41 = vmul.f32 %v10366_v5, %v10472_v28  ;;  %v10668_v17 = vadd.f32 %v10321_v12, %v2540_v60  ;;  %v10670_v15 = vadd.f32 %v2549_v32, %v2541_v33  ;;  %7148 = vtanh.f32 %v10328_v19 }
 0x359   :  { %v2568_v16 = vmul.f32 %v10416_v18, %v2405_v6  ;;  %v2471_v2 = vadd.f32 %v10490_v53, %v2470_v56  ;;  %v10683_v5 = vadd.f32 %v2550_v25, %v2542_v31  ;;  %v2569_v26 = vmul.f32 %v10422_v40, %v2420_v13 }
 0x35a   :  { %15584 = vst [vmem:[#allocation72_spill] sm:$0xff] %v10668_v17  ;;  %v10685_v12 = vadd.f32 %v2551_v41, %v2543_v45  ;;  %v2460_v18 = vsel %vm10678_vm0, %v10486_v11, %v2456_v52  ;;  %7150 = vtanh.f32 %v10668_v17  ;;  %v2570_v63 = vmul.f32 %v10443_v51, %v2435_v59 }
 0x35b   :  { %v2576_v28 = vpack.c.bf16 %v2568_v16, %v2568_v16  ;;  %v2486_v6 = vadd.f32 %v10501_v58, %v2485_v20  ;;  %vm2503_vm4 = vweird.f32 %v10517_v46  ;;  %7152 = vtanh.f32 %v10670_v15 }
 0x35c   :  { %15587 = vst [vmem:[#allocation69_spill] sm:$0xff] %v10685_v12  ;;  %v2577_v0 = vpack.c.bf16 %v2569_v26, %v2569_v26  ;;  %v2501_v11 = vadd.f32 %v10517_v46, %v2500_v44  ;;  %7154 = vtanh.f32 %v10683_v5  ;;  %v2578_v51 = vpack.c.bf16 %v2570_v63, %v2570_v63 }
 0x35d   :  { %v2592_v13 = vunpack.c.l.b16 %v2576_v28  ;;  %v2475_v21 = vsel %vm10700_vm10, %v10490_v53, %v2471_v2  ;;  %v2508_v4 = vand.u32 2147483648, %v10430_v61  ;;  %7156 = vtanh.f32 %v10685_v12 }
 0x35e   :  { %v2593_v9 = vunpack.c.l.b16 %v2577_v0  ;;  %v7149_v10 = vpop.eup %7148  ;;  %v2465_v59 = vsel %vm10639_vm5, %v2464_v48, %v2460_v18  ;;  %vm2502_vm8 = vweird.f32 %v10430_v61  ;;  %v2506_v53 = vand.u32 2147483647, %v10430_v61  ;;  %v15609_v48 = vld [vmem:[#allocation18_spill] sm:$0xff] }
 0x35f   :  { %v2600_v30 = vrot.slane %v2592_v13, 2  ;;  %v2490_v36 = vsel %vm10717_vm2, %v10501_v58, %v2486_v6  ;;  %vm2492_vm7 = vcmp.eq.f32.partialorder %v2491_v55, 8.507059e+37  ;;  %vm10728_vm1 = vmor %vm2502_vm8, %vm2503_vm4  ;;  %v2571_v49 = vmul.f32 %v7149_v10, %v2450_v47  ;;  %v15603_v10 = vld [vmem:[#allocation17_spill] sm:$0xff] }
 0x360   :  { %v2601_v24 = vrot.slane %v2593_v9, 1  ;;  %v7151_v52 = vpop.eup %7150  ;;  %v2480_v56 = vsel %vm10657_vm12, %v2479_v42, %v2475_v21  ;;  %v2494_v57 = vor.u32 1.1754944e-38, %v2493_v43  ;;  %v2505_v61 = vsel %vm10728_vm1, %v10517_v46, %v2501_v11  ;;  %v15602_v9 = vld [vmem:[#allocation12_spill] sm:$0xff] }
 0x361   :  { %v2594_v60 = vunpack.c.l.b16 %v2578_v51  ;;  %v7153_v58 = vpop.eup %7152  ;;  %v2509_v14 = vor.u32 1.1754944e-38, %v2508_v4  ;;  %v2572_v37 = vmul.f32 %v7151_v52, %v2465_v59  ;;  %v2579_v33 = vpack.c.bf16 %v2571_v49, %v2571_v49  ;;  %v15601_v4 = vld [vmem:[#allocation11_spill] sm:$0xff]  ;;  %v15604_v59 = vld [vmem:[#allocation14_spill] sm:$0xff]  ;;  %v15610_v49 = vld [vmem:[#allocation20_spill] sm:$0xff] }
 0x362   :  { %vm15594_vm9 = vcmask 1041409   ;;  %v7155_v31 = vpop.eup %7154  ;;  %v2495_v55 = vsel %vm2492_vm7, %v2494_v57, %v2490_v36  ;;  %vm2507_vm3 = vcmp.eq.f32.partialorder %v2506_v53, 8.507059e+37  ;;  %v2573_v47 = vmul.f32 %v7153_v58, %v2480_v56  ;;  %v15606_v53 = vld [vmem:[#allocation15_spill] sm:$0xff]  ;;  %v15608_v36 = vld [vmem:[#allocation16_spill] sm:$0xff]  ;;  %v15612_v52 = vld [vmem:[#allocation21_spill] sm:$0xff] }
 0x363   :  { %v2602_v27 = vsel %vm15594_vm9, %v2601_v24, %v2600_v30  ;;  %vm15595_vm14 = vcmask 1042434   ;;  %v7157_v45 = vpop.eup %7156  ;;  %v2510_v42 = vsel %vm2507_vm3, %v2509_v14, %v2505_v61  ;;  %v2574_v43 = vmul.f32 %v7155_v31, %v2495_v55  ;;  %v15607_v30 = vld [vmem:[#allocation19_spill] sm:$0xff]  ;;  %v15613_v56 = vld [vmem:[#allocation22_spill] sm:$0xff]  ;;  %v15614_v57 = vld [vmem:[#allocation24_spill] sm:$0xff] }
 0x364   :  { %v2603_v54 = vsel %vm15595_vm14, %v2594_v60, %v2602_v27  ;;  %v2580_v32 = vpack.c.bf16 %v2572_v37, %v2572_v37  ;;  %v2595_v50 = vunpack.c.l.b16 %v2579_v33  ;;  %v2575_v20 = vmul.f32 %v7157_v45, %v2510_v42  ;;  %v15611_v24 = vld [vmem:[#allocation23_spill] sm:$0xff]  ;;  %v15616_v60 = vld [vmem:[#allocation25_spill] sm:$0xff]  ;;  %v15617_v58 = vld [vmem:[#allocation26_spill] sm:$0xff] }
 0x365   :  { %v2581_v46 = vpack.c.bf16 %v2573_v47, %v2573_v47  ;;  %v2582_v44 = vpack.c.bf16 %v2574_v43, %v2574_v43  ;;  %vm15596_vm15 = vcmask 1043459   ;;  %vm15597_vm6 = vcmask 1044484   ;;  %v15615_v61 = vld [vmem:[#allocation27_spill] sm:$0xff]  ;;  %v15618_v14 = vld [vmem:[#allocation30_spill] sm:$0xff]  ;;  %v15620_v33 = vld [vmem:[#allocation29_spill] sm:$0xff] }
 0x366   :  { %v2596_v25 = vunpack.c.l.b16 %v2580_v32  ;;  %v2604_v41 = vrot.slane %v2595_v50, 7  ;;  %v2583_v16 = vpack.c.bf16 %v2575_v20, %v2575_v20  ;;  %vm15598_vm5 = vcmask 1045509   ;;  %v15619_v37 = vld [vmem:[#allocation31_spill] sm:$0xff]  ;;  %v15621_v27 = vld [vmem:[#allocation28_spill] sm:$0xff]  ;;  %v15622_v31 = vld [vmem:[#allocation34_spill] sm:$0xff] }
 0x367   :  { %v2597_v22 = vunpack.c.l.b16 %v2581_v46  ;;  %v2598_v2 = vunpack.c.l.b16 %v2582_v44  ;;  %vm15599_vm13 = vcmask 1046534   ;;  %vm15600_vm11 = vcmask 1047559   ;;  %v15623_v55 = vld [vmem:[#allocation35_spill] sm:$0xff]  ;;  %v15624_v47 = vld [vmem:[#allocation33_spill] sm:$0xff]  ;;  %v15627_v42 = vld [vmem:[#allocation38_spill] sm:$0xff] }
 0x368   :  { %v2605_v26 = vsel %vm15596_vm15, %v2604_v41, %v2603_v54  ;;  %v2606_v18 = vrot.slane %v2596_v25, 6  ;;  %v2599_v63 = vunpack.c.l.b16 %v2583_v16  ;;  %v15625_v54 = vld [vmem:[#allocation32_spill] sm:$0xff]  ;;  %v15626_v45 = vld [vmem:[#allocation41_spill] sm:$0xff]  ;;  %v15630_v50 = vld [vmem:[#allocation42_spill] sm:$0xff] }
 0x369   :  { %v2608_v28 = vrot.slane %v2597_v22, 5  ;;  %v2610_v0 = vrot.slane %v2598_v2, 4  ;;  %v15628_v43 = vld [vmem:[#allocation37_spill] sm:$0xff]  ;;  %v15629_v32 = vld [vmem:[#allocation36_spill] sm:$0xff]  ;;  %v15632_v46 = vld [vmem:[#allocation39_spill] sm:$0xff] }
 0x36a   :  { %v2607_v6 = vsel %vm15597_vm6, %v2606_v18, %v2605_v26  ;;  %v2612_v11 = vrot.slane %v2599_v63, 3  ;;  %v15631_v20 = vld [vmem:[#allocation40_spill] sm:$0xff] }
 0x36b   :  { %v2609_v40 = vsel %vm15598_vm5, %v2608_v28, %v2607_v6  ;;  %v15633_v28 = vld [vmem:[#allocation44_spill] sm:$0xff] }
 0x36c   :  { %v2611_v51 = vsel %vm15599_vm13, %v2610_v0, %v2609_v40  ;;  %v15634_v0 = vld [vmem:[#allocation45_spill] sm:$0xff] }
 0x36d   :  { %v2613_v13 = vsel %vm15600_vm11, %v2612_v11, %v2611_v51  ;;  %v15635_v11 = vld [vmem:[#allocation46_spill] sm:$0xff] }
 0x36e   :  { %v2614_v21 = vpack.c.b16 %v2613_v13, %v2613_v13  ;;  %v15636_v13 = vld [vmem:[#allocation43_spill] sm:$0xff] }
 0x370   :  { %2624 = vmatmul.bf16.vlgmr.msra.gmra.mxu0 %v2614_v21  ;;  %2637 = vmatmul.bf16.vlgmr.msrb.gmra.mxu1 %v2614_v21 }
 0x371   :  { %2650 = vmatmul.bf16.vlgmr.msra.gmra.mxu2 %v2614_v21  ;;  %2663 = vmatmul.bf16.vlgmr.msra.gmra.mxu3 %v2614_v21 }
 0x372   :  { %4048 = vmatpush.bf16.msra.mxu0 %v15601_v4  ;;  %4061 = vmatpush.bf16.msrb.mxu1 %v15602_v9 }
 0x373   :  { %4074 = vmatpush.bf16.msra.mxu2 %v15603_v10  ;;  %4087 = vmatpush.bf16.msra.mxu3 %v15604_v59 }
 0x376   :  { %4049 = vmatpush.bf16.msra.mxu0 %v15605_v23  ;;  %4062 = vmatpush.bf16.msrb.mxu1 %v15606_v53 }
 0x377   :  { %4075 = vmatpush.bf16.msra.mxu2 %v15607_v30  ;;  %4088 = vmatpush.bf16.msra.mxu3 %v15608_v36 }
 0x37a   :  { %4050 = vmatpush.bf16.msra.mxu0 %v15609_v48  ;;  %4063 = vmatpush.bf16.msrb.mxu1 %v15610_v49 }
 0x37b   :  { %4076 = vmatpush.bf16.msra.mxu2 %v15611_v24  ;;  %4089 = vmatpush.bf16.msra.mxu3 %v15612_v52  ;;  %v15658_v24 = vld [vmem:[#allocation57_spill] sm:$0xff] }
 0x37e   :  { %4051 = vmatpush.bf16.msra.mxu0 %v15613_v56  ;;  %4064 = vmatpush.bf16.msrb.mxu1 %v15614_v57 }
 0x37f   :  { %4077 = vmatpush.bf16.msra.mxu2 %v15615_v61  ;;  %4090 = vmatpush.bf16.msra.mxu3 %v15616_v60 }
 0x382   :  { %4052 = vmatpush.bf16.msra.mxu0 %v15617_v58  ;;  %4065 = vmatpush.bf16.msrb.mxu1 %v15618_v14 }
 0x383   :  { %4078 = vmatpush.bf16.msra.mxu2 %v15619_v37  ;;  %4091 = vmatpush.bf16.msra.mxu3 %v15620_v33 }
 0x386   :  { %4053 = vmatpush.bf16.msra.mxu0 %v15621_v27  ;;  %4066 = vmatpush.bf16.msrb.mxu1 %v15622_v31 }
 0x387   :  { %4079 = vmatpush.bf16.msra.mxu2 %v15623_v55  ;;  %4092 = vmatpush.bf16.msra.mxu3 %v15624_v47 }
 0x38a   :  { %4054 = vmatpush.bf16.msra.mxu0 %v15625_v54  ;;  %4067 = vmatpush.bf16.msrb.mxu1 %v15626_v45  ;;  %v15640_v54 = vld [vmem:[#allocation50_spill] sm:$0xff] }
 0x38b   :  { %4080 = vmatpush.bf16.msra.mxu2 %v15627_v42  ;;  %4093 = vmatpush.bf16.msra.mxu3 %v15628_v43  ;;  %v15639_v43 = vld [vmem:[#allocation49_spill] sm:$0xff] }
 0x38e   :  { %4055 = vmatpush.bf16.msra.mxu0 %v15629_v32  ;;  %4068 = vmatpush.bf16.msrb.mxu1 %v15630_v50  ;;  %v15638_v50 = vld [vmem:[#allocation48_spill] sm:$0xff] }
 0x38f   :  { %4081 = vmatpush.bf16.msra.mxu2 %v15631_v20  ;;  %4094 = vmatpush.bf16.msra.mxu3 %v15632_v46  ;;  %v15637_v20 = vld [vmem:[#allocation47_spill] sm:$0xff] }
 0x3ed   :  { %v2625_v44 = vpop.f32.mrf.mxu0  ;;  %v10776_v25 = vpop.f32.mrf.mxu1 }
 0x3ee   :  { %v2672_v41 = vrot.slane %v2625_v44, 5  ;;  %v2676_v16 = vrot.slane %v2625_v44, 6  ;;  %v2680_v22 = vrot.slane %v2625_v44, 7  ;;  %v2684_v2 = vrot.slane %v2625_v44, 1 }
 0x3ef   :  { %v2688_v26 = vrot.slane %v2625_v44, 2  ;;  %v2692_v18 = vrot.slane %v2625_v44, 3  ;;  %v2696_v63 = vrot.slane %v2625_v44, 4  ;;  %v2744_v6 = vadd.f32 %v2625_v44, %v15633_v28 }
 0x3f0   :  { %v2732_v40 = vadd.f32 %v2672_v41, %v15634_v0  ;;  %v2736_v51 = vadd.f32 %v2676_v16, %v15635_v11  ;;  %v2740_v21 = vadd.f32 %v2680_v22, %v15636_v13  ;;  %v2748_v46 = vadd.f32 %v2684_v2, %v15637_v20 }
 0x3f1   :  { %v2752_v32 = vadd.f32 %v2688_v26, %v15638_v50  ;;  %v2756_v42 = vadd.f32 %v2692_v18, %v15639_v43  ;;  %v6573_v45 = vmul.f32 -1.442695, %v2744_v6  ;;  %v2760_v47 = vadd.f32 %v2696_v63, %v15640_v54  ;;  %v15641_v6 = vld [vmem:[#allocation73_spill] sm:$0xff]  ;;  %v15648_v54 = vld [vmem:[#allocation78_spill] sm:$0xff] }
 0x3f2   :  { %v6570_v55 = vmul.f32 -1.442695, %v2732_v40  ;;  %v6571_v31 = vmul.f32 -1.442695, %v2736_v51  ;;  %v6572_v27 = vmul.f32 -1.442695, %v2740_v21 }
 0x3f3   :  { %7158 = vpow2.f32 %v6573_v45  ;;  %v6574_v44 = vmul.f32 -1.442695, %v2748_v46  ;;  %v6575_v41 = vmul.f32 -1.442695, %v2752_v32  ;;  %v2673_v16 = vrot.slane %v10776_v25, 5  ;;  %v15642_v21 = vld [vmem:[#allocation74_spill] sm:$0xff] }
 0x3f4   :  { %7160 = vpow2.f32 %v6570_v55  ;;  %v10787_v28 = vpop.f32.mrf.mxu2  ;;  %v6576_v22 = vmul.f32 -1.442695, %v2756_v42  ;;  %v6577_v18 = vmul.f32 -1.442695, %v2760_v47  ;;  %v2677_v63 = vrot.slane %v10776_v25, 6 }
 0x3f5   :  { %7162 = vpow2.f32 %v6571_v31  ;;  %v2627_v2 = vpop.f32.mrf.mxu0  ;;  %v2640_v26 = vpop.f32.mrf.mxu1  ;;  %v2733_v43 = vadd.f32 %v2673_v16, %v15641_v6  ;;  %v2681_v55 = vrot.slane %v10776_v25, 7  ;;  %v2685_v51 = vrot.slane %v10776_v25, 1 }
 0x3f6   :  { %7164 = vpow2.f32 %v6572_v27  ;;  %v15643_v2 = vld [vmem:[#allocation75_spill] sm:$0xff]  ;;  %v2674_v37 = vrot.slane %v10787_v28, 5 }
 0x3f7   :  { %7166 = vpow2.f32 %v6574_v44  ;;  %v6578_v32 = vmul.f32 -1.442695, %v2733_v43  ;;  %v2737_v44 = vadd.f32 %v2677_v63, %v15642_v21  ;;  %v2689_v43 = vrot.slane %v10776_v25, 2 }
 0x3f8   :  { %7168 = vpow2.f32 %v6575_v41  ;;  %v2741_v26 = vadd.f32 %v2681_v55, %v15643_v2  ;;  %v15647_v55 = vld [vmem:[#allocation77_spill] sm:$0xff] }
 0x3f9   :  { %v7159_v45 = vpop.eup %7158  ;;  %7170 = vpow2.f32 %v6576_v22  ;;  %v6579_v2 = vmul.f32 -1.442695, %v2737_v44  ;;  %v2753_v50 = vadd.f32 %v2689_v43, %v15648_v54  ;;  %v15651_v44 = vld [vmem:[#allocation67_spill] sm:$0xff] }
 0x3fa   :  { %v7161_v46 = vpop.eup %7160  ;;  %7172 = vpow2.f32 %v6577_v18  ;;  %v10792_v40 = vadd.f32 1.0, %v7159_v45 }
 0x3fb   :  { %v7163_v31 = vpop.eup %7162  ;;  %v10794_v42 = vadd.f32 1.0, %v7161_v46  ;;  %7174 = vpow2.f32 %v6578_v32  ;;  %v2693_v46 = vrot.slane %v10776_v25, 3 }
 0x3fc   :  { %v7165_v27 = vpop.eup %7164  ;;  %v10796_v47 = vadd.f32 1.0, %v7163_v31  ;;  %v2653_v41 = vpop.f32.mrf.mxu2  ;;  %v15644_v31 = vld [vmem:[#allocation76_spill] sm:$0xff] }
 0x3fd   :  { %v7167_v16 = vpop.eup %7166  ;;  %v10800_v22 = vadd.f32 1.0, %v7165_v27  ;;  %7176 = vrcp.f32 %v10794_v42  ;;  %v2745_v63 = vadd.f32 %v10776_v25, %v15644_v31  ;;  %v2697_v27 = vrot.slane %v10776_v25, 4 }
 0x3fe   :  { %v7169_v18 = vpop.eup %7168  ;;  %v10805_v45 = vadd.f32 1.0, %v7167_v16  ;;  %7178 = vrcp.f32 %v10792_v40  ;;  %v2749_v16 = vadd.f32 %v2685_v51, %v15647_v55  ;;  %v6580_v31 = vmul.f32 -1.442695, %v2741_v26 }
 0x3ff   :  { %v7171_v32 = vpop.eup %7170  ;;  %v10811_v41 = vadd.f32 1.0, %v7169_v18  ;;  %7180 = vrcp.f32 %v10796_v47  ;;  %v15649_v18 = vld [vmem:[#allocation79_spill] sm:$0xff]  ;;  %v6581_v0 = vmul.f32 -1.442695, %v2745_v63  ;;  %v2761_v43 = vadd.f32 %v2697_v27, %v15651_v44 }
 0x400   :  { %v7173_v21 = vpop.eup %7172  ;;  %v10815_v6 = vadd.f32 1.0, %v7171_v32  ;;  %7182 = vrcp.f32 %v10800_v22  ;;  %v2757_v11 = vadd.f32 %v2693_v46, %v15649_v18  ;;  %v6582_v26 = vmul.f32 -1.442695, %v2749_v16  ;;  %v15655_v46 = vld [vmem:[#allocation53_spill] sm:$0xff] }
 0x401   :  { %15645 = vst [vmem:[#allocation84_spill] sm:$0xff] %v10811_v41  ;;  %7184 = vrcp.f32 %v10805_v45  ;;  %v7175_v13 = vpop.eup %7174  ;;  %v10825_v32 = vadd.f32 1.0, %v7173_v21  ;;  %v6583_v21 = vmul.f32 -1.442695, %v2753_v50  ;;  %v2678_v16 = vrot.slane %v10787_v28, 6 }
 0x402   :  { %15646 = vst [vmem:[#allocation52_spill] sm:$0xff] %v10815_v6  ;;  %7186 = vrcp.f32 %v10811_v41  ;;  %v6584_v33 = vmul.f32 -1.442695, %v2757_v11  ;;  %v10845_v27 = vadd.f32 1.0, %v7175_v13  ;;  %v6585_v63 = vmul.f32 -1.442695, %v2761_v43  ;;  %v10851_v11 = vpop.f32.mrf.mxu3 }
 0x403   :  { %v10823_v25 = vpop.eup %7176  ;;  %15650 = vst [vmem:[#allocation71_spill] sm:$0xff] %v10825_v32  ;;  %7188 = vrcp.f32 %v10815_v6  ;;  %v15654_v43 = vld [vmem:[#allocation51_spill] sm:$0xff]  ;;  %v10872_v13 = vadd.f32 %v2678_v16, %v15655_v46  ;;  %v10888_v16 = vadd.f32 %v10787_v28, %v15658_v24  ;;  %vm2801_vm12 = vweird.f32 %v10794_v42 }
 0x404   :  { %v10828_v20 = vpop.eup %7178  ;;  %v2797_v51 = vmul.f32 %v10823_v25, %v10794_v42  ;;  %7190 = vpow2.f32 %v6579_v2  ;;  %v2686_v2 = vrot.slane %v10787_v28, 1  ;;  %vm2802_vm0 = vweird.f32 %v10823_v25 }
 0x405   :  { %v10833_v54 = vpop.eup %7180  ;;  %7192 = vpow2.f32 %v6580_v31  ;;  %v10860_v58 = vmul.f32 %v10828_v20, %v10792_v40  ;;  %v2807_v23 = vand.u32 2147483648, %v10794_v42  ;;  %vm10935_vm4 = vmor %vm2801_vm12, %vm2802_vm0  ;;  %vm2953_vm7 = vweird.f32 %v10845_v27 }
 0x406   :  { %v10837_v18 = vpop.eup %7182  ;;  %7194 = vpow2.f32 %v6581_v0  ;;  %v2798_v50 = vsub.f32 1.0, %v2797_v51  ;;  %v2682_v0 = vrot.slane %v10787_v28, 7  ;;  %vm2817_vm2 = vweird.f32 %v10833_v54 }
 0x407   :  { %v10841_v14 = vpop.eup %7184  ;;  %7196 = vrcp.f32 %v10825_v32  ;;  %vm2816_vm1 = vweird.f32 %v10796_v47  ;;  %vm2832_vm13 = vweird.f32 %v10837_v18  ;;  %vm2831_vm0 = vweird.f32 %v10800_v22 }
 0x408   :  { %v10848_v31 = vpop.eup %7186  ;;  %7198 = vpow2.f32 %v6582_v26  ;;  %v10864_v26 = vadd.f32 %v2674_v37, %v15654_v43  ;;  %v2799_v37 = vmul.f32 %v10823_v25, %v2798_v50  ;;  %v15659_v50 = vld [vmem:[#allocation59_spill] sm:$0xff]  ;;  %v10899_v49 = vmul.f32 %v10841_v14, %v10805_v45  ;;  %vm10989_vm15 = vmor %vm2816_vm1, %vm2817_vm2 }
 0x409   :  { %15652 = vst [vmem:[#allocation68_spill] sm:$0xff] %v10848_v31  ;;  %v10853_v55 = vpop.eup %7188  ;;  %7200 = vpow2.f32 %v6583_v21  ;;  %v2812_v21 = vmul.f32 %v10833_v54, %v10796_v47  ;;  %v10903_v24 = vmul.f32 %v10848_v31, %v10811_v41  ;;  %vm2846_vm2 = vweird.f32 %v10792_v40 }
 0x40a   :  { %15653 = vst [vmem:[#allocation81_spill] sm:$0xff] %v10853_v55  ;;  %v7191_v44 = vpop.eup %7190  ;;  %7202 = vpow2.f32 %v6584_v33  ;;  %v15656_v33 = vld [vmem:[#allocation55_spill] sm:$0xff]  ;;  %v10929_v17 = vmul.f32 %v10853_v55, %v10815_v6 }
 0x40b   :  { %v7193_v60 = vpop.eup %7192  ;;  %v10868_v61 = vadd.f32 1.0, %v7191_v44  ;;  %7204 = vrcp.f32 %v10845_v27  ;;  %v10877_v51 = vadd.f32 %v2682_v0, %v15656_v33  ;;  %v2959_v44 = vand.u32 2147483648, %v10845_v27 }
 0x40c   :  { %v7195_v57 = vpop.eup %7194  ;;  %7206 = vpow2.f32 %v6585_v63  ;;  %v10874_v56 = vadd.f32 1.0, %v7193_v60  ;;  %v2827_v60 = vmul.f32 %v10837_v18, %v10800_v22  ;;  %v10895_v33 = vadd.f32 %v2686_v2, %v15659_v50 }
 0x40d   :  { %v10880_v43 = vpop.eup %7196  ;;  %v10882_v52 = vadd.f32 1.0, %v7195_v57  ;;  %7208 = vrcp.f32 %v10868_v61  ;;  %v2813_v46 = vsub.f32 1.0, %v2812_v21  ;;  %v2800_v0 = vadd.f32 %v10823_v25, %v2799_v37  ;;  %v2666_v21 = vpop.f32.mrf.mxu3 }
 0x40e   :  { %15657 = vst [vmem:[#allocation70_spill] sm:$0xff] %v10880_v43  ;;  %v7199_v63 = vpop.eup %7198  ;;  %7210 = vrcp.f32 %v10874_v56  ;;  %v2805_v2 = vand.u32 2147483647, %v10794_v42  ;;  %v10914_v30 = vor.u32 1.1754944e-38, %v2959_v44  ;;  %v2974_v53 = vand.u32 2147483648, %v10868_v61 }
 0x40f   :  { %v7201_v57 = vpop.eup %7200  ;;  %7212 = vrcp.f32 %v10882_v52  ;;  %v10912_v36 = vadd.f32 1.0, %v7199_v63  ;;  %v2828_v10 = vsub.f32 1.0, %v2827_v60  ;;  %v2989_v4 = vand.u32 2147483648, %v10874_v56 }
 0x410   :  { %v7203_v48 = vpop.eup %7202  ;;  %v10918_v37 = vadd.f32 1.0, %v7201_v57  ;;  %v2858_v63 = vsub.f32 1.0, %v10899_v49  ;;  %v2814_v57 = vmul.f32 %v10833_v54, %v2813_v46  ;;  %v3004_v49 = vand.u32 2147483648, %v10882_v52 }
 0x411   :  { %v10910_v50 = vpop.eup %7204  ;;  %v10942_v43 = vadd.f32 1.0, %v7203_v48  ;;  %v2804_v44 = vsel %vm10935_vm4, %v10823_v25, %v2800_v0  ;;  %vm10948_vm10 = vcmp.eq.f32.partialorder %v2805_v2, 8.507059e+37  ;;  %v10956_v46 = vor.u32 1.1754944e-38, %v2974_v53 }
 0x412   :  { %v7207_v59 = vpop.eup %7206  ;;  %v2949_v9 = vmul.f32 %v10910_v50, %v10845_v27  ;;  %7214 = vrcp.f32 %v10912_v36  ;;  %v2808_v48 = vor.u32 1.1754944e-38, %v2807_v23  ;;  %v10961_v31 = vor.u32 1.1754944e-38, %v2989_v4 }
 0x413   :  { %v10923_v21 = vpop.eup %7208  ;;  %15662 = vst [vmem:[#allocation82_spill] sm:$0xff] %v10942_v43  ;;  %v10959_v55 = vadd.f32 1.0, %v7207_v59  ;;  %7216 = vrcp.f32 %v10918_v37  ;;  %v2815_v2 = vadd.f32 %v10833_v54, %v2814_v57  ;;  %vm2954_vm8 = vweird.f32 %v10910_v50 }
 0x414   :  { %v10940_v41 = vpop.eup %7210  ;;  %v2964_v32 = vmul.f32 %v10923_v21, %v10868_v61  ;;  %v2950_v12 = vsub.f32 1.0, %v2949_v9  ;;  %v10971_v23 = vor.u32 1.1754944e-38, %v3004_v49  ;;  %7218 = vrcp.f32 %v10942_v43 }
 0x415   :  { %v10952_v42 = vpop.eup %7212  ;;  %v2979_v25 = vmul.f32 %v10940_v41, %v10874_v56  ;;  %v2829_v4 = vmul.f32 %v10837_v18, %v2828_v10  ;;  %v2820_v59 = vand.u32 2147483647, %v10796_v47  ;;  %v2822_v53 = vand.u32 2147483648, %v10796_v47 }
 0x416   :  { %v2994_v0 = vmul.f32 %v10952_v42, %v10882_v52  ;;  %v2965_v9 = vsub.f32 1.0, %v2964_v32  ;;  %v2951_v60 = vmul.f32 %v10910_v50, %v2950_v12  ;;  %vm2968_vm9 = vweird.f32 %v10868_v61 }
 0x417   :  { %vm2969_vm3 = vweird.f32 %v10923_v21  ;;  %vm2984_vm14 = vweird.f32 %v10940_v41  ;;  %v10985_v10 = vsel %vm10948_vm10, %v2808_v48, %v2804_v44  ;;  %v2980_v47 = vsub.f32 1.0, %v2979_v25  ;;  %vm11027_vm10 = vmor %vm2831_vm0, %vm2832_vm13 }
 0x418   :  { %v10993_v57 = vpop.eup %7214  ;;  %vm2983_vm6 = vweird.f32 %v10874_v56  ;;  %v2995_v12 = vsub.f32 1.0, %v2994_v0  ;;  %vm2999_vm5 = vweird.f32 %v10952_v42  ;;  %v2819_v6 = vsel %vm10989_vm15, %v10833_v54, %v2815_v2 }
 0x419   :  { %v11000_v44 = vpop.eup %7216  ;;  %v11003_v49 = vadd.f32 %v10837_v18, %v2829_v4  ;;  %v2837_v48 = vand.u32 2147483648, %v10800_v22  ;;  %v15668_v25 = vsub.f32 1.0, %v10860_v58  ;;  %v2966_v0 = vmul.f32 %v10923_v21, %v2965_v9 }
 0x41a   :  { %15667 = vst [vmem:[#allocation80_spill] sm:$0xff] %v11000_v44  ;;  %vm2998_vm11 = vweird.f32 %v10882_v52  ;;  %vm2821_vm12 = vcmp.eq.f32.partialorder %v2820_v59, 8.507059e+37  ;;  %v2823_v32 = vor.u32 1.1754944e-38, %v2822_v53  ;;  %v11013_v54 = vpop.eup %7218  ;;  %v2835_v2 = vand.u32 2147483647, %v10800_v22 }
 0x41b   :  { %v2844_v43 = vmul.f32 %v10828_v20, %v15668_v25  ;;  %vm2847_vm4 = vweird.f32 %v10828_v20  ;;  %v2859_v58 = vmul.f32 %v10841_v14, %v2858_v63  ;;  %v2981_v25 = vmul.f32 %v10940_v41, %v2980_v47 }
 0x41c   :  { %v2996_v9 = vmul.f32 %v10952_v42, %v2995_v12  ;;  %v11023_v44 = vsel %vm2821_vm12, %v2823_v32, %v2819_v6  ;;  %v2834_v22 = vsel %vm11027_vm10, %v10837_v18, %v11003_v49  ;;  %v2850_v63 = vand.u32 2147483647, %v10792_v40  ;;  %vm11038_vm1 = vmor %vm2846_vm2, %vm2847_vm4 }
 0x41d   :  { %v11017_v4 = vadd.f32 %v10828_v20, %v2844_v43  ;;  %v2838_v43 = vor.u32 1.1754944e-38, %v2837_v48  ;;  %v2852_v53 = vand.u32 2147483648, %v10792_v40  ;;  %vm2861_vm15 = vweird.f32 %v10805_v45  ;;  %vm2955_vm12 = vmor %vm2953_vm7, %vm2954_vm8 }
 0x41e   :  { %vm2862_vm13 = vweird.f32 %v10841_v14  ;;  %v2952_v12 = vadd.f32 %v10910_v50, %v2951_v60  ;;  %v2957_v6 = vand.u32 2147483647, %v10845_v27  ;;  %vm11050_vm0 = vcmp.eq.f32.partialorder %v2835_v2, 8.507059e+37  ;;  %vm2970_vm8 = vmor %vm2968_vm9, %vm2969_vm3 }
 0x41f   :  { %v2849_v40 = vsel %vm11038_vm1, %v10828_v20, %v11017_v4  ;;  %v2860_v49 = vadd.f32 %v10841_v14, %v2859_v58  ;;  %v2967_v60 = vadd.f32 %v10923_v21, %v2966_v0  ;;  %v2972_v48 = vand.u32 2147483647, %v10868_v61  ;;  %vm2985_vm4 = vmor %vm2983_vm6, %vm2984_vm14 }
 0x420   :  { %v2865_v27 = vand.u32 2147483647, %v10805_v45  ;;  %v2956_v32 = vsel %vm2955_vm12, %v10910_v50, %v2952_v12  ;;  %vm2958_vm7 = vcmp.eq.f32.partialorder %v2957_v6, 8.507059e+37  ;;  %v2982_v2 = vadd.f32 %v10940_v41, %v2981_v25  ;;  %vm3000_vm9 = vmor %vm2998_vm11, %vm2999_vm5 }
 0x421   :  { %v2961_v20 = vsel %vm2958_vm7, %v10914_v30, %v2956_v32  ;;  %v2971_v0 = vsel %vm2970_vm8, %v10923_v21, %v2967_v60  ;;  %vm2973_vm10 = vcmp.eq.f32.partialorder %v2972_v48, 8.507059e+37  ;;  %v2987_v61 = vand.u32 2147483647, %v10874_v56  ;;  %vm11100_vm6 = vmor %vm2861_vm15, %vm2862_vm13 }
 0x422   :  { %v2867_v4 = vand.u32 2147483648, %v10805_v45  ;;  %v2976_v58 = vsel %vm2973_vm10, %v10956_v46, %v2971_v0  ;;  %v2986_v50 = vsel %vm2985_vm4, %v10940_v41, %v2982_v2  ;;  %v2997_v25 = vadd.f32 %v10952_v42, %v2996_v9 }
 0x423   :  { %vm2988_vm3 = vcmp.eq.f32.partialorder %v2987_v61, 8.507059e+37  ;;  %v3002_v30 = vand.u32 2147483647, %v10882_v52  ;;  %7220 = vtanh.f32 %v10864_v26  ;;  %v15675_v56 = vrot.slane %v10315_v1, 7 }
 0x424   :  { %v2991_v59 = vsel %vm2988_vm3, %v10961_v31, %v2986_v50  ;;  %v3001_v46 = vsel %vm3000_vm9, %v10952_v42, %v2997_v25  ;;  %7222 = vtanh.f32 %v10872_v13  ;;  %v15676_v41 = vrot.slane %v10319_v38, 7 }
 0x425   :  { %v3252_v21 = vmul.f32 %v15675_v56, %v2961_v20  ;;  %vm3003_vm14 = vcmp.eq.f32.partialorder %v3002_v30, 8.507059e+37  ;;  %7224 = vtanh.f32 %v10877_v51  ;;  %v15677_v47 = vrot.slane %v10323_v34, 7 }
 0x426   :  { %v3253_v9 = vmul.f32 %v15676_v41, %v2976_v58  ;;  %v2675_v26 = vrot.slane %v10851_v11, 5  ;;  %v3006_v31 = vsel %vm3003_vm14, %v10971_v23, %v3001_v46  ;;  %7226 = vtanh.f32 %v10888_v16 }
 0x427   :  { %v3254_v52 = vmul.f32 %v15677_v47, %v2991_v59  ;;  %v2679_v38 = vrot.slane %v10851_v11, 6  ;;  %v2683_v13 = vrot.slane %v10851_v11, 7  ;;  %v2853_v34 = vor.u32 1.1754944e-38, %v2852_v53 }
 0x428   :  { %v2864_v51 = vsel %vm11100_vm6, %v10841_v14, %v2860_v49  ;;  %7228 = vtanh.f32 %v10895_v33  ;;  %v15680_v45 = vrot.slane %v10328_v19, 7  ;;  %v2839_v12 = vsel %vm11050_vm0, %v2838_v43, %v2834_v22 }
 0x429   :  { %vm2851_vm5 = vcmp.eq.f32.partialorder %v2850_v63, 8.507059e+37  ;;  %v2868_v23 = vor.u32 1.1754944e-38, %v2867_v4  ;;  %v2735_v16 = vadd.f32 %v2675_v26, %v15373_v29  ;;  %v7221_v6 = vpop.eup %7220  ;;  %vm2866_vm11 = vcmp.eq.f32.partialorder %v2865_v27, 8.507059e+37 }
 0x42a   :  { %v3255_v42 = vmul.f32 %v15680_v45, %v3006_v31  ;;  %v2854_v60 = vsel %vm2851_vm5, %v2853_v34, %v2849_v40  ;;  %v2687_v53 = vrot.slane %v10851_v11, 1  ;;  %v2739_v48 = vadd.f32 %v2679_v38, %v15374_v35  ;;  %v7223_v14 = vpop.eup %7222  ;;  %v15683_v31 = vld [vmem:[#allocation66_spill] sm:$0xff] }
 0x42b   :  { %v2869_v49 = vsel %vm2866_vm11, %v2868_v23, %v2864_v51  ;;  %v3260_v33 = vmul.f32 %v7221_v6, %v10985_v10  ;;  %v2691_v19 = vrot.slane %v10851_v11, 2  ;;  %v2743_v18 = vadd.f32 %v2683_v13, %v15375_v3  ;;  %v7225_v22 = vpop.eup %7224 }
 0x42c   :  { %v3261_v43 = vmul.f32 %v7223_v14, %v11023_v44  ;;  %v2695_v63 = vrot.slane %v10851_v11, 3  ;;  %v2699_v40 = vrot.slane %v10851_v11, 4  ;;  %v6586_v27 = vmul.f32 -1.442695, %v2735_v16  ;;  %v7227_v32 = vpop.eup %7226  ;;  %v15686_v16 = vld [vmem:[#allocation69_spill] sm:$0xff] }
 0x42d   :  { %v3262_v2 = vmul.f32 %v7225_v22, %v2839_v12  ;;  %v11125_v20 = vadd.f32 %v3260_v33, %v3252_v21  ;;  %v2747_v0 = vadd.f32 %v10851_v11, %v15376_v62  ;;  %v6587_v10 = vmul.f32 -1.442695, %v2739_v48  ;;  %v15681_v11 = vld [vmem:[#allocation61_spill] sm:$0xff] }
 0x42e   :  { %v7229_v61 = vpop.eup %7228  ;;  %v3263_v4 = vmul.f32 %v7227_v32, %v2854_v60  ;;  %v11129_v58 = vadd.f32 %v3261_v43, %v3253_v9  ;;  %v2751_v50 = vadd.f32 %v2687_v53, %v15377_v39  ;;  %7230 = vpow2.f32 %v6586_v27  ;;  %v15687_v60 = vld [vmem:[#allocation63_spill] sm:$0xff]  ;;  %v15689_v14 = vld [vmem:[#allocation65_spill] sm:$0xff] }
 0x42f   :  { %v11132_v44 = vmul.f32 %v7229_v61, %v2869_v49  ;;  %v11134_v25 = vadd.f32 %v3262_v2, %v3254_v52  ;;  %v2755_v30 = vadd.f32 %v2691_v19, %v15532_v7  ;;  %v6588_v56 = vmul.f32 -1.442695, %v2743_v18  ;;  %v15691_v27 = vld [vmem:[#allocation81_spill] sm:$0xff]  ;;  %v15692_v2 = vld [vmem:[#allocation82_spill] sm:$0xff]  ;;  %v15693_v61 = vld [vmem:[#allocation71_spill] sm:$0xff] }
 0x430   :  { %7232 = vrcp.f32 %v10959_v55  ;;  %v2698_v21 = vrot.slane %v10787_v28, 4  ;;  %v15682_v59 = vrot.slane %v10787_v28, 2  ;;  %v11142_v41 = vadd.f32 %v3263_v4, %v3255_v42  ;;  %v15685_v42 = vld [vmem:[#allocation68_spill] sm:$0xff]  ;;  %v15694_v4 = vld [vmem:[#allocation70_spill] sm:$0xff] }
 0x431   :  { %7234 = vpow2.f32 %v6587_v10  ;;  %v6589_v52 = vmul.f32 -1.442695, %v2747_v0  ;;  %v3009_v26 = vmul.f32 %v10993_v57, %v10912_v36  ;;  %v2759_v1 = vadd.f32 %v2695_v63, %v15533_v8 }
 0x432   :  { %v2754_v46 = vadd.f32 %v15682_v59, %v15681_v11  ;;  %v2763_v38 = vadd.f32 %v2699_v40, %v15683_v31  ;;  %v6590_v13 = vmul.f32 -1.442695, %v2751_v50  ;;  %v2888_v34 = vsub.f32 1.0, %v10929_v17  ;;  %v15690_v17 = vld [vmem:[#allocation80_spill] sm:$0xff] }
 0x433   :  { %7236 = vpow2.f32 %v6588_v56  ;;  %v6591_v51 = vmul.f32 -1.442695, %v2755_v30  ;;  %v15684_v45 = vsub.f32 1.0, %v10903_v24  ;;  %v15688_v53 = vrot.slane %v10787_v28, 3 }
 0x434   :  { %v7231_v23 = vpop.eup %7230  ;;  %v2762_v49 = vadd.f32 %v2698_v21, %v15689_v14  ;;  %7238 = vtanh.f32 %v2754_v46  ;;  %v3019_v33 = vand.u32 2147483648, %v10912_v36  ;;  %v11162_v19 = vmul.f32 %v15690_v17, %v10918_v37  ;;  %v15695_v21 = vld [vmem:[#allocation84_spill] sm:$0xff] }
 0x435   :  { %v2874_v12 = vmul.f32 %v15685_v42, %v15684_v45  ;;  %v2758_v48 = vadd.f32 %v15688_v53, %v15687_v60  ;;  %7240 = vpow2.f32 %v6589_v52  ;;  %v11164_v24 = vadd.f32 1.0, %v7231_v23  ;;  %v15698_v23 = vld [vmem:[#allocation52_spill] sm:$0xff] }
 0x436   :  { %v11166_v18 = vpop.eup %7232  ;;  %v3010_v22 = vsub.f32 1.0, %v3009_v26  ;;  %7242 = vpow2.f32 %v6590_v13  ;;  %v6592_v43 = vmul.f32 -1.442695, %v2759_v1  ;;  %v6593_v63 = vmul.f32 -1.442695, %v2763_v38 }
 0x437   :  { %v7235_v28 = vpop.eup %7234  ;;  %7244 = vpow2.f32 %v6591_v51  ;;  %v2875_v40 = vadd.f32 %v15685_v42, %v2874_v12  ;;  %vm2877_vm2 = vweird.f32 %v15685_v42  ;;  %v2889_v32 = vmul.f32 %v15691_v27, %v2888_v34 }
 0x438   :  { %v11173_v0 = vmul.f32 %v11013_v54, %v15692_v2  ;;  %7246 = vtanh.f32 %v2758_v48  ;;  %v11175_v10 = vadd.f32 1.0, %v7235_v28  ;;  %v2902_v50 = vmul.f32 %v15694_v4, %v15693_v61 }
 0x439   :  { %v7237_v30 = vpop.eup %7236  ;;  %v3025_v56 = vsub.f32 1.0, %v11162_v19  ;;  %7248 = vrcp.f32 %v11164_v24  ;;  %vm2876_vm1 = vweird.f32 %v15695_v21  ;;  %v2882_v59 = vand.u32 2147483648, %v15695_v21 }
 0x43a   :  { %v11183_v46 = vpop.eup %7238  ;;  %v3011_v52 = vmul.f32 %v10993_v57, %v3010_v22  ;;  %7250 = vpow2.f32 %v6592_v43  ;;  %vm11186_vm15 = vmor %vm2876_vm1, %vm2877_vm2  ;;  %v2880_v1 = vand.u32 2147483647, %v15695_v21  ;;  %v2903_v38 = vsub.f32 1.0, %v2902_v50 }
 0x43b   :  { %v7241_v13 = vpop.eup %7240  ;;  %7252 = vpow2.f32 %v6593_v63  ;;  %v2879_v34 = vsel %vm11186_vm15, %v15685_v42, %v2875_v40  ;;  %v2890_v51 = vadd.f32 %v15691_v27, %v2889_v32  ;;  %vm2892_vm13 = vweird.f32 %v15691_v27 }
 0x43c   :  { %v7243_v45 = vpop.eup %7242  ;;  %v11196_v12 = vadd.f32 1.0, %v7237_v30  ;;  %7254 = vrcp.f32 %v11175_v10  ;;  %v2895_v53 = vand.u32 2147483647, %v15698_v23  ;;  %v2897_v48 = vand.u32 2147483648, %v15698_v23 }
 0x43d   :  { %v7245_v19 = vpop.eup %7244  ;;  %vm3013_vm12 = vweird.f32 %v10912_v36  ;;  %7256 = vtanh.f32 %v2762_v49  ;;  %v2883_v22 = vor.u32 1.1754944e-38, %v2882_v59  ;;  %vm2891_vm0 = vweird.f32 %v15698_v23 }
 0x43e   :  { %v2904_v42 = vmul.f32 %v15694_v4, %v2903_v38  ;;  %v11204_v43 = vpop.eup %7246  ;;  %v3040_v63 = vsub.f32 1.0, %v11173_v0  ;;  %7258 = vtanh.f32 %v11125_v20  ;;  %v11208_v28 = vadd.f32 1.0, %v7241_v13  ;;  %vm11212_vm7 = vmor %vm2891_vm0, %vm2892_vm13 }
 0x43f   :  { %vm2881_vm8 = vcmp.eq.f32.partialorder %v2880_v1, 8.507059e+37  ;;  %v11216_v49 = vpop.eup %7248  ;;  %7260 = vtanh.f32 %v11129_v58  ;;  %v11219_v32 = vadd.f32 1.0, %v7243_v45  ;;  %v2894_v0 = vsel %vm11212_vm7, %v15691_v27, %v2890_v51 }
 0x440   :  { %v11221_v50 = vsel %vm2881_vm8, %v2883_v22, %v2879_v34  ;;  %v7251_v30 = vpop.eup %7250  ;;  %v11226_v21 = vadd.f32 1.0, %v7245_v19  ;;  %7262 = vrcp.f32 %v11196_v12  ;;  %vm2896_vm4 = vcmp.eq.f32.partialorder %v2895_v53, 8.507059e+37 }
 0x441   :  { %v2898_v59 = vor.u32 1.1754944e-38, %v2897_v48  ;;  %v7253_v26 = vpop.eup %7252  ;;  %v2905_v1 = vadd.f32 %v15694_v4, %v2904_v42  ;;  %vm2907_vm10 = vweird.f32 %v15694_v4  ;;  %v2910_v38 = vand.u32 2147483647, %v15693_v61 }
 0x442   :  { %v2912_v13 = vand.u32 2147483648, %v15693_v61  ;;  %v11233_v34 = vpop.eup %7254  ;;  %v3109_v27 = vmul.f32 %v11216_v49, %v11164_v24  ;;  %7264 = vrcp.f32 %v11208_v28  ;;  %vm2906_vm9 = vweird.f32 %v15693_v61 }
 0x443   :  { %v11238_v51 = vsel %vm2896_vm4, %v2898_v59, %v2894_v0  ;;  %v11241_v45 = vpop.eup %7256  ;;  %v11243_v23 = vadd.f32 1.0, %v7251_v30  ;;  %7266 = vrcp.f32 %v11219_v32  ;;  %v3012_v53 = vadd.f32 %v10993_v57, %v3011_v52  ;;  %vm11255_vm14 = vmor %vm2906_vm9, %vm2907_vm10 }
 0x444   :  { %vm3014_vm3 = vweird.f32 %v10993_v57  ;;  %v11248_v48 = vpop.eup %7258  ;;  %v11250_v19 = vadd.f32 1.0, %v7253_v26  ;;  %7268 = vrcp.f32 %v11226_v21  ;;  %v3026_v22 = vmul.f32 %v15690_v17, %v3025_v56 }
 0x445   :  { %v3041_v42 = vmul.f32 %v11013_v54, %v3040_v63  ;;  %v11261_v40 = vpop.eup %7260  ;;  %v3124_v52 = vmul.f32 %v11233_v34, %v11175_v10  ;;  %v2909_v0 = vsel %vm11255_vm14, %v15694_v4, %v2905_v1  ;;  %vm11268_vm6 = vcmp.eq.f32.partialorder %v2910_v38, 8.507059e+37  ;;  %vm11276_vm5 = vmor %vm3013_vm12, %vm3014_vm3 }
 0x446   :  { %v2913_v59 = vor.u32 1.1754944e-38, %v2912_v13  ;;  %v11272_v26 = vpop.eup %7262  ;;  %v3110_v6 = vsub.f32 1.0, %v3109_v27  ;;  %v3017_v63 = vand.u32 2147483647, %v10912_v36  ;;  %v3020_v61 = vor.u32 1.1754944e-38, %v3019_v33 }
 0x447   :  { %v3054_v4 = vmul.f32 %v11166_v18, %v10959_v55  ;;  %v3016_v1 = vsel %vm11276_vm5, %v10993_v57, %v3012_v53  ;;  %vm3028_vm11 = vweird.f32 %v10918_v37  ;;  %vm3029_vm2 = vweird.f32 %v15690_v17 }
 0x448   :  { %v3032_v38 = vand.u32 2147483647, %v10918_v37  ;;  %v11291_v13 = vpop.eup %7264  ;;  %v3027_v27 = vadd.f32 %v15690_v17, %v3026_v22  ;;  %v3042_v36 = vadd.f32 %v11013_v54, %v3041_v42  ;;  %vm3044_vm1 = vweird.f32 %v11013_v54  ;;  %vm11310_vm13 = vmor %vm3028_vm11, %vm3029_vm2 }
 0x449   :  { %v3055_v33 = vsub.f32 1.0, %v3054_v4  ;;  %v11296_v47 = vpop.eup %7266  ;;  %v3125_v9 = vsub.f32 1.0, %v3124_v52  ;;  %v3034_v57 = vand.u32 2147483648, %v10918_v37  ;;  %v3047_v53 = vand.u32 2147483647, %v15692_v2 }
 0x44a   :  { %v3049_v56 = vand.u32 2147483648, %v15692_v2  ;;  %v11301_v31 = vpop.eup %7268  ;;  %v3139_v8 = vmul.f32 %v11272_v26, %v11196_v12  ;;  %7270 = vrcp.f32 %v11243_v23  ;;  %vm3018_vm15 = vcmp.eq.f32.partialorder %v3017_v63, 8.507059e+37 }
 0x44b   :  { %vm3043_vm12 = vweird.f32 %v15692_v2  ;;  %7272 = vrcp.f32 %v11250_v19  ;;  %v11318_v42 = vsel %vm11268_vm6, %v2913_v59, %v2909_v0  ;;  %v11320_v52 = vsel %vm3018_vm15, %v3020_v61, %v3016_v1 }
 0x44c   :  { %vm3033_vm0 = vcmp.eq.f32.partialorder %v3032_v38, 8.507059e+37  ;;  %vm3045_vm8 = vmor %vm3043_vm12, %vm3044_vm1  ;;  %v3031_v37 = vsel %vm11310_vm13, %v15690_v17, %v3027_v27  ;;  %v3056_v2 = vmul.f32 %v11166_v18, %v3055_v33  ;;  %v3111_v4 = vmul.f32 %v11216_v49, %v3110_v6 }
 0x44d   :  { %v3046_v63 = vsel %vm3045_vm8, %v11013_v54, %v3042_v36  ;;  %v3035_v7 = vor.u32 1.1754944e-38, %v3034_v57  ;;  %vm3048_vm7 = vcmp.eq.f32.partialorder %v3047_v53, 8.507059e+37  ;;  %v3050_v0 = vor.u32 1.1754944e-38, %v3049_v56 }
 0x44e   :  { %v3126_v30 = vmul.f32 %v11233_v34, %v3125_v9  ;;  %v3062_v59 = vand.u32 2147483647, %v10959_v55  ;;  %v3064_v61 = vand.u32 2147483648, %v10959_v55  ;;  %v3117_v1 = vand.u32 2147483647, %v11164_v24 }
 0x44f   :  { %v3140_v38 = vsub.f32 1.0, %v3139_v8  ;;  %v11334_v22 = vsel %vm3033_vm0, %v3035_v7, %v3031_v37  ;;  %v11336_v17 = vsel %vm3048_vm7, %v3050_v0, %v3046_v63  ;;  %vm3058_vm4 = vweird.f32 %v10959_v55 }
 0x450   :  { %vm3059_vm10 = vweird.f32 %v11166_v18  ;;  %v11340_v54 = vpop.eup %7270  ;;  %v3057_v6 = vadd.f32 %v11166_v18, %v3056_v2  ;;  %v3112_v9 = vadd.f32 %v11216_v49, %v3111_v4  ;;  %vm3114_vm9 = vweird.f32 %v11216_v49 }
 0x451   :  { %v3119_v27 = vand.u32 2147483648, %v11164_v24  ;;  %v11346_v36 = vpop.eup %7272  ;;  %vm3113_vm3 = vweird.f32 %v11164_v24  ;;  %v3127_v7 = vadd.f32 %v11233_v34, %v3126_v30  ;;  %vm3129_vm14 = vweird.f32 %v11233_v34  ;;  %vm11353_vm6 = vmor %vm3058_vm4, %vm3059_vm10 }
 0x452   :  { %v3154_v8 = vmul.f32 %v11291_v13, %v11208_v28  ;;  %vm11357_vm5 = vcmp.eq.f32.partialorder %v3062_v59, 8.507059e+37  ;;  %v3065_v57 = vor.u32 1.1754944e-38, %v3064_v61  ;;  %vm11361_vm11 = vcmp.eq.f32.partialorder %v3117_v1, 8.507059e+37  ;;  %vm11366_vm2 = vmor %vm3113_vm3, %vm3114_vm9 }
 0x453   :  { %v3141_v24 = vmul.f32 %v11272_v26, %v3140_v38  ;;  %vm3128_vm1 = vweird.f32 %v11175_v10  ;;  %v3134_v37 = vand.u32 2147483648, %v11175_v10  ;;  %v3169_v2 = vmul.f32 %v11296_v47, %v11219_v32 }
 0x454   :  { %v3155_v63 = vsub.f32 1.0, %v3154_v8  ;;  %v3061_v4 = vsel %vm11353_vm6, %v11166_v18, %v3057_v6  ;;  %v3116_v0 = vsel %vm11366_vm2, %v11216_v49, %v3112_v9  ;;  %v3120_v30 = vor.u32 1.1754944e-38, %v3119_v27  ;;  %vm11382_vm15 = vmor %vm3128_vm1, %vm3129_vm14 }
 0x455   :  { %v3132_v61 = vand.u32 2147483647, %v11175_v10  ;;  %v3131_v1 = vsel %vm11382_vm15, %v11233_v34, %v3127_v7  ;;  %vm3143_vm13 = vweird.f32 %v11196_v12  ;;  %v3170_v38 = vsub.f32 1.0, %v3169_v2 }
 0x456   :  { %v3156_v18 = vmul.f32 %v11291_v13, %v3155_v63  ;;  %v3142_v49 = vadd.f32 %v11272_v26, %v3141_v24  ;;  %vm3144_vm12 = vweird.f32 %v11272_v26  ;;  %v3147_v6 = vand.u32 2147483647, %v11196_v12 }
 0x457   :  { %v3149_v9 = vand.u32 2147483648, %v11196_v12  ;;  %v3066_v10 = vsel %vm11357_vm5, %v3065_v57, %v3061_v4  ;;  %v3135_v27 = vor.u32 1.1754944e-38, %v3134_v37  ;;  %v3162_v8 = vand.u32 2147483647, %v11208_v28  ;;  %vm11407_vm7 = vmor %vm3143_vm13, %vm3144_vm12 }
 0x458   :  { %v3184_v34 = vmul.f32 %v11301_v31, %v11226_v21  ;;  %v3121_v7 = vsel %vm11361_vm11, %v3120_v30, %v3116_v0  ;;  %vm3133_vm0 = vcmp.eq.f32.partialorder %v3132_v61, 8.507059e+37  ;;  %v3157_v55 = vadd.f32 %v11291_v13, %v3156_v18 }
 0x459   :  { %vm3159_vm8 = vweird.f32 %v11291_v13  ;;  %v3136_v24 = vsel %vm3133_vm0, %v3135_v27, %v3131_v1  ;;  %vm3158_vm4 = vweird.f32 %v11208_v28  ;;  %v3164_v57 = vand.u32 2147483648, %v11208_v28 }
 0x45a   :  { %v3171_v56 = vmul.f32 %v11296_v47, %v3170_v38  ;;  %v3146_v53 = vsel %vm11407_vm7, %v11272_v26, %v3142_v49  ;;  %vm3148_vm10 = vcmp.eq.f32.partialorder %v3147_v6, 8.507059e+37  ;;  %v3150_v37 = vor.u32 1.1754944e-38, %v3149_v9  ;;  %vm11419_vm9 = vmor %vm3158_vm4, %vm3159_vm8 }
 0x45b   :  { %v3199_v63 = vmul.f32 %v11340_v54, %v11243_v23  ;;  %vm11423_vm3 = vcmp.eq.f32.partialorder %v3162_v8, 8.507059e+37  ;;  %vm3173_vm14 = vweird.f32 %v11219_v32  ;;  %v3179_v28 = vand.u32 2147483648, %v11219_v32  ;;  %v15725_v8 = vld [vmem:[#allocation72_spill] sm:$0xff] }
 0x45c   :  { %v3185_v4 = vsub.f32 1.0, %v3184_v34  ;;  %v3161_v26 = vsel %vm11419_vm9, %v11291_v13, %v3157_v55  ;;  %v3177_v0 = vand.u32 2147483647, %v11219_v32  ;;  %v3194_v30 = vand.u32 2147483648, %v11226_v21 }
 0x45d   :  { %v3214_v59 = vmul.f32 %v11346_v36, %v11250_v19  ;;  %v11436_v61 = vsel %vm3148_vm10, %v3150_v37, %v3146_v53  ;;  %v3165_v1 = vor.u32 1.1754944e-38, %v3164_v57  ;;  %v3172_v18 = vadd.f32 %v11296_v47, %v3171_v56 }
 0x45e   :  { %vm3174_vm6 = vweird.f32 %v11296_v47  ;;  %vm3188_vm5 = vweird.f32 %v11226_v21  ;;  %vm3189_vm11 = vweird.f32 %v11301_v31  ;;  %v3192_v13 = vand.u32 2147483647, %v11226_v21 }
 0x45f   :  { %v3200_v38 = vsub.f32 1.0, %v3199_v63  ;;  %v3215_v49 = vsub.f32 1.0, %v3214_v59  ;;  %v3166_v6 = vsel %vm11423_vm3, %v3165_v1, %v3161_v26  ;;  %v3180_v9 = vor.u32 1.1754944e-38, %v3179_v28  ;;  %vm11451_vm2 = vmor %vm3173_vm14, %vm3174_vm6 }
 0x460   :  { %v3186_v27 = vmul.f32 %v11301_v31, %v3185_v4  ;;  %v15726_v34 = vrot.slane %v15725_v8, 7  ;;  %vm11455_vm1 = vcmp.eq.f32.partialorder %v3177_v0, 8.507059e+37  ;;  %v3195_v56 = vor.u32 1.1754944e-38, %v3194_v30  ;;  %vm11508_vm8 = vmor %vm3188_vm5, %vm3189_vm11 }
 0x461   :  { %vm3203_vm15 = vweird.f32 %v11243_v23  ;;  %v15731_v53 = vrot.slane %v10670_v15, 7  ;;  %v3176_v32 = vsel %vm11451_vm2, %v11296_v47, %v3172_v18  ;;  %vm3204_vm13 = vweird.f32 %v11340_v54  ;;  %v15751_v18 = vld [vmem:[#allocation11_spill] sm:$0xff] }
 0x462   :  { %v3256_v55 = vmul.f32 %v15726_v34, %v11320_v52  ;;  %v15732_v52 = vrot.slane %v10683_v5, 7  ;;  %v15733_v12 = vrot.slane %v15686_v16, 7  ;;  %v3265_v28 = vmul.f32 %v11183_v46, %v11221_v50  ;;  %vm11526_vm7 = vmor %vm3203_vm15, %vm3204_vm13 }
 0x463   :  { %v3257_v37 = vmul.f32 %v15731_v53, %v11334_v22  ;;  %vm11474_vm12 = vcmp.eq.f32.partialorder %v3192_v13, 8.507059e+37  ;;  %v3201_v15 = vmul.f32 %v11340_v54, %v3200_v38  ;;  %v3216_v5 = vmul.f32 %v11346_v36, %v3215_v49 }
 0x464   :  { %v3258_v63 = vmul.f32 %v15732_v52, %v11336_v17  ;;  %v3259_v2 = vmul.f32 %v15733_v12, %v3066_v10  ;;  %v3266_v22 = vmul.f32 %v11204_v43, %v11238_v51  ;;  %v3267_v47 = vmul.f32 %v11241_v45, %v11318_v42 }
 0x465   :  { %v11485_v16 = vadd.f32 %v11132_v44, %v3256_v55  ;;  %v11487_v17 = vadd.f32 %v3265_v28, %v3257_v37  ;;  %7274 = vtanh.f32 %v11134_v25  ;;  %v3284_v46 = vmul.f32 %v11248_v48, %v3121_v7 }
 0x466   :  { %v3187_v50 = vadd.f32 %v11301_v31, %v3186_v27  ;;  %v11492_v10 = vadd.f32 %v3266_v22, %v3258_v63  ;;  %v11494_v26 = vadd.f32 %v3267_v47, %v3259_v2  ;;  %7276 = vtanh.f32 %v11142_v41 }
 0x467   :  { %v3207_v43 = vand.u32 2147483647, %v11243_v23  ;;  %7278 = vtanh.f32 %v11485_v16  ;;  %v3285_v44 = vmul.f32 %v11261_v40, %v3136_v24  ;;  %v3292_v51 = vpack.c.bf16 %v3284_v46, %v3284_v46 }
 0x468   :  { %15736 = vst [vmem:[#allocation83_spill] sm:$0xff] %v11492_v10  ;;  %v3202_v45 = vadd.f32 %v11340_v54, %v3201_v15  ;;  %v3209_v42 = vand.u32 2147483648, %v11243_v23  ;;  %vm3219_vm0 = vweird.f32 %v11346_v36  ;;  %7280 = vtanh.f32 %v11487_v17 }
 0x469   :  { %15737 = vst [vmem:[#allocation68_spill] sm:$0xff] %v11494_v26  ;;  %v3217_v7 = vadd.f32 %v11346_v36, %v3216_v5  ;;  %7282 = vtanh.f32 %v11492_v10  ;;  %v3293_v40 = vpack.c.bf16 %v3285_v44, %v3285_v44  ;;  %v3308_v24 = vunpack.c.l.b16 %v3292_v51 }
 0x46a   :  { %v3191_v0 = vsel %vm11508_vm8, %v11301_v31, %v3187_v50  ;;  %v3222_v30 = vand.u32 2147483647, %v11250_v19  ;;  %v3224_v59 = vand.u32 2147483648, %v11250_v19  ;;  %7284 = vtanh.f32 %v11494_v26 }
 0x46b   :  { %v7275_v21 = vpop.eup %7274  ;;  %v3181_v1 = vsel %vm11455_vm1, %v3180_v9, %v3176_v32  ;;  %vm3218_vm4 = vweird.f32 %v11250_v19  ;;  %v3309_v31 = vunpack.c.l.b16 %v3293_v40  ;;  %v3316_v13 = vrot.slane %v3308_v24, 3  ;;  %v15757_v9 = vld [vmem:[#allocation19_spill] sm:$0xff] }
 0x46c   :  { %v7277_v38 = vpop.eup %7276  ;;  %v3206_v49 = vsel %vm11526_vm7, %v11340_v54, %v3202_v45  ;;  %vm3208_vm10 = vcmp.eq.f32.partialorder %v3207_v43, 8.507059e+37  ;;  %v3210_v27 = vor.u32 1.1754944e-38, %v3209_v42  ;;  %vm11536_vm9 = vmor %vm3218_vm4, %vm3219_vm0  ;;  %v3286_v23 = vmul.f32 %v7275_v21, %v11436_v61 }
 0x46d   :  { %v7279_v8 = vpop.eup %7278  ;;  %v3196_v19 = vsel %vm11474_vm12, %v3195_v56, %v3191_v0  ;;  %v3221_v34 = vsel %vm11536_vm9, %v11346_v36, %v3217_v7  ;;  %v3287_v55 = vmul.f32 %v7277_v38, %v3166_v6  ;;  %v3317_v54 = vrot.slane %v3309_v31, 2  ;;  %v15752_v31 = vld [vmem:[#allocation12_spill] sm:$0xff]  ;;  %v15754_v38 = vld [vmem:[#allocation14_spill] sm:$0xff] }
 0x46e   :  { %v7281_v33 = vpop.eup %7280  ;;  %vm3223_vm3 = vcmp.eq.f32.partialorder %v3222_v30, 8.507059e+37  ;;  %v3225_v57 = vor.u32 1.1754944e-38, %v3224_v59  ;;  %v3288_v53 = vmul.f32 %v7279_v8, %v3181_v1  ;;  %v3294_v37 = vpack.c.bf16 %v3286_v23, %v3286_v23  ;;  %v15758_v23 = vld [vmem:[#allocation16_spill] sm:$0xff]  ;;  %v15759_v8 = vld [vmem:[#allocation18_spill] sm:$0xff] }
 0x46f   :  { %v7283_v52 = vpop.eup %7282  ;;  %v3211_v63 = vsel %vm3208_vm10, %v3210_v27, %v3206_v49  ;;  %v3289_v32 = vmul.f32 %v7281_v33, %v3196_v19  ;;  %v3295_v12 = vpack.c.bf16 %v3287_v55, %v3287_v55  ;;  %vm15744_vm14 = vcmask 1041409   ;;  %v15755_v49 = vld [vmem:[#allocation13_spill] sm:$0xff]  ;;  %v15756_v27 = vld [vmem:[#allocation15_spill] sm:$0xff]  ;;  %v15760_v19 = vld [vmem:[#allocation20_spill] sm:$0xff] }
 0x470   :  { %v3318_v61 = vsel %vm15744_vm14, %v3317_v54, %v3316_v13  ;;  %v7285_v2 = vpop.eup %7284  ;;  %v3226_v28 = vsel %vm3223_vm3, %v3225_v57, %v3221_v34  ;;  %v3290_v56 = vmul.f32 %v7283_v52, %v3211_v63  ;;  %v3296_v4 = vpack.c.bf16 %v3288_v53, %v3288_v53  ;;  %v15753_v13 = vld [vmem:[#allocation17_spill] sm:$0xff]  ;;  %v15761_v34 = vld [vmem:[#allocation23_spill] sm:$0xff]  ;;  %v15763_v54 = vld [vmem:[#allocation22_spill] sm:$0xff] }
 0x471   :  { %v3310_v15 = vunpack.c.l.b16 %v3294_v37  ;;  %v3291_v5 = vmul.f32 %v7285_v2, %v3226_v28  ;;  %v3297_v36 = vpack.c.bf16 %v3289_v32, %v3289_v32  ;;  %v3311_v50 = vunpack.c.l.b16 %v3295_v12  ;;  %v15762_v55 = vld [vmem:[#allocation21_spill] sm:$0xff]  ;;  %v15764_v33 = vld [vmem:[#allocation24_spill] sm:$0xff]  ;;  %v15765_v57 = vld [vmem:[#allocation27_spill] sm:$0xff] }
 0x472   :  { %v3298_v6 = vpack.c.bf16 %v3290_v56, %v3290_v56  ;;  %v3312_v22 = vunpack.c.l.b16 %v3296_v4  ;;  %vm15745_vm6 = vcmask 1042434   ;;  %vm15746_vm5 = vcmask 1043459   ;;  %v15766_v53 = vld [vmem:[#allocation25_spill] sm:$0xff]  ;;  %v15767_v37 = vld [vmem:[#allocation26_spill] sm:$0xff]  ;;  %v15769_v63 = vld [vmem:[#allocation31_spill] sm:$0xff] }
 0x473   :  { %v3319_v47 = vrot.slane %v3310_v15, 1  ;;  %v3299_v46 = vpack.c.bf16 %v3291_v5, %v3291_v5  ;;  %v3313_v43 = vunpack.c.l.b16 %v3297_v36  ;;  %vm15747_vm11 = vcmask 1044484   ;;  %v15768_v52 = vld [vmem:[#allocation30_spill] sm:$0xff]  ;;  %v15770_v32 = vld [vmem:[#allocation29_spill] sm:$0xff]  ;;  %v15771_v12 = vld [vmem:[#allocation28_spill] sm:$0xff] }
 0x474   :  { %v3314_v44 = vunpack.c.l.b16 %v3298_v6  ;;  %v3322_v45 = vrot.slane %v3312_v22, 7  ;;  %vm15748_vm2 = vcmask 1045509   ;;  %vm15749_vm1 = vcmask 1046534   ;;  %v15773_v2 = vld [vmem:[#allocation35_spill] sm:$0xff]  ;;  %v15774_v28 = vld [vmem:[#allocation33_spill] sm:$0xff]  ;;  %v15775_v56 = vld [vmem:[#allocation32_spill] sm:$0xff] }
 0x475   :  { %v3320_v51 = vsel %vm15745_vm6, %v3319_v47, %v3318_v61  ;;  %v3315_v42 = vunpack.c.l.b16 %v3299_v46  ;;  %v3324_v7 = vrot.slane %v3313_v43, 6  ;;  %vm15750_vm15 = vcmask 1047559   ;;  %v15772_v61 = vld [vmem:[#allocation34_spill] sm:$0xff]  ;;  %v15776_v4 = vld [vmem:[#allocation41_spill] sm:$0xff]  ;;  %v15779_v36 = vld [vmem:[#allocation36_spill] sm:$0xff] }
 0x476   :  { %v3321_v48 = vsel %vm15746_vm5, %v3311_v50, %v3320_v51  ;;  %v3326_v24 = vrot.slane %v3314_v44, 5  ;;  %v15777_v15 = vld [vmem:[#allocation38_spill] sm:$0xff]  ;;  %v15778_v5 = vld [vmem:[#allocation37_spill] sm:$0xff]  ;;  %v15781_v22 = vld [vmem:[#allocation40_spill] sm:$0xff] }
 0x477   :  { %v3323_v40 = vsel %vm15747_vm11, %v3322_v45, %v3321_v48  ;;  %v3328_v30 = vrot.slane %v3315_v42, 4  ;;  %v15780_v6 = vld [vmem:[#allocation42_spill] sm:$0xff]  ;;  %v15782_v47 = vld [vmem:[#allocation39_spill] sm:$0xff] }
 0x478   :  { %v3325_v0 = vsel %vm15748_vm2, %v3324_v7, %v3323_v40  ;;  %v15783_v40 = vld [vmem:[#allocation47_spill] sm:$0xff] }
 0x479   :  { %v3327_v59 = vsel %vm15749_vm1, %v3326_v24, %v3325_v0  ;;  %v15784_v0 = vld [vmem:[#allocation45_spill] sm:$0xff] }
 0x47a   :  { %v3329_v21 = vsel %vm15750_vm15, %v3328_v30, %v3327_v59  ;;  %v15785_v59 = vld [vmem:[#allocation46_spill] sm:$0xff] }
 0x47b   :  { %v3330_v1 = vpack.c.b16 %v3329_v21, %v3329_v21 }
 0x47d   :  { %3340 = vmatmul.bf16.vlgmr.msrb.gmra.mxu0 %v3330_v1  ;;  %3353 = vmatmul.bf16.vlgmr.msra.gmra.mxu1 %v3330_v1 }
 0x47e   :  { %3366 = vmatmul.bf16.vlgmr.msrb.gmra.mxu2 %v3330_v1  ;;  %3379 = vmatmul.bf16.vlgmr.msrb.gmra.mxu3 %v3330_v1  ;;  %v15786_v1 = vld [vmem:[#allocation43_spill] sm:$0xff] }
 0x47f   :  { %4764 = vmatpush.bf16.msrb.mxu0 %v15751_v18  ;;  %4777 = vmatpush.bf16.msra.mxu1 %v15752_v31 }
 0x480   :  { %4790 = vmatpush.bf16.msrb.mxu2 %v15753_v13  ;;  %4803 = vmatpush.bf16.msrb.mxu3 %v15754_v38 }
 0x483   :  { %4765 = vmatpush.bf16.msrb.mxu0 %v15755_v49  ;;  %4778 = vmatpush.bf16.msra.mxu1 %v15756_v27 }
 0x484   :  { %4791 = vmatpush.bf16.msrb.mxu2 %v15757_v9  ;;  %4804 = vmatpush.bf16.msrb.mxu3 %v15758_v23 }
 0x487   :  { %4766 = vmatpush.bf16.msrb.mxu0 %v15759_v8  ;;  %4779 = vmatpush.bf16.msra.mxu1 %v15760_v19 }
 0x488   :  { %4792 = vmatpush.bf16.msrb.mxu2 %v15761_v34  ;;  %4805 = vmatpush.bf16.msrb.mxu3 %v15762_v55  ;;  %v15806_v34 = vld [vmem:[#allocation57_spill] sm:$0xff] }
 0x48b   :  { %4767 = vmatpush.bf16.msrb.mxu0 %v15763_v54  ;;  %4780 = vmatpush.bf16.msra.mxu1 %v15764_v33  ;;  %v15804_v54 = vld [vmem:[#allocation53_spill] sm:$0xff] }
 0x48c   :  { %4793 = vmatpush.bf16.msrb.mxu2 %v15765_v57  ;;  %4806 = vmatpush.bf16.msrb.mxu3 %v15766_v53  ;;  %v15803_v57 = vld [vmem:[#allocation51_spill] sm:$0xff] }
 0x48f   :  { %4768 = vmatpush.bf16.msrb.mxu0 %v15767_v37  ;;  %4781 = vmatpush.bf16.msra.mxu1 %v15768_v52 }
 0x490   :  { %4794 = vmatpush.bf16.msrb.mxu2 %v15769_v63  ;;  %4807 = vmatpush.bf16.msrb.mxu3 %v15770_v32 }
 0x493   :  { %4769 = vmatpush.bf16.msrb.mxu0 %v15771_v12  ;;  %4782 = vmatpush.bf16.msra.mxu1 %v15772_v61 }
 0x494   :  { %4795 = vmatpush.bf16.msrb.mxu2 %v15773_v2  ;;  %4808 = vmatpush.bf16.msrb.mxu3 %v15774_v28  ;;  %v15790_v28 = vld [vmem:[#allocation50_spill] sm:$0xff] }
 0x497   :  { %4770 = vmatpush.bf16.msrb.mxu0 %v15775_v56  ;;  %4783 = vmatpush.bf16.msra.mxu1 %v15776_v4 }
 0x498   :  { %4796 = vmatpush.bf16.msrb.mxu2 %v15777_v15  ;;  %4809 = vmatpush.bf16.msrb.mxu3 %v15778_v5  ;;  %v15789_v15 = vld [vmem:[#allocation49_spill] sm:$0xff] }
 0x49b   :  { %4771 = vmatpush.bf16.msrb.mxu0 %v15779_v36  ;;  %4784 = vmatpush.bf16.msra.mxu1 %v15780_v6  ;;  %v15787_v6 = vld [vmem:[#allocation44_spill] sm:$0xff] }
 0x49c   :  { %4797 = vmatpush.bf16.msrb.mxu2 %v15781_v22  ;;  %4810 = vmatpush.bf16.msrb.mxu3 %v15782_v47  ;;  %v15788_v36 = vld [vmem:[#allocation48_spill] sm:$0xff] }
 0x4fa   :  { %v3341_v46 = vpop.f32.mrf.mxu0  ;;  %v11585_v50 = vpop.f32.mrf.mxu1 }
 0x4fb   :  { %v3388_v43 = vrot.slane %v3341_v46, 4  ;;  %v3392_v44 = vrot.slane %v3341_v46, 5  ;;  %v3396_v51 = vrot.slane %v3341_v46, 6  ;;  %v3400_v45 = vrot.slane %v3341_v46, 7 }
 0x4fc   :  { %v3404_v42 = vrot.slane %v3341_v46, 1  ;;  %v3408_v48 = vrot.slane %v3341_v46, 2  ;;  %v3412_v7 = vrot.slane %v3341_v46, 3  ;;  %v3464_v24 = vadd.f32 %v3341_v46, %v15783_v40 }
 0x4fd   :  { %v3448_v30 = vadd.f32 %v3388_v43, %v15784_v0  ;;  %v3452_v21 = vadd.f32 %v3392_v44, %v15785_v59  ;;  %v3456_v22 = vadd.f32 %v3396_v51, %v15786_v1  ;;  %v3460_v47 = vadd.f32 %v3400_v45, %v15787_v6 }
 0x4fe   :  { %v3468_v5 = vadd.f32 %v3404_v42, %v15788_v36  ;;  %v3472_v4 = vadd.f32 %v3408_v48, %v15789_v15  ;;  %v6598_v56 = vmul.f32 -1.442695, %v3464_v24  ;;  %v3476_v2 = vadd.f32 %v3412_v7, %v15790_v28  ;;  %v15791_v24 = vld [vmem:[#allocation73_spill] sm:$0xff] }
 0x4ff   :  { %v6594_v61 = vmul.f32 -1.442695, %v3448_v30  ;;  %v6595_v12 = vmul.f32 -1.442695, %v3452_v21  ;;  %v6596_v32 = vmul.f32 -1.442695, %v3456_v22 }
 0x500   :  { %v6597_v63 = vmul.f32 -1.442695, %v3460_v47  ;;  %7286 = vpow2.f32 %v6598_v56  ;;  %v6599_v46 = vmul.f32 -1.442695, %v3468_v5  ;;  %v3389_v43 = vrot.slane %v11585_v50, 4  ;;  %v15792_v21 = vld [vmem:[#allocation74_spill] sm:$0xff] }
 0x501   :  { %7288 = vpow2.f32 %v6594_v61  ;;  %v11596_v44 = vpop.f32.mrf.mxu2  ;;  %v6600_v51 = vmul.f32 -1.442695, %v3472_v4  ;;  %v6601_v48 = vmul.f32 -1.442695, %v3476_v2  ;;  %v3393_v22 = vrot.slane %v11585_v50, 5  ;;  %v11669_v33 = vpop.f32.mrf.mxu3 }
 0x502   :  { %7290 = vpow2.f32 %v6595_v12  ;;  %v3343_v45 = vpop.f32.mrf.mxu0  ;;  %v3356_v42 = vpop.f32.mrf.mxu1  ;;  %v3449_v15 = vadd.f32 %v3389_v43, %v15791_v24  ;;  %v3397_v61 = vrot.slane %v11585_v50, 6  ;;  %v3401_v12 = vrot.slane %v11585_v50, 7 }
 0x503   :  { %7292 = vpow2.f32 %v6596_v32  ;;  %v3409_v45 = vrot.slane %v11585_v50, 2  ;;  %v15793_v42 = vld [vmem:[#allocation75_spill] sm:$0xff]  ;;  %v3394_v0 = vrot.slane %v11596_v44, 5  ;;  %v3398_v36 = vrot.slane %v11596_v44, 6 }
 0x504   :  { %7294 = vpow2.f32 %v6597_v63  ;;  %v6602_v56 = vmul.f32 -1.442695, %v3449_v15  ;;  %v3405_v63 = vrot.slane %v11585_v50, 1  ;;  %v3410_v52 = vrot.slane %v11596_v44, 2 }
 0x505   :  { %7296 = vpow2.f32 %v6599_v46  ;;  %v3453_v46 = vadd.f32 %v3393_v22, %v15792_v21 }
 0x506   :  { %v7287_v47 = vpop.eup %7286  ;;  %7298 = vpow2.f32 %v6600_v51 }
 0x507   :  { %v7289_v5 = vpop.eup %7288  ;;  %7300 = vpow2.f32 %v6601_v48  ;;  %v11601_v7 = vadd.f32 1.0, %v7287_v47  ;;  %v3457_v48 = vadd.f32 %v3397_v61, %v15793_v42  ;;  %v15798_v61 = vld [vmem:[#allocation78_spill] sm:$0xff]  ;;  %v6603_v42 = vmul.f32 -1.442695, %v3453_v46  ;;  %v15801_v46 = vld [vmem:[#allocation67_spill] sm:$0xff] }
 0x508   :  { %v7291_v4 = vpop.eup %7290  ;;  %v11604_v32 = vadd.f32 1.0, %v7289_v5  ;;  %7302 = vpow2.f32 %v6602_v56  ;;  %v3413_v56 = vrot.slane %v11585_v50, 3 }
 0x509   :  { %v7293_v2 = vpop.eup %7292  ;;  %v11606_v30 = vadd.f32 1.0, %v7291_v4  ;;  %v3369_v43 = vpop.f32.mrf.mxu2  ;;  %v15794_v4 = vld [vmem:[#allocation76_spill] sm:$0xff] }
 0x50a   :  { %v7295_v51 = vpop.eup %7294  ;;  %v11610_v15 = vadd.f32 1.0, %v7293_v2  ;;  %7304 = vrcp.f32 %v11604_v32  ;;  %v3461_v24 = vadd.f32 %v3401_v12, %v15794_v4  ;;  %v15796_v2 = vld [vmem:[#allocation77_spill] sm:$0xff]  ;;  %v15799_v12 = vld [vmem:[#allocation79_spill] sm:$0xff]  ;;  %v6604_v4 = vmul.f32 -1.442695, %v3457_v48 }
 0x50b   :  { %v7297_v47 = vpop.eup %7296  ;;  %v11615_v5 = vadd.f32 1.0, %v7295_v51  ;;  %7306 = vrcp.f32 %v11601_v7  ;;  %v3465_v43 = vadd.f32 %v11585_v50, %v15796_v2  ;;  %v3469_v51 = vadd.f32 %v3405_v63, %v15798_v61 }
 0x50c   :  { %v7299_v28 = vpop.eup %7298  ;;  %v11619_v22 = vadd.f32 1.0, %v7297_v47  ;;  %7308 = vrcp.f32 %v11606_v30  ;;  %v3473_v47 = vadd.f32 %v3409_v45, %v15799_v12  ;;  %v6605_v1 = vmul.f32 -1.442695, %v3461_v24 }
 0x50d   :  { %v7301_v21 = vpop.eup %7300  ;;  %v11625_v40 = vadd.f32 1.0, %v7299_v28  ;;  %7310 = vrcp.f32 %v11610_v15  ;;  %v3477_v61 = vadd.f32 %v3413_v56, %v15801_v46  ;;  %v6606_v45 = vmul.f32 -1.442695, %v3465_v43 }
 0x50e   :  { %15795 = vst [vmem:[#allocation69_spill] sm:$0xff] %v11619_v22  ;;  %7312 = vrcp.f32 %v11615_v5  ;;  %v7303_v6 = vpop.eup %7302  ;;  %v11636_v2 = vadd.f32 1.0, %v7301_v21  ;;  %v6607_v48 = vmul.f32 -1.442695, %v3469_v51  ;;  %v6608_v50 = vmul.f32 -1.442695, %v3473_v47 }
 0x50f   :  { %15797 = vst [vmem:[#allocation80_spill] sm:$0xff] %v11625_v40  ;;  %7314 = vrcp.f32 %v11619_v22  ;;  %v3390_v28 = vrot.slane %v11596_v44, 4  ;;  %v3406_v46 = vrot.slane %v11596_v44, 1  ;;  %v3414_v43 = vrot.slane %v11596_v44, 3 }
 0x510   :  { %v11632_v59 = vpop.eup %7304  ;;  %15800 = vst [vmem:[#allocation81_spill] sm:$0xff] %v11636_v2  ;;  %7316 = vrcp.f32 %v11625_v40  ;;  %vm3517_vm13 = vweird.f32 %v11604_v32  ;;  %v3523_v38 = vand.u32 2147483648, %v11604_v32  ;;  %vm3532_vm3 = vweird.f32 %v11606_v30 }
 0x511   :  { %v11639_v63 = vpop.eup %7306  ;;  %7318 = vpow2.f32 %v6603_v42  ;;  %v3513_v24 = vmul.f32 %v11632_v59, %v11604_v32  ;;  %v3402_v42 = vrot.slane %v11596_v44, 7  ;;  %v11667_v51 = vadd.f32 %v3390_v28, %v15803_v57  ;;  %v15807_v57 = vld [vmem:[#allocation59_spill] sm:$0xff] }
 0x512   :  { %v11642_v12 = vpop.eup %7308  ;;  %7320 = vpow2.f32 %v6604_v4  ;;  %v11657_v4 = vadd.f32 1.0, %v7303_v6  ;;  %vm3518_vm12 = vweird.f32 %v11632_v59  ;;  %v3524_v26 = vor.u32 1.1754944e-38, %v3523_v38 }
 0x513   :  { %v11647_v21 = vpop.eup %7310  ;;  %7322 = vpow2.f32 %v6605_v1  ;;  %v6609_v1 = vmul.f32 -1.442695, %v3477_v61  ;;  %v3514_v53 = vsub.f32 1.0, %v3513_v24  ;;  %v15805_v61 = vld [vmem:[#allocation55_spill] sm:$0xff]  ;;  %v11678_v19 = vadd.f32 %v3402_v42, %v15806_v34  ;;  %vm11758_vm0 = vmor %vm3517_vm13, %vm3518_vm12 }
 0x514   :  { %v11652_v56 = vpop.eup %7312  ;;  %7324 = vrcp.f32 %v11636_v2  ;;  %v11675_v55 = vadd.f32 %v3398_v36, %v15805_v61  ;;  %v3528_v36 = vmul.f32 %v11642_v12, %v11606_v30  ;;  %v3675_v34 = vand.u32 2147483648, %v11657_v4 }
 0x515   :  { %v11659_v47 = vpop.eup %7314  ;;  %7326 = vpow2.f32 %v6606_v45  ;;  %v11672_v45 = vadd.f32 %v3394_v0, %v15804_v54  ;;  %v3543_v8 = vmul.f32 %v11647_v21, %v11610_v15  ;;  %vm3669_vm4 = vweird.f32 %v11657_v4 }
 0x516   :  { %v11663_v37 = vpop.eup %7316  ;;  %7328 = vpow2.f32 %v6607_v48  ;;  %v11682_v48 = vmul.f32 %v11639_v63, %v11601_v7  ;;  %v3529_v9 = vsub.f32 1.0, %v3528_v36  ;;  %v11724_v27 = vor.u32 1.1754944e-38, %v3675_v34 }
 0x517   :  { %15802 = vst [vmem:[#allocation82_spill] sm:$0xff] %v11663_v37  ;;  %v7319_v6 = vpop.eup %7318  ;;  %7330 = vpow2.f32 %v6608_v50  ;;  %v11689_v50 = vadd.f32 %v11596_v44, %v15807_v57  ;;  %v3515_v44 = vmul.f32 %v11632_v59, %v3514_v53  ;;  %v11722_v53 = vadd.f32 %v3414_v43, %v15689_v14  ;;  %v3382_v43 = vpop.f32.mrf.mxu3 }
 0x518   :  { %v7321_v24 = vpop.eup %7320  ;;  %v11684_v28 = vadd.f32 1.0, %v7319_v6  ;;  %7332 = vrcp.f32 %v11657_v4  ;;  %v11702_v6 = vadd.f32 %v3406_v46, %v15681_v11  ;;  %v11718_v46 = vmul.f32 %v11659_v47, %v11619_v22 }
 0x519   :  { %v7323_v0 = vpop.eup %7322  ;;  %7334 = vpow2.f32 %v6609_v1  ;;  %v11693_v42 = vadd.f32 1.0, %v7321_v24  ;;  %v11709_v1 = vmul.f32 %v11652_v56, %v11615_v5  ;;  %v11713_v24 = vadd.f32 %v3410_v52, %v15687_v60 }
 0x51a   :  { %v11696_v61 = vpop.eup %7324  ;;  %v11698_v54 = vadd.f32 1.0, %v7323_v0  ;;  %7336 = vrcp.f32 %v11684_v28  ;;  %v3521_v52 = vand.u32 2147483647, %v11604_v32  ;;  %v3690_v23 = vand.u32 2147483648, %v11684_v28 }
 0x51b   :  { %15808 = vst [vmem:[#allocation71_spill] sm:$0xff] %v11696_v61  ;;  %v7327_v57 = vpop.eup %7326  ;;  %7338 = vrcp.f32 %v11693_v42  ;;  %v3516_v49 = vadd.f32 %v11632_v59, %v3515_v44  ;;  %v3544_v13 = vsub.f32 1.0, %v3543_v8  ;;  %v3559_v34 = vsub.f32 1.0, %v11709_v1 }
 0x51c   :  { %v7329_v0 = vpop.eup %7328  ;;  %7340 = vrcp.f32 %v11698_v54  ;;  %v11737_v36 = vmul.f32 %v11663_v37, %v11625_v40  ;;  %v11739_v31 = vadd.f32 1.0, %v7327_v57  ;;  %v3705_v43 = vand.u32 2147483648, %v11693_v42 }
 0x51d   :  { %v7331_v11 = vpop.eup %7330  ;;  %v11744_v44 = vadd.f32 1.0, %v7329_v0  ;;  %v3720_v40 = vand.u32 2147483648, %v11698_v54  ;;  %vm11762_vm8 = vcmp.eq.f32.partialorder %v3521_v52, 8.507059e+37  ;;  %v3530_v22 = vmul.f32 %v11642_v12, %v3529_v9 }
 0x51e   :  { %v11728_v60 = vpop.eup %7332  ;;  %v11751_v1 = vadd.f32 1.0, %v7331_v11  ;;  %v11771_v2 = vor.u32 1.1754944e-38, %v3690_v23  ;;  %v3520_v32 = vsel %vm11758_vm0, %v11632_v59, %v3516_v49  ;;  %7342 = vrcp.f32 %v11739_v31 }
 0x51f   :  { %v7335_v14 = vpop.eup %7334  ;;  %15809 = vst [vmem:[#allocation70_spill] sm:$0xff] %v11744_v44  ;;  %v3665_v61 = vmul.f32 %v11728_v60, %v11657_v4  ;;  %vm3670_vm7 = vweird.f32 %v11728_v60  ;;  %v11784_v23 = vor.u32 1.1754944e-38, %v3705_v43  ;;  %7344 = vrcp.f32 %v11744_v44 }
 0x520   :  { %v11741_v18 = vpop.eup %7336  ;;  %15810 = vst [vmem:[#allocation84_spill] sm:$0xff] %v11751_v1  ;;  %v11769_v11 = vadd.f32 1.0, %v7335_v14  ;;  %v11788_v38 = vor.u32 1.1754944e-38, %v3720_v40  ;;  %7346 = vrcp.f32 %v11751_v1  ;;  %v3531_v49 = vadd.f32 %v11642_v12, %v3530_v22 }
 0x521   :  { %v11749_v8 = vpop.eup %7338  ;;  %v3680_v10 = vmul.f32 %v11741_v18, %v11684_v28  ;;  %v3666_v14 = vsub.f32 1.0, %v3665_v61  ;;  %vm3533_vm10 = vweird.f32 %v11642_v12  ;;  %v3536_v59 = vand.u32 2147483647, %v11606_v30 }
 0x522   :  { %v11767_v37 = vpop.eup %7340  ;;  %15815 = vst [vmem:[#allocation52_spill] sm:$0xff] %v11769_v11  ;;  %v3695_v52 = vmul.f32 %v11749_v8, %v11693_v42  ;;  %7348 = vrcp.f32 %v11769_v11  ;;  %v3538_v61 = vand.u32 2147483648, %v11606_v30  ;;  %v3545_v43 = vmul.f32 %v11647_v21, %v3544_v13  ;;  %vm11806_vm5 = vmor %vm3532_vm3, %vm3533_vm10 }
 0x523   :  { %v3710_v9 = vmul.f32 %v11767_v37, %v11698_v54  ;;  %v3681_v57 = vsub.f32 1.0, %v3680_v10  ;;  %vm3684_vm9 = vweird.f32 %v11684_v28  ;;  %v3667_v1 = vmul.f32 %v11728_v60, %v3666_v14  ;;  %vm11858_vm3 = vmor %vm3669_vm4, %vm3670_vm7 }
 0x524   :  { %v3696_v44 = vsub.f32 1.0, %v3695_v52  ;;  %vm3685_vm14 = vweird.f32 %v11741_v18  ;;  %vm3700_vm6 = vweird.f32 %v11749_v8  ;;  %v11804_v22 = vsel %vm11762_vm8, %v3524_v26, %v3520_v32  ;;  %v11810_v10 = vpop.eup %7342 }
 0x525   :  { %v3711_v40 = vsub.f32 1.0, %v3710_v9  ;;  %vm3699_vm11 = vweird.f32 %v11693_v42  ;;  %vm3715_vm2 = vweird.f32 %v11767_v37  ;;  %v3535_v13 = vsel %vm11806_vm5, %v11642_v12, %v3531_v49  ;;  %v11821_v26 = vpop.eup %7344  ;;  %vm11877_vm7 = vmor %vm3684_vm9, %vm3685_vm14 }
 0x526   :  { %v11818_v30 = vadd.f32 %v11647_v21, %v3545_v43  ;;  %vm3548_vm1 = vweird.f32 %v11647_v21  ;;  %vm3714_vm15 = vweird.f32 %v11698_v54  ;;  %vm3537_vm13 = vcmp.eq.f32.partialorder %v3536_v59, 8.507059e+37  ;;  %v11826_v9 = vpop.eup %7346  ;;  %vm3701_vm14 = vmor %vm3699_vm11, %vm3700_vm6 }
 0x527   :  { %v3539_v0 = vor.u32 1.1754944e-38, %v3538_v61  ;;  %v3553_v32 = vand.u32 2147483648, %v11610_v15  ;;  %v3560_v52 = vmul.f32 %v11652_v56, %v3559_v34  ;;  %15818 = vst [vmem:[#allocation72_spill] sm:$0xff] %v11826_v9  ;;  %v3682_v11 = vmul.f32 %v11741_v18, %v3681_v57 }
 0x528   :  { %v3697_v12 = vmul.f32 %v11749_v8, %v3696_v44  ;;  %v3712_v14 = vmul.f32 %v11767_v37, %v3711_v40  ;;  %vm3547_vm12 = vweird.f32 %v11610_v15  ;;  %v11832_v49 = vpop.eup %7348  ;;  %vm3563_vm8 = vweird.f32 %v11652_v56 }
 0x529   :  { %15819 = vst [vmem:[#allocation85_spill] sm:$0xff] %v11832_v49  ;;  %v11834_v43 = vsel %vm3537_vm13, %v3539_v0, %v3535_v13  ;;  %vm11836_vm0 = vmor %vm3547_vm12, %vm3548_vm1  ;;  %v11841_v34 = vadd.f32 %v11652_v56, %v3560_v52  ;;  %v15822_v61 = vsub.f32 1.0, %v11682_v48  ;;  %v3551_v40 = vand.u32 2147483647, %v11610_v15 }
 0x52a   :  { %v3550_v57 = vsel %vm11836_vm0, %v11647_v21, %v11818_v30  ;;  %vm3562_vm10 = vweird.f32 %v11615_v5  ;;  %v3566_v13 = vand.u32 2147483647, %v11615_v5  ;;  %v3554_v48 = vor.u32 1.1754944e-38, %v3553_v32  ;;  %vm3716_vm0 = vmor %vm3714_vm15, %vm3715_vm2 }
 0x52b   :  { %v3575_v44 = vmul.f32 %v11639_v63, %v15822_v61  ;;  %v3568_v52 = vand.u32 2147483648, %v11615_v5  ;;  %vm3577_vm5 = vweird.f32 %v11601_v7  ;;  %v3668_v21 = vadd.f32 %v11728_v60, %v3667_v1  ;;  %vm11865_vm1 = vmor %vm3562_vm10, %vm3563_vm8 }
 0x52c   :  { %vm3578_vm13 = vweird.f32 %v11639_v63  ;;  %v3581_v30 = vand.u32 2147483647, %v11601_v7  ;;  %v3673_v59 = vand.u32 2147483647, %v11657_v4  ;;  %v3683_v61 = vadd.f32 %v11741_v18, %v3682_v11 }
 0x52d   :  { %v3565_v1 = vsel %vm11865_vm1, %v11652_v56, %v11841_v34  ;;  %v3576_v32 = vadd.f32 %v11639_v63, %v3575_v44  ;;  %v3672_v4 = vsel %vm11858_vm3, %v11728_v60, %v3668_v21  ;;  %v3688_v11 = vand.u32 2147483647, %v11684_v28  ;;  %vm11927_vm11 = vmor %vm3577_vm5, %vm3578_vm13 }
 0x52e   :  { %vm11890_vm4 = vcmp.eq.f32.partialorder %v3551_v40, 8.507059e+37  ;;  %vm3674_vm9 = vcmp.eq.f32.partialorder %v3673_v59, 8.507059e+37  ;;  %v3687_v9 = vsel %vm11877_vm7, %v11741_v18, %v3683_v61  ;;  %v3698_v15 = vadd.f32 %v11749_v8, %v3697_v12 }
 0x52f   :  { %v3703_v56 = vand.u32 2147483647, %v11693_v42  ;;  %v3583_v60 = vand.u32 2147483648, %v11601_v7  ;;  %v3677_v28 = vsel %vm3674_vm9, %v11724_v27, %v3672_v4  ;;  %vm3689_vm12 = vcmp.eq.f32.partialorder %v3688_v11, 8.507059e+37 }
 0x530   :  { %v3713_v34 = vadd.f32 %v11767_v37, %v3712_v14  ;;  %v3692_v18 = vsel %vm3689_vm12, %v11771_v2, %v3687_v9  ;;  %v3702_v12 = vsel %vm3701_vm14, %v11749_v8, %v3698_v15  ;;  %v3718_v42 = vand.u32 2147483647, %v11698_v54 }
 0x531   :  { %vm3704_vm8 = vcmp.eq.f32.partialorder %v3703_v56, 8.507059e+37  ;;  %7350 = vtanh.f32 %v11667_v51  ;;  %v15831_v27 = vrot.slane %v11125_v20, 7  ;;  %v15832_v0 = vrot.slane %v11129_v58, 7 }
 0x532   :  { %v3707_v44 = vsel %vm3704_vm8, %v11784_v23, %v3702_v12  ;;  %v3717_v40 = vsel %vm3716_vm0, %v11767_v37, %v3713_v34  ;;  %vm3719_vm6 = vcmp.eq.f32.partialorder %v3718_v42, 8.507059e+37  ;;  %7352 = vtanh.f32 %v11672_v45  ;;  %v15838_v42 = vld [vmem:[#allocation64_spill] sm:$0xff] }
 0x533   :  { %v3968_v14 = vmul.f32 %v15831_v27, %v3677_v28  ;;  %v3969_v2 = vmul.f32 %v15832_v0, %v3692_v18  ;;  %v15833_v8 = vrot.slane %v11134_v25, 7  ;;  %v3722_v20 = vsel %vm3719_vm6, %v11788_v38, %v3717_v40  ;;  %v15837_v18 = vld [vmem:[#allocation62_spill] sm:$0xff] }
 0x534   :  { %7354 = vtanh.f32 %v11675_v55  ;;  %v3391_v37 = vrot.slane %v11669_v33, 4  ;;  %v3395_v58 = vrot.slane %v11669_v33, 5  ;;  %v3580_v25 = vsel %vm11927_vm11, %v11639_v63, %v3576_v32 }
 0x535   :  { %v3970_v9 = vmul.f32 %v15833_v8, %v3707_v44  ;;  %7356 = vtanh.f32 %v11678_v19  ;;  %v15836_v7 = vrot.slane %v11142_v41, 7  ;;  %v3399_v45 = vrot.slane %v11669_v33, 6 }
 0x536   :  { %v3569_v23 = vor.u32 1.1754944e-38, %v3568_v52  ;;  %v3584_v21 = vor.u32 1.1754944e-38, %v3583_v60  ;;  %7358 = vtanh.f32 %v11689_v50  ;;  %v3403_v55 = vrot.slane %v11669_v33, 7 }
 0x537   :  { %v3971_v51 = vmul.f32 %v15836_v7, %v3722_v20  ;;  %vm3567_vm2 = vcmp.eq.f32.partialorder %v3566_v13, 8.507059e+37  ;;  %vm3582_vm15 = vcmp.eq.f32.partialorder %v3581_v30, 8.507059e+37  ;;  %v3451_v38 = vadd.f32 %v3391_v37, %v15373_v29  ;;  %v7351_v63 = vpop.eup %7350 }
 0x538   :  { %v3455_v59 = vadd.f32 %v3395_v58, %v15374_v35  ;;  %v3555_v19 = vsel %vm11890_vm4, %v3554_v48, %v3550_v57  ;;  %v3570_v41 = vsel %vm3567_vm2, %v3569_v23, %v3565_v1  ;;  %v3585_v61 = vsel %vm3582_vm15, %v3584_v21, %v3580_v25  ;;  %v7353_v52 = vpop.eup %7352  ;;  %v15841_v21 = vld [vmem:[#allocation83_spill] sm:$0xff] }
 0x539   :  { %v3407_v5 = vrot.slane %v11669_v33, 1  ;;  %v3976_v32 = vmul.f32 %v7351_v63, %v11804_v22  ;;  %v3411_v50 = vrot.slane %v11669_v33, 2  ;;  %v3415_v13 = vrot.slane %v11669_v33, 3 }
 0x53a   :  { %v3459_v30 = vadd.f32 %v3399_v45, %v15375_v3  ;;  %v7355_v4 = vpop.eup %7354  ;;  %7360 = vtanh.f32 %v11702_v6  ;;  %v3977_v11 = vmul.f32 %v7353_v52, %v11834_v43  ;;  %v3463_v49 = vadd.f32 %v3403_v55, %v15376_v62  ;;  %v15845_v52 = vld [vmem:[#allocation72_spill] sm:$0xff] }
 0x53b   :  { %v6610_v57 = vmul.f32 -1.442695, %v3451_v38  ;;  %v7357_v48 = vpop.eup %7356  ;;  %v3978_v1 = vmul.f32 %v7355_v4, %v3555_v19  ;;  %v11956_v15 = vadd.f32 %v3976_v32, %v3968_v14  ;;  %v3467_v22 = vadd.f32 %v11669_v33, %v15377_v39  ;;  %v15839_v33 = vld [vmem:[#allocation66_spill] sm:$0xff]  ;;  %v15842_v38 = vld [vmem:[#allocation68_spill] sm:$0xff] }
 0x53c   :  { %v6611_v56 = vmul.f32 -1.442695, %v3455_v59  ;;  %v7359_v60 = vpop.eup %7358  ;;  %v3979_v28 = vmul.f32 %v7357_v48, %v3570_v41  ;;  %v11960_v34 = vadd.f32 %v3977_v11, %v3969_v2  ;;  %v3471_v12 = vadd.f32 %v3407_v5, %v15837_v18  ;;  %v15844_v5 = vld [vmem:[#allocation84_spill] sm:$0xff] }
 0x53d   :  { %7362 = vpow2.f32 %v6610_v57  ;;  %v11963_v6 = vmul.f32 %v7359_v60, %v3585_v61  ;;  %v11965_v43 = vadd.f32 %v3978_v1, %v3970_v9  ;;  %v3475_v44 = vadd.f32 %v3411_v50, %v15838_v42  ;;  %v15843_v61 = vld [vmem:[#allocation70_spill] sm:$0xff]  ;;  %v15846_v50 = vld [vmem:[#allocation81_spill] sm:$0xff] }
 0x53e   :  { %v6612_v40 = vmul.f32 -1.442695, %v3459_v30  ;;  %7364 = vtanh.f32 %v11713_v24  ;;  %v11969_v27 = vadd.f32 %v3979_v28, %v3971_v51  ;;  %v3479_v14 = vadd.f32 %v3415_v13, %v15839_v33  ;;  %v15847_v13 = vld [vmem:[#allocation71_spill] sm:$0xff]  ;;  %v15848_v57 = vld [vmem:[#allocation82_spill] sm:$0xff] }
 0x53f   :  { %v6613_v0 = vmul.f32 -1.442695, %v3463_v49  ;;  %7366 = vpow2.f32 %v6611_v56  ;;  %v6614_v2 = vmul.f32 -1.442695, %v3467_v22  ;;  %v3725_v54 = vmul.f32 %v11810_v10, %v11739_v31  ;;  %v15849_v22 = vld [vmem:[#allocation69_spill] sm:$0xff] }
 0x540   :  { %v11972_v8 = vpop.eup %7360  ;;  %v3735_v9 = vand.u32 2147483648, %v11739_v31  ;;  %7368 = vtanh.f32 %v11722_v53  ;;  %v6615_v20 = vmul.f32 -1.442695, %v3471_v12  ;;  %v6616_v58 = vmul.f32 -1.442695, %v3475_v44 }
 0x541   :  { %7370 = vpow2.f32 %v6612_v40  ;;  %v3604_v7 = vsub.f32 1.0, %v11737_v36  ;;  %v6617_v51 = vmul.f32 -1.442695, %v3479_v14  ;;  %v15840_v45 = vsub.f32 1.0, %v11718_v46 }
 0x542   :  { %7372 = vpow2.f32 %v6613_v0  ;;  %v3726_v19 = vsub.f32 1.0, %v3725_v54  ;;  %v11990_v41 = vor.u32 1.1754944e-38, %v3735_v9  ;;  %v11994_v36 = vmul.f32 %v11821_v26, %v15843_v61 }
 0x543   :  { %v7363_v25 = vpop.eup %7362  ;;  %v3590_v23 = vmul.f32 %v11659_v47, %v15840_v45  ;;  %7374 = vpow2.f32 %v6614_v2  ;;  %v11998_v32 = vmul.f32 %v15845_v52, %v15844_v5  ;;  %vm3593_vm10 = vweird.f32 %v11659_v47  ;;  %v15852_v45 = vld [vmem:[#allocation80_spill] sm:$0xff] }
 0x544   :  { %v11986_v59 = vadd.f32 1.0, %v7363_v25  ;;  %v11988_v63 = vpop.eup %7364  ;;  %7376 = vpow2.f32 %v6615_v20  ;;  %v3618_v30 = vmul.f32 %v15847_v13, %v15846_v50  ;;  %v3605_v48 = vmul.f32 %v15848_v57, %v3604_v7 }
 0x545   :  { %v7367_v46 = vpop.eup %7366  ;;  %7378 = vpow2.f32 %v6616_v58  ;;  %v3591_v49 = vadd.f32 %v11659_v47, %v3590_v23  ;;  %vm3730_vm3 = vweird.f32 %v11810_v10  ;;  %v3598_v56 = vand.u32 2147483648, %v15849_v22 }
 0x546   :  { %v12003_v4 = vpop.eup %7368  ;;  %7380 = vpow2.f32 %v6617_v51  ;;  %v12005_v11 = vadd.f32 1.0, %v7367_v46  ;;  %v3619_v60 = vsub.f32 1.0, %v3618_v30  ;;  %v3741_v12 = vsub.f32 1.0, %v11994_v36 }
 0x547   :  { %v7371_v1 = vpop.eup %7370  ;;  %7382 = vrcp.f32 %v11986_v59  ;;  %vm3592_vm5 = vweird.f32 %v15849_v22  ;;  %v3596_v44 = vand.u32 2147483647, %v15849_v22  ;;  %v3727_v14 = vmul.f32 %v11810_v10, %v3726_v19 }
 0x548   :  { %v7373_v28 = vpop.eup %7372  ;;  %7384 = vtanh.f32 %v11956_v15  ;;  %vm3729_vm1 = vweird.f32 %v11739_v31  ;;  %v3756_v0 = vsub.f32 1.0, %v11998_v32  ;;  %vm12022_vm13 = vmor %vm3592_vm5, %vm3593_vm10  ;;  %v3620_v54 = vmul.f32 %v15847_v13, %v3619_v60 }
 0x549   :  { %v7375_v40 = vpop.eup %7374  ;;  %7386 = vrcp.f32 %v12005_v11  ;;  %v12027_v20 = vadd.f32 1.0, %v7371_v1  ;;  %v3595_v58 = vsel %vm12022_vm13, %v11659_v47, %v3591_v49  ;;  %v3606_v25 = vadd.f32 %v15848_v57, %v3605_v48  ;;  %vm12094_vm11 = vmor %vm3729_vm1, %vm3730_vm3 }
 0x54a   :  { %v7377_v9 = vpop.eup %7376  ;;  %vm3608_vm7 = vweird.f32 %v15848_v57  ;;  %7388 = vtanh.f32 %v11960_v34  ;;  %v3599_v51 = vor.u32 1.1754944e-38, %v3598_v56  ;;  %vm3607_vm4 = vweird.f32 %v15852_v45 }
 0x54b   :  { %v7379_v7 = vpop.eup %7378  ;;  %v3613_v23 = vand.u32 2147483648, %v15852_v45  ;;  %v12037_v36 = vadd.f32 1.0, %v7373_v28  ;;  %vm3597_vm9 = vcmp.eq.f32.partialorder %v3596_v44, 8.507059e+37  ;;  %v3611_v46 = vand.u32 2147483647, %v15852_v45  ;;  %vm12047_vm12 = vmor %vm3607_vm4, %vm3608_vm7 }
 0x54c   :  { %v7381_v19 = vpop.eup %7380  ;;  %vm3622_vm14 = vweird.f32 %v15846_v50  ;;  %v12043_v32 = vadd.f32 1.0, %v7375_v40  ;;  %v12045_v30 = vsel %vm3597_vm9, %v3599_v51, %v3595_v58  ;;  %v3621_v48 = vadd.f32 %v15847_v13, %v3620_v54 }
 0x54d   :  { %v12041_v47 = vpop.eup %7382  ;;  %vm3623_vm0 = vweird.f32 %v15847_v13  ;;  %v12055_v22 = vadd.f32 1.0, %v7377_v9  ;;  %7390 = vrcp.f32 %v12027_v20  ;;  %v3610_v56 = vsel %vm12047_vm12, %v15848_v57, %v3606_v25 }
 0x54e   :  { %v12053_v1 = vpop.eup %7384  ;;  %v3628_v60 = vand.u32 2147483648, %v15846_v50  ;;  %v12064_v44 = vadd.f32 1.0, %v7379_v7  ;;  %v3614_v40 = vor.u32 1.1754944e-38, %v3613_v23  ;;  %v3626_v2 = vand.u32 2147483647, %v15846_v50  ;;  %vm12077_vm6 = vmor %vm3622_vm14, %vm3623_vm0 }
 0x54f   :  { %v12062_v28 = vpop.eup %7386  ;;  %v3728_v54 = vadd.f32 %v11810_v10, %v3727_v14  ;;  %v12068_v58 = vadd.f32 1.0, %v7381_v19  ;;  %v3825_v9 = vmul.f32 %v12041_v47, %v11986_v59  ;;  %7392 = vrcp.f32 %v12037_v36 }
 0x550   :  { %vm3612_vm8 = vcmp.eq.f32.partialorder %v3611_v46, 8.507059e+37  ;;  %v12081_v25 = vpop.eup %7388  ;;  %7394 = vrcp.f32 %v12043_v32  ;;  %v3625_v7 = vsel %vm12077_vm6, %v15847_v13, %v3621_v48  ;;  %v3742_v51 = vmul.f32 %v11821_v26, %v3741_v12  ;;  %v15859_v12 = vld [vmem:[#allocation52_spill] sm:$0xff]  ;;  %v15860_v46 = vld [vmem:[#allocation85_spill] sm:$0xff] }
 0x551   :  { %v12084_v14 = vsel %vm3612_vm8, %v3614_v40, %v3610_v56  ;;  %v3840_v45 = vmul.f32 %v12062_v28, %v12005_v11  ;;  %7396 = vrcp.f32 %v12055_v22  ;;  %v3629_v23 = vor.u32 1.1754944e-38, %v3628_v60 }
 0x552   :  { %v3733_v19 = vand.u32 2147483647, %v11739_v31  ;;  %7398 = vrcp.f32 %v12064_v44  ;;  %vm3627_vm2 = vcmp.eq.f32.partialorder %v3626_v2, 8.507059e+37  ;;  %v3732_v13 = vsel %vm12094_vm11, %v11810_v10, %v3728_v54 }
 0x553   :  { %v3770_v49 = vmul.f32 %v15860_v46, %v15859_v12  ;;  %v12108_v48 = vpop.eup %7390  ;;  %v3826_v56 = vsub.f32 1.0, %v3825_v9  ;;  %7400 = vrcp.f32 %v12068_v58  ;;  %v12111_v40 = vsel %vm3627_vm2, %v3629_v23, %v3625_v7 }
 0x554   :  { %v3757_v60 = vmul.f32 %v15845_v52, %v3756_v0  ;;  %v3743_v31 = vadd.f32 %v11821_v26, %v3742_v51  ;;  %vm3745_vm15 = vweird.f32 %v11821_v26  ;;  %v3748_v2 = vand.u32 2147483647, %v15843_v61 }
 0x555   :  { %v3771_v57 = vsub.f32 1.0, %v3770_v49  ;;  %v12117_v10 = vpop.eup %7392  ;;  %v3841_v54 = vsub.f32 1.0, %v3840_v45  ;;  %vm3734_vm10 = vcmp.eq.f32.partialorder %v3733_v19, 8.507059e+37  ;;  %v3750_v50 = vand.u32 2147483648, %v15843_v61 }
 0x556   :  { %v3763_v9 = vand.u32 2147483647, %v15844_v5  ;;  %v12121_v53 = vpop.eup %7394  ;;  %v3855_v0 = vmul.f32 %v12108_v48, %v12027_v20  ;;  %v12126_v7 = vsel %vm3734_vm10, %v11990_v41, %v3732_v13  ;;  %vm3744_vm3 = vweird.f32 %v15843_v61 }
 0x557   :  { %vm3759_vm5 = vweird.f32 %v15844_v5  ;;  %v12130_v51 = vpop.eup %7396  ;;  %vm12132_vm1 = vmor %vm3744_vm3, %vm3745_vm15  ;;  %v3758_v23 = vadd.f32 %v15845_v52, %v3757_v60  ;;  %vm3760_vm13 = vweird.f32 %v15845_v52  ;;  %v3765_v19 = vand.u32 2147483648, %v15844_v5 }
 0x558   :  { %v3778_v49 = vand.u32 2147483647, %v15859_v12  ;;  %v12140_v41 = vpop.eup %7398  ;;  %v3747_v61 = vsel %vm12132_vm1, %v11821_v26, %v3743_v31  ;;  %vm3749_vm7 = vcmp.eq.f32.partialorder %v3748_v2, 8.507059e+37  ;;  %v3772_v13 = vmul.f32 %v15860_v46, %v3771_v57  ;;  %vm12157_vm14 = vmor %vm3759_vm5, %vm3760_vm13 }
 0x559   :  { %v3827_v55 = vmul.f32 %v12041_v47, %v3826_v56  ;;  %v12147_v24 = vpop.eup %7400  ;;  %v3751_v60 = vor.u32 1.1754944e-38, %v3750_v50  ;;  %vm12149_vm4 = vcmp.eq.f32.partialorder %v3763_v9, 8.507059e+37  ;;  %vm3774_vm9 = vweird.f32 %v15859_v12 }
 0x55a   :  { %v3842_v33 = vmul.f32 %v12062_v28, %v3841_v54  ;;  %vm3775_vm12 = vweird.f32 %v15860_v46  ;;  %v3780_v56 = vand.u32 2147483648, %v15859_v12  ;;  %v3833_v31 = vand.u32 2147483647, %v11986_v59 }
 0x55b   :  { %v3856_v2 = vsub.f32 1.0, %v3855_v0  ;;  %v12164_v57 = vsel %vm3749_vm7, %v3751_v60, %v3747_v61  ;;  %v3762_v50 = vsel %vm12157_vm14, %v15845_v52, %v3758_v23  ;;  %v3766_v54 = vor.u32 1.1754944e-38, %v3765_v19  ;;  %vm12190_vm2 = vmor %vm3774_vm9, %vm3775_vm12 }
 0x55c   :  { %vm12169_vm0 = vcmp.eq.f32.partialorder %v3778_v49, 8.507059e+37  ;;  %v3773_v9 = vadd.f32 %v15860_v46, %v3772_v13  ;;  %v3828_v45 = vadd.f32 %v12041_v47, %v3827_v55  ;;  %vm3830_vm8 = vweird.f32 %v12041_v47 }
 0x55d   :  { %v3835_v42 = vand.u32 2147483648, %v11986_v59  ;;  %vm3829_vm6 = vweird.f32 %v11986_v59  ;;  %v3843_v0 = vadd.f32 %v12062_v28, %v3842_v33  ;;  %vm3845_vm11 = vweird.f32 %v12062_v28 }
 0x55e   :  { %v3870_v52 = vmul.f32 %v12117_v10, %v12037_v36  ;;  %v12184_v23 = vsel %vm12149_vm4, %v3766_v54, %v3762_v50  ;;  %v3781_v59 = vor.u32 1.1754944e-38, %v3780_v56  ;;  %vm12194_vm15 = vcmp.eq.f32.partialorder %v3833_v31, 8.507059e+37  ;;  %vm12199_vm10 = vmor %vm3829_vm6, %vm3830_vm8 }
 0x55f   :  { %v3857_v19 = vmul.f32 %v12108_v48, %v3856_v2  ;;  %vm3844_vm3 = vweird.f32 %v12005_v11  ;;  %v3850_v37 = vand.u32 2147483648, %v12005_v11  ;;  %v3885_v61 = vmul.f32 %v12121_v53, %v12043_v32 }
 0x560   :  { %v3871_v12 = vsub.f32 1.0, %v3870_v52  ;;  %v3777_v13 = vsel %vm12190_vm2, %v15860_v46, %v3773_v9  ;;  %v3832_v60 = vsel %vm12199_vm10, %v12041_v47, %v3828_v45  ;;  %v3836_v26 = vor.u32 1.1754944e-38, %v3835_v42  ;;  %vm12215_vm5 = vmor %vm3844_vm3, %vm3845_vm11 }
 0x561   :  { %v3848_v31 = vand.u32 2147483647, %v12005_v11  ;;  %v3847_v2 = vsel %vm12215_vm5, %v12062_v28, %v3843_v0  ;;  %vm3859_vm1 = vweird.f32 %v12027_v20  ;;  %v3886_v50 = vsub.f32 1.0, %v3885_v61 }
 0x562   :  { %v3872_v46 = vmul.f32 %v12117_v10, %v3871_v12  ;;  %v3858_v47 = vadd.f32 %v12108_v48, %v3857_v19  ;;  %vm3860_vm13 = vweird.f32 %v12108_v48  ;;  %v3863_v42 = vand.u32 2147483647, %v12027_v20 }
 0x563   :  { %v3865_v54 = vand.u32 2147483648, %v12027_v20  ;;  %v3782_v11 = vsel %vm12169_vm0, %v3781_v59, %v3777_v13  ;;  %v3851_v9 = vor.u32 1.1754944e-38, %v3850_v37  ;;  %v3878_v45 = vand.u32 2147483647, %v12037_v36  ;;  %vm12240_vm9 = vmor %vm3859_vm1, %vm3860_vm13 }
 0x564   :  { %v3900_v28 = vmul.f32 %v12130_v51, %v12055_v22  ;;  %v3837_v0 = vsel %vm12194_vm15, %v3836_v26, %v3832_v60  ;;  %vm3849_vm7 = vcmp.eq.f32.partialorder %v3848_v31, 8.507059e+37  ;;  %v3873_v52 = vadd.f32 %v12117_v10, %v3872_v46 }
 0x565   :  { %vm3875_vm4 = vweird.f32 %v12117_v10  ;;  %v3852_v55 = vsel %vm3849_vm7, %v3851_v9, %v3847_v2  ;;  %vm3874_vm14 = vweird.f32 %v12037_v36  ;;  %v3880_v59 = vand.u32 2147483648, %v12037_v36 }
 0x566   :  { %v3887_v19 = vmul.f32 %v12121_v53, %v3886_v50  ;;  %v3862_v33 = vsel %vm12240_vm9, %v12108_v48, %v3858_v47  ;;  %vm3864_vm12 = vcmp.eq.f32.partialorder %v3863_v42, 8.507059e+37  ;;  %v3866_v49 = vor.u32 1.1754944e-38, %v3865_v54  ;;  %vm12252_vm0 = vmor %vm3874_vm14, %vm3875_vm4 }
 0x567   :  { %v3915_v37 = vmul.f32 %v12140_v41, %v12064_v44  ;;  %vm12256_vm8 = vcmp.eq.f32.partialorder %v3878_v45, 8.507059e+37  ;;  %vm3889_vm6 = vweird.f32 %v12043_v32  ;;  %v3895_v36 = vand.u32 2147483648, %v12043_v32 }
 0x568   :  { %v3901_v61 = vsub.f32 1.0, %v3900_v28  ;;  %v3877_v48 = vsel %vm12252_vm0, %v12117_v10, %v3873_v52  ;;  %v3893_v13 = vand.u32 2147483647, %v12043_v32  ;;  %v3910_v60 = vand.u32 2147483648, %v12055_v22 }
 0x569   :  { %v3930_v26 = vmul.f32 %v12147_v24, %v12068_v58  ;;  %v12269_v56 = vsel %vm3864_vm12, %v3866_v49, %v3862_v33  ;;  %v3881_v31 = vor.u32 1.1754944e-38, %v3880_v59  ;;  %v3888_v2 = vadd.f32 %v12121_v53, %v3887_v19 }
 0x56a   :  { %vm3890_vm11 = vweird.f32 %v12121_v53  ;;  %vm3904_vm2 = vweird.f32 %v12055_v22  ;;  %vm3905_vm15 = vweird.f32 %v12130_v51  ;;  %v3908_v10 = vand.u32 2147483647, %v12055_v22 }
 0x56b   :  { %v3916_v46 = vsub.f32 1.0, %v3915_v37  ;;  %v3931_v50 = vsub.f32 1.0, %v3930_v26  ;;  %v3882_v47 = vsel %vm12256_vm8, %v3881_v31, %v3877_v48  ;;  %v3896_v42 = vor.u32 1.1754944e-38, %v3895_v36  ;;  %vm12284_vm10 = vmor %vm3889_vm6, %vm3890_vm11 }
 0x56c   :  { %v3902_v54 = vmul.f32 %v12130_v51, %v3901_v61  ;;  %v15883_v9 = vrot.slane %v11485_v16, 7  ;;  %vm12288_vm3 = vcmp.eq.f32.partialorder %v3893_v13, 8.507059e+37  ;;  %v3911_v5 = vor.u32 1.1754944e-38, %v3910_v60  ;;  %vm12341_vm4 = vmor %vm3904_vm2, %vm3905_vm15  ;;  %v15911_v60 = vld [vmem:[#allocation17_spill] sm:$0xff] }
 0x56d   :  { %vm3919_vm5 = vweird.f32 %v12064_v44  ;;  %v15888_v59 = vrot.slane %v11487_v17, 7  ;;  %v15889_v16 = vrot.slane %v15841_v21, 7  ;;  %v3892_v32 = vsel %vm12284_vm10, %v12121_v53, %v3888_v2 }
 0x56e   :  { %v3972_v45 = vmul.f32 %v15883_v9, %v12126_v7  ;;  %vm3920_vm1 = vweird.f32 %v12140_v41  ;;  %v15890_v33 = vrot.slane %v15842_v38, 7  ;;  %v3981_v37 = vmul.f32 %v11972_v8, %v12045_v30 }
 0x56f   :  { %v3973_v19 = vmul.f32 %v15888_v59, %v12164_v57  ;;  %v3974_v7 = vmul.f32 %v15889_v16, %v12184_v23  ;;  %vm12307_vm13 = vcmp.eq.f32.partialorder %v3908_v10, 8.507059e+37  ;;  %v3917_v17 = vmul.f32 %v12140_v41, %v3916_v46  ;;  %vm12359_vm9 = vmor %vm3919_vm5, %vm3920_vm1  ;;  %v15917_v46 = vld [vmem:[#allocation18_spill] sm:$0xff] }
 0x570   :  { %v3975_v49 = vmul.f32 %v15890_v33, %v3782_v11  ;;  %v3932_v21 = vmul.f32 %v12147_v24, %v3931_v50  ;;  %v3982_v57 = vmul.f32 %v11988_v63, %v12084_v14  ;;  %v3983_v53 = vmul.f32 %v12003_v4, %v12111_v40 }
 0x571   :  { %v12318_v38 = vadd.f32 %v11963_v6, %v3972_v45  ;;  %v12320_v23 = vadd.f32 %v3981_v37, %v3973_v19  ;;  %7402 = vtanh.f32 %v11965_v43  ;;  %v4000_v8 = vmul.f32 %v12053_v1, %v3837_v0 }
 0x572   :  { %v3903_v30 = vadd.f32 %v12130_v51, %v3902_v54  ;;  %v12325_v11 = vadd.f32 %v3982_v57, %v3974_v7  ;;  %v12327_v12 = vadd.f32 %v3983_v53, %v3975_v49  ;;  %7404 = vtanh.f32 %v11969_v27 }
 0x573   :  { %15893 = vst [vmem:[#allocation83_spill] sm:$0xff] %v12320_v23  ;;  %v3923_v63 = vand.u32 2147483647, %v12064_v44  ;;  %7406 = vtanh.f32 %v12318_v38  ;;  %v4001_v6 = vmul.f32 %v12081_v25, %v3852_v55  ;;  %v4008_v4 = vpack.c.bf16 %v4000_v8, %v4000_v8 }
 0x574   :  { %15894 = vst [vmem:[#allocation68_spill] sm:$0xff] %v12325_v11  ;;  %v3918_v14 = vadd.f32 %v12140_v41, %v3917_v17  ;;  %v3925_v40 = vand.u32 2147483648, %v12064_v44  ;;  %vm3935_vm7 = vweird.f32 %v12147_v24  ;;  %7408 = vtanh.f32 %v12320_v23 }
 0x575   :  { %15895 = vst [vmem:[#allocation70_spill] sm:$0xff] %v12327_v12  ;;  %v3933_v0 = vadd.f32 %v12147_v24, %v3932_v21  ;;  %7410 = vtanh.f32 %v12325_v11  ;;  %v4009_v25 = vpack.c.bf16 %v4001_v6, %v4001_v6  ;;  %v4024_v55 = vunpack.c.l.b16 %v4008_v4 }
 0x576   :  { %v3907_v36 = vsel %vm12341_vm4, %v12130_v51, %v3903_v30  ;;  %v3938_v61 = vand.u32 2147483647, %v12068_v58  ;;  %v3940_v48 = vand.u32 2147483648, %v12068_v58  ;;  %7412 = vtanh.f32 %v12327_v12 }
 0x577   :  { %v7403_v22 = vpop.eup %7402  ;;  %v3897_v13 = vsel %vm12288_vm3, %v3896_v42, %v3892_v32  ;;  %vm3934_vm14 = vweird.f32 %v12068_v58  ;;  %v4025_v51 = vunpack.c.l.b16 %v4009_v25  ;;  %v4032_v26 = vrot.slane %v4024_v55, 4 }
 0x578   :  { %v7405_v31 = vpop.eup %7404  ;;  %v3922_v2 = vsel %vm12359_vm9, %v12140_v41, %v3918_v14  ;;  %vm3924_vm12 = vcmp.eq.f32.partialorder %v3923_v63, 8.507059e+37  ;;  %v3926_v10 = vor.u32 1.1754944e-38, %v3925_v40  ;;  %vm12369_vm0 = vmor %vm3934_vm14, %vm3935_vm7  ;;  %v4002_v44 = vmul.f32 %v7403_v22, %v12269_v56  ;;  %v15909_v22 = vld [vmem:[#allocation11_spill] sm:$0xff] }
 0x579   :  { %v7407_v50 = vpop.eup %7406  ;;  %v3912_v58 = vsel %vm12307_vm13, %v3911_v5, %v3907_v36  ;;  %v3937_v42 = vsel %vm12369_vm0, %v12147_v24, %v3933_v0  ;;  %v4003_v54 = vmul.f32 %v7405_v31, %v3882_v47  ;;  %v4033_v41 = vrot.slane %v4025_v51, 3  ;;  %v15912_v51 = vld [vmem:[#allocation14_spill] sm:$0xff]  ;;  %v15914_v31 = vld [vmem:[#allocation15_spill] sm:$0xff] }
 0x57a   :  { %v7409_v9 = vpop.eup %7408  ;;  %vm3939_vm8 = vcmp.eq.f32.partialorder %v3938_v61, 8.507059e+37  ;;  %v3941_v45 = vor.u32 1.1754944e-38, %v3940_v48  ;;  %v4004_v28 = vmul.f32 %v7407_v50, %v3897_v13  ;;  %v4010_v52 = vpack.c.bf16 %v4002_v44, %v4002_v44  ;;  %v15910_v13 = vld [vmem:[#allocation12_spill] sm:$0xff]  ;;  %v15919_v50 = vld [vmem:[#allocation23_spill] sm:$0xff] }
 0x57b   :  { %v7411_v59 = vpop.eup %7410  ;;  %v3927_v19 = vsel %vm3924_vm12, %v3926_v10, %v3922_v2  ;;  %v4005_v16 = vmul.f32 %v7409_v9, %v3912_v58  ;;  %v4011_v7 = vpack.c.bf16 %v4003_v54, %v4003_v54  ;;  %vm15902_vm6 = vcmask 1041409   ;;  %v15915_v2 = vld [vmem:[#allocation19_spill] sm:$0xff]  ;;  %v15916_v10 = vld [vmem:[#allocation16_spill] sm:$0xff]  ;;  %v15920_v58 = vld [vmem:[#allocation21_spill] sm:$0xff] }
 0x57c   :  { %v4034_v56 = vsel %vm15902_vm6, %v4033_v41, %v4032_v26  ;;  %v7413_v32 = vpop.eup %7412  ;;  %v3942_v33 = vsel %vm3939_vm8, %v3941_v45, %v3937_v42  ;;  %v4006_v5 = vmul.f32 %v7411_v59, %v3927_v19  ;;  %v4012_v49 = vpack.c.bf16 %v4004_v28, %v4004_v28  ;;  %v15913_v26 = vld [vmem:[#allocation13_spill] sm:$0xff]  ;;  %v15918_v44 = vld [vmem:[#allocation20_spill] sm:$0xff]  ;;  %v15921_v42 = vld [vmem:[#allocation22_spill] sm:$0xff] }
 0x57d   :  { %v4026_v37 = vunpack.c.l.b16 %v4010_v52  ;;  %v4007_v20 = vmul.f32 %v7413_v32, %v3942_v33  ;;  %v4013_v24 = vpack.c.bf16 %v4005_v16, %v4005_v16  ;;  %v4027_v47 = vunpack.c.l.b16 %v4011_v7  ;;  %v15922_v54 = vld [vmem:[#allocation24_spill] sm:$0xff]  ;;  %v15923_v41 = vld [vmem:[#allocation27_spill] sm:$0xff]  ;;  %v15924_v9 = vld [vmem:[#allocation25_spill] sm:$0xff] }
 0x57e   :  { %v4014_v17 = vpack.c.bf16 %v4006_v5, %v4006_v5  ;;  %v4028_v30 = vunpack.c.l.b16 %v4012_v49  ;;  %vm15903_vm11 = vcmask 1042434   ;;  %vm15904_vm2 = vcmask 1043459   ;;  %v15925_v45 = vld [vmem:[#allocation26_spill] sm:$0xff]  ;;  %v15927_v52 = vld [vmem:[#allocation31_spill] sm:$0xff]  ;;  %v15928_v59 = vld [vmem:[#allocation29_spill] sm:$0xff] }
 0x57f   :  { %v4035_v21 = vrot.slane %v4026_v37, 2  ;;  %v4015_v57 = vpack.c.bf16 %v4007_v20, %v4007_v20  ;;  %v4029_v53 = vunpack.c.l.b16 %v4013_v24  ;;  %v4037_v8 = vrot.slane %v4027_v47, 1  ;;  %v15926_v28 = vld [vmem:[#allocation30_spill] sm:$0xff]  ;;  %v15929_v19 = vld [vmem:[#allocation28_spill] sm:$0xff]  ;;  %v15931_v7 = vld [vmem:[#allocation35_spill] sm:$0xff] }
 0x580   :  { %v4030_v63 = vunpack.c.l.b16 %v4014_v17  ;;  %vm15905_vm15 = vcmask 1044484   ;;  %vm15906_vm10 = vcmask 1045509   ;;  %vm15907_vm3 = vcmask 1046534   ;;  %v15930_v16 = vld [vmem:[#allocation34_spill] sm:$0xff]  ;;  %v15933_v32 = vld [vmem:[#allocation32_spill] sm:$0xff]  ;;  %v15934_v33 = vld [vmem:[#allocation41_spill] sm:$0xff] }
 0x581   :  { %v4036_v6 = vsel %vm15903_vm11, %v4035_v21, %v4034_v56  ;;  %v4031_v4 = vunpack.c.l.b16 %v4015_v57  ;;  %v4040_v40 = vrot.slane %v4029_v53, 7  ;;  %vm15908_vm5 = vcmask 1047559   ;;  %v15932_v56 = vld [vmem:[#allocation33_spill] sm:$0xff]  ;;  %v15935_v5 = vld [vmem:[#allocation38_spill] sm:$0xff]  ;;  %v15937_v37 = vld [vmem:[#allocation36_spill] sm:$0xff] }
 0x582   :  { %v4038_v14 = vsel %vm15904_vm2, %v4037_v8, %v4036_v6  ;;  %v4042_v0 = vrot.slane %v4030_v63, 6  ;;  %v15936_v49 = vld [vmem:[#allocation37_spill] sm:$0xff]  ;;  %v15938_v20 = vld [vmem:[#allocation42_spill] sm:$0xff]  ;;  %v15939_v24 = vld [vmem:[#allocation40_spill] sm:$0xff] }
 0x583   :  { %v4039_v1 = vsel %vm15905_vm15, %v4028_v30, %v4038_v14  ;;  %v4044_v55 = vrot.slane %v4031_v4, 5  ;;  %v15940_v47 = vld [vmem:[#allocation39_spill] sm:$0xff]  ;;  %v15941_v14 = vld [vmem:[#allocation48_spill] sm:$0xff] }
 0x584   :  { %v4041_v25 = vsel %vm15906_vm10, %v4040_v40, %v4039_v1  ;;  %v15942_v1 = vld [vmem:[#allocation45_spill] sm:$0xff] }
 0x585   :  { %v4043_v36 = vsel %vm15907_vm3, %v4042_v0, %v4041_v25  ;;  %v15943_v25 = vld [vmem:[#allocation46_spill] sm:$0xff] }
 0x586   :  { %v4045_v61 = vsel %vm15908_vm5, %v4044_v55, %v4043_v36  ;;  %v15944_v36 = vld [vmem:[#allocation43_spill] sm:$0xff] }
 0x587   :  { %v4046_v48 = vpack.c.b16 %v4045_v61, %v4045_v61 }
 0x589   :  { %4056 = vmatmul.bf16.vlgmr.msra.gmra.mxu0 %v4046_v48  ;;  %4069 = vmatmul.bf16.vlgmr.msrb.gmra.mxu1 %v4046_v48 }
 0x58a   :  { %4082 = vmatmul.bf16.vlgmr.msra.gmra.mxu2 %v4046_v48  ;;  %4095 = vmatmul.bf16.vlgmr.msra.gmra.mxu3 %v4046_v48  ;;  %v15945_v48 = vld [vmem:[#allocation44_spill] sm:$0xff] }
 0x58b   :  { %5480 = vmatpush.bf16.msra.mxu0 %v15909_v22  ;;  %5493 = vmatpush.bf16.msrb.mxu1 %v15910_v13  ;;  %v15946_v13 = vld [vmem:[#allocation47_spill] sm:$0xff] }
 0x58c   :  { %5506 = vmatpush.bf16.msra.mxu2 %v15911_v60  ;;  %5519 = vmatpush.bf16.msra.mxu3 %v15912_v51 }
 0x58f   :  { %5481 = vmatpush.bf16.msra.mxu0 %v15913_v26  ;;  %5494 = vmatpush.bf16.msrb.mxu1 %v15914_v31  ;;  %v15947_v26 = vld [vmem:[#allocation49_spill] sm:$0xff] }
 0x590   :  { %5507 = vmatpush.bf16.msra.mxu2 %v15915_v2  ;;  %5520 = vmatpush.bf16.msra.mxu3 %v15916_v10 }
 0x593   :  { %5482 = vmatpush.bf16.msra.mxu0 %v15917_v46  ;;  %5495 = vmatpush.bf16.msrb.mxu1 %v15918_v44 }
 0x594   :  { %5508 = vmatpush.bf16.msra.mxu2 %v15919_v50  ;;  %5521 = vmatpush.bf16.msra.mxu3 %v15920_v58  ;;  %v15948_v50 = vld [vmem:[#allocation50_spill] sm:$0xff] }
 0x597   :  { %5483 = vmatpush.bf16.msra.mxu0 %v15921_v42  ;;  %5496 = vmatpush.bf16.msrb.mxu1 %v15922_v54 }
 0x598   :  { %5509 = vmatpush.bf16.msra.mxu2 %v15923_v41  ;;  %5522 = vmatpush.bf16.msra.mxu3 %v15924_v9 }
 0x59b   :  { %5484 = vmatpush.bf16.msra.mxu0 %v15925_v45  ;;  %5497 = vmatpush.bf16.msrb.mxu1 %v15926_v28 }
 0x59c   :  { %5510 = vmatpush.bf16.msra.mxu2 %v15927_v52  ;;  %5523 = vmatpush.bf16.msra.mxu3 %v15928_v59  ;;  %v15950_v52 = vld [vmem:[#allocation73_spill] sm:$0xff] }
 0x59f   :  { %5485 = vmatpush.bf16.msra.mxu0 %v15929_v19  ;;  %5498 = vmatpush.bf16.msrb.mxu1 %v15930_v16 }
 0x5a0   :  { %5511 = vmatpush.bf16.msra.mxu2 %v15931_v7  ;;  %5524 = vmatpush.bf16.msra.mxu3 %v15932_v56 }
 0x5a3   :  { %5486 = vmatpush.bf16.msra.mxu0 %v15933_v32  ;;  %5499 = vmatpush.bf16.msrb.mxu1 %v15934_v33 }
 0x5a4   :  { %5512 = vmatpush.bf16.msra.mxu2 %v15935_v5  ;;  %5525 = vmatpush.bf16.msra.mxu3 %v15936_v49 }
 0x5a7   :  { %5487 = vmatpush.bf16.msra.mxu0 %v15937_v37  ;;  %5500 = vmatpush.bf16.msrb.mxu1 %v15938_v20 }
 0x5a8   :  { %5513 = vmatpush.bf16.msra.mxu2 %v15939_v24  ;;  %5526 = vmatpush.bf16.msra.mxu3 %v15940_v47 }
 0x606   :  { %v4057_v17 = vpop.f32.mrf.mxu0  ;;  %v12418_v21 = vpop.f32.mrf.mxu1 }
 0x607   :  { %v4104_v57 = vrot.slane %v4057_v17, 3  ;;  %v4108_v53 = vrot.slane %v4057_v17, 4  ;;  %v4112_v8 = vrot.slane %v4057_v17, 5  ;;  %v4116_v30 = vrot.slane %v4057_v17, 6 }
 0x608   :  { %v4120_v63 = vrot.slane %v4057_v17, 7  ;;  %v4124_v6 = vrot.slane %v4057_v17, 1  ;;  %v4128_v4 = vrot.slane %v4057_v17, 2  ;;  %v4184_v40 = vadd.f32 %v4057_v17, %v15941_v14 }
 0x609   :  { %v4164_v0 = vadd.f32 %v4104_v57, %v15942_v1  ;;  %v4168_v55 = vadd.f32 %v4108_v53, %v15943_v25  ;;  %v4172_v61 = vadd.f32 %v4112_v8, %v15944_v36  ;;  %v4176_v22 = vadd.f32 %v4116_v30, %v15945_v48  ;;  %v15951_v57 = vld [vmem:[#allocation74_spill] sm:$0xff] }
 0x60a   :  { %v4180_v60 = vadd.f32 %v4120_v63, %v15946_v13  ;;  %v6623_v51 = vmul.f32 -1.442695, %v4184_v40  ;;  %v4188_v31 = vadd.f32 %v4124_v6, %v15947_v26  ;;  %v4192_v58 = vadd.f32 %v4128_v4, %v15948_v50  ;;  %v15952_v6 = vld [vmem:[#allocation75_spill] sm:$0xff] }
 0x60b   :  { %v6618_v2 = vmul.f32 -1.442695, %v4164_v0  ;;  %v6619_v10 = vmul.f32 -1.442695, %v4168_v55  ;;  %v6620_v46 = vmul.f32 -1.442695, %v4172_v61 }
 0x60c   :  { %v6621_v44 = vmul.f32 -1.442695, %v4176_v22  ;;  %7414 = vpow2.f32 %v6623_v51  ;;  %v6622_v42 = vmul.f32 -1.442695, %v4180_v60  ;;  %v4105_v54 = vrot.slane %v12418_v21, 3  ;;  %v15953_v61 = vld [vmem:[#allocation76_spill] sm:$0xff] }
 0x60d   :  { %7416 = vpow2.f32 %v6618_v2  ;;  %v12429_v41 = vpop.f32.mrf.mxu2  ;;  %v6624_v28 = vmul.f32 -1.442695, %v4188_v31  ;;  %v6625_v19 = vmul.f32 -1.442695, %v4192_v58  ;;  %v4109_v16 = vrot.slane %v12418_v21, 4  ;;  %v15954_v2 = vld [vmem:[#allocation77_spill] sm:$0xff] }
 0x60e   :  { %15949 = vst [vmem:[#allocation84_spill] sm:$0xff] %v12429_v41  ;;  %7418 = vpow2.f32 %v6619_v10  ;;  %v4059_v9 = vpop.f32.mrf.mxu0  ;;  %v4072_v45 = vpop.f32.mrf.mxu1  ;;  %v4165_v59 = vadd.f32 %v4105_v54, %v15950_v52  ;;  %v4113_v56 = vrot.slane %v12418_v21, 5  ;;  %v4117_v33 = vrot.slane %v12418_v21, 6 }
 0x60f   :  { %7420 = vpow2.f32 %v6620_v46  ;;  %v4121_v17 = vrot.slane %v12418_v21, 7  ;;  %v4169_v53 = vadd.f32 %v4109_v16, %v15951_v57  ;;  %v4125_v55 = vrot.slane %v12418_v21, 1  ;;  %v15956_v9 = vld [vmem:[#allocation79_spill] sm:$0xff] }
 0x610   :  { %7422 = vpow2.f32 %v6621_v44  ;;  %v6626_v5 = vmul.f32 -1.442695, %v4165_v59  ;;  %v4173_v4 = vadd.f32 %v4113_v56, %v15952_v6  ;;  %v4177_v22 = vadd.f32 %v4117_v33, %v15953_v61  ;;  %v15955_v44 = vld [vmem:[#allocation78_spill] sm:$0xff]  ;;  %v15958_v16 = vld [vmem:[#allocation67_spill] sm:$0xff]  ;;  %v15966_v61 = vld [vmem:[#allocation61_spill] sm:$0xff] }
 0x611   :  { %7424 = vpow2.f32 %v6622_v42  ;;  %v4129_v51 = vrot.slane %v12418_v21, 2  ;;  %v4181_v10 = vadd.f32 %v4121_v17, %v15954_v2  ;;  %v6627_v46 = vmul.f32 -1.442695, %v4169_v53 }
 0x612   :  { %v7415_v7 = vpop.eup %7414  ;;  %7426 = vpow2.f32 %v6624_v28  ;;  %v4185_v58 = vadd.f32 %v12418_v21, %v15955_v44  ;;  %v6628_v42 = vmul.f32 -1.442695, %v4173_v4  ;;  %v4189_v45 = vadd.f32 %v4125_v55, %v15956_v9 }
 0x613   :  { %v7417_v32 = vpop.eup %7416  ;;  %v12437_v20 = vadd.f32 1.0, %v7415_v7  ;;  %7428 = vpow2.f32 %v6625_v19  ;;  %v6629_v28 = vmul.f32 -1.442695, %v4177_v22  ;;  %v4193_v7 = vadd.f32 %v4129_v51, %v15958_v16  ;;  %v15959_v22 = vld [vmem:[#allocation51_spill] sm:$0xff] }
 0x614   :  { %v7419_v49 = vpop.eup %7418  ;;  %v12435_v37 = vadd.f32 1.0, %v7417_v32  ;;  %v6630_v32 = vmul.f32 -1.442695, %v4181_v10  ;;  %v6632_v17 = vmul.f32 -1.442695, %v4189_v45  ;;  %v4106_v53 = vrot.slane %v12429_v41, 3 }
 0x615   :  { %v7421_v24 = vpop.eup %7420  ;;  %v12439_v47 = vadd.f32 1.0, %v7419_v49  ;;  %v4085_v8 = vpop.f32.mrf.mxu2  ;;  %v6633_v4 = vmul.f32 -1.442695, %v4193_v7  ;;  %v12540_v6 = vadd.f32 %v12429_v41, %v15966_v61 }
 0x616   :  { %v7423_v30 = vpop.eup %7422  ;;  %v12443_v63 = vadd.f32 1.0, %v7421_v24  ;;  %7430 = vrcp.f32 %v12435_v37  ;;  %vm4233_vm1 = vweird.f32 %v12435_v37  ;;  %v4237_v61 = vand.u32 2147483647, %v12435_v37 }
 0x617   :  { %v7425_v40 = vpop.eup %7424  ;;  %v12447_v0 = vadd.f32 1.0, %v7423_v30  ;;  %7432 = vpow2.f32 %v6626_v5  ;;  %v6631_v5 = vmul.f32 -1.442695, %v4185_v58  ;;  %vm4248_vm8 = vweird.f32 %v12439_v47 }
 0x618   :  { %v12451_v60 = vadd.f32 1.0, %v7425_v40  ;;  %7434 = vrcp.f32 %v12437_v20  ;;  %v7427_v31 = vpop.eup %7426  ;;  %v4110_v40 = vrot.slane %v12429_v41, 4  ;;  %vm12593_vm4 = vcmp.eq.f32.partialorder %v4237_v61, 8.507059e+37 }
 0x619   :  { %7436 = vrcp.f32 %v12439_v47  ;;  %v7429_v54 = vpop.eup %7428  ;;  %v12464_v19 = vadd.f32 1.0, %v7427_v31  ;;  %v4114_v31 = vrot.slane %v12429_v41, 5  ;;  %vm4263_vm15 = vweird.f32 %v12443_v63 }
 0x61a   :  { %7438 = vrcp.f32 %v12443_v63  ;;  %v12496_v30 = vadd.f32 1.0, %v7429_v54 }
 0x61b   :  { %7440 = vrcp.f32 %v12447_v0  ;;  %15957 = vst [vmem:[#allocation72_spill] sm:$0xff] %v12464_v19 }
 0x61c   :  { %v12462_v59 = vpop.eup %7430  ;;  %7442 = vrcp.f32 %v12451_v60  ;;  %15960 = vst [vmem:[#allocation81_spill] sm:$0xff] %v12496_v30 }
 0x61d   :  { %v7433_v56 = vpop.eup %7432  ;;  %7444 = vpow2.f32 %v6627_v46  ;;  %v4229_v21 = vmul.f32 %v12462_v59, %v12435_v37  ;;  %v15961_v46 = vld [vmem:[#allocation53_spill] sm:$0xff]  ;;  %vm4234_vm13 = vweird.f32 %v12462_v59 }
 0x61e   :  { %v12468_v33 = vpop.eup %7434  ;;  %7446 = vpow2.f32 %v6628_v42  ;;  %v12484_v51 = vadd.f32 1.0, %v7433_v56  ;;  %v4118_v42 = vrot.slane %v12429_v41, 6  ;;  %vm12580_vm7 = vmor %vm4233_vm1, %vm4234_vm13 }
 0x61f   :  { %v12472_v49 = vpop.eup %7436  ;;  %7448 = vpow2.f32 %v6629_v28  ;;  %v4230_v58 = vsub.f32 1.0, %v4229_v21  ;;  %v4122_v28 = vrot.slane %v12429_v41, 7  ;;  %v12501_v21 = vadd.f32 %v4110_v40, %v15961_v46 }
 0x620   :  { %v12476_v8 = vpop.eup %7438  ;;  %7450 = vrcp.f32 %v12464_v19  ;;  %v4391_v40 = vand.u32 2147483648, %v12484_v51  ;;  %vm4249_vm14 = vweird.f32 %v12472_v49  ;;  %vm4385_vm12 = vweird.f32 %v12484_v51 }
 0x621   :  { %v12481_v55 = vpop.eup %7440  ;;  %7452 = vpow2.f32 %v6630_v32  ;;  %v12494_v32 = vadd.f32 %v4106_v53, %v15959_v22  ;;  %v15962_v53 = vld [vmem:[#allocation55_spill] sm:$0xff]  ;;  %v4231_v46 = vmul.f32 %v12462_v59, %v4230_v58  ;;  %v4259_v9 = vmul.f32 %v12476_v8, %v12443_v63  ;;  %vm12633_vm2 = vmor %vm4248_vm8, %vm4249_vm14 }
 0x622   :  { %v12487_v10 = vpop.eup %7442  ;;  %7454 = vpow2.f32 %v6631_v5  ;;  %v12503_v5 = vpop.f32.mrf.mxu3  ;;  %v12513_v54 = vadd.f32 %v4114_v31, %v15962_v53  ;;  %v15964_v31 = vld [vmem:[#allocation57_spill] sm:$0xff]  ;;  %v12532_v44 = vmul.f32 %v12481_v55, %v12447_v0  ;;  %v15965_v58 = vld [vmem:[#allocation59_spill] sm:$0xff]  ;;  %v12549_v50 = vor.u32 1.1754944e-38, %v4391_v40 }
 0x623   :  { %v7445_v45 = vpop.eup %7444  ;;  %7456 = vpow2.f32 %v6632_v17  ;;  %v12507_v17 = vmul.f32 %v12468_v33, %v12437_v20  ;;  %v12528_v53 = vadd.f32 %v4118_v42, %v15964_v31  ;;  %v12536_v2 = vadd.f32 %v4122_v28, %v15965_v58 }
 0x624   :  { %v7447_v56 = vpop.eup %7446  ;;  %7458 = vpow2.f32 %v6633_v4  ;;  %v12498_v24 = vadd.f32 1.0, %v7445_v45  ;;  %v12544_v52 = vmul.f32 %v12487_v10, %v12451_v60  ;;  %v4232_v28 = vadd.f32 %v12462_v59, %v4231_v46 }
 0x625   :  { %v7449_v16 = vpop.eup %7448  ;;  %v12509_v7 = vadd.f32 1.0, %v7447_v56  ;;  %7460 = vrcp.f32 %v12484_v51  ;;  %v4244_v56 = vmul.f32 %v12472_v49, %v12439_v47  ;;  %v4260_v13 = vsub.f32 1.0, %v4259_v9 }
 0x626   :  { %v12515_v4 = vpop.eup %7450  ;;  %v12517_v45 = vadd.f32 1.0, %v7449_v16  ;;  %7462 = vrcp.f32 %v12498_v24  ;;  %v4239_v42 = vand.u32 2147483648, %v12435_v37  ;;  %v4275_v25 = vsub.f32 1.0, %v12532_v44 }
 0x627   :  { %15963 = vst [vmem:[#allocation71_spill] sm:$0xff] %v12515_v4  ;;  %v7453_v22 = vpop.eup %7452  ;;  %7464 = vrcp.f32 %v12509_v7  ;;  %v4245_v14 = vsub.f32 1.0, %v4244_v56  ;;  %v4406_v46 = vand.u32 2147483648, %v12498_v24  ;;  %v4421_v1 = vand.u32 2147483648, %v12509_v7 }
 0x628   :  { %v7455_v16 = vpop.eup %7454  ;;  %7466 = vrcp.f32 %v12517_v45  ;;  %v12556_v48 = vadd.f32 1.0, %v7453_v22  ;;  %v4290_v56 = vsub.f32 1.0, %v12544_v52  ;;  %v12571_v9 = vmul.f32 %v12515_v4, %v12464_v19 }
 0x629   :  { %v7457_v57 = vpop.eup %7456  ;;  %7468 = vrcp.f32 %v12496_v30  ;;  %v12562_v40 = vadd.f32 1.0, %v7455_v16  ;;  %v4436_v30 = vand.u32 2147483648, %v12517_v45  ;;  %v4240_v11 = vor.u32 1.1754944e-38, %v4239_v42 }
 0x62a   :  { %v7459_v31 = vpop.eup %7458  ;;  %v4098_v26 = vpop.f32.mrf.mxu3  ;;  %15967 = vst [vmem:[#allocation82_spill] sm:$0xff] %v12571_v9  ;;  %v12573_v22 = vadd.f32 1.0, %v7457_v57  ;;  %v4236_v57 = vsel %vm12580_vm7, %v12462_v59, %v4232_v28  ;;  %7470 = vrcp.f32 %v12556_v48  ;;  %v4246_v23 = vmul.f32 %v12472_v49, %v4245_v14 }
 0x62b   :  { %v12554_v58 = vpop.eup %7460  ;;  %v12603_v9 = vadd.f32 1.0, %v7459_v31  ;;  %v12605_v41 = vor.u32 1.1754944e-38, %v4406_v46  ;;  %v12607_v44 = vor.u32 1.1754944e-38, %v4421_v1  ;;  %7472 = vrcp.f32 %v12562_v40 }
 0x62c   :  { %v12559_v36 = vpop.eup %7462  ;;  %15968 = vst [vmem:[#allocation69_spill] sm:$0xff] %v12573_v22  ;;  %v4381_v52 = vmul.f32 %v12554_v58, %v12484_v51  ;;  %vm4386_vm9 = vweird.f32 %v12554_v58  ;;  %v12613_v59 = vor.u32 1.1754944e-38, %v4436_v30  ;;  %7474 = vrcp.f32 %v12573_v22 }
 0x62d   :  { %v12566_v12 = vpop.eup %7464  ;;  %v4396_v16 = vmul.f32 %v12559_v36, %v12498_v24  ;;  %15974 = vst [vmem:[#allocation52_spill] sm:$0xff] %v12603_v9  ;;  %v4261_v42 = vmul.f32 %v12476_v8, %v4260_v13  ;;  %v4252_v1 = vand.u32 2147483647, %v12439_v47  ;;  %v4247_v46 = vadd.f32 %v12472_v49, %v4246_v23 }
 0x62e   :  { %v12584_v26 = vpop.eup %7466  ;;  %v4411_v4 = vmul.f32 %v12566_v12, %v12509_v7  ;;  %v4382_v14 = vsub.f32 1.0, %v4381_v52  ;;  %vm4401_vm0 = vweird.f32 %v12559_v36  ;;  %v12626_v13 = vsel %vm12593_vm4, %v4240_v11, %v4236_v57 }
 0x62f   :  { %v12597_v37 = vpop.eup %7468  ;;  %v4426_v61 = vmul.f32 %v12584_v26, %v12517_v45  ;;  %v4397_v31 = vsub.f32 1.0, %v4396_v16  ;;  %v4262_v30 = vadd.f32 %v12476_v8, %v4261_v42  ;;  %vm4264_vm6 = vweird.f32 %v12476_v8 }
 0x630   :  { %15973 = vst [vmem:[#allocation80_spill] sm:$0xff] %v12597_v37  ;;  %v4412_v28 = vsub.f32 1.0, %v4411_v4  ;;  %v4254_v37 = vand.u32 2147483648, %v12439_v47  ;;  %v12630_v52 = vpop.eup %7470  ;;  %vm4400_vm11 = vweird.f32 %v12498_v24  ;;  %v4267_v16 = vand.u32 2147483647, %v12443_v63  ;;  %vm12649_vm5 = vmor %vm4263_vm15, %vm4264_vm6 }
 0x631   :  { %v4427_v4 = vsub.f32 1.0, %v4426_v61  ;;  %v4269_v11 = vand.u32 2147483648, %v12443_v63  ;;  %v12640_v19 = vpop.eup %7472  ;;  %v4383_v47 = vmul.f32 %v12554_v58, %v4382_v14  ;;  %v4398_v57 = vmul.f32 %v12559_v36, %v4397_v31 }
 0x632   :  { %15977 = vst [vmem:[#allocation85_spill] sm:$0xff] %v12640_v19  ;;  %vm4416_vm10 = vweird.f32 %v12566_v12  ;;  %vm12645_vm3 = vcmp.eq.f32.partialorder %v4252_v1, 8.507059e+37  ;;  %v4276_v22 = vmul.f32 %v12481_v55, %v4275_v25  ;;  %v12654_v9 = vpop.eup %7474  ;;  %v4413_v63 = vmul.f32 %v12566_v12, %v4412_v28 }
 0x633   :  { %15982 = vst [vmem:[#allocation11_spill] sm:$0xff] %v12654_v9  ;;  %vm4431_vm1 = vweird.f32 %v12584_v26  ;;  %v4251_v14 = vsel %vm12633_vm2, %v12472_v49, %v4247_v46  ;;  %v4255_v31 = vor.u32 1.1754944e-38, %v4254_v37  ;;  %v4266_v1 = vsel %vm12649_vm5, %v12476_v8, %v4262_v30  ;;  %vm12698_vm5 = vmor %vm4385_vm12, %vm4386_vm9 }
 0x634   :  { %vm4415_vm13 = vweird.f32 %v12509_v7  ;;  %v12666_v19 = vadd.f32 %v12481_v55, %v4276_v22  ;;  %vm4279_vm7 = vweird.f32 %v12481_v55  ;;  %v4284_v25 = vand.u32 2147483648, %v12447_v0  ;;  %vm12720_vm9 = vmor %vm4400_vm11, %vm4401_vm0 }
 0x635   :  { %v4291_v28 = vmul.f32 %v12487_v10, %v4290_v56  ;;  %v4428_v9 = vmul.f32 %v12584_v26, %v4427_v4  ;;  %vm4430_vm4 = vweird.f32 %v12517_v45  ;;  %vm4268_vm14 = vcmp.eq.f32.partialorder %v4267_v16, 8.507059e+37 }
 0x636   :  { %v4270_v49 = vor.u32 1.1754944e-38, %v4269_v11  ;;  %vm4278_vm8 = vweird.f32 %v12447_v0  ;;  %vm4294_vm6 = vweird.f32 %v12487_v10  ;;  %v4299_v22 = vand.u32 2147483648, %v12451_v60 }
 0x637   :  { %v12675_v8 = vadd.f32 %v12487_v10, %v4291_v28  ;;  %v15983_v37 = vsub.f32 1.0, %v12507_v17  ;;  %v12684_v56 = vsel %vm12645_vm3, %v4255_v31, %v4251_v14  ;;  %vm12688_vm2 = vmor %vm4278_vm8, %vm4279_vm7  ;;  %v4282_v23 = vand.u32 2147483647, %v12447_v0 }
 0x638   :  { %v12686_v30 = vsel %vm4268_vm14, %v4270_v49, %v4266_v1  ;;  %vm4293_vm15 = vweird.f32 %v12451_v60  ;;  %v4281_v16 = vsel %vm12688_vm2, %v12481_v55, %v12666_v19  ;;  %v4285_v11 = vor.u32 1.1754944e-38, %v4284_v25  ;;  %vm4417_vm8 = vmor %vm4415_vm13, %vm4416_vm10 }
 0x639   :  { %v4306_v46 = vmul.f32 %v12468_v33, %v15983_v37  ;;  %v4297_v61 = vand.u32 2147483647, %v12451_v60  ;;  %vm4308_vm3 = vweird.f32 %v12437_v20  ;;  %vm12708_vm7 = vmor %vm4293_vm15, %vm4294_vm6  ;;  %vm4309_vm14 = vweird.f32 %v12468_v33 }
 0x63a   :  { %v4384_v42 = vadd.f32 %v12554_v58, %v4383_v47  ;;  %v4389_v14 = vand.u32 2147483647, %v12484_v51  ;;  %v4399_v31 = vadd.f32 %v12559_v36, %v4398_v57  ;;  %v4296_v55 = vsel %vm12708_vm7, %v12487_v10, %v12675_v8  ;;  %vm4432_vm6 = vmor %vm4430_vm4, %vm4431_vm1 }
 0x63b   :  { %v4300_v19 = vor.u32 1.1754944e-38, %v4299_v22  ;;  %v4307_v47 = vadd.f32 %v12468_v33, %v4306_v46  ;;  %v4404_v51 = vand.u32 2147483647, %v12498_v24  ;;  %v4312_v57 = vand.u32 2147483647, %v12437_v20  ;;  %vm12773_vm1 = vmor %vm4308_vm3, %vm4309_vm14 }
 0x63c   :  { %v4388_v1 = vsel %vm12698_vm5, %v12554_v58, %v4384_v42  ;;  %vm4390_vm12 = vcmp.eq.f32.partialorder %v4389_v14, 8.507059e+37  ;;  %v4403_v25 = vsel %vm12720_vm9, %v12559_v36, %v4399_v31  ;;  %vm12737_vm0 = vcmp.eq.f32.partialorder %v4282_v23, 8.507059e+37 }
 0x63d   :  { %v4393_v10 = vsel %vm4390_vm12, %v12549_v50, %v4388_v1  ;;  %vm4405_vm11 = vcmp.eq.f32.partialorder %v4404_v51, 8.507059e+37  ;;  %v4414_v24 = vadd.f32 %v12566_v12, %v4413_v63  ;;  %v4419_v49 = vand.u32 2147483647, %v12509_v7 }
 0x63e   :  { %v4314_v58 = vand.u32 2147483648, %v12437_v20  ;;  %v4408_v36 = vsel %vm4405_vm11, %v12605_v41, %v4403_v25  ;;  %v4429_v8 = vadd.f32 %v12584_v26, %v4428_v9  ;;  %v4434_v22 = vand.u32 2147483647, %v12517_v45 }
 0x63f   :  { %v4418_v50 = vsel %vm4417_vm8, %v12566_v12, %v4414_v24  ;;  %vm4420_vm2 = vcmp.eq.f32.partialorder %v4419_v49, 8.507059e+37  ;;  %7476 = vtanh.f32 %v12494_v32  ;;  %v15994_v7 = vrot.slane %v11956_v15, 7 }
 0x640   :  { %v4423_v37 = vsel %vm4420_vm2, %v12607_v44, %v4418_v50  ;;  %v4433_v41 = vsel %vm4432_vm6, %v12584_v26, %v4429_v8  ;;  %vm4435_vm10 = vcmp.eq.f32.partialorder %v4434_v22, 8.507059e+37  ;;  %7478 = vtanh.f32 %v12501_v21 }
 0x641   :  { %v4684_v63 = vmul.f32 %v15994_v7, %v4393_v10  ;;  %v4438_v9 = vsel %vm4435_vm10, %v12613_v59, %v4433_v41  ;;  %7480 = vtanh.f32 %v12513_v54  ;;  %v15995_v45 = vrot.slane %v11960_v34, 7  ;;  %v16004_v41 = vld [vmem:[#allocation64_spill] sm:$0xff] }
 0x642   :  { %v15996_v46 = vrot.slane %v11965_v43, 7  ;;  %7482 = vtanh.f32 %v12528_v53  ;;  %v15999_v21 = vrot.slane %v11969_v27, 7  ;;  %v4107_v54 = vrot.slane %v12503_v5, 3 }
 0x643   :  { %v4685_v12 = vmul.f32 %v15995_v45, %v4408_v36  ;;  %v4111_v34 = vrot.slane %v12503_v5, 4  ;;  %v4311_v43 = vsel %vm12773_vm1, %v12468_v33, %v4307_v47  ;;  %7484 = vtanh.f32 %v12536_v2  ;;  %v16001_v36 = vld [vmem:[#allocation84_spill] sm:$0xff] }
 0x644   :  { %v4686_v32 = vmul.f32 %v15996_v46, %v4423_v37  ;;  %v4687_v26 = vmul.f32 %v15999_v21, %v4438_v9  ;;  %v4115_v20 = vrot.slane %v12503_v5, 5  ;;  %v4119_v44 = vrot.slane %v12503_v5, 6  ;;  %v16006_v21 = vld [vmem:[#allocation52_spill] sm:$0xff] }
 0x645   :  { %v4315_v59 = vor.u32 1.1754944e-38, %v4314_v58  ;;  %7486 = vtanh.f32 %v12540_v6  ;;  %v4123_v27 = vrot.slane %v12503_v5, 7  ;;  %v4167_v53 = vadd.f32 %v4107_v54, %v15373_v29  ;;  %v7477_v4 = vpop.eup %7476  ;;  %v16000_v58 = vld [vmem:[#allocation63_spill] sm:$0xff] }
 0x646   :  { %vm4298_vm13 = vcmp.eq.f32.partialorder %v4297_v61, 8.507059e+37  ;;  %vm4313_vm4 = vcmp.eq.f32.partialorder %v4312_v57, 8.507059e+37  ;;  %v4171_v23 = vadd.f32 %v4111_v34, %v15374_v35  ;;  %v4175_v33 = vadd.f32 %v4115_v20, %v15375_v3  ;;  %v7479_v17 = vpop.eup %7478  ;;  %v16008_v20 = vld [vmem:[#allocation83_spill] sm:$0xff] }
 0x647   :  { %v4286_v2 = vsel %vm12737_vm0, %v4285_v11, %v4281_v16  ;;  %v4301_v0 = vsel %vm4298_vm13, %v4300_v19, %v4296_v55  ;;  %v4316_v42 = vsel %vm4313_vm4, %v4315_v59, %v4311_v43  ;;  %v4692_v14 = vmul.f32 %v7477_v4, %v12626_v13  ;;  %v7481_v6 = vpop.eup %7480  ;;  %v16009_v59 = vld [vmem:[#allocation68_spill] sm:$0xff] }
 0x648   :  { %v4693_v31 = vmul.f32 %v7479_v17, %v12684_v56  ;;  %v4127_v60 = vrot.slane %v12503_v5, 1  ;;  %v4179_v61 = vadd.f32 %v4119_v44, %v15376_v62  ;;  %v6634_v47 = vmul.f32 -1.442695, %v4167_v53  ;;  %v7483_v51 = vpop.eup %7482  ;;  %v16010_v53 = vld [vmem:[#allocation81_spill] sm:$0xff]  ;;  %v16011_v4 = vld [vmem:[#allocation80_spill] sm:$0xff] }
 0x649   :  { %v4694_v57 = vmul.f32 %v7481_v6, %v12686_v30  ;;  %v12800_v1 = vadd.f32 %v4692_v14, %v4684_v63  ;;  %v4183_v25 = vadd.f32 %v4123_v27, %v15377_v39  ;;  %v6635_v16 = vmul.f32 -1.442695, %v4171_v23  ;;  %v7485_v11 = vpop.eup %7484  ;;  %v16003_v63 = vld [vmem:[#allocation82_spill] sm:$0xff] }
 0x64a   :  { %v4695_v55 = vmul.f32 %v7483_v51, %v4286_v2  ;;  %v12803_v19 = vadd.f32 %v4693_v31, %v4685_v12  ;;  %7488 = vpow2.f32 %v6634_v47  ;;  %v6636_v13 = vmul.f32 -1.442695, %v4175_v33  ;;  %v16012_v2 = vld [vmem:[#allocation71_spill] sm:$0xff]  ;;  %v16014_v47 = vld [vmem:[#allocation65_spill] sm:$0xff] }
 0x64b   :  { %v7487_v56 = vpop.eup %7486  ;;  %v12805_v28 = vmul.f32 %v7485_v11, %v4301_v0  ;;  %v12807_v10 = vadd.f32 %v4694_v57, %v4686_v32  ;;  %v4131_v24 = vrot.slane %v12503_v5, 2  ;;  %v4187_v30 = vadd.f32 %v12503_v5, %v15837_v18  ;;  %v16005_v32 = vld [vmem:[#allocation85_spill] sm:$0xff] }
 0x64c   :  { %v16002_v8 = vrot.slane %v16001_v36, 1  ;;  %v12816_v50 = vmul.f32 %v7487_v56, %v4316_v42  ;;  %v12818_v7 = vadd.f32 %v4695_v55, %v4687_v26  ;;  %v4320_v37 = vsub.f32 1.0, %v16003_v63  ;;  %v16007_v26 = vld [vmem:[#allocation66_spill] sm:$0xff]  ;;  %v16015_v11 = vld [vmem:[#allocation69_spill] sm:$0xff]  ;;  %v16016_v55 = vld [vmem:[#allocation11_spill] sm:$0xff] }
 0x64d   :  { %v4191_v9 = vadd.f32 %v4127_v60, %v16004_v41  ;;  %7490 = vpow2.f32 %v6635_v16  ;;  %v6637_v45 = vmul.f32 -1.442695, %v4179_v61  ;;  %v4441_v12 = vmul.f32 %v12630_v52, %v12556_v48  ;;  %v16013_v42 = vld [vmem:[#allocation70_spill] sm:$0xff] }
 0x64e   :  { %v4190_v22 = vadd.f32 %v16002_v8, %v16000_v58  ;;  %v4130_v5 = vrot.slane %v16001_v36, 2  ;;  %7492 = vpow2.f32 %v6636_v13  ;;  %v6638_v46 = vmul.f32 -1.442695, %v4183_v25 }
 0x64f   :  { %v4456_v15 = vmul.f32 %v16005_v32, %v12562_v40  ;;  %7494 = vrcp.f32 %v16006_v21  ;;  %v4195_v54 = vadd.f32 %v4131_v24, %v16007_v26  ;;  %v6639_v34 = vmul.f32 -1.442695, %v4187_v30 }
 0x650   :  { %v7489_v43 = vpop.eup %7488  ;;  %7496 = vtanh.f32 %v4190_v22  ;;  %v4334_v23 = vmul.f32 %v16011_v4, %v16010_v53  ;;  %v6640_v33 = vmul.f32 -1.442695, %v4191_v9  ;;  %v4321_v0 = vmul.f32 %v16012_v2, %v4320_v37  ;;  %v16017_v37 = vld [vmem:[#allocation72_spill] sm:$0xff] }
 0x651   :  { %7498 = vpow2.f32 %v6637_v45  ;;  %v12833_v17 = vadd.f32 1.0, %v7489_v43  ;;  %v4442_v6 = vsub.f32 1.0, %v4441_v12  ;;  %v4457_v61 = vsub.f32 1.0, %v4456_v15 }
 0x652   :  { %7500 = vpow2.f32 %v6638_v46  ;;  %v4335_v31 = vsub.f32 1.0, %v4334_v23  ;;  %v4194_v51 = vadd.f32 %v4130_v5, %v16014_v47  ;;  %v6641_v57 = vmul.f32 -1.442695, %v4195_v54 }
 0x653   :  { %v7491_v60 = vpop.eup %7490  ;;  %7502 = vpow2.f32 %v6639_v34  ;;  %v4451_v16 = vand.u32 2147483648, %v12556_v48  ;;  %v12841_v13 = vmul.f32 %v16016_v55, %v16015_v11  ;;  %vm4445_vm15 = vweird.f32 %v12556_v48 }
 0x654   :  { %v7493_v25 = vpop.eup %7492  ;;  %v12843_v56 = vadd.f32 1.0, %v7491_v60  ;;  %7504 = vrcp.f32 %v12833_v17  ;;  %v4322_v30 = vadd.f32 %v16012_v2, %v4321_v0  ;;  %vm4324_vm5 = vweird.f32 %v16012_v2 }
 0x655   :  { %v12846_v24 = vpop.eup %7494  ;;  %7506 = vpow2.f32 %v6640_v33  ;;  %v4336_v36 = vmul.f32 %v16011_v4, %v4335_v31  ;;  %v4443_v22 = vmul.f32 %v12630_v52, %v4442_v6  ;;  %v12855_v63 = vadd.f32 1.0, %v7493_v25 }
 0x656   :  { %v12852_v8 = vpop.eup %7496  ;;  %7508 = vrcp.f32 %v12843_v56  ;;  %v4329_v9 = vand.u32 2147483648, %v16017_v37  ;;  %v4458_v12 = vmul.f32 %v16005_v32, %v4457_v61  ;;  %vm4323_vm3 = vweird.f32 %v16017_v37 }
 0x657   :  { %v7499_v45 = vpop.eup %7498  ;;  %7510 = vpow2.f32 %v6641_v57  ;;  %v4327_v5 = vand.u32 2147483647, %v16017_v37  ;;  %vm4460_vm7 = vweird.f32 %v12562_v40  ;;  %v4472_v15 = vsub.f32 1.0, %v12841_v13  ;;  %vm12866_vm14 = vmor %vm4323_vm3, %vm4324_vm5 }
 0x658   :  { %v7501_v46 = vpop.eup %7500  ;;  %7512 = vtanh.f32 %v4194_v51  ;;  %v4342_v34 = vand.u32 2147483647, %v16010_v53  ;;  %v4344_v43 = vand.u32 2147483648, %v16010_v53  ;;  %v4326_v33 = vsel %vm12866_vm14, %v16012_v2, %v4322_v30 }
 0x659   :  { %v7503_v23 = vpop.eup %7502  ;;  %7514 = vtanh.f32 %v12800_v1  ;;  %v4337_v0 = vadd.f32 %v16011_v4, %v4336_v36  ;;  %vm4339_vm9 = vweird.f32 %v16011_v4  ;;  %v12880_v31 = vadd.f32 1.0, %v7499_v45 }
 0x65a   :  { %v12878_v6 = vpop.eup %7504  ;;  %7516 = vrcp.f32 %v12855_v63  ;;  %v4330_v60 = vor.u32 1.1754944e-38, %v4329_v9  ;;  %vm4338_vm12 = vweird.f32 %v16010_v53  ;;  %v12884_v51 = vadd.f32 1.0, %v7501_v46 }
 0x65b   :  { %v7507_v61 = vpop.eup %7506  ;;  %vm4328_vm0 = vcmp.eq.f32.partialorder %v4327_v5, 8.507059e+37  ;;  %v4444_v57 = vadd.f32 %v12630_v52, %v4443_v22  ;;  %vm4446_vm11 = vweird.f32 %v12630_v52  ;;  %7518 = vtanh.f32 %v12803_v19  ;;  %vm12893_vm8 = vmor %vm4338_vm12, %vm4339_vm9 }
 0x65c   :  { %v12888_v2 = vpop.eup %7508  ;;  %v12891_v25 = vsel %vm4328_vm0, %v4330_v60, %v4326_v33  ;;  %vm12897_vm6 = vcmp.eq.f32.partialorder %v4342_v34, 8.507059e+37  ;;  %v4345_v30 = vor.u32 1.1754944e-38, %v4344_v43  ;;  %v12901_v37 = vadd.f32 1.0, %v7503_v23  ;;  %vm12918_vm2 = vmor %vm4445_vm15, %vm4446_vm11 }
 0x65d   :  { %v7511_v36 = vpop.eup %7510  ;;  %v4541_v22 = vmul.f32 %v12878_v6, %v12833_v17  ;;  %v4341_v9 = vsel %vm12893_vm8, %v16011_v4, %v4337_v0  ;;  %v4449_v45 = vand.u32 2147483647, %v12556_v48  ;;  %v12911_v46 = vadd.f32 1.0, %v7507_v61 }
 0x65e   :  { %v12909_v5 = vpop.eup %7512  ;;  %7520 = vrcp.f32 %v12880_v31  ;;  %v4459_v34 = vadd.f32 %v16005_v32, %v4458_v12  ;;  %vm4461_vm10 = vweird.f32 %v16005_v32  ;;  %v4556_v43 = vmul.f32 %v12888_v2, %v12843_v56 }
 0x65f   :  { %v12924_v4 = vpop.eup %7514  ;;  %7522 = vrcp.f32 %v12884_v51  ;;  %v4448_v23 = vsel %vm12918_vm2, %v12630_v52, %v4444_v57  ;;  %v4473_v33 = vmul.f32 %v16016_v55, %v4472_v15  ;;  %v12935_v60 = vadd.f32 1.0, %v7511_v36  ;;  %vm12951_vm13 = vmor %vm4460_vm7, %vm4461_vm10 }
 0x660   :  { %v12933_v0 = vpop.eup %7516  ;;  %v12939_v12 = vsel %vm12897_vm6, %v4345_v30, %v4341_v9  ;;  %v4466_v61 = vand.u32 2147483648, %v12562_v40  ;;  %v4486_v13 = vmul.f32 %v12846_v24, %v16006_v21  ;;  %v4542_v14 = vsub.f32 1.0, %v4541_v22 }
 0x661   :  { %7524 = vrcp.f32 %v12901_v37  ;;  %vm12945_vm1 = vcmp.eq.f32.partialorder %v4449_v45, 8.507059e+37  ;;  %v4464_v57 = vand.u32 2147483647, %v12562_v40  ;;  %v12956_v53 = vpop.eup %7518  ;;  %v4452_v30 = vor.u32 1.1754944e-38, %v4451_v16 }
 0x662   :  { %7526 = vrcp.f32 %v12911_v46  ;;  %v4463_v36 = vsel %vm12951_vm13, %v16005_v32, %v4459_v34  ;;  %v4487_v22 = vsub.f32 1.0, %v4486_v13  ;;  %v4557_v9 = vsub.f32 1.0, %v4556_v43 }
 0x663   :  { %v4571_v45 = vmul.f32 %v12933_v0, %v12855_v63  ;;  %v4474_v54 = vadd.f32 %v16016_v55, %v4473_v33  ;;  %vm4476_vm4 = vweird.f32 %v16016_v55  ;;  %7528 = vrcp.f32 %v12935_v60 }
 0x664   :  { %v12968_v40 = vpop.eup %7520  ;;  %v4467_v27 = vor.u32 1.1754944e-38, %v4466_v61  ;;  %v4479_v48 = vand.u32 2147483647, %v16015_v11  ;;  %v4481_v16 = vand.u32 2147483648, %v16015_v11  ;;  %v12977_v32 = vsel %vm12945_vm1, %v4452_v30, %v4448_v23 }
 0x665   :  { %v12973_v15 = vpop.eup %7522  ;;  %vm4465_vm15 = vcmp.eq.f32.partialorder %v4464_v57, 8.507059e+37  ;;  %vm4475_vm5 = vweird.f32 %v16015_v11  ;;  %v4543_v34 = vmul.f32 %v12878_v6, %v4542_v14  ;;  %v4488_v61 = vmul.f32 %v12846_v24, %v4487_v22 }
 0x666   :  { %v12981_v43 = vsel %vm4465_vm15, %v4467_v27, %v4463_v36  ;;  %vm12983_vm3 = vmor %vm4475_vm5, %vm4476_vm4  ;;  %vm4490_vm7 = vweird.f32 %v16006_v21  ;;  %v4494_v13 = vand.u32 2147483647, %v16006_v21  ;;  %v4496_v14 = vand.u32 2147483648, %v16006_v21 }
 0x667   :  { %v12990_v52 = vpop.eup %7524  ;;  %v4478_v11 = vsel %vm12983_vm3, %v16016_v55, %v4474_v54  ;;  %v4558_v27 = vmul.f32 %v12888_v2, %v4557_v9  ;;  %v4572_v23 = vsub.f32 1.0, %v4571_v45  ;;  %vm4480_vm14 = vcmp.eq.f32.partialorder %v4479_v48, 8.507059e+37 }
 0x668   :  { %v12997_v57 = vpop.eup %7526  ;;  %v4482_v30 = vor.u32 1.1754944e-38, %v4481_v16  ;;  %vm4491_vm9 = vweird.f32 %v12846_v24  ;;  %v4549_v36 = vand.u32 2147483647, %v12833_v17  ;;  %v4544_v22 = vadd.f32 %v12878_v6, %v4543_v34 }
 0x669   :  { %vm4545_vm12 = vweird.f32 %v12833_v17  ;;  %vm4546_vm0 = vweird.f32 %v12878_v6  ;;  %v4551_v55 = vand.u32 2147483648, %v12833_v17  ;;  %v13005_v54 = vpop.eup %7528  ;;  %v4489_v45 = vadd.f32 %v12846_v24, %v4488_v61  ;;  %vm13033_vm1 = vmor %vm4490_vm7, %vm4491_vm9 }
 0x66a   :  { %v13007_v9 = vsel %vm4480_vm14, %v4482_v30, %v4478_v11  ;;  %vm13010_vm11 = vcmp.eq.f32.partialorder %v4494_v13, 8.507059e+37  ;;  %v4586_v16 = vmul.f32 %v12968_v40, %v12880_v31  ;;  %v4497_v34 = vor.u32 1.1754944e-38, %v4496_v14  ;;  %vm13019_vm6 = vmor %vm4545_vm12, %vm4546_vm0 }
 0x66b   :  { %v4559_v33 = vadd.f32 %v12888_v2, %v4558_v27  ;;  %vm4561_vm8 = vweird.f32 %v12888_v2  ;;  %v4573_v17 = vmul.f32 %v12933_v0, %v4572_v23  ;;  %vm13023_vm2 = vcmp.eq.f32.partialorder %v4549_v36, 8.507059e+37 }
 0x66c   :  { %vm4560_vm10 = vweird.f32 %v12843_v56  ;;  %v4566_v13 = vand.u32 2147483648, %v12843_v56  ;;  %v4587_v11 = vsub.f32 1.0, %v4586_v16  ;;  %v4548_v27 = vsel %vm13019_vm6, %v12878_v6, %v4544_v22 }
 0x66d   :  { %v4552_v23 = vor.u32 1.1754944e-38, %v4551_v55  ;;  %v4564_v30 = vand.u32 2147483647, %v12843_v56  ;;  %v4601_v36 = vmul.f32 %v12973_v15, %v12884_v51  ;;  %v4493_v16 = vsel %vm13033_vm1, %v12846_v24, %v4489_v45  ;;  %vm13046_vm13 = vmor %vm4560_vm10, %vm4561_vm8 }
 0x66e   :  { %vm4575_vm4 = vweird.f32 %v12855_v63  ;;  %vm4576_vm15 = vweird.f32 %v12933_v0  ;;  %v4588_v44 = vmul.f32 %v12968_v40, %v4587_v11  ;;  %v4563_v56 = vsel %vm13046_vm13, %v12888_v2, %v4559_v33 }
 0x66f   :  { %v4574_v6 = vadd.f32 %v12933_v0, %v4573_v17  ;;  %v4579_v22 = vand.u32 2147483647, %v12855_v63  ;;  %v4581_v24 = vand.u32 2147483648, %v12855_v63  ;;  %v4567_v55 = vor.u32 1.1754944e-38, %v4566_v13  ;;  %vm13072_vm7 = vmor %vm4575_vm4, %vm4576_vm15 }
 0x670   :  { %v4594_v45 = vand.u32 2147483647, %v12880_v31  ;;  %v4602_v14 = vsub.f32 1.0, %v4601_v36  ;;  %v4616_v49 = vmul.f32 %v12990_v52, %v12901_v37  ;;  %v4553_v11 = vsel %vm13023_vm2, %v4552_v23, %v4548_v27 }
 0x671   :  { %vm4565_vm5 = vcmp.eq.f32.partialorder %v4564_v30, 8.507059e+37  ;;  %v4589_v21 = vadd.f32 %v12968_v40, %v4588_v44  ;;  %vm4591_vm3 = vweird.f32 %v12968_v40  ;;  %v4498_v2 = vsel %vm13010_vm11, %v4497_v34, %v4493_v16 }
 0x672   :  { %v4568_v33 = vsel %vm4565_vm5, %v4567_v55, %v4563_v56  ;;  %vm4590_vm14 = vweird.f32 %v12880_v31  ;;  %v4596_v61 = vand.u32 2147483648, %v12880_v31  ;;  %v4578_v13 = vsel %vm13072_vm7, %v12933_v0, %v4574_v6 }
 0x673   :  { %vm4580_vm9 = vcmp.eq.f32.partialorder %v4579_v22, 8.507059e+37  ;;  %v4582_v48 = vor.u32 1.1754944e-38, %v4581_v24  ;;  %v4631_v34 = vmul.f32 %v12997_v57, %v12911_v46  ;;  %vm13083_vm12 = vmor %vm4590_vm14, %vm4591_vm3  ;;  %vm13087_vm0 = vcmp.eq.f32.partialorder %v4594_v45, 8.507059e+37 }
 0x674   :  { %v4603_v23 = vmul.f32 %v12973_v15, %v4602_v14  ;;  %v4611_v31 = vand.u32 2147483648, %v12884_v51  ;;  %v4617_v30 = vsub.f32 1.0, %v4616_v49  ;;  %v4593_v0 = vsel %vm13083_vm12, %v12968_v40, %v4589_v21 }
 0x675   :  { %vm4605_vm11 = vweird.f32 %v12884_v51  ;;  %v4609_v36 = vand.u32 2147483647, %v12884_v51  ;;  %v4646_v16 = vmul.f32 %v13005_v54, %v12935_v60  ;;  %v13100_v44 = vsel %vm4580_vm9, %v4582_v48, %v4578_v13 }
 0x676   :  { %v4597_v56 = vor.u32 1.1754944e-38, %v4596_v61  ;;  %vm4606_vm8 = vweird.f32 %v12973_v15  ;;  %v4626_v6 = vand.u32 2147483648, %v12901_v37  ;;  %vm4620_vm6 = vweird.f32 %v12901_v37 }
 0x677   :  { %vm4621_vm2 = vweird.f32 %v12990_v52  ;;  %v4624_v49 = vand.u32 2147483647, %v12901_v37  ;;  %v4632_v40 = vsub.f32 1.0, %v4631_v34  ;;  %v4647_v22 = vsub.f32 1.0, %v4646_v16  ;;  %vm13151_vm15 = vmor %vm4605_vm11, %vm4606_vm8 }
 0x678   :  { %v4598_v24 = vsel %vm13087_vm0, %v4597_v56, %v4593_v0  ;;  %v4604_v55 = vadd.f32 %v12973_v15, %v4603_v23  ;;  %v4612_v45 = vor.u32 1.1754944e-38, %v4611_v31  ;;  %v4618_v14 = vmul.f32 %v12990_v52, %v4617_v30  ;;  %vm13174_vm3 = vmor %vm4620_vm6, %vm4621_vm2 }
 0x679   :  { %vm13111_vm10 = vcmp.eq.f32.partialorder %v4609_v36, 8.507059e+37  ;;  %vm4635_vm1 = vweird.f32 %v12911_v46  ;;  %v16050_v17 = vrot.slane %v12318_v38, 7  ;;  %v16051_v13 = vrot.slane %v16008_v20, 7 }
 0x67a   :  { %v16052_v34 = vrot.slane %v16009_v59, 7  ;;  %v4627_v63 = vor.u32 1.1754944e-38, %v4626_v6  ;;  %vm4636_vm13 = vweird.f32 %v12997_v57  ;;  %v4639_v23 = vand.u32 2147483647, %v12911_v46 }
 0x67b   :  { %v4688_v61 = vmul.f32 %v16050_v17, %v12977_v32  ;;  %v4689_v48 = vmul.f32 %v16051_v13, %v12981_v43  ;;  %v16053_v31 = vrot.slane %v16013_v42, 7  ;;  %vm13129_vm4 = vcmp.eq.f32.partialorder %v4624_v49, 8.507059e+37  ;;  %vm13192_vm7 = vmor %vm4635_vm1, %vm4636_vm13 }
 0x67c   :  { %v4690_v27 = vmul.f32 %v16052_v34, %v13007_v9  ;;  %v4633_v38 = vmul.f32 %v12997_v57, %v4632_v40  ;;  %v4648_v20 = vmul.f32 %v13005_v54, %v4647_v22  ;;  %v4698_v59 = vmul.f32 %v12852_v8, %v12891_v25 }
 0x67d   :  { %v4691_v30 = vmul.f32 %v16053_v31, %v4498_v2  ;;  %v4699_v32 = vmul.f32 %v12909_v5, %v12939_v12  ;;  %v13140_v43 = vadd.f32 %v12805_v28, %v4688_v61  ;;  %v13143_v42 = vadd.f32 %v12816_v50, %v4689_v48 }
 0x67e   :  { %7530 = vtanh.f32 %v12807_v10  ;;  %v4716_v9 = vmul.f32 %v12924_v4, %v4553_v11  ;;  %v4619_v8 = vadd.f32 %v12990_v52, %v4618_v14  ;;  %v13156_v25 = vadd.f32 %v4698_v59, %v4690_v27 }
 0x67f   :  { %16056 = vst [vmem:[#allocation12_spill] sm:$0xff] %v13140_v43  ;;  %v13158_v28 = vadd.f32 %v4699_v32, %v4691_v30  ;;  %7532 = vtanh.f32 %v12818_v7  ;;  %v4608_v50 = vsel %vm13151_vm15, %v12973_v15, %v4604_v55  ;;  %v4717_v51 = vmul.f32 %v12956_v53, %v4568_v33 }
 0x680   :  { %7534 = vtanh.f32 %v13140_v43  ;;  %v4724_v5 = vpack.c.bf16 %v4716_v9, %v4716_v9  ;;  %v4634_v4 = vadd.f32 %v12997_v57, %v4633_v38  ;;  %v4641_v12 = vand.u32 2147483648, %v12911_v46 }
 0x681   :  { %16059 = vst [vmem:[#allocation17_spill] sm:$0xff] %v13158_v28  ;;  %vm4651_vm5 = vweird.f32 %v13005_v54  ;;  %7536 = vtanh.f32 %v13143_v42  ;;  %v4649_v15 = vadd.f32 %v13005_v54, %v4648_v20  ;;  %v4725_v53 = vpack.c.bf16 %v4717_v51, %v4717_v51 }
 0x682   :  { %7538 = vtanh.f32 %v13156_v25  ;;  %v4740_v33 = vunpack.c.l.b16 %v4724_v5  ;;  %v4623_v36 = vsel %vm13174_vm3, %v12990_v52, %v4619_v8  ;;  %v4654_v16 = vand.u32 2147483647, %v12935_v60 }
 0x683   :  { %v4656_v56 = vand.u32 2147483648, %v12935_v60  ;;  %7540 = vtanh.f32 %v13158_v28  ;;  %v4613_v6 = vsel %vm13111_vm10, %v4612_v45, %v4608_v50  ;;  %vm4650_vm14 = vweird.f32 %v12935_v60 }
 0x684   :  { %v7531_v37 = vpop.eup %7530  ;;  %v4741_v52 = vunpack.c.l.b16 %v4725_v53  ;;  %v4748_v40 = vrot.slane %v4740_v33, 5  ;;  %v4638_v55 = vsel %vm13192_vm7, %v12997_v57, %v4634_v4  ;;  %vm4640_vm9 = vcmp.eq.f32.partialorder %v4639_v23, 8.507059e+37  ;;  %vm13202_vm12 = vmor %vm4650_vm14, %vm4651_vm5 }
 0x685   :  { %v7533_v22 = vpop.eup %7532  ;;  %v4642_v14 = vor.u32 1.1754944e-38, %v4641_v12  ;;  %v4718_v46 = vmul.f32 %v7531_v37, %v13100_v44  ;;  %v4628_v60 = vsel %vm13129_vm4, %v4627_v63, %v4623_v36  ;;  %v4653_v17 = vsel %vm13202_vm12, %v13005_v54, %v4649_v15 }
 0x686   :  { %v7535_v21 = vpop.eup %7534  ;;  %v4719_v61 = vmul.f32 %v7533_v22, %v4598_v24  ;;  %v4749_v57 = vrot.slane %v4741_v52, 4  ;;  %vm4655_vm0 = vcmp.eq.f32.partialorder %v4654_v16, 8.507059e+37  ;;  %v4657_v48 = vor.u32 1.1754944e-38, %v4656_v56 }
 0x687   :  { %v7537_v13 = vpop.eup %7536  ;;  %v4720_v34 = vmul.f32 %v7535_v21, %v4613_v6  ;;  %v4726_v27 = vpack.c.bf16 %v4718_v46, %v4718_v46  ;;  %v4643_v31 = vsel %vm4640_vm9, %v4642_v14, %v4638_v55  ;;  %vm16066_vm11 = vcmask 1041409  }
 0x688   :  { %v7539_v23 = vpop.eup %7538  ;;  %v4721_v30 = vmul.f32 %v7537_v13, %v4628_v60  ;;  %v4727_v38 = vpack.c.bf16 %v4719_v61, %v4719_v61  ;;  %v4750_v44 = vsel %vm16066_vm11, %v4749_v57, %v4748_v40  ;;  %v4658_v0 = vsel %vm4655_vm0, %v4657_v48, %v4653_v17  ;;  %v16073_v61 = vld [vmem:[#allocation49_spill] sm:$0xff] }
 0x689   :  { %v7541_v20 = vpop.eup %7540  ;;  %v4722_v63 = vmul.f32 %v7539_v23, %v4643_v31  ;;  %v4728_v59 = vpack.c.bf16 %v4720_v34, %v4720_v34  ;;  %v4742_v32 = vunpack.c.l.b16 %v4726_v27  ;;  %vm16067_vm8 = vcmask 1042434   ;;  %v16074_v13 = vld [vmem:[#allocation45_spill] sm:$0xff]  ;;  %v16075_v34 = vld [vmem:[#allocation46_spill] sm:$0xff]  ;;  %v16076_v23 = vld [vmem:[#allocation43_spill] sm:$0xff] }
 0x68a   :  { %v4723_v9 = vmul.f32 %v7541_v20, %v4658_v0  ;;  %v4729_v54 = vpack.c.bf16 %v4721_v30, %v4721_v30  ;;  %v4743_v24 = vunpack.c.l.b16 %v4727_v38  ;;  %vm16068_vm6 = vcmask 1043459   ;;  %v16077_v30 = vld [vmem:[#allocation44_spill] sm:$0xff] }
 0x68b   :  { %v4730_v2 = vpack.c.bf16 %v4722_v63, %v4722_v63  ;;  %v4744_v8 = vunpack.c.l.b16 %v4728_v59  ;;  %v4751_v50 = vrot.slane %v4742_v32, 3  ;;  %vm16069_vm2 = vcmask 1044484   ;;  %v16079_v0 = vld [vmem:[#allocation48_spill] sm:$0xff]  ;;  %v16080_v32 = vld [vmem:[#allocation50_spill] sm:$0xff] }
 0x68c   :  { %v4731_v51 = vpack.c.bf16 %v4723_v9, %v4723_v9  ;;  %v4753_v5 = vrot.slane %v4743_v24, 2  ;;  %v4745_v15 = vunpack.c.l.b16 %v4729_v54  ;;  %vm16070_vm10 = vcmask 1045509  }
 0x68d   :  { %v4746_v4 = vunpack.c.l.b16 %v4730_v2  ;;  %v4752_v12 = vsel %vm16067_vm8, %v4751_v50, %v4750_v44  ;;  %v4755_v11 = vrot.slane %v4744_v8, 1  ;;  %vm16071_vm1 = vcmask 1046534   ;;  %v16078_v44 = vld [vmem:[#allocation47_spill] sm:$0xff] }
 0x68e   :  { %v4747_v53 = vunpack.c.l.b16 %v4731_v51  ;;  %v4754_v33 = vsel %vm16068_vm6, %v4753_v5, %v4752_v12  ;;  %vm16072_vm13 = vcmask 1047559  }
 0x68f   :  { %v4756_v36 = vsel %vm16069_vm2, %v4755_v11, %v4754_v33  ;;  %v4758_v16 = vrot.slane %v4746_v4, 7 }
 0x690   :  { %v4757_v56 = vsel %vm16070_vm10, %v4745_v15, %v4756_v36  ;;  %v4760_v37 = vrot.slane %v4747_v53, 6  ;;  %v16081_v53 = vld [vmem:[#allocation73_spill] sm:$0xff] }
 0x691   :  { %v4759_v6 = vsel %vm16071_vm1, %v4758_v16, %v4757_v56 }
 0x692   :  { %v4761_v49 = vsel %vm16072_vm13, %v4760_v37, %v4759_v6 }
 0x693   :  { %v4762_v52 = vpack.c.b16 %v4761_v49, %v4761_v49 }
 0x695   :  { %4772 = vmatmul.bf16.vlgmr.msrb.gmra.mxu0 %v4762_v52  ;;  %4785 = vmatmul.bf16.vlgmr.msra.gmra.mxu1 %v4762_v52 }
 0x696   :  { %4798 = vmatmul.bf16.vlgmr.msrb.gmra.mxu2 %v4762_v52  ;;  %4811 = vmatmul.bf16.vlgmr.msrb.gmra.mxu3 %v4762_v52 }
 0x712   :  { %v4773_v40 = vpop.f32.mrf.mxu0  ;;  %v13219_v22 = vpop.f32.mrf.mxu1 }
 0x713   :  { %v4820_v55 = vrot.slane %v4773_v40, 2  ;;  %v4824_v14 = vrot.slane %v4773_v40, 3  ;;  %v4828_v45 = vrot.slane %v4773_v40, 4  ;;  %v4832_v46 = vrot.slane %v4773_v40, 5 }
 0x714   :  { %v4836_v21 = vrot.slane %v4773_v40, 6  ;;  %v4840_v60 = vrot.slane %v4773_v40, 7  ;;  %v4844_v17 = vrot.slane %v4773_v40, 1  ;;  %v4904_v57 = vadd.f32 %v4773_v40, %v16073_v61 }
 0x715   :  { %v4880_v48 = vadd.f32 %v4820_v55, %v16074_v13  ;;  %v4884_v27 = vadd.f32 %v4824_v14, %v16075_v34  ;;  %v4888_v31 = vadd.f32 %v4828_v45, %v16076_v23  ;;  %v4892_v38 = vadd.f32 %v4832_v46, %v16077_v30 }
 0x716   :  { %v4896_v20 = vadd.f32 %v4836_v21, %v16078_v44  ;;  %v4900_v63 = vadd.f32 %v4840_v60, %v16079_v0  ;;  %v6648_v59 = vmul.f32 -1.442695, %v4904_v57  ;;  %v4908_v9 = vadd.f32 %v4844_v17, %v16080_v32  ;;  %v16083_v21 = vld [vmem:[#allocation74_spill] sm:$0xff] }
 0x717   :  { %v6642_v54 = vmul.f32 -1.442695, %v4880_v48  ;;  %v6643_v24 = vmul.f32 -1.442695, %v4884_v27  ;;  %v6644_v2 = vmul.f32 -1.442695, %v4888_v31 }
 0x718   :  { %v6645_v8 = vmul.f32 -1.442695, %v4892_v38  ;;  %7542 = vpow2.f32 %v6648_v59  ;;  %v6646_v50 = vmul.f32 -1.442695, %v4896_v20  ;;  %v4821_v51 = vrot.slane %v13219_v22, 2  ;;  %v16084_v31 = vld [vmem:[#allocation75_spill] sm:$0xff] }
 0x719   :  { %7544 = vpow2.f32 %v6642_v54  ;;  %v13230_v5 = vpop.f32.mrf.mxu2  ;;  %v6647_v4 = vmul.f32 -1.442695, %v4900_v63  ;;  %v6649_v15 = vmul.f32 -1.442695, %v4908_v9  ;;  %v4825_v36 = vrot.slane %v13219_v22, 3  ;;  %v16085_v59 = vld [vmem:[#allocation76_spill] sm:$0xff] }
 0x71a   :  { %7546 = vpow2.f32 %v6643_v24  ;;  %v4775_v12 = vpop.f32.mrf.mxu0  ;;  %v4788_v11 = vpop.f32.mrf.mxu1  ;;  %v4881_v33 = vadd.f32 %v4821_v51, %v16081_v53  ;;  %v4829_v56 = vrot.slane %v13219_v22, 4  ;;  %v4833_v52 = vrot.slane %v13219_v22, 5  ;;  %v16087_v51 = vld [vmem:[#allocation77_spill] sm:$0xff] }
 0x71b   :  { %7548 = vpow2.f32 %v6644_v2  ;;  %v4837_v46 = vrot.slane %v13219_v22, 6  ;;  %v4885_v60 = vadd.f32 %v4825_v36, %v16083_v21  ;;  %v4841_v27 = vrot.slane %v13219_v22, 7  ;;  %v16088_v11 = vld [vmem:[#allocation78_spill] sm:$0xff] }
 0x71c   :  { %7550 = vpow2.f32 %v6645_v8  ;;  %v6650_v37 = vmul.f32 -1.442695, %v4881_v33  ;;  %v4889_v38 = vadd.f32 %v4829_v56, %v16084_v31  ;;  %v4893_v9 = vadd.f32 %v4833_v52, %v16085_v59 }
 0x71d   :  { %7552 = vpow2.f32 %v6646_v50  ;;  %v4845_v2 = vrot.slane %v13219_v22, 1  ;;  %v6651_v12 = vmul.f32 -1.442695, %v4885_v60 }
 0x71e   :  { %v7543_v16 = vpop.eup %7542  ;;  %7554 = vpow2.f32 %v6647_v4  ;;  %v4897_v4 = vadd.f32 %v4837_v46, %v16087_v51  ;;  %v6652_v33 = vmul.f32 -1.442695, %v4889_v38  ;;  %v16092_v46 = vld [vmem:[#allocation67_spill] sm:$0xff] }
 0x71f   :  { %v7545_v6 = vpop.eup %7544  ;;  %7556 = vpow2.f32 %v6649_v15  ;;  %v13235_v49 = vadd.f32 1.0, %v7543_v16  ;;  %v4901_v15 = vadd.f32 %v4841_v27, %v16088_v11  ;;  %v16089_v16 = vld [vmem:[#allocation79_spill] sm:$0xff]  ;;  %v4909_v60 = vadd.f32 %v4845_v2, %v16092_v46  ;;  %v13299_v46 = vpop.f32.mrf.mxu3 }
 0x720   :  { %v7547_v40 = vpop.eup %7546  ;;  %v13238_v55 = vadd.f32 1.0, %v7545_v6  ;;  %7558 = vpow2.f32 %v6650_v37  ;;  %v4905_v56 = vadd.f32 %v13219_v22, %v16089_v16  ;;  %v6653_v37 = vmul.f32 -1.442695, %v4893_v9  ;;  %v16096_v9 = vld [vmem:[#allocation55_spill] sm:$0xff] }
 0x721   :  { %16082 = vst [vmem:[#allocation14_spill] sm:$0xff] %v13235_v49  ;;  %v7549_v14 = vpop.eup %7548  ;;  %v13240_v45 = vadd.f32 1.0, %v7547_v40  ;;  %v4801_v17 = vpop.f32.mrf.mxu2  ;;  %v6655_v38 = vmul.f32 -1.442695, %v4901_v15  ;;  %v6657_v27 = vmul.f32 -1.442695, %v4909_v60 }
 0x722   :  { %v7551_v57 = vpop.eup %7550  ;;  %v13244_v48 = vadd.f32 1.0, %v7549_v14  ;;  %7560 = vrcp.f32 %v13238_v55  ;;  %v6654_v17 = vmul.f32 -1.442695, %v4897_v4  ;;  %v4826_v4 = vrot.slane %v13230_v5, 3  ;;  %v16094_v60 = vld [vmem:[#allocation51_spill] sm:$0xff] }
 0x723   :  { %v7553_v20 = vpop.eup %7552  ;;  %v13249_v63 = vadd.f32 1.0, %v7551_v57  ;;  %7562 = vrcp.f32 %v13235_v49  ;;  %vm4949_vm4 = vweird.f32 %v13238_v55  ;;  %v4955_v13 = vand.u32 2147483648, %v13238_v55 }
 0x724   :  { %v7555_v54 = vpop.eup %7554  ;;  %v13253_v24 = vadd.f32 1.0, %v7553_v20  ;;  %7564 = vrcp.f32 %v13240_v45  ;;  %vm4964_vm12 = vweird.f32 %v13240_v45 }
 0x725   :  { %v7557_v8 = vpop.eup %7556  ;;  %v13257_v50 = vadd.f32 1.0, %v7555_v54  ;;  %7566 = vrcp.f32 %v13244_v48  ;;  %v6656_v54 = vmul.f32 -1.442695, %v4905_v56 }
 0x726   :  { %7568 = vrcp.f32 %v13249_v63  ;;  %v7559_v36 = vpop.eup %7558  ;;  %v13268_v52 = vadd.f32 1.0, %v7557_v8  ;;  %v4822_v8 = vrot.slane %v13230_v5, 2 }
 0x727   :  { %16086 = vst [vmem:[#allocation13_spill] sm:$0xff] %v13257_v50  ;;  %7570 = vrcp.f32 %v13253_v24  ;;  %v13287_v2 = vadd.f32 1.0, %v7559_v36  ;;  %v4838_v36 = vrot.slane %v13230_v5, 6  ;;  %v4814_v32 = vpop.f32.mrf.mxu3 }
 0x728   :  { %v13266_v6 = vpop.eup %7560  ;;  %16090 = vst [vmem:[#allocation15_spill] sm:$0xff] %v13268_v52  ;;  %7572 = vrcp.f32 %v13257_v50 }
 0x729   :  { %v13271_v40 = vpop.eup %7562  ;;  %v4945_v14 = vmul.f32 %v13266_v6, %v13238_v55  ;;  %7574 = vpow2.f32 %v6651_v12  ;;  %v4830_v12 = vrot.slane %v13230_v5, 4  ;;  %v5107_v0 = vand.u32 2147483648, %v13287_v2 }
 0x72a   :  { %16091 = vst [vmem:[#allocation19_spill] sm:$0xff] %v13271_v40  ;;  %v13276_v57 = vpop.eup %7564  ;;  %7576 = vpow2.f32 %v6652_v33  ;;  %vm4950_vm15 = vweird.f32 %v13266_v6  ;;  %vm5101_vm9 = vweird.f32 %v13287_v2 }
 0x72b   :  { %v13280_v20 = vpop.eup %7566  ;;  %7578 = vpow2.f32 %v6653_v37  ;;  %v4946_v15 = vsub.f32 1.0, %v4945_v14  ;;  %v4834_v37 = vrot.slane %v13230_v5, 5  ;;  %v4960_v51 = vmul.f32 %v13276_v57, %v13240_v45  ;;  %vm13377_vm5 = vmor %vm4949_vm4, %vm4950_vm15 }
 0x72c   :  { %v13284_v16 = vpop.eup %7568  ;;  %7580 = vrcp.f32 %v13268_v52  ;;  %v13314_v21 = vadd.f32 %v4830_v12, %v16096_v9  ;;  %v13359_v23 = vor.u32 1.1754944e-38, %v5107_v0  ;;  %vm4965_vm7 = vweird.f32 %v13276_v57 }
 0x72d   :  { %v13291_v33 = vpop.eup %7570  ;;  %7582 = vpow2.f32 %v6654_v17  ;;  %v13305_v17 = vadd.f32 %v4822_v8, %v16094_v60  ;;  %v4947_v8 = vmul.f32 %v13266_v6, %v4946_v15  ;;  %v13340_v15 = vmul.f32 %v13284_v16, %v13249_v63  ;;  %vm13431_vm6 = vmor %vm4964_vm12, %vm4965_vm7 }
 0x72e   :  { %v13294_v56 = vpop.eup %7572  ;;  %7584 = vpow2.f32 %v6655_v38  ;;  %v16095_v38 = vld [vmem:[#allocation53_spill] sm:$0xff]  ;;  %vm4980_vm1 = vweird.f32 %v13280_v20  ;;  %vm4979_vm15 = vweird.f32 %v13244_v48  ;;  %vm4994_vm7 = vweird.f32 %v13249_v63 }
 0x72f   :  { %16093 = vst [vmem:[#allocation16_spill] sm:$0xff] %v13294_v56  ;;  %v7575_v11 = vpop.eup %7574  ;;  %7586 = vpow2.f32 %v6656_v54  ;;  %v13311_v22 = vadd.f32 %v4826_v4, %v16095_v38  ;;  %v16097_v54 = vld [vmem:[#allocation57_spill] sm:$0xff]  ;;  %v16099_v4 = vld [vmem:[#allocation59_spill] sm:$0xff]  ;;  %v4953_v38 = vand.u32 2147483647, %v13238_v55 }
 0x730   :  { %v7577_v59 = vpop.eup %7576  ;;  %v13307_v31 = vadd.f32 1.0, %v7575_v11  ;;  %7588 = vrcp.f32 %v13287_v2  ;;  %v13319_v14 = vadd.f32 %v4834_v37, %v16097_v54  ;;  %v13329_v12 = vadd.f32 %v4838_v36, %v16099_v4 }
 0x731   :  { %v7579_v53 = vpop.eup %7578  ;;  %7590 = vpow2.f32 %v6657_v27  ;;  %v13316_v61 = vadd.f32 1.0, %v7577_v59  ;;  %v4961_v27 = vsub.f32 1.0, %v4960_v51  ;;  %v4975_v59 = vmul.f32 %v13280_v20, %v13244_v48 }
 0x732   :  { %v13322_v60 = vpop.eup %7580  ;;  %v13324_v11 = vadd.f32 1.0, %v7579_v53  ;;  %7592 = vrcp.f32 %v13307_v31  ;;  %v13335_v37 = vmul.f32 %v13271_v40, %v13235_v49  ;;  %v13344_v36 = vmul.f32 %v13291_v33, %v13253_v24 }
 0x733   :  { %16098 = vst [vmem:[#allocation18_spill] sm:$0xff] %v13322_v60  ;;  %v7583_v9 = vpop.eup %7582  ;;  %7594 = vrcp.f32 %v13316_v61  ;;  %v13348_v51 = vmul.f32 %v13294_v56, %v13257_v50  ;;  %v4948_v54 = vadd.f32 %v13266_v6, %v4947_v8  ;;  %v5122_v34 = vand.u32 2147483648, %v13307_v31 }
 0x734   :  { %v7585_v53 = vpop.eup %7584  ;;  %7596 = vrcp.f32 %v13324_v11  ;;  %v13357_v30 = vadd.f32 1.0, %v7583_v9  ;;  %v4976_v49 = vsub.f32 1.0, %v4975_v59  ;;  %v5137_v60 = vand.u32 2147483648, %v13316_v61 }
 0x735   :  { %16100 = vst [vmem:[#allocation20_spill] sm:$0xff] %v13348_v51  ;;  %v7587_v4 = vpop.eup %7586  ;;  %v13363_v8 = vadd.f32 1.0, %v7585_v53  ;;  %v4991_v9 = vsub.f32 1.0, %v13340_v15  ;;  %v5006_v0 = vsub.f32 1.0, %v13344_v36  ;;  %v4962_v59 = vmul.f32 %v13276_v57, %v4961_v27 }
 0x736   :  { %v13355_v44 = vpop.eup %7588  ;;  %v13384_v47 = vadd.f32 1.0, %v7587_v4  ;;  %v5152_v15 = vand.u32 2147483648, %v13324_v11  ;;  %v4952_v36 = vsel %vm13377_vm5, %v13266_v6, %v4948_v54  ;;  %vm13390_vm3 = vcmp.eq.f32.partialorder %v4953_v38, 8.507059e+37 }
 0x737   :  { %v7591_v43 = vpop.eup %7590  ;;  %v5097_v50 = vmul.f32 %v13355_v44, %v13287_v2  ;;  %v13398_v27 = vor.u32 1.1754944e-38, %v5122_v34  ;;  %7598 = vrcp.f32 %v13357_v30  ;;  %v4956_v4 = vor.u32 1.1754944e-38, %v4955_v13 }
 0x738   :  { %v13368_v52 = vpop.eup %7592  ;;  %16103 = vst [vmem:[#allocation23_spill] sm:$0xff] %v13384_v47  ;;  %v13401_v28 = vadd.f32 1.0, %v7591_v43  ;;  %v13403_v51 = vor.u32 1.1754944e-38, %v5137_v60  ;;  %7600 = vrcp.f32 %v13363_v8  ;;  %v4963_v54 = vadd.f32 %v13276_v57, %v4962_v59 }
 0x739   :  { %v13382_v53 = vpop.eup %7594  ;;  %v5112_v58 = vmul.f32 %v13368_v52, %v13307_v31  ;;  %v5098_v56 = vsub.f32 1.0, %v5097_v50  ;;  %vm5102_vm14 = vweird.f32 %v13355_v44  ;;  %v13413_v13 = vor.u32 1.1754944e-38, %v5152_v15 }
 0x73a   :  { %v13394_v55 = vpop.eup %7596  ;;  %v5127_v6 = vmul.f32 %v13382_v53, %v13316_v61  ;;  %7602 = vrcp.f32 %v13384_v47  ;;  %v4977_v43 = vmul.f32 %v13280_v20, %v4976_v49  ;;  %v4968_v50 = vand.u32 2147483647, %v13240_v45 }
 0x73b   :  { %v5142_v38 = vmul.f32 %v13394_v55, %v13324_v11  ;;  %v5113_v34 = vsub.f32 1.0, %v5112_v58  ;;  %v4970_v60 = vand.u32 2147483648, %v13240_v45  ;;  %v5099_v32 = vmul.f32 %v13355_v44, %v5098_v56 }
 0x73c   :  { %vm5116_vm0 = vweird.f32 %v13307_v31  ;;  %vm5117_vm11 = vweird.f32 %v13368_v52  ;;  %vm5132_vm8 = vweird.f32 %v13382_v53  ;;  %v13427_v49 = vsel %vm13390_vm3, %v4956_v4, %v4952_v36  ;;  %vm13467_vm3 = vmor %vm4979_vm15, %vm4980_vm1 }
 0x73d   :  { %v13435_v59 = vpop.eup %7598  ;;  %v5128_v45 = vsub.f32 1.0, %v5127_v6  ;;  %vm5131_vm2 = vweird.f32 %v13316_v61  ;;  %v5143_v56 = vsub.f32 1.0, %v5142_v38  ;;  %vm5147_vm10 = vweird.f32 %v13394_v55 }
 0x73e   :  { %v4967_v40 = vsel %vm13431_vm6, %v13276_v57, %v4963_v54  ;;  %v13442_v15 = vpop.eup %7600  ;;  %v13445_v36 = vadd.f32 %v13280_v20, %v4977_v43  ;;  %v4985_v4 = vand.u32 2147483648, %v13244_v48  ;;  %v4992_v6 = vmul.f32 %v13284_v16, %v4991_v9 }
 0x73f   :  { %16108 = vst [vmem:[#allocation21_spill] sm:$0xff] %v13442_v15  ;;  %v5114_v47 = vmul.f32 %v13368_v52, %v5113_v34  ;;  %vm5146_vm13 = vweird.f32 %v13324_v11  ;;  %vm4969_vm4 = vcmp.eq.f32.partialorder %v4968_v50, 8.507059e+37  ;;  %v4971_v38 = vor.u32 1.1754944e-38, %v4970_v60 }
 0x740   :  { %v13453_v57 = vpop.eup %7602  ;;  %v4983_v54 = vand.u32 2147483647, %v13244_v48  ;;  %v13457_v43 = vadd.f32 %v13284_v16, %v4992_v6  ;;  %vm4995_vm5 = vweird.f32 %v13284_v16  ;;  %v5007_v58 = vmul.f32 %v13291_v33, %v5006_v0 }
 0x741   :  { %v5129_v9 = vmul.f32 %v13382_v53, %v5128_v45  ;;  %v5144_v34 = vmul.f32 %v13394_v55, %v5143_v56  ;;  %v13463_v15 = vsel %vm4969_vm4, %v4971_v38, %v4967_v40  ;;  %v4982_v48 = vsel %vm13467_vm3, %v13280_v20, %v13445_v36  ;;  %vm13478_vm12 = vmor %vm4994_vm7, %vm4995_vm5 }
 0x742   :  { %v4986_v0 = vor.u32 1.1754944e-38, %v4985_v4  ;;  %v4998_v60 = vand.u32 2147483647, %v13249_v63  ;;  %v5000_v45 = vand.u32 2147483648, %v13249_v63  ;;  %vm5009_vm6 = vweird.f32 %v13253_v24  ;;  %vm5103_vm4 = vmor %vm5101_vm9, %vm5102_vm14 }
 0x743   :  { %vm5010_vm1 = vweird.f32 %v13291_v33  ;;  %v5100_v40 = vadd.f32 %v13355_v44, %v5099_v32  ;;  %v5105_v6 = vand.u32 2147483647, %v13287_v2  ;;  %vm13490_vm15 = vcmp.eq.f32.partialorder %v4983_v54, 8.507059e+37  ;;  %vm5118_vm14 = vmor %vm5116_vm0, %vm5117_vm11 }
 0x744   :  { %v4997_v63 = vsel %vm13478_vm12, %v13284_v16, %v13457_v43  ;;  %v5008_v36 = vadd.f32 %v13291_v33, %v5007_v58  ;;  %v5115_v32 = vadd.f32 %v13368_v52, %v5114_v47  ;;  %v5120_v4 = vand.u32 2147483647, %v13307_v31  ;;  %vm5133_vm5 = vmor %vm5131_vm2, %vm5132_vm8 }
 0x745   :  { %v5013_v2 = vand.u32 2147483647, %v13253_v24  ;;  %v5104_v38 = vsel %vm5103_vm4, %v13355_v44, %v5100_v40  ;;  %vm5106_vm9 = vcmp.eq.f32.partialorder %v5105_v6, 8.507059e+37  ;;  %v5130_v54 = vadd.f32 %v13382_v53, %v5129_v9  ;;  %vm5148_vm0 = vmor %vm5146_vm13, %vm5147_vm10 }
 0x746   :  { %v5109_v47 = vsel %vm5106_vm9, %v13359_v23, %v5104_v38  ;;  %v5119_v16 = vsel %vm5118_vm14, %v13368_v52, %v5115_v32  ;;  %vm5121_vm3 = vcmp.eq.f32.partialorder %v5120_v4, 8.507059e+37  ;;  %v5135_v31 = vand.u32 2147483647, %v13316_v61  ;;  %vm13544_vm10 = vmor %vm5009_vm6, %vm5010_vm1 }
 0x747   :  { %v5015_v43 = vand.u32 2147483648, %v13253_v24  ;;  %v5124_v58 = vsel %vm5121_vm3, %v13398_v27, %v5119_v16  ;;  %v5134_v44 = vsel %vm5133_vm5, %v13382_v53, %v5130_v54  ;;  %v5145_v9 = vadd.f32 %v13394_v55, %v5144_v34 }
 0x748   :  { %vm5136_vm11 = vcmp.eq.f32.partialorder %v5135_v31, 8.507059e+37  ;;  %v5150_v23 = vand.u32 2147483647, %v13324_v11  ;;  %7604 = vtanh.f32 %v13305_v17  ;;  %v16115_v61 = vrot.slane %v12800_v1, 7 }
 0x749   :  { %v5139_v50 = vsel %vm5136_vm11, %v13403_v51, %v5134_v44  ;;  %v5149_v27 = vsel %vm5148_vm0, %v13394_v55, %v5145_v9  ;;  %7606 = vtanh.f32 %v13311_v22  ;;  %v16116_v53 = vrot.slane %v12803_v19, 7 }
 0x74a   :  { %v5400_v52 = vmul.f32 %v16115_v61, %v5109_v47  ;;  %vm5151_vm8 = vcmp.eq.f32.partialorder %v5150_v23, 8.507059e+37  ;;  %7608 = vtanh.f32 %v13314_v21  ;;  %v16117_v56 = vrot.slane %v12807_v10, 7 }
 0x74b   :  { %v5401_v34 = vmul.f32 %v16116_v53, %v5124_v58  ;;  %v4823_v17 = vrot.slane %v13299_v46, 2  ;;  %v5154_v1 = vsel %vm5151_vm8, %v13413_v13, %v5149_v27  ;;  %7610 = vtanh.f32 %v13319_v14 }
 0x74c   :  { %v5402_v11 = vmul.f32 %v16117_v56, %v5139_v50  ;;  %v4827_v51 = vrot.slane %v13299_v46, 3  ;;  %v4831_v55 = vrot.slane %v13299_v46, 4  ;;  %vm4999_vm2 = vcmp.eq.f32.partialorder %v4998_v60, 8.507059e+37  ;;  %v16121_v50 = vld [vmem:[#allocation61_spill] sm:$0xff] }
 0x74d   :  { %v5001_v22 = vor.u32 1.1754944e-38, %v5000_v45  ;;  %7612 = vtanh.f32 %v13329_v12  ;;  %v16120_v10 = vrot.slane %v12818_v7, 7  ;;  %v4987_v14 = vsel %vm13490_vm15, %v4986_v0, %v4982_v48 }
 0x74e   :  { %v5012_v13 = vsel %vm13544_vm10, %v13291_v33, %v5008_v36  ;;  %v4835_v60 = vrot.slane %v13299_v46, 5  ;;  %v4883_v24 = vadd.f32 %v4823_v17, %v15373_v29  ;;  %v7605_v45 = vpop.eup %7604  ;;  %v5016_v6 = vor.u32 1.1754944e-38, %v5015_v43 }
 0x74f   :  { %v5403_v21 = vmul.f32 %v16120_v10, %v5154_v1  ;;  %v5002_v40 = vsel %vm4999_vm2, %v5001_v22, %v4997_v63  ;;  %v4839_v32 = vrot.slane %v13299_v46, 6  ;;  %v4887_v12 = vadd.f32 %v4827_v51, %v15374_v35  ;;  %v7607_v7 = vpop.eup %7606 }
 0x750   :  { %vm5014_vm13 = vcmp.eq.f32.partialorder %v5013_v2, 8.507059e+37  ;;  %v5408_v20 = vmul.f32 %v7605_v45, %v13427_v49  ;;  %v4843_v48 = vrot.slane %v13299_v46, 7  ;;  %v4891_v0 = vadd.f32 %v4831_v55, %v15375_v3  ;;  %v7609_v33 = vpop.eup %7608  ;;  %v16126_v45 = vld [vmem:[#allocation17_spill] sm:$0xff] }
 0x751   :  { %v5017_v36 = vsel %vm5014_vm13, %v5016_v6, %v5012_v13  ;;  %v5409_v4 = vmul.f32 %v7607_v7, %v13463_v15  ;;  %v4847_v38 = vrot.slane %v13299_v46, 1  ;;  %v6658_v63 = vmul.f32 -1.442695, %v4883_v24  ;;  %v7611_v54 = vpop.eup %7610  ;;  %v16125_v13 = vld [vmem:[#allocation16_spill] sm:$0xff]  ;;  %v16127_v6 = vld [vmem:[#allocation63_spill] sm:$0xff] }
 0x752   :  { %v5410_v47 = vmul.f32 %v7609_v33, %v4987_v14  ;;  %v13565_v16 = vadd.f32 %v5408_v20, %v5400_v52  ;;  %v4895_v31 = vadd.f32 %v4835_v60, %v15376_v62  ;;  %v6659_v2 = vmul.f32 -1.442695, %v4887_v12  ;;  %v16128_v12 = vld [vmem:[#allocation65_spill] sm:$0xff] }
 0x753   :  { %v7613_v43 = vpop.eup %7612  ;;  %v5411_v49 = vmul.f32 %v7611_v54, %v5002_v40  ;;  %v13568_v58 = vadd.f32 %v5409_v4, %v5401_v34  ;;  %v4899_v44 = vadd.f32 %v4839_v32, %v15377_v39  ;;  %7614 = vpow2.f32 %v6658_v63  ;;  %v16129_v20 = vld [vmem:[#allocation21_spill] sm:$0xff]  ;;  %v16130_v63 = vld [vmem:[#allocation19_spill] sm:$0xff] }
 0x754   :  { %v13571_v9 = vmul.f32 %v7613_v43, %v5017_v36  ;;  %v13573_v15 = vadd.f32 %v5410_v47, %v5402_v11  ;;  %v4903_v23 = vadd.f32 %v4843_v48, %v15837_v18  ;;  %v6660_v61 = vmul.f32 -1.442695, %v4891_v0  ;;  %v16131_v47 = vld [vmem:[#allocation23_spill] sm:$0xff] }
 0x755   :  { %7616 = vrcp.f32 %v13401_v28  ;;  %v4846_v52 = vrot.slane %v13230_v5, 1  ;;  %v16122_v27 = vrot.slane %v13230_v5, 7  ;;  %v13581_v34 = vadd.f32 %v5411_v49, %v5403_v21  ;;  %v16123_v21 = vld [vmem:[#allocation20_spill] sm:$0xff]  ;;  %v16132_v43 = vld [vmem:[#allocation15_spill] sm:$0xff]  ;;  %v16133_v49 = vld [vmem:[#allocation18_spill] sm:$0xff] }
 0x756   :  { %7618 = vpow2.f32 %v6659_v2  ;;  %v6661_v11 = vmul.f32 -1.442695, %v4895_v31  ;;  %v5157_v1 = vmul.f32 %v13435_v59, %v13357_v30  ;;  %v4907_v51 = vadd.f32 %v13299_v46, %v16004_v41 }
 0x757   :  { %v4902_v53 = vadd.f32 %v16122_v27, %v16121_v50  ;;  %v4911_v55 = vadd.f32 %v4847_v38, %v16007_v26  ;;  %v6662_v22 = vmul.f32 -1.442695, %v4899_v44  ;;  %v5036_v19 = vsub.f32 1.0, %v13335_v37 }
 0x758   :  { %7620 = vpow2.f32 %v6660_v61  ;;  %v6663_v10 = vmul.f32 -1.442695, %v4903_v23  ;;  %v16124_v14 = vsub.f32 1.0, %v16123_v21  ;;  %v4906_v32 = vadd.f32 %v13230_v5, %v16127_v6 }
 0x759   :  { %v7615_v24 = vpop.eup %7614  ;;  %v4910_v7 = vadd.f32 %v4846_v52, %v16128_v12  ;;  %7622 = vtanh.f32 %v4902_v53  ;;  %v5167_v46 = vand.u32 2147483648, %v13357_v30  ;;  %v13601_v37 = vmul.f32 %v16129_v20, %v13363_v8  ;;  %v16134_v52 = vld [vmem:[#allocation13_spill] sm:$0xff] }
 0x75a   :  { %v5022_v60 = vmul.f32 %v16125_v13, %v16124_v14  ;;  %7624 = vpow2.f32 %v6661_v11  ;;  %v13603_v48 = vadd.f32 1.0, %v7615_v24  ;;  %v5158_v33 = vsub.f32 1.0, %v5157_v1 }
 0x75b   :  { %v13605_v0 = vpop.eup %7616  ;;  %7626 = vpow2.f32 %v6662_v22  ;;  %v6664_v36 = vmul.f32 -1.442695, %v4907_v51  ;;  %v6665_v4 = vmul.f32 -1.442695, %v4911_v55  ;;  %vm5025_vm7 = vweird.f32 %v16125_v13 }
 0x75c   :  { %v7619_v38 = vpop.eup %7618  ;;  %7628 = vpow2.f32 %v6663_v10  ;;  %v5023_v5 = vadd.f32 %v16125_v13, %v5022_v60  ;;  %v5037_v54 = vmul.f32 %v16130_v63, %v5036_v19  ;;  %v13612_v31 = vmul.f32 %v13453_v57, %v16131_v47  ;;  %v16137_v60 = vld [vmem:[#allocation14_spill] sm:$0xff] }
 0x75d   :  { %7630 = vtanh.f32 %v4906_v32  ;;  %v13614_v2 = vadd.f32 1.0, %v7619_v38  ;;  %v5050_v44 = vmul.f32 %v16133_v49, %v16132_v43  ;;  %v5173_v61 = vsub.f32 1.0, %v13601_v37 }
 0x75e   :  { %v7621_v23 = vpop.eup %7620  ;;  %7632 = vrcp.f32 %v13603_v48  ;;  %vm5024_vm12 = vweird.f32 %v16134_v52  ;;  %v5030_v27 = vand.u32 2147483648, %v16134_v52  ;;  %v5159_v11 = vmul.f32 %v13435_v59, %v5158_v33 }
 0x75f   :  { %v13622_v53 = vpop.eup %7622  ;;  %7634 = vpow2.f32 %v6664_v36  ;;  %vm13625_vm6 = vmor %vm5024_vm12, %vm5025_vm7  ;;  %v5028_v51 = vand.u32 2147483647, %v16134_v52  ;;  %v5051_v55 = vsub.f32 1.0, %v5050_v44  ;;  %v5038_v10 = vadd.f32 %v16130_v63, %v5037_v54 }
 0x760   :  { %v7625_v22 = vpop.eup %7624  ;;  %7636 = vpow2.f32 %v6665_v4  ;;  %v5027_v19 = vsel %vm13625_vm6, %v16125_v13, %v5023_v5  ;;  %vm5040_vm1 = vweird.f32 %v16130_v63  ;;  %v13635_v14 = vadd.f32 1.0, %v7621_v23 }
 0x761   :  { %v7627_v21 = vpop.eup %7626  ;;  %7638 = vrcp.f32 %v13614_v2  ;;  %v5043_v24 = vand.u32 2147483647, %v16137_v60  ;;  %v5045_v32 = vand.u32 2147483648, %v16137_v60  ;;  %vm5161_vm4 = vweird.f32 %v13357_v30 }
 0x762   :  { %v7629_v37 = vpop.eup %7628  ;;  %7640 = vtanh.f32 %v4910_v7  ;;  %v5031_v33 = vor.u32 1.1754944e-38, %v5030_v27  ;;  %vm5039_vm15 = vweird.f32 %v16137_v60  ;;  %v5052_v13 = vmul.f32 %v16133_v49, %v5051_v55 }
 0x763   :  { %v13643_v36 = vpop.eup %7630  ;;  %v5188_v4 = vsub.f32 1.0, %v13612_v31  ;;  %7642 = vtanh.f32 %v13565_v16  ;;  %v13647_v38 = vadd.f32 1.0, %v7625_v22  ;;  %vm5029_vm14 = vcmp.eq.f32.partialorder %v5028_v51, 8.507059e+37  ;;  %vm13651_vm9 = vmor %vm5039_vm15, %vm5040_vm1 }
 0x764   :  { %v13655_v7 = vpop.eup %7632  ;;  %7644 = vtanh.f32 %v13568_v58  ;;  %v13658_v54 = vadd.f32 1.0, %v7627_v21  ;;  %v13660_v44 = vsel %vm5029_vm14, %v5031_v33, %v5027_v19  ;;  %v5042_v31 = vsel %vm13651_vm9, %v16130_v63, %v5038_v10 }
 0x765   :  { %v7635_v23 = vpop.eup %7634  ;;  %v13665_v52 = vadd.f32 1.0, %v7629_v37  ;;  %7646 = vrcp.f32 %v13635_v14  ;;  %vm5044_vm5 = vcmp.eq.f32.partialorder %v5043_v24, 8.507059e+37  ;;  %v5046_v27 = vor.u32 1.1754944e-38, %v5045_v32 }
 0x766   :  { %v7637_v1 = vpop.eup %7636  ;;  %v5053_v51 = vadd.f32 %v16133_v49, %v5052_v13  ;;  %vm5055_vm3 = vweird.f32 %v16133_v49  ;;  %v5058_v55 = vand.u32 2147483647, %v16132_v43  ;;  %v5060_v22 = vand.u32 2147483648, %v16132_v43 }
 0x767   :  { %v13672_v19 = vpop.eup %7638  ;;  %v5257_v63 = vmul.f32 %v13655_v7, %v13603_v48  ;;  %7648 = vrcp.f32 %v13647_v38  ;;  %v13677_v10 = vsel %vm5044_vm5, %v5046_v27, %v5042_v31  ;;  %vm5054_vm0 = vweird.f32 %v16132_v43 }
 0x768   :  { %v13680_v21 = vpop.eup %7640  ;;  %v13682_v60 = vadd.f32 1.0, %v7635_v23  ;;  %7650 = vrcp.f32 %v13658_v54  ;;  %v5160_v24 = vadd.f32 %v13435_v59, %v5159_v11  ;;  %vm5162_vm11 = vweird.f32 %v13435_v59  ;;  %vm13694_vm8 = vmor %vm5054_vm0, %vm5055_vm3 }
 0x769   :  { %v13687_v32 = vpop.eup %7642  ;;  %v13689_v37 = vadd.f32 1.0, %v7637_v1  ;;  %7652 = vrcp.f32 %v13665_v52  ;;  %v5174_v33 = vmul.f32 %v16129_v20, %v5173_v61  ;;  %v5189_v13 = vmul.f32 %v13453_v57, %v5188_v4  ;;  %vm13715_vm10 = vmor %vm5161_vm4, %vm5162_vm11 }
 0x76a   :  { %v13700_v5 = vpop.eup %7644  ;;  %v5272_v11 = vmul.f32 %v13672_v19, %v13614_v2  ;;  %v5057_v31 = vsel %vm13694_vm8, %v16133_v49, %v5053_v51  ;;  %vm13707_vm2 = vcmp.eq.f32.partialorder %v5058_v55, 8.507059e+37  ;;  %v5061_v27 = vor.u32 1.1754944e-38, %v5060_v22 }
 0x76b   :  { %v13711_v1 = vpop.eup %7646  ;;  %v5258_v40 = vsub.f32 1.0, %v5257_v63  ;;  %v5165_v4 = vand.u32 2147483647, %v13357_v30  ;;  %v5168_v43 = vor.u32 1.1754944e-38, %v5167_v46  ;;  %v5202_v49 = vmul.f32 %v13605_v0, %v13401_v28 }
 0x76c   :  { %v5164_v51 = vsel %vm13715_vm10, %v13435_v59, %v5160_v24  ;;  %vm5176_vm13 = vweird.f32 %v13363_v8  ;;  %vm5177_vm7 = vweird.f32 %v16129_v20  ;;  %v5180_v55 = vand.u32 2147483647, %v13363_v8 }
 0x76d   :  { %v13730_v22 = vpop.eup %7648  ;;  %v5175_v63 = vadd.f32 %v16129_v20, %v5174_v33  ;;  %v5190_v30 = vadd.f32 %v13453_v57, %v5189_v13  ;;  %vm5192_vm12 = vweird.f32 %v13453_v57  ;;  %v5203_v46 = vsub.f32 1.0, %v5202_v49  ;;  %vm13749_vm1 = vmor %vm5176_vm13, %vm5177_vm7 }
 0x76e   :  { %v13735_v17 = vpop.eup %7650  ;;  %v5273_v56 = vsub.f32 1.0, %v5272_v11  ;;  %v5182_v59 = vand.u32 2147483648, %v13363_v8  ;;  %v5195_v24 = vand.u32 2147483647, %v16131_v47  ;;  %v5197_v61 = vand.u32 2147483648, %v16131_v47 }
 0x76f   :  { %v13740_v26 = vpop.eup %7652  ;;  %v5287_v41 = vmul.f32 %v13711_v1, %v13635_v14  ;;  %7654 = vrcp.f32 %v13682_v60  ;;  %vm5166_vm6 = vcmp.eq.f32.partialorder %v5165_v4, 8.507059e+37  ;;  %vm5191_vm4 = vweird.f32 %v16131_v47 }
 0x770   :  { %7656 = vrcp.f32 %v13689_v37  ;;  %v13757_v13 = vsel %vm13707_vm2, %v5061_v27, %v5057_v31  ;;  %v13759_v11 = vsel %vm5166_vm6, %v5168_v43, %v5164_v51  ;;  %vm5181_vm15 = vcmp.eq.f32.partialorder %v5180_v55, 8.507059e+37  ;;  %vm5193_vm14 = vmor %vm5191_vm4, %vm5192_vm12 }
 0x771   :  { %v5179_v8 = vsel %vm13749_vm1, %v16129_v20, %v5175_v63  ;;  %v5194_v4 = vsel %vm5193_vm14, %v13453_v57, %v5190_v30  ;;  %v5204_v47 = vmul.f32 %v13605_v0, %v5203_v46  ;;  %v5259_v49 = vmul.f32 %v13655_v7, %v5258_v40 }
 0x772   :  { %v5183_v18 = vor.u32 1.1754944e-38, %v5182_v59  ;;  %vm5196_vm9 = vcmp.eq.f32.partialorder %v5195_v24, 8.507059e+37  ;;  %v5198_v31 = vor.u32 1.1754944e-38, %v5197_v61  ;;  %v5274_v23 = vmul.f32 %v13672_v19, %v5273_v56 }
 0x773   :  { %v5210_v27 = vand.u32 2147483647, %v13401_v28  ;;  %v5212_v43 = vand.u32 2147483648, %v13401_v28  ;;  %v5265_v51 = vand.u32 2147483647, %v13603_v48  ;;  %v5288_v55 = vsub.f32 1.0, %v5287_v41 }
 0x774   :  { %v13773_v33 = vsel %vm5181_vm15, %v5183_v18, %v5179_v8  ;;  %v13775_v20 = vsel %vm5196_vm9, %v5198_v31, %v5194_v4  ;;  %vm5206_vm5 = vweird.f32 %v13401_v28  ;;  %vm5207_vm3 = vweird.f32 %v13605_v0 }
 0x775   :  { %v13779_v57 = vpop.eup %7654  ;;  %v5205_v40 = vadd.f32 %v13605_v0, %v5204_v47  ;;  %v5260_v56 = vadd.f32 %v13655_v7, %v5259_v49  ;;  %vm5262_vm0 = vweird.f32 %v13655_v7  ;;  %v5267_v63 = vand.u32 2147483648, %v13603_v48  ;;  %vm13792_vm2 = vmor %vm5206_vm5, %vm5207_vm3 }
 0x776   :  { %v13785_v30 = vpop.eup %7656  ;;  %vm5261_vm11 = vweird.f32 %v13603_v48  ;;  %v5275_v18 = vadd.f32 %v13672_v19, %v5274_v23  ;;  %vm5277_vm8 = vweird.f32 %v13672_v19  ;;  %v5302_v41 = vmul.f32 %v13730_v22, %v13647_v38 }
 0x777   :  { %vm13796_vm10 = vcmp.eq.f32.partialorder %v5210_v27, 8.507059e+37  ;;  %v5213_v59 = vor.u32 1.1754944e-38, %v5212_v43  ;;  %vm13800_vm13 = vcmp.eq.f32.partialorder %v5265_v51, 8.507059e+37  ;;  %v5289_v48 = vmul.f32 %v13711_v1, %v5288_v55  ;;  %vm13805_vm7 = vmor %vm5261_vm11, %vm5262_vm0 }
 0x778   :  { %vm5276_vm12 = vweird.f32 %v13614_v2  ;;  %v5282_v8 = vand.u32 2147483648, %v13614_v2  ;;  %v5303_v4 = vsub.f32 1.0, %v5302_v41  ;;  %v5317_v47 = vmul.f32 %v13735_v17, %v13658_v54 }
 0x779   :  { %v5209_v49 = vsel %vm13792_vm2, %v13605_v0, %v5205_v40  ;;  %v5264_v31 = vsel %vm13805_vm7, %v13655_v7, %v5260_v56  ;;  %v5268_v23 = vor.u32 1.1754944e-38, %v5267_v63  ;;  %vm13821_vm6 = vmor %vm5276_vm12, %vm5277_vm8  ;;  %v5280_v43 = vand.u32 2147483647, %v13614_v2 }
 0x77a   :  { %v5279_v51 = vsel %vm13821_vm6, %v13672_v19, %v5275_v18  ;;  %vm5291_vm1 = vweird.f32 %v13635_v14  ;;  %v5304_v0 = vmul.f32 %v13730_v22, %v5303_v4  ;;  %v5318_v55 = vsub.f32 1.0, %v5317_v47 }
 0x77b   :  { %v5290_v7 = vadd.f32 %v13711_v1, %v5289_v48  ;;  %vm5292_vm4 = vweird.f32 %v13711_v1  ;;  %v5295_v40 = vand.u32 2147483647, %v13635_v14  ;;  %v5297_v56 = vand.u32 2147483648, %v13635_v14 }
 0x77c   :  { %v5214_v2 = vsel %vm13796_vm10, %v5213_v59, %v5209_v49  ;;  %v5283_v63 = vor.u32 1.1754944e-38, %v5282_v8  ;;  %v5310_v41 = vand.u32 2147483647, %v13647_v38  ;;  %v5332_v19 = vmul.f32 %v13740_v26, %v13665_v52  ;;  %vm13846_vm9 = vmor %vm5291_vm1, %vm5292_vm4 }
 0x77d   :  { %v5269_v18 = vsel %vm13800_vm13, %v5268_v23, %v5264_v31  ;;  %vm5281_vm15 = vcmp.eq.f32.partialorder %v5280_v43, 8.507059e+37  ;;  %v5305_v28 = vadd.f32 %v13730_v22, %v5304_v0  ;;  %vm5307_vm14 = vweird.f32 %v13730_v22 }
 0x77e   :  { %v5284_v48 = vsel %vm5281_vm15, %v5283_v63, %v5279_v51  ;;  %vm5306_vm5 = vweird.f32 %v13647_v38  ;;  %v5312_v59 = vand.u32 2147483648, %v13647_v38  ;;  %v5319_v61 = vmul.f32 %v13735_v17, %v5318_v55 }
 0x77f   :  { %v5294_v24 = vsel %vm13846_vm9, %v13711_v1, %v5290_v7  ;;  %vm5296_vm3 = vcmp.eq.f32.partialorder %v5295_v40, 8.507059e+37  ;;  %v5298_v8 = vor.u32 1.1754944e-38, %v5297_v56  ;;  %v5347_v4 = vmul.f32 %v13779_v57, %v13682_v60  ;;  %vm13858_vm0 = vmor %vm5306_vm5, %vm5307_vm14 }
 0x780   :  { %vm13862_vm11 = vcmp.eq.f32.partialorder %v5310_v41, 8.507059e+37  ;;  %vm5321_vm8 = vweird.f32 %v13658_v54  ;;  %v5327_v38 = vand.u32 2147483648, %v13658_v54  ;;  %v5333_v49 = vsub.f32 1.0, %v5332_v19  ;;  %v16164_v41 = vld [vmem:[#allocation12_spill] sm:$0xff] }
 0x781   :  { %v5309_v1 = vsel %vm13858_vm0, %v13730_v22, %v5305_v28  ;;  %v5325_v31 = vand.u32 2147483647, %v13658_v54  ;;  %v5342_v23 = vand.u32 2147483648, %v13665_v52  ;;  %v5362_v27 = vmul.f32 %v13785_v30, %v13689_v37 }
 0x782   :  { %v13875_v43 = vsel %vm5296_vm3, %v5298_v8, %v5294_v24  ;;  %v5313_v51 = vor.u32 1.1754944e-38, %v5312_v59  ;;  %v5320_v0 = vadd.f32 %v13735_v17, %v5319_v61  ;;  %vm5322_vm2 = vweird.f32 %v13735_v17 }
 0x783   :  { %vm5336_vm10 = vweird.f32 %v13665_v52  ;;  %vm5337_vm13 = vweird.f32 %v13740_v26  ;;  %v5340_v22 = vand.u32 2147483647, %v13665_v52  ;;  %v5348_v55 = vsub.f32 1.0, %v5347_v4  ;;  %vm13890_vm7 = vmor %vm5321_vm8, %vm5322_vm2 }
 0x784   :  { %v5363_v7 = vsub.f32 1.0, %v5362_v27  ;;  %v5314_v40 = vsel %vm13862_vm11, %v5313_v51, %v5309_v1  ;;  %v5328_v56 = vor.u32 1.1754944e-38, %v5327_v38  ;;  %v5334_v63 = vmul.f32 %v13740_v26, %v5333_v49  ;;  %vm13947_vm14 = vmor %vm5336_vm10, %vm5337_vm13 }
 0x785   :  { %v16165_v19 = vrot.slane %v16164_v41, 7  ;;  %vm13894_vm12 = vcmp.eq.f32.partialorder %v5325_v31, 8.507059e+37  ;;  %v5343_v61 = vor.u32 1.1754944e-38, %v5342_v23  ;;  %vm5351_vm6 = vweird.f32 %v13682_v60 }
 0x786   :  { %v16170_v24 = vrot.slane %v13143_v42, 7  ;;  %v5324_v54 = vsel %vm13890_vm7, %v13735_v17, %v5320_v0  ;;  %vm5352_vm1 = vweird.f32 %v13779_v57  ;;  %v16172_v14 = vrot.slane %v16126_v45, 7 }
 0x787   :  { %v5404_v28 = vmul.f32 %v16165_v19, %v13759_v11  ;;  %v16171_v11 = vrot.slane %v13156_v25, 7  ;;  %v5413_v38 = vmul.f32 %v13622_v53, %v13660_v44  ;;  %vm13913_vm4 = vcmp.eq.f32.partialorder %v5340_v22, 8.507059e+37  ;;  %vm13965_vm9 = vmor %vm5351_vm6, %vm5352_vm1 }
 0x788   :  { %v5405_v8 = vmul.f32 %v16170_v24, %v13773_v33  ;;  %v5407_v47 = vmul.f32 %v16172_v14, %v5214_v2  ;;  %v5349_v42 = vmul.f32 %v13779_v57, %v5348_v55  ;;  %v5364_v25 = vmul.f32 %v13785_v30, %v5363_v7 }
 0x789   :  { %v5406_v4 = vmul.f32 %v16171_v11, %v13775_v20  ;;  %v5414_v33 = vmul.f32 %v13643_v36, %v13677_v10  ;;  %v5415_v17 = vmul.f32 %v13680_v21, %v13757_v13  ;;  %v13924_v45 = vadd.f32 %v13571_v9, %v5404_v28 }
 0x78a   :  { %v13926_v20 = vadd.f32 %v5413_v38, %v5405_v8  ;;  %7658 = vtanh.f32 %v13573_v15  ;;  %v5432_v53 = vmul.f32 %v13687_v32, %v5269_v18  ;;  %v5335_v44 = vadd.f32 %v13740_v26, %v5334_v63 }
 0x78b   :  { %16175 = vst [vmem:[#allocation22_spill] sm:$0xff] %v13924_v45  ;;  %v13931_v2 = vadd.f32 %v5414_v33, %v5406_v4  ;;  %v13933_v1 = vadd.f32 %v5415_v17, %v5407_v47  ;;  %7660 = vtanh.f32 %v13581_v34  ;;  %v5355_v36 = vand.u32 2147483647, %v13682_v60 }
 0x78c   :  { %16176 = vst [vmem:[#allocation24_spill] sm:$0xff] %v13926_v20  ;;  %7662 = vtanh.f32 %v13924_v45  ;;  %v5433_v9 = vmul.f32 %v13700_v5, %v5284_v48  ;;  %v5440_v10 = vpack.c.bf16 %v5432_v53, %v5432_v53  ;;  %v5350_v21 = vadd.f32 %v13779_v57, %v5349_v42 }
 0x78d   :  { %16177 = vst [vmem:[#allocation27_spill] sm:$0xff] %v13931_v2  ;;  %v5357_v13 = vand.u32 2147483648, %v13682_v60  ;;  %vm5367_vm15 = vweird.f32 %v13785_v30  ;;  %7664 = vtanh.f32 %v13926_v20  ;;  %v5365_v18 = vadd.f32 %v13785_v30, %v5364_v25 }
 0x78e   :  { %16178 = vst [vmem:[#allocation25_spill] sm:$0xff] %v13933_v1  ;;  %7666 = vtanh.f32 %v13931_v2  ;;  %v5441_v5 = vpack.c.bf16 %v5433_v9, %v5433_v9  ;;  %v5456_v48 = vunpack.c.l.b16 %v5440_v10  ;;  %v5339_v31 = vsel %vm13947_vm14, %v13740_v26, %v5335_v44 }
 0x78f   :  { %v5370_v23 = vand.u32 2147483647, %v13689_v37  ;;  %v5372_v27 = vand.u32 2147483648, %v13689_v37  ;;  %7668 = vtanh.f32 %v13933_v1  ;;  %v5329_v51 = vsel %vm13894_vm12, %v5328_v56, %v5324_v54 }
 0x790   :  { %v7659_v52 = vpop.eup %7658  ;;  %vm5366_vm5 = vweird.f32 %v13689_v37  ;;  %v5457_v26 = vunpack.c.l.b16 %v5441_v5  ;;  %v5464_v22 = vrot.slane %v5456_v48, 6  ;;  %v5354_v7 = vsel %vm13965_vm9, %v13779_v57, %v5350_v21 }
 0x791   :  { %v7661_v55 = vpop.eup %7660  ;;  %vm5356_vm3 = vcmp.eq.f32.partialorder %v5355_v36, 8.507059e+37  ;;  %v5358_v63 = vor.u32 1.1754944e-38, %v5357_v13  ;;  %vm13975_vm0 = vmor %vm5366_vm5, %vm5367_vm15  ;;  %v5434_v60 = vmul.f32 %v7659_v52, %v13875_v43  ;;  %v5344_v37 = vsel %vm13913_vm4, %v5343_v61, %v5339_v31 }
 0x792   :  { %v7663_v41 = vpop.eup %7662  ;;  %v5369_v19 = vsel %vm13975_vm0, %v13785_v30, %v5365_v18  ;;  %v5435_v28 = vmul.f32 %v7661_v55, %v5314_v40  ;;  %v5465_v57 = vrot.slane %v5457_v26, 5  ;;  %vm5371_vm11 = vcmp.eq.f32.partialorder %v5370_v23, 8.507059e+37 }
 0x793   :  { %v7665_v46 = vpop.eup %7664  ;;  %v5373_v59 = vor.u32 1.1754944e-38, %v5372_v27  ;;  %v5436_v24 = vmul.f32 %v7663_v41, %v5329_v51  ;;  %v5442_v8 = vpack.c.bf16 %v5434_v60, %v5434_v60  ;;  %v5359_v4 = vsel %vm5356_vm3, %v5358_v63, %v5354_v7 }
 0x794   :  { %v7667_v11 = vpop.eup %7666  ;;  %v5437_v54 = vmul.f32 %v7665_v46, %v5344_v37  ;;  %v5443_v14 = vpack.c.bf16 %v5435_v28, %v5435_v28  ;;  %vm16185_vm8 = vcmask 1041409   ;;  %vm16186_vm2 = vcmask 1042434   ;;  %v16192_v37 = vld [vmem:[#allocation50_spill] sm:$0xff]  ;;  %v16193_v28 = vld [vmem:[#allocation45_spill] sm:$0xff] }
 0x795   :  { %v5466_v43 = vsel %vm16185_vm8, %v5465_v57, %v5464_v22  ;;  %v7669_v47 = vpop.eup %7668  ;;  %v5374_v38 = vsel %vm5371_vm11, %v5373_v59, %v5369_v19  ;;  %v5438_v61 = vmul.f32 %v7667_v11, %v5359_v4  ;;  %v5444_v49 = vpack.c.bf16 %v5436_v24, %v5436_v24  ;;  %v16194_v46 = vld [vmem:[#allocation46_spill] sm:$0xff]  ;;  %v16195_v24 = vld [vmem:[#allocation43_spill] sm:$0xff]  ;;  %v16196_v11 = vld [vmem:[#allocation44_spill] sm:$0xff] }
 0x796   :  { %v5458_v42 = vunpack.c.l.b16 %v5442_v8  ;;  %v5439_v25 = vmul.f32 %v7669_v47, %v5374_v38  ;;  %v5445_v30 = vpack.c.bf16 %v5437_v54, %v5437_v54  ;;  %v5459_v40 = vunpack.c.l.b16 %v5443_v14  ;;  %v16197_v54 = vld [vmem:[#allocation47_spill] sm:$0xff] }
 0x797   :  { %v5446_v33 = vpack.c.bf16 %v5438_v61, %v5438_v61  ;;  %v5460_v17 = vunpack.c.l.b16 %v5444_v49  ;;  %vm16187_vm10 = vcmask 1043459   ;;  %vm16188_vm13 = vcmask 1044484   ;;  %v16199_v61 = vld [vmem:[#allocation49_spill] sm:$0xff] }
 0x798   :  { %v5467_v53 = vrot.slane %v5458_v42, 4  ;;  %v5447_v44 = vpack.c.bf16 %v5439_v25, %v5439_v25  ;;  %v5461_v36 = vunpack.c.l.b16 %v5445_v30  ;;  %v5469_v9 = vrot.slane %v5459_v40, 3 }
 0x799   :  { %v5471_v21 = vrot.slane %v5460_v17, 2  ;;  %v5462_v5 = vunpack.c.l.b16 %v5446_v33  ;;  %vm16189_vm7 = vcmask 1045509   ;;  %vm16190_vm12 = vcmask 1046534  }
 0x79a   :  { %v5468_v10 = vsel %vm16186_vm2, %v5467_v53, %v5466_v43  ;;  %v5463_v13 = vunpack.c.l.b16 %v5447_v44  ;;  %v5473_v18 = vrot.slane %v5461_v36, 1  ;;  %vm16191_vm6 = vcmask 1047559   ;;  %v16198_v43 = vld [vmem:[#allocation48_spill] sm:$0xff] }
 0x79b   :  { %v5470_v32 = vsel %vm16187_vm10, %v5469_v9, %v5468_v10 }
 0x79c   :  { %v5472_v48 = vsel %vm16188_vm13, %v5471_v21, %v5470_v32  ;;  %v5476_v23 = vrot.slane %v5463_v13, 7  ;;  %v16200_v21 = vld [vmem:[#allocation73_spill] sm:$0xff] }
 0x79d   :  { %v5474_v31 = vsel %vm16189_vm7, %v5473_v18, %v5472_v48 }
 0x79e   :  { %v5475_v27 = vsel %vm16190_vm12, %v5462_v5, %v5474_v31 }
 0x79f   :  { %v5477_v52 = vsel %vm16191_vm6, %v5476_v23, %v5475_v27 }
 0x7a0   :  { %v5478_v51 = vpack.c.b16 %v5477_v52, %v5477_v52 }
 0x7a2   :  { %5488 = vmatmul.bf16.vlgmr.msra.gmra.mxu0 %v5478_v51  ;;  %5501 = vmatmul.bf16.vlgmr.msrb.gmra.mxu1 %v5478_v51 }
 0x7a3   :  { %5514 = vmatmul.bf16.vlgmr.msra.gmra.mxu2 %v5478_v51  ;;  %5527 = vmatmul.bf16.vlgmr.msra.gmra.mxu3 %v5478_v51 }
 0x81f   :  { %v5489_v0 = vpop.f32.mrf.mxu0  ;;  %v13992_v26 = vpop.f32.mrf.mxu1 }
 0x820   :  { %v5536_v22 = vrot.slane %v5489_v0, 1  ;;  %v5540_v55 = vrot.slane %v5489_v0, 2  ;;  %v5544_v7 = vrot.slane %v5489_v0, 3  ;;  %v5548_v63 = vrot.slane %v5489_v0, 4 }
 0x821   :  { %v5552_v56 = vrot.slane %v5489_v0, 5  ;;  %v5556_v60 = vrot.slane %v5489_v0, 6  ;;  %v5560_v41 = vrot.slane %v5489_v0, 7  ;;  %v5624_v19 = vadd.f32 %v5489_v0, %v16192_v37 }
 0x822   :  { %v5596_v57 = vadd.f32 %v5536_v22, %v16193_v28  ;;  %v5600_v59 = vadd.f32 %v5540_v55, %v16194_v46  ;;  %v5604_v8 = vadd.f32 %v5544_v7, %v16195_v24  ;;  %v5608_v4 = vadd.f32 %v5548_v63, %v16196_v11  ;;  %v16202_v28 = vld [vmem:[#allocation74_spill] sm:$0xff]  ;;  %v16203_v11 = vld [vmem:[#allocation75_spill] sm:$0xff] }
 0x823   :  { %v5612_v14 = vadd.f32 %v5552_v56, %v16197_v54  ;;  %v5616_v47 = vadd.f32 %v5556_v60, %v16198_v43  ;;  %v6673_v38 = vmul.f32 -1.442695, %v5624_v19  ;;  %v5620_v49 = vadd.f32 %v5560_v41, %v16199_v61  ;;  %v16204_v43 = vld [vmem:[#allocation76_spill] sm:$0xff] }
 0x824   :  { %v6666_v42 = vmul.f32 -1.442695, %v5596_v57  ;;  %v6667_v25 = vmul.f32 -1.442695, %v5600_v59  ;;  %v6668_v30 = vmul.f32 -1.442695, %v5604_v8 }
 0x825   :  { %v6669_v40 = vmul.f32 -1.442695, %v5608_v4  ;;  %7670 = vpow2.f32 %v6673_v38  ;;  %v6670_v33 = vmul.f32 -1.442695, %v5612_v14  ;;  %v5537_v17 = vrot.slane %v13992_v26, 1  ;;  %v16205_v38 = vld [vmem:[#allocation77_spill] sm:$0xff] }
 0x826   :  { %7672 = vpow2.f32 %v6666_v42  ;;  %v14003_v53 = vpop.f32.mrf.mxu2  ;;  %v6671_v44 = vmul.f32 -1.442695, %v5616_v47  ;;  %v6672_v10 = vmul.f32 -1.442695, %v5620_v49  ;;  %v5541_v48 = vrot.slane %v13992_v26, 2 }
 0x827   :  { %7674 = vpow2.f32 %v6667_v25  ;;  %v5491_v36 = vpop.f32.mrf.mxu0  ;;  %v5504_v9 = vpop.f32.mrf.mxu1  ;;  %v5597_v13 = vadd.f32 %v5537_v17, %v16200_v21  ;;  %v5545_v27 = vrot.slane %v13992_v26, 3  ;;  %v5549_v22 = vrot.slane %v13992_v26, 4  ;;  %v16208_v21 = vld [vmem:[#allocation79_spill] sm:$0xff] }
 0x828   :  { %7676 = vpow2.f32 %v6668_v30  ;;  %v5553_v55 = vrot.slane %v13992_v26, 5  ;;  %v5557_v60 = vrot.slane %v13992_v26, 6  ;;  %v5601_v57 = vadd.f32 %v5541_v48, %v16202_v28  ;;  %v16206_v30 = vld [vmem:[#allocation78_spill] sm:$0xff] }
 0x829   :  { %7678 = vpow2.f32 %v6669_v40  ;;  %v6674_v52 = vmul.f32 -1.442695, %v5597_v13  ;;  %v5561_v8 = vrot.slane %v13992_v26, 7  ;;  %v5605_v4 = vadd.f32 %v5545_v27, %v16203_v11  ;;  %v16210_v27 = vld [vmem:[#allocation67_spill] sm:$0xff] }
 0x82a   :  { %7680 = vpow2.f32 %v6670_v33  ;;  %v5609_v47 = vadd.f32 %v5549_v22, %v16204_v43  ;;  %v5613_v61 = vadd.f32 %v5553_v55, %v16205_v38  ;;  %v5617_v40 = vadd.f32 %v5557_v60, %v16206_v30  ;;  %v16212_v30 = vld [vmem:[#allocation51_spill] sm:$0xff] }
 0x82b   :  { %v7671_v31 = vpop.eup %7670  ;;  %7682 = vpow2.f32 %v6671_v44  ;;  %v6675_v36 = vmul.f32 -1.442695, %v5601_v57  ;;  %v5621_v13 = vadd.f32 %v5561_v8, %v16208_v21  ;;  %v6676_v48 = vmul.f32 -1.442695, %v5605_v4 }
 0x82c   :  { %v7673_v51 = vpop.eup %7672  ;;  %7684 = vpow2.f32 %v6672_v10  ;;  %v14012_v0 = vadd.f32 1.0, %v7671_v31  ;;  %v6678_v22 = vmul.f32 -1.442695, %v5613_v61  ;;  %v5538_v60 = vrot.slane %v14003_v53, 1 }
 0x82d   :  { %v7675_v7 = vpop.eup %7674  ;;  %v14017_v56 = vadd.f32 1.0, %v7673_v51  ;;  %7686 = vpow2.f32 %v6674_v52  ;;  %v5625_v52 = vadd.f32 %v13992_v26, %v16210_v27  ;;  %v6677_v51 = vmul.f32 -1.442695, %v5609_v47 }
 0x82e   :  { %16201 = vst [vmem:[#allocation26_spill] sm:$0xff] %v14012_v0  ;;  %v7677_v41 = vpop.eup %7676  ;;  %v14021_v19 = vadd.f32 1.0, %v7675_v7  ;;  %7688 = vrcp.f32 %v14012_v0  ;;  %v5517_v46 = vpop.f32.mrf.mxu2  ;;  %v6679_v7 = vmul.f32 -1.442695, %v5617_v40  ;;  %v5546_v26 = vrot.slane %v14003_v53, 3 }
 0x82f   :  { %v7679_v59 = vpop.eup %7678  ;;  %v14025_v24 = vadd.f32 1.0, %v7677_v41  ;;  %7690 = vrcp.f32 %v14017_v56  ;;  %v5542_v41 = vrot.slane %v14003_v53, 2  ;;  %v6680_v8 = vmul.f32 -1.442695, %v5621_v13 }
 0x830   :  { %v7681_v54 = vpop.eup %7680  ;;  %v14030_v14 = vadd.f32 1.0, %v7679_v59  ;;  %7692 = vrcp.f32 %v14021_v19  ;;  %v5550_v11 = vrot.slane %v14003_v53, 4  ;;  %v5554_v4 = vrot.slane %v14003_v53, 5 }
 0x831   :  { %v7683_v49 = vpop.eup %7682  ;;  %v14036_v25 = vadd.f32 1.0, %v7681_v54  ;;  %7694 = vrcp.f32 %v14025_v24  ;;  %v5558_v47 = vrot.slane %v14003_v53, 6  ;;  %v5562_v38 = vrot.slane %v14003_v53, 7 }
 0x832   :  { %v7685_v33 = vpop.eup %7684  ;;  %v14041_v44 = vadd.f32 1.0, %v7683_v49  ;;  %7696 = vrcp.f32 %v14030_v14  ;;  %v6681_v49 = vmul.f32 -1.442695, %v5625_v52  ;;  %v14080_v40 = vadd.f32 %v5538_v60, %v16212_v30 }
 0x833   :  { %v7687_v9 = vpop.eup %7686  ;;  %v14044_v10 = vadd.f32 1.0, %v7685_v33  ;;  %7698 = vrcp.f32 %v14036_v25  ;;  %v16213_v33 = vld [vmem:[#allocation53_spill] sm:$0xff]  ;;  %vm5665_vm1 = vweird.f32 %v14017_v56  ;;  %v5669_v17 = vand.u32 2147483647, %v14017_v56 }
 0x834   :  { %v14048_v31 = vpop.eup %7688  ;;  %7700 = vrcp.f32 %v14041_v44  ;;  %v14062_v46 = vadd.f32 1.0, %v7687_v9  ;;  %v5671_v18 = vand.u32 2147483648, %v14017_v56  ;;  %vm5680_vm3 = vweird.f32 %v14021_v19 }
 0x835   :  { %16207 = vst [vmem:[#allocation30_spill] sm:$0xff] %v14044_v10  ;;  %v14053_v55 = vpop.eup %7690  ;;  %7702 = vrcp.f32 %v14044_v10  ;;  %v14073_v43 = vmul.f32 %v14048_v31, %v14012_v0  ;;  %vm14181_vm14 = vcmp.eq.f32.partialorder %v5669_v17, 8.507059e+37  ;;  %vm5695_vm12 = vweird.f32 %v14025_v24 }
 0x836   :  { %16209 = vst [vmem:[#allocation31_spill] sm:$0xff] %v14048_v31  ;;  %v14058_v28 = vpop.eup %7692  ;;  %v5661_v57 = vmul.f32 %v14053_v55, %v14017_v56  ;;  %7704 = vpow2.f32 %v6675_v36  ;;  %v14083_v36 = vadd.f32 %v5542_v41, %v16213_v33  ;;  %v5823_v13 = vand.u32 2147483648, %v14062_v46  ;;  %v16217_v41 = vld [vmem:[#allocation59_spill] sm:$0xff] }
 0x837   :  { %v14065_v59 = vpop.eup %7694  ;;  %7706 = vpow2.f32 %v6676_v48  ;;  %16211 = vst [vmem:[#allocation29_spill] sm:$0xff] %v14073_v43  ;;  %v16214_v48 = vld [vmem:[#allocation55_spill] sm:$0xff]  ;;  %v5676_v52 = vmul.f32 %v14058_v28, %v14021_v19  ;;  %v14099_v30 = vadd.f32 %v5554_v4, %v16217_v41  ;;  %vm5666_vm4 = vweird.f32 %v14053_v55 }
 0x838   :  { %v14069_v54 = vpop.eup %7696  ;;  %7708 = vpow2.f32 %v6677_v51  ;;  %v5662_v21 = vsub.f32 1.0, %v5661_v57  ;;  %v14089_v27 = vadd.f32 %v5546_v26, %v16214_v48  ;;  %v14103_v57 = vadd.f32 %v5558_v47, %v16121_v50  ;;  %vm14177_vm15 = vmor %vm5665_vm1, %vm5666_vm4 }
 0x839   :  { %v14077_v61 = vpop.eup %7698  ;;  %7710 = vpow2.f32 %v6678_v22  ;;  %v16216_v22 = vld [vmem:[#allocation57_spill] sm:$0xff]  ;;  %v14106_v26 = vadd.f32 %v5562_v38, %v16127_v6  ;;  %v14110_v48 = vadd.f32 %v14003_v53, %v16128_v12  ;;  %v14122_v6 = vor.u32 1.1754944e-38, %v5823_v13 }
 0x83a   :  { %v14085_v9 = vpop.eup %7700  ;;  %7712 = vpow2.f32 %v6679_v7  ;;  %v14096_v60 = vadd.f32 %v5550_v11, %v16216_v22  ;;  %v14114_v11 = vmul.f32 %v14065_v59, %v14025_v24  ;;  %v5663_v12 = vmul.f32 %v14053_v55, %v5662_v21  ;;  %v14140_v21 = vpop.f32.mrf.mxu3 }
 0x83b   :  { %v14091_v51 = vpop.eup %7702  ;;  %7714 = vpow2.f32 %v6680_v8  ;;  %16218 = vst [vmem:[#allocation34_spill] sm:$0xff] %v14110_v48  ;;  %v5677_v38 = vsub.f32 1.0, %v5676_v52  ;;  %v14127_v22 = vmul.f32 %v14069_v54, %v14030_v14  ;;  %v14144_v52 = vmul.f32 %v14085_v9, %v14041_v44 }
 0x83c   :  { %16215 = vst [vmem:[#allocation28_spill] sm:$0xff] %v14091_v51  ;;  %v7705_v33 = vpop.eup %7704  ;;  %7716 = vrcp.f32 %v14062_v46  ;;  %v5664_v37 = vadd.f32 %v14053_v55, %v5663_v12  ;;  %v5692_v7 = vsub.f32 1.0, %v14114_v11  ;;  %v5672_v3 = vor.u32 1.1754944e-38, %v5671_v18 }
 0x83d   :  { %v7707_v8 = vpop.eup %7706  ;;  %v14116_v4 = vadd.f32 1.0, %v7705_v33  ;;  %7718 = vpow2.f32 %v6681_v49  ;;  %v14134_v49 = vmul.f32 %v14077_v61, %v14036_v25  ;;  %v5678_v31 = vmul.f32 %v14058_v28, %v5677_v38 }
 0x83e   :  { %v7709_v50 = vpop.eup %7708  ;;  %v14120_v47 = vadd.f32 1.0, %v7707_v8  ;;  %v5668_v0 = vsel %vm14177_vm15, %v14053_v55, %v5664_v37  ;;  %vm5681_vm9 = vweird.f32 %v14058_v28  ;;  %vm5817_vm11 = vweird.f32 %v14062_v46 }
 0x83f   :  { %v7711_v53 = vpop.eup %7710  ;;  %v14129_v41 = vadd.f32 1.0, %v7709_v50  ;;  %7720 = vrcp.f32 %v14116_v4  ;;  %vm14246_vm0 = vmor %vm5680_vm3, %vm5681_vm9  ;;  %vm5696_vm10 = vweird.f32 %v14065_v59  ;;  %vm5832_vm13 = vweird.f32 %v14116_v4 }
 0x840   :  { %v7713_v33 = vpop.eup %7712  ;;  %v14136_v8 = vadd.f32 1.0, %v7711_v53  ;;  %7722 = vrcp.f32 %v14120_v47  ;;  %v14152_v53 = vmul.f32 %v14091_v51, %v14044_v10  ;;  %v5853_v23 = vand.u32 2147483648, %v14120_v47  ;;  %vm14275_vm6 = vmor %vm5695_vm12, %vm5696_vm10 }
 0x841   :  { %v7715_v13 = vpop.eup %7714  ;;  %v14146_v50 = vadd.f32 1.0, %v7713_v33  ;;  %7724 = vrcp.f32 %v14129_v41  ;;  %v5838_v33 = vand.u32 2147483648, %v14116_v4  ;;  %v5868_v12 = vand.u32 2147483648, %v14129_v41 }
 0x842   :  { %16219 = vst [vmem:[#allocation35_spill] sm:$0xff] %v14152_v53  ;;  %v14154_v42 = vadd.f32 1.0, %v7715_v13  ;;  %7726 = vrcp.f32 %v14136_v8  ;;  %v14158_v63 = vpop.eup %7716  ;;  %v14201_v10 = vor.u32 1.1754944e-38, %v5853_v23  ;;  %v5883_v11 = vand.u32 2147483648, %v14136_v8  ;;  %v5530_v55 = vpop.f32.mrf.mxu3 }
 0x843   :  { %7728 = vrcp.f32 %v14146_v50  ;;  %v7719_v5 = vpop.eup %7718  ;;  %v5813_v32 = vmul.f32 %v14158_v63, %v14062_v46  ;;  %v14197_v17 = vor.u32 1.1754944e-38, %v5838_v33  ;;  %v14210_v37 = vor.u32 1.1754944e-38, %v5868_v12 }
 0x844   :  { %7730 = vrcp.f32 %v14154_v42  ;;  %v14206_v53 = vadd.f32 1.0, %v7719_v5  ;;  %v14224_v35 = vor.u32 1.1754944e-38, %v5883_v11  ;;  %vm5818_vm5 = vweird.f32 %v14158_v63 }
 0x845   :  { %v14169_v1 = vpop.eup %7720  ;;  %v5814_v39 = vsub.f32 1.0, %v5813_v32  ;;  %v5679_v32 = vadd.f32 %v14058_v28, %v5678_v31  ;;  %v14233_v31 = vsel %vm14181_vm14, %v5672_v3, %v5668_v0  ;;  %v5699_v13 = vand.u32 2147483647, %v14025_v24 }
 0x846   :  { %v14186_v20 = vpop.eup %7722  ;;  %v5828_v45 = vmul.f32 %v14169_v1, %v14116_v4  ;;  %16224 = vst [vmem:[#allocation33_spill] sm:$0xff] %v14224_v35  ;;  %7732 = vrcp.f32 %v14206_v53  ;;  %vm5833_vm8 = vweird.f32 %v14169_v1  ;;  %v16227_v35 = vsub.f32 1.0, %v14127_v22 }
 0x847   :  { %v14195_v43 = vpop.eup %7724  ;;  %v5843_v56 = vmul.f32 %v14186_v20, %v14120_v47  ;;  %v5815_v18 = vmul.f32 %v14158_v63, %v5814_v39  ;;  %v5683_v0 = vsel %vm14246_vm0, %v14058_v28, %v5679_v32  ;;  %vm5848_vm7 = vweird.f32 %v14186_v20 }
 0x848   :  { %v14204_v51 = vpop.eup %7726  ;;  %v5858_v2 = vmul.f32 %v14195_v43, %v14129_v41  ;;  %v5829_v33 = vsub.f32 1.0, %v5828_v45  ;;  %v5684_v45 = vand.u32 2147483647, %v14021_v19  ;;  %v5708_v28 = vmul.f32 %v14069_v54, %v16227_v35 }
 0x849   :  { %v14212_v38 = vpop.eup %7728  ;;  %v5844_v62 = vsub.f32 1.0, %v5843_v56  ;;  %v5873_v23 = vmul.f32 %v14204_v51, %v14136_v8  ;;  %v5686_v56 = vand.u32 2147483648, %v14021_v19  ;;  %v5693_v19 = vmul.f32 %v14065_v59, %v5692_v7 }
 0x84a   :  { %v5859_v48 = vsub.f32 1.0, %v5858_v2  ;;  %v14218_v5 = vmul.f32 %v14212_v38, %v14146_v50  ;;  %v14222_v12 = vpop.eup %7730  ;;  %v5830_v2 = vmul.f32 %v14169_v1, %v5829_v33  ;;  %vm5685_vm2 = vcmp.eq.f32.partialorder %v5684_v45, 8.507059e+37 }
 0x84b   :  { %v5874_v55 = vsub.f32 1.0, %v5873_v23  ;;  %v14238_v11 = vmul.f32 %v14186_v20, %v5844_v62  ;;  %v14257_v62 = vmul.f32 %v14222_v12, %v14154_v42  ;;  %v5694_v33 = vadd.f32 %v14065_v59, %v5693_v19 }
 0x84c   :  { %v14241_v23 = vmul.f32 %v14195_v43, %v5859_v48  ;;  %v5687_v48 = vor.u32 1.1754944e-38, %v5686_v56  ;;  %vm5711_vm1 = vweird.f32 %v14069_v54  ;;  %v5714_v45 = vand.u32 2147483647, %v14030_v14  ;;  %v14282_v19 = vpop.eup %7732 }
 0x84d   :  { %v14253_v3 = vmul.f32 %v14204_v51, %v5874_v55  ;;  %v5701_v55 = vand.u32 2147483648, %v14025_v24  ;;  %v5716_v56 = vand.u32 2147483648, %v14030_v14  ;;  %vm5847_vm4 = vweird.f32 %v14120_v47 }
 0x84e   :  { %v14273_v7 = vsel %vm5685_vm2, %v5687_v48, %v5683_v0  ;;  %vm5863_vm15 = vweird.f32 %v14195_v43  ;;  %v5698_v24 = vsel %vm14275_vm6, %v14065_v59, %v5694_v33  ;;  %v5709_v22 = vadd.f32 %v14069_v54, %v5708_v28 }
 0x84f   :  { %vm5710_vm14 = vweird.f32 %v14030_v14  ;;  %v16230_v0 = vsub.f32 1.0, %v14134_v49  ;;  %vm5700_vm9 = vcmp.eq.f32.partialorder %v5699_v13, 8.507059e+37  ;;  %v5702_v35 = vor.u32 1.1754944e-38, %v5701_v55 }
 0x850   :  { %vm14294_vm3 = vcmp.eq.f32.partialorder %v5714_v45, 8.507059e+37  ;;  %vm5726_vm0 = vweird.f32 %v14077_v61  ;;  %vm5862_vm2 = vweird.f32 %v14129_v41  ;;  %vm14302_vm10 = vmor %vm5710_vm14, %vm5711_vm1  ;;  %v5717_v14 = vor.u32 1.1754944e-38, %v5716_v56 }
 0x851   :  { %v5723_v48 = vmul.f32 %v14077_v61, %v16230_v0  ;;  %vm5725_vm12 = vweird.f32 %v14036_v25  ;;  %v5729_v13 = vand.u32 2147483647, %v14036_v25  ;;  %v14309_v33 = vsel %vm5700_vm9, %v5702_v35, %v5698_v24  ;;  %vm14332_vm9 = vmor %vm5817_vm11, %vm5818_vm5 }
 0x852   :  { %v5713_v55 = vsel %vm14302_vm10, %v14069_v54, %v5709_v22  ;;  %vm14314_vm6 = vmor %vm5725_vm12, %vm5726_vm0  ;;  %v5731_v32 = vand.u32 2147483648, %v14036_v25  ;;  %v16237_v45 = vsub.f32 1.0, %v14144_v52  ;;  %vm5740_vm1 = vweird.f32 %v14041_v44 }
 0x853   :  { %v5724_v49 = vadd.f32 %v14077_v61, %v5723_v48  ;;  %vm5741_vm14 = vweird.f32 %v14085_v9  ;;  %v5744_v54 = vand.u32 2147483647, %v14041_v44  ;;  %v5746_v22 = vand.u32 2147483648, %v14041_v44  ;;  %vm5834_vm5 = vmor %vm5832_vm13, %vm5833_vm8 }
 0x854   :  { %v5738_v56 = vmul.f32 %v14085_v9, %v16237_v45  ;;  %v5732_v52 = vor.u32 1.1754944e-38, %v5731_v32  ;;  %vm5730_vm0 = vcmp.eq.f32.partialorder %v5729_v13, 8.507059e+37  ;;  %vm14339_vm10 = vmor %vm5740_vm1, %vm5741_vm14  ;;  %v5821_v35 = vand.u32 2147483647, %v14062_v46 }
 0x855   :  { %v5728_v0 = vsel %vm14314_vm6, %v14077_v61, %v5724_v49  ;;  %v5816_v61 = vadd.f32 %v14158_v63, %v5815_v18  ;;  %v5831_v59 = vadd.f32 %v14169_v1, %v5830_v2  ;;  %v5836_v49 = vand.u32 2147483647, %v14116_v4  ;;  %vm5849_vm13 = vmor %vm5847_vm4, %vm5848_vm7 }
 0x856   :  { %v5739_v24 = vadd.f32 %v14085_v9, %v5738_v56  ;;  %v14352_v44 = vsel %vm14294_vm3, %v5717_v14, %v5713_v55  ;;  %v14354_v18 = vsel %vm5730_vm0, %v5732_v52, %v5728_v0  ;;  %vm14362_vm11 = vcmp.eq.f32.partialorder %v5744_v54, 8.507059e+37  ;;  %vm5864_vm7 = vmor %vm5862_vm2, %vm5863_vm15  ;;  %v16248_v54 = vld [vmem:[#allocation54_spill] sm:$0xff] }
 0x857   :  { %v5820_v46 = vsel %vm14332_vm9, %v14158_v63, %v5816_v61  ;;  %vm5822_vm12 = vcmp.eq.f32.partialorder %v5821_v35, 8.507059e+37  ;;  %v5835_v4 = vsel %vm5834_vm5, %v14169_v1, %v5831_v59  ;;  %vm5837_vm8 = vcmp.eq.f32.partialorder %v5836_v49, 8.507059e+37  ;;  %v16250_v61 = vld [vmem:[#allocation56_spill] sm:$0xff] }
 0x858   :  { %v5743_v13 = vsel %vm14339_vm10, %v14085_v9, %v5739_v24  ;;  %v5846_v39 = vadd.f32 %v14186_v20, %v14238_v11  ;;  %v5747_v9 = vor.u32 1.1754944e-38, %v5746_v22  ;;  %v5825_v14 = vsel %vm5822_vm12, %v14122_v6, %v5820_v46  ;;  %v16252_v46 = vld [vmem:[#allocation60_spill] sm:$0xff] }
 0x859   :  { %v5840_v63 = vsel %vm5837_vm8, %v14197_v17, %v5835_v4  ;;  %v5851_v55 = vand.u32 2147483647, %v14120_v47  ;;  %v5861_v1 = vadd.f32 %v14195_v43, %v14241_v23  ;;  %v5866_v32 = vand.u32 2147483647, %v14129_v41 }
 0x85a   :  { %v5850_v28 = vsel %vm5849_vm13, %v14186_v20, %v5846_v39  ;;  %7734 = vtanh.f32 %v14080_v40  ;;  %v16244_v6 = vrot.slane %v13565_v16, 7  ;;  %v16245_v20 = vrot.slane %v13568_v58, 7  ;;  %v6765_v40 = vld [vmem:[%s14857_s4 + $0x38] sm:$0xff] }
 0x85b   :  { %vm5852_vm4 = vcmp.eq.f32.partialorder %v5851_v55, 8.507059e+37  ;;  %7736 = vtanh.f32 %v14083_v36  ;;  %v5865_v23 = vsel %vm5864_vm7, %v14195_v43, %v5861_v1  ;;  %vm5867_vm3 = vcmp.eq.f32.partialorder %v5866_v32, 8.507059e+37  ;;  %6317 = vmatpush.bf16.msrb.mxu0 %v6765_v40  ;;  %v16255_v55 = vld [vmem:[#allocation66_spill] sm:$0xff] }
 0x85c   :  { %v6116_v47 = vmul.f32 %v16244_v6, %v5825_v14  ;;  %v6117_v17 = vmul.f32 %v16245_v20, %v5840_v63  ;;  %v5855_v11 = vsel %vm5852_vm4, %v14201_v10, %v5850_v28  ;;  %7738 = vtanh.f32 %v14089_v27  ;;  %v16254_v14 = vld [vmem:[#allocation64_spill] sm:$0xff] }
 0x85d   :  { %v5870_v41 = vsel %vm5867_vm3, %v14210_v37, %v5865_v23  ;;  %7740 = vtanh.f32 %v14096_v60  ;;  %v16246_v16 = vrot.slane %v13573_v15, 7  ;;  %v5539_v58 = vrot.slane %v14140_v21, 1  ;;  %v6764_v37 = vld [vmem:[%s14857_s4 + $0x30] sm:$0xff] }
 0x85e   :  { %7742 = vtanh.f32 %v14099_v30  ;;  %v16247_v10 = vrot.slane %v13581_v34, 7  ;;  %v5543_v27 = vrot.slane %v14140_v21, 2  ;;  %v5547_v45 = vrot.slane %v14140_v21, 3 }
 0x85f   :  { %v6118_v36 = vmul.f32 %v16246_v16, %v5855_v11  ;;  %7744 = vtanh.f32 %v14103_v57  ;;  %v5551_v15 = vrot.slane %v14140_v21, 4  ;;  %v5555_v60 = vrot.slane %v14140_v21, 5  ;;  %v16249_v57 = vld [vmem:[#allocation34_spill] sm:$0xff]  ;;  %6318 = vmatpush.bf16.msrb.mxu0 %v6764_v37 }
 0x860   :  { %v6119_v43 = vmul.f32 %v16247_v10, %v5870_v41  ;;  %v5559_v30 = vrot.slane %v14140_v21, 6  ;;  %v7735_v56 = vpop.eup %7734  ;;  %7746 = vtanh.f32 %v14106_v26  ;;  %v5563_v34 = vrot.slane %v14140_v21, 7  ;;  %v16251_v26 = vld [vmem:[#allocation58_spill] sm:$0xff] }
 0x861   :  { %v5599_v0 = vadd.f32 %v5539_v58, %v15373_v29  ;;  %v5603_v25 = vadd.f32 %v5543_v27, %v16248_v54  ;;  %v7737_v52 = vpop.eup %7736  ;;  %v5748_v24 = vsel %vm14362_vm11, %v5747_v9, %v5743_v13  ;;  %7748 = vtanh.f32 %v16249_v57  ;;  %v16253_v29 = vld [vmem:[#allocation62_spill] sm:$0xff]  ;;  %v16260_v54 = vld [vmem:[#allocation29_spill] sm:$0xff] }
 0x862   :  { %v6124_v22 = vmul.f32 %v7735_v56, %v14233_v31  ;;  %v5607_v48 = vadd.f32 %v5547_v45, %v16250_v61  ;;  %v7739_v35 = vpop.eup %7738  ;;  %v6125_v59 = vmul.f32 %v7737_v52, %v14273_v7  ;;  %v5611_v49 = vadd.f32 %v5551_v15, %v16251_v26  ;;  %v6763_v13 = vld [vmem:[%s14857_s4 + $0x28] sm:$0xff]  ;;  %v16258_v45 = vld [vmem:[#allocation28_spill] sm:$0xff] }
 0x863   :  { %v5615_v4 = vadd.f32 %v5555_v60, %v16252_v46  ;;  %v5619_v39 = vadd.f32 %v5559_v30, %v16253_v29  ;;  %v7741_v2 = vpop.eup %7740  ;;  %v6126_v9 = vmul.f32 %v7739_v35, %v14309_v33  ;;  %v5623_v63 = vadd.f32 %v5563_v34, %v16254_v14  ;;  %6319 = vmatpush.bf16.msrb.mxu0 %v6763_v13  ;;  %v6761_v60 = vld [vmem:[%s14857_s4 + $0x18] sm:$0xff]  ;;  %v16259_v30 = vld [vmem:[#allocation30_spill] sm:$0xff]  ;;  %v16262_v52 = vld [vmem:[#allocation31_spill] sm:$0xff] }
 0x864   :  { %v6132_v31 = vadd.f32 %v6124_v22, %v6116_v47  ;;  %v5627_v7 = vadd.f32 %v14140_v21, %v16255_v55  ;;  %v7743_v28 = vpop.eup %7742  ;;  %v6127_v1 = vmul.f32 %v7741_v2, %v14352_v44  ;;  %v6133_v32 = vadd.f32 %v6125_v59, %v6117_v17  ;;  %v6762_v44 = vld [vmem:[%s14857_s4 + $0x20] sm:$0xff] }
 0x865   :  { %v6682_v6 = vmul.f32 -1.442695, %v5599_v0  ;;  %v6683_v20 = vmul.f32 -1.442695, %v5603_v25  ;;  %v7745_v11 = vpop.eup %7744  ;;  %v14435_v23 = vmul.f32 %v7743_v28, %v14354_v18  ;;  %v6134_v40 = vadd.f32 %v6126_v9, %v6118_v36  ;;  %v16268_v9 = vld [vmem:[#allocation26_spill] sm:$0xff] }
 0x866   :  { %7750 = vtanh.f32 %v6132_v31  ;;  %v6684_v41 = vmul.f32 -1.442695, %v5607_v48  ;;  %v14437_v33 = vpop.eup %7746  ;;  %vm5878_vm15 = vweird.f32 %v14204_v51  ;;  %v14440_v47 = vmul.f32 %v7745_v11, %v5748_v24 }
 0x867   :  { %v14442_v21 = vadd.f32 %v6127_v1, %v6119_v43  ;;  %7752 = vtanh.f32 %v6133_v32  ;;  %v14447_v17 = vpop.eup %7748  ;;  %v14451_v18 = vmul.f32 %v14282_v19, %v14206_v53  ;;  %v6685_v16 = vmul.f32 -1.442695, %v5611_v49  ;;  %v16256_v43 = vld [vmem:[#allocation35_spill] sm:$0xff]  ;;  %6320 = vmatpush.bf16.msrb.mxu0 %v6762_v44 }
 0x868   :  { %7754 = vtanh.f32 %v6134_v40  ;;  %vm5877_vm2 = vweird.f32 %v14136_v8  ;;  %v6686_v36 = vmul.f32 -1.442695, %v5615_v4  ;;  %v6687_v58 = vmul.f32 -1.442695, %v5619_v39 }
 0x869   :  { %7756 = vpow2.f32 %v6682_v6  ;;  %v6688_v10 = vmul.f32 -1.442695, %v5623_v63  ;;  %v16257_v27 = vsub.f32 1.0, %v16256_v43  ;;  %v6689_v15 = vmul.f32 -1.442695, %v5627_v7  ;;  %vm14517_vm12 = vmor %vm5877_vm2, %vm5878_vm15 }
 0x86a   :  { %7758 = vpow2.f32 %v6683_v20  ;;  %v5759_v56 = vand.u32 2147483647, %v16259_v30  ;;  %vm5756_vm6 = vweird.f32 %v16258_v45  ;;  %v16261_v25 = vsub.f32 1.0, %v16260_v54 }
 0x86b   :  { %v5753_v37 = vmul.f32 %v16258_v45, %v16257_v27  ;;  %7760 = vpow2.f32 %v6684_v41  ;;  %v16263_v22 = vsub.f32 1.0, %v14218_v5  ;;  %v5904_v48 = vsub.f32 1.0, %v14257_v62  ;;  %6321 = vmatpush.bf16.msrb.mxu0 %v6761_v60  ;;  %v6760_v62 = vld [vmem:[%s14857_s4 + $0x10] sm:$0xff]  ;;  %v6759_v41 = vld [vmem:[%s14857_s4 + $0x8] sm:$0xff]  ;;  %v6758_v60 = vld [vmem:[%s14857_s4] sm:$0xff] }
 0x86c   :  { %v14461_v34 = vpop.eup %7750  ;;  %7762 = vpow2.f32 %v6685_v16  ;;  %v5768_v24 = vmul.f32 %v16262_v52, %v16261_v25  ;;  %v5761_v35 = vand.u32 2147483648, %v16259_v30  ;;  %vm5892_vm1 = vweird.f32 %v14146_v50 }
 0x86d   :  { %v5754_v0 = vadd.f32 %v16258_v45, %v5753_v37  ;;  %v14468_v57 = vpop.eup %7752  ;;  %v5890_v61 = vmul.f32 %v14212_v38, %v16263_v22  ;;  %7764 = vpow2.f32 %v6686_v36  ;;  %vm5755_vm14 = vweird.f32 %v16259_v30 }
 0x86e   :  { %v14475_v59 = vpop.eup %7754  ;;  %7766 = vpow2.f32 %v6687_v58  ;;  %v5769_v26 = vadd.f32 %v16262_v52, %v5768_v24  ;;  %vm5771_vm9 = vweird.f32 %v16262_v52  ;;  %v5919_v5 = vsub.f32 1.0, %v14451_v18  ;;  %vm14487_vm0 = vmor %vm5755_vm14, %vm5756_vm6 }
 0x86f   :  { %v7757_v49 = vpop.eup %7756  ;;  %7768 = vpow2.f32 %v6688_v10  ;;  %vm14491_vm10 = vcmp.eq.f32.partialorder %v5759_v56, 8.507059e+37  ;;  %v5876_v29 = vadd.f32 %v14204_v51, %v14253_v3  ;;  %v5758_v2 = vsel %vm14487_vm0, %v16258_v45, %v5754_v0  ;;  %6322 = vmatpush.bf16.msrb.mxu0 %v6760_v62  ;;  %v16273_v56 = vld [vmem:[#allocation33_spill] sm:$0xff] }
 0x870   :  { %v7759_v39 = vpop.eup %7758  ;;  %7770 = vpow2.f32 %v6689_v15  ;;  %v14497_v13 = vadd.f32 1.0, %v7757_v49  ;;  %vm5770_vm5 = vweird.f32 %v16268_v9  ;;  %v5762_v63 = vor.u32 1.1754944e-38, %v5761_v35 }
 0x871   :  { %v7761_v31 = vpop.eup %7760  ;;  %v14503_v14 = vadd.f32 1.0, %v7759_v39  ;;  %vm14507_vm11 = vmor %vm5770_vm5, %vm5771_vm9  ;;  %v5774_v3 = vand.u32 2147483647, %v16268_v9  ;;  %v5776_v7 = vand.u32 2147483648, %v16268_v9  ;;  %v5881_v20 = vand.u32 2147483647, %v14136_v8 }
 0x872   :  { %v7763_v28 = vpop.eup %7762  ;;  %v14521_v32 = vadd.f32 1.0, %v7761_v31  ;;  %7772 = vrcp.f32 %v14497_v13  ;;  %v5773_v6 = vsel %vm14507_vm11, %v16262_v52, %v5769_v26  ;;  %v5880_v44 = vsel %vm14517_vm12, %v14204_v51, %v5876_v29 }
 0x873   :  { %v7765_v11 = vpop.eup %7764  ;;  %v14528_v40 = vadd.f32 1.0, %v7763_v28  ;;  %7774 = vrcp.f32 %v14503_v14  ;;  %v5891_v16 = vadd.f32 %v14212_v38, %v5890_v61  ;;  %vm5893_vm8 = vweird.f32 %v14212_v38  ;;  %6323 = vmatpush.bf16.msrb.mxu0 %v6759_v41 }
 0x874   :  { %v7767_v36 = vpop.eup %7766  ;;  %v14538_v58 = vadd.f32 1.0, %v7765_v11  ;;  %7776 = vrcp.f32 %v14521_v32  ;;  %v5896_v8 = vand.u32 2147483647, %v14146_v50  ;;  %v14547_v27 = vsel %vm14491_vm10, %v5762_v63, %v5758_v2  ;;  %vm14566_vm4 = vmor %vm5892_vm1, %vm5893_vm8 }
 0x875   :  { %v7769_v10 = vpop.eup %7768  ;;  %v14543_v43 = vadd.f32 1.0, %v7767_v36  ;;  %vm5775_vm13 = vcmp.eq.f32.partialorder %v5774_v3, 8.507059e+37  ;;  %v5777_v51 = vor.u32 1.1754944e-38, %v5776_v7  ;;  %7778 = vrcp.f32 %v14528_v40 }
 0x876   :  { %v7771_v45 = vpop.eup %7770  ;;  %v14549_v37 = vadd.f32 1.0, %v7769_v10  ;;  %vm5882_vm7 = vcmp.eq.f32.partialorder %v5881_v20, 8.507059e+37  ;;  %v5898_v15 = vand.u32 2147483648, %v14146_v50  ;;  %7780 = vrcp.f32 %v14538_v58 }
 0x877   :  { %v14557_v30 = vsel %vm5775_vm13, %v5777_v51, %v5773_v6  ;;  %v14560_v0 = vsel %vm5882_vm7, %v16273_v56, %v5880_v44  ;;  %v5905_v25 = vmul.f32 %v14222_v12, %v5904_v48  ;;  %v14573_v24 = vadd.f32 1.0, %v7771_v45  ;;  %6324 = vmatpush.bf16.msrb.mxu0 %v6758_v60 }
 0x878   :  { %v14571_v52 = vpop.eup %7772  ;;  %7782 = vrcp.f32 %v14543_v43  ;;  %v5895_v22 = vsel %vm14566_vm4, %v14212_v38, %v5891_v16  ;;  %vm14579_vm3 = vcmp.eq.f32.partialorder %v5896_v8, 8.507059e+37  ;;  %v5899_v48 = vor.u32 1.1754944e-38, %v5898_v15 }
 0x879   :  { %v14583_v50 = vpop.eup %7774  ;;  %v5973_v35 = vmul.f32 %v14571_v52, %v14497_v13  ;;  %7784 = vrcp.f32 %v14549_v37  ;;  %vm5907_vm15 = vweird.f32 %v14154_v42  ;;  %vm5908_vm2 = vweird.f32 %v14222_v12 }
 0x87a   :  { %v14589_v26 = vpop.eup %7776  ;;  %v5988_v49 = vmul.f32 %v14583_v50, %v14503_v14  ;;  %v5911_v38 = vand.u32 2147483647, %v14154_v42  ;;  %v5920_v62 = vmul.f32 %v14282_v19, %v5919_v5  ;;  %v5906_v29 = vadd.f32 %v14222_v12, %v5905_v25  ;;  %vm14617_vm1 = vmor %vm5907_vm15, %vm5908_vm2 }
 0x87b   :  { %v5974_v46 = vsub.f32 1.0, %v5973_v35  ;;  %v6003_v4 = vmul.f32 %v14589_v26, %v14521_v32  ;;  %v5913_v39 = vand.u32 2147483648, %v14154_v42  ;;  %v14602_v2 = vpop.eup %7778  ;;  %7786 = vrcp.f32 %v14573_v24 }
 0x87c   :  { %v5989_v9 = vsub.f32 1.0, %v5988_v49  ;;  %v5921_v31 = vadd.f32 %v14282_v19, %v5920_v62  ;;  %vm5923_vm6 = vweird.f32 %v14282_v19  ;;  %v14607_v18 = vpop.eup %7780  ;;  %v14611_v5 = vsel %vm14579_vm3, %v5899_v48, %v5895_v22 }
 0x87d   :  { %vm5922_vm14 = vweird.f32 %v14206_v53  ;;  %v5926_v55 = vand.u32 2147483647, %v14206_v53  ;;  %v5928_v3 = vand.u32 2147483648, %v14206_v53  ;;  %v6004_v28 = vsub.f32 1.0, %v6003_v4 }
 0x87e   :  { %v14624_v7 = vpop.eup %7782  ;;  %vm14626_vm9 = vcmp.eq.f32.partialorder %v5911_v38, 8.507059e+37  ;;  %vm14630_vm0 = vmor %vm5922_vm14, %vm5923_vm6  ;;  %v5975_v42 = vmul.f32 %v14571_v52, %v5974_v46  ;;  %vm5978_vm10 = vweird.f32 %v14571_v52  ;;  %v5910_v53 = vsel %vm14617_vm1, %v14222_v12, %v5906_v29 }
 0x87f   :  { %v14636_v20 = vpop.eup %7784  ;;  %v5914_v11 = vor.u32 1.1754944e-38, %v5913_v39  ;;  %v5925_v41 = vsel %vm14630_vm0, %v14282_v19, %v5921_v31  ;;  %v5983_v44 = vand.u32 2147483648, %v14497_v13  ;;  %vm5977_vm5 = vweird.f32 %v14497_v13 }
 0x880   :  { %v5976_v16 = vadd.f32 %v14571_v52, %v5975_v42  ;;  %v5981_v36 = vand.u32 2147483647, %v14497_v13  ;;  %v5990_v8 = vmul.f32 %v14583_v50, %v5989_v9  ;;  %vm5927_vm11 = vcmp.eq.f32.partialorder %v5926_v55, 8.507059e+37  ;;  %vm14649_vm12 = vmor %vm5977_vm5, %vm5978_vm10 }
 0x881   :  { %v5929_v10 = vor.u32 1.1754944e-38, %v5928_v3  ;;  %vm5993_vm8 = vweird.f32 %v14583_v50  ;;  %v5996_v12 = vand.u32 2147483647, %v14503_v14  ;;  %v14655_v19 = vpop.eup %7786  ;;  %v5998_v15 = vand.u32 2147483648, %v14503_v14 }
 0x882   :  { %v5980_v45 = vsel %vm14649_vm12, %v14571_v52, %v5976_v16  ;;  %v5991_v13 = vadd.f32 %v14583_v50, %v5990_v8  ;;  %v6005_v60 = vmul.f32 %v14589_v26, %v6004_v28  ;;  %v14665_v56 = vsel %vm14626_vm9, %v5914_v11, %v5910_v53 }
 0x883   :  { %v14667_v54 = vsel %vm5927_vm11, %v5929_v10, %v5925_v41  ;;  %v5984_v25 = vor.u32 1.1754944e-38, %v5983_v44  ;;  %vm5992_vm13 = vweird.f32 %v14503_v14  ;;  %vm5982_vm7 = vcmp.eq.f32.partialorder %v5981_v36, 8.507059e+37 }
 0x884   :  { %vm14670_vm4 = vmor %vm5992_vm13, %vm5993_vm8  ;;  %v6006_v52 = vadd.f32 %v14589_v26, %v6005_v60  ;;  %vm6008_vm3 = vweird.f32 %v14589_v26  ;;  %v6011_v61 = vand.u32 2147483647, %v14521_v32  ;;  %v6013_v49 = vand.u32 2147483648, %v14521_v32 }
 0x885   :  { %v14677_v35 = vsel %vm5982_vm7, %v5984_v25, %v5980_v45  ;;  %v5995_v48 = vsel %vm14670_vm4, %v14583_v50, %v5991_v13  ;;  %v6018_v14 = vmul.f32 %v14602_v2, %v14528_v40  ;;  %vm5997_vm15 = vcmp.eq.f32.partialorder %v5996_v12, 8.507059e+37 }
 0x886   :  { %v5999_v38 = vor.u32 1.1754944e-38, %v5998_v15  ;;  %vm6007_vm2 = vweird.f32 %v14521_v32  ;;  %v6026_v62 = vand.u32 2147483647, %v14528_v40  ;;  %vm6022_vm1 = vweird.f32 %v14528_v40 }
 0x887   :  { %vm14687_vm6 = vmor %vm6007_vm2, %vm6008_vm3  ;;  %v6019_v4 = vsub.f32 1.0, %v6018_v14  ;;  %vm6023_vm14 = vweird.f32 %v14602_v2  ;;  %v6033_v50 = vmul.f32 %v14607_v18, %v14538_v58  ;;  %vm6012_vm9 = vcmp.eq.f32.partialorder %v6011_v61, 8.507059e+37 }
 0x888   :  { %v14695_v29 = vsel %vm5997_vm15, %v5999_v38, %v5995_v48  ;;  %v6010_v32 = vsel %vm14687_vm6, %v14589_v26, %v6006_v52  ;;  %v6028_v39 = vand.u32 2147483648, %v14528_v40  ;;  %v6014_v9 = vor.u32 1.1754944e-38, %v6013_v49  ;;  %vm14721_vm11 = vmor %vm6022_vm1, %vm6023_vm14 }
 0x889   :  { %v6020_v31 = vmul.f32 %v14602_v2, %v6019_v4  ;;  %v6034_v63 = vsub.f32 1.0, %v6033_v50  ;;  %v6041_v55 = vand.u32 2147483647, %v14538_v58  ;;  %vm14703_vm0 = vcmp.eq.f32.partialorder %v6026_v62, 8.507059e+37  ;;  %v16304_v50 = vld [vmem:[#allocation24_spill] sm:$0xff] }
 0x88a   :  { %vm6037_vm10 = vweird.f32 %v14538_v58  ;;  %vm6038_vm5 = vweird.f32 %v14607_v18  ;;  %v6048_v26 = vmul.f32 %v14624_v7, %v14543_v43  ;;  %v6043_v6 = vand.u32 2147483648, %v14538_v58 }
 0x88b   :  { %v6021_v28 = vadd.f32 %v14602_v2, %v6020_v31  ;;  %v6035_v1 = vmul.f32 %v14607_v18, %v6034_v63  ;;  %v6056_v42 = vand.u32 2147483647, %v14543_v43  ;;  %v6015_v53 = vsel %vm6012_vm9, %v6014_v9, %v6010_v32  ;;  %vm14739_vm13 = vmor %vm6037_vm10, %vm6038_vm5  ;;  %v16306_v63 = vld [vmem:[#allocation27_spill] sm:$0xff] }
 0x88c   :  { %v6029_v11 = vor.u32 1.1754944e-38, %v6028_v39  ;;  %v6049_v41 = vsub.f32 1.0, %v6048_v26  ;;  %v6063_v44 = vmul.f32 %v14636_v20, %v14549_v37  ;;  %vm14726_vm12 = vcmp.eq.f32.partialorder %v6041_v55, 8.507059e+37 }
 0x88d   :  { %v6036_v36 = vadd.f32 %v14607_v18, %v6035_v1  ;;  %vm6052_vm8 = vweird.f32 %v14543_v43  ;;  %v6058_v10 = vand.u32 2147483648, %v14543_v43  ;;  %v6025_v51 = vsel %vm14721_vm11, %v14602_v2, %v6021_v28  ;;  %v16302_v43 = vld [vmem:[#allocation22_spill] sm:$0xff] }
 0x88e   :  { %v6050_v12 = vmul.f32 %v14624_v7, %v6049_v41  ;;  %vm6053_vm7 = vweird.f32 %v14624_v7  ;;  %v6064_v45 = vsub.f32 1.0, %v6063_v44  ;;  %v6044_v15 = vor.u32 1.1754944e-38, %v6043_v6 }
 0x88f   :  { %v6040_v13 = vsel %vm14739_vm13, %v14607_v18, %v6036_v36  ;;  %vm14748_vm4 = vcmp.eq.f32.partialorder %v6056_v42, 8.507059e+37  ;;  %v6073_v58 = vand.u32 2147483648, %v14549_v37  ;;  %vm6067_vm3 = vweird.f32 %v14549_v37  ;;  %vm14762_vm15 = vmor %vm6052_vm8, %vm6053_vm7 }
 0x890   :  { %v6051_v60 = vadd.f32 %v14624_v7, %v6050_v12  ;;  %v6065_v25 = vmul.f32 %v14636_v20, %v6064_v45  ;;  %v6078_v22 = vmul.f32 %v14655_v19, %v14573_v24  ;;  %v6030_v52 = vsel %vm14703_vm0, %v6029_v11, %v6025_v51 }
 0x891   :  { %v6059_v61 = vor.u32 1.1754944e-38, %v6058_v10  ;;  %vm6068_vm2 = vweird.f32 %v14636_v20  ;;  %v6071_v48 = vand.u32 2147483647, %v14549_v37  ;;  %v6045_v49 = vsel %vm14726_vm12, %v6044_v15, %v6040_v13 }
 0x892   :  { %v6055_v14 = vsel %vm14762_vm15, %v14624_v7, %v6051_v60  ;;  %v6074_v38 = vor.u32 1.1754944e-38, %v6073_v58  ;;  %v6079_v62 = vsub.f32 1.0, %v6078_v22  ;;  %vm6082_vm6 = vweird.f32 %v14573_v24  ;;  %vm14808_vm9 = vmor %vm6067_vm3, %vm6068_vm2 }
 0x893   :  { %vm6083_vm1 = vweird.f32 %v14655_v19  ;;  %v16303_v46 = vrot.slane %v16302_v43, 7  ;;  %v16305_v32 = vrot.slane %v16304_v50, 7  ;;  %v6066_v9 = vadd.f32 %v14636_v20, %v6065_v25 }
 0x894   :  { %v6080_v31 = vmul.f32 %v14655_v19, %v6079_v62  ;;  %v6086_v7 = vand.u32 2147483647, %v14573_v24  ;;  %v16307_v55 = vrot.slane %v16306_v63, 7  ;;  %v6060_v26 = vsel %vm14748_vm4, %v6059_v61, %v6055_v14  ;;  %vm14824_vm0 = vmor %vm6082_vm6, %vm6083_vm1 }
 0x895   :  { %v6120_v4 = vmul.f32 %v16303_v46, %v14560_v0  ;;  %v6121_v39 = vmul.f32 %v16305_v32, %v14611_v5  ;;  %v6088_v28 = vand.u32 2147483648, %v14573_v24  ;;  %v16308_v0 = vld [vmem:[#allocation25_spill] sm:$0xff]  ;;  %v6130_v5 = vmul.f32 %v14437_v33, %v14547_v27 }
 0x896   :  { %v6122_v3 = vmul.f32 %v16307_v55, %v14665_v56  ;;  %v16309_v1 = vrot.slane %v16308_v0, 7  ;;  %vm14795_vm14 = vcmp.eq.f32.partialorder %v6071_v48, 8.507059e+37  ;;  %v6081_v11 = vadd.f32 %v14655_v19, %v6080_v31 }
 0x897   :  { %v6131_v56 = vmul.f32 %v14447_v17, %v14557_v30  ;;  %v6136_v41 = vadd.f32 %v14435_v23, %v6120_v4  ;;  %v6137_v44 = vadd.f32 %v14440_v47, %v6121_v39  ;;  %7788 = vtanh.f32 %v14442_v21 }
 0x898   :  { %v6123_v6 = vmul.f32 %v16309_v1, %v14667_v54  ;;  %v6138_v33 = vadd.f32 %v6130_v5, %v6122_v3  ;;  %v6148_v27 = vmul.f32 %v14461_v34, %v14677_v35  ;;  %v6149_v17 = vmul.f32 %v14468_v57, %v14695_v29 }
 0x899   :  { %v6070_v23 = vsel %vm14808_vm9, %v14636_v20, %v6066_v9  ;;  %7790 = vtanh.f32 %v6136_v41  ;;  %v6150_v21 = vmul.f32 %v14475_v59, %v6015_v53  ;;  %v6085_v34 = vsel %vm14824_vm0, %v14655_v19, %v6081_v11 }
 0x89a   :  { %v6139_v37 = vadd.f32 %v6131_v56, %v6123_v6  ;;  %7792 = vtanh.f32 %v6137_v44  ;;  %v6164_v57 = vrot.slane %v6149_v17, 7  ;;  %6179 = vst [vmem:[#allocation2 - $0x7] sm:$0x80] %v6148_v27  ;;  %v6209_v20 = vpack.c.bf16 %v6148_v27, %v6148_v27  ;;  %v6773_v27 = vld [vmem:[%s14858_s5] ss:$0 sm:$0xff] }
 0x89b   :  { %7794 = vtanh.f32 %v6138_v33  ;;  %v6165_v30 = vrot.slane %v6150_v21, 6  ;;  %vm16316_vm10 = vcmask 1041409   ;;  %v6210_v35 = vpack.c.bf16 %v6149_v17, %v6149_v17 }
 0x89c   :  { %7796 = vtanh.f32 %v6139_v37  ;;  %v6211_v29 = vpack.c.bf16 %v6150_v21, %v6150_v21  ;;  %vm6087_vm5 = vcmp.eq.f32.partialorder %v6086_v7, 8.507059e+37  ;;  %v6089_v36 = vor.u32 1.1754944e-38, %v6088_v28  ;;  %vm16321_vm7 = vmmov %vm16316_vm10 }
 0x89d   :  { %v6166_v24 = vsel %vm16316_vm10, %v6165_v30, %v6164_v57  ;;  %v7789_v16 = vpop.eup %7788  ;;  %v6245_v8 = vunpack.c.l.b16 %v6209_v20  ;;  %v6246_v10 = vunpack.c.l.b16 %v6210_v35  ;;  %v6075_v40 = vsel %vm14795_vm14, %v6074_v38, %v6070_v23 }
 0x89e   :  { %v6151_v53 = vmul.f32 %v7789_v16, %v6030_v52  ;;  %v6247_v51 = vunpack.c.l.b16 %v6211_v29  ;;  %v6090_v12 = vsel %vm6087_vm5, %v6089_v36, %v6085_v34  ;;  %vm16317_vm11 = vcmask 1042434  }
 0x89f   :  { %v7791_v59 = vpop.eup %7790  ;;  %v6253_v13 = vrot.slane %v6245_v8, 7  ;;  %v6254_v25 = vrot.slane %v6246_v10, 6  ;;  %vm16318_vm12 = vcmask 1043459   ;;  %vm16319_vm8 = vcmask 1044484   ;;  %vm16323_vm3 = vmmov %vm16317_vm11 }
 0x8a0   :  { %v7793_v19 = vpop.eup %7792  ;;  %v6152_v45 = vmul.f32 %v7791_v59, %v6045_v49  ;;  %v6167_v58 = vrot.slane %v6151_v53, 5  ;;  %v6212_v60 = vpack.c.bf16 %v6151_v53, %v6151_v53  ;;  %v6256_v14 = vrot.slane %v6247_v51, 5  ;;  %vm16324_vm15 = vmmov %vm16318_vm12 }
 0x8a1   :  { %v7795_v15 = vpop.eup %7794  ;;  %v6153_v2 = vmul.f32 %v7793_v19, %v6060_v26  ;;  %vm16320_vm13 = vcmask 1045509   ;;  %v6255_v55 = vsel %vm16321_vm7, %v6254_v25, %v6253_v13  ;;  %vm16322_vm4 = vcmask 1046534   ;;  %vm16325_vm2 = vmmov %vm16319_vm8 }
 0x8a2   :  { %v7797_v22 = vpop.eup %7796  ;;  %v6154_v18 = vmul.f32 %v7795_v15, %v6075_v40  ;;  %v6169_v61 = vrot.slane %v6152_v45, 4  ;;  %v6213_v48 = vpack.c.bf16 %v6152_v45, %v6152_v45  ;;  %v6168_v62 = vsel %vm16317_vm11, %v6167_v58, %v6166_v24  ;;  %vm16326_vm6 = vmmov %vm16320_vm13 }
 0x8a3   :  { %v6155_v52 = vmul.f32 %v7797_v22, %v6090_v12  ;;  %v6171_v43 = vrot.slane %v6153_v2, 3  ;;  %v6214_v46 = vpack.c.bf16 %v6153_v2, %v6153_v2  ;;  %v6248_v50 = vunpack.c.l.b16 %v6212_v60  ;;  %vm16327_vm1 = vmmov %vm16322_vm4 }
 0x8a4   :  { %v6170_v38 = vsel %vm16318_vm12, %v6169_v61, %v6168_v62  ;;  %v6173_v4 = vrot.slane %v6154_v18, 2  ;;  %v6215_v49 = vpack.c.bf16 %v6154_v18, %v6154_v18  ;;  %v6249_v9 = vunpack.c.l.b16 %v6213_v48 }
 0x8a5   :  { %v6172_v32 = vsel %vm16319_vm8, %v6171_v43, %v6170_v38  ;;  %v6175_v39 = vrot.slane %v6155_v52, 1  ;;  %v6250_v7 = vunpack.c.l.b16 %v6214_v46  ;;  %v6216_v26 = vpack.c.bf16 %v6155_v52, %v6155_v52 }
 0x8a6   :  { %v6174_v31 = vsel %vm16320_vm13, %v6173_v4, %v6172_v32  ;;  %v6251_v63 = vunpack.c.l.b16 %v6215_v49  ;;  %v6257_v28 = vsel %vm16323_vm3, %v6256_v14, %v6255_v55  ;;  %v6258_v0 = vrot.slane %v6248_v50, 4 }
 0x8a7   :  { %v6176_v3 = vsel %vm16322_vm4, %v6175_v39, %v6174_v31  ;;  %v6260_v1 = vrot.slane %v6249_v9, 3  ;;  %v6262_v5 = vrot.slane %v6250_v7, 2  ;;  %v6252_v56 = vunpack.c.l.b16 %v6216_v26 }
 0x8a8   :  { %6180 = vst [vmem:[#allocation2 + $0x1] sm:$0x7f] %v6176_v3  ;;  %v6259_v6 = vsel %vm16324_vm15, %v6258_v0, %v6257_v28  ;;  %v6264_v11 = vrot.slane %v6251_v63, 1  ;;  %vm16328_vm14 = vcmask 1047559   ;;  %vm6330_vm9 = vcmask 31744  }
 0x8a9   :  { %v6261_v42 = vsel %vm16325_vm2, %v6260_v1, %v6259_v6 }
 0x8aa   :  { %v6263_v41 = vsel %vm16326_vm6, %v6262_v5, %v6261_v42 }
 0x8ab   :  { %v6265_v44 = vsel %vm16327_vm1, %v6264_v11, %v6263_v41 }
 0x8ac   :  { %v6266_v54 = vsel %vm16328_vm14, %v6252_v56, %v6265_v44 }
 0x8ad   :  { %v6267_v33 = vpack.c.b16 %v6266_v54, %v6266_v54 }
 0x8af   :  { %6325 = vmatmul.bf16.vlgmr.msrb.gmra.mxu0 %v6267_v33 }
 0x92c   :  { %v6326_v17 = vpop.f32.mrf.mxu0 }
 0x92d   :  { %v6327_v23 = vadd.f32 %v6773_v27, %v6326_v17 }
 0x92f   :  { %6331 = vst.msk [vmem:[%s14859_s6] sm:$0xff] %vm6330_vm9, %v6327_v23 }
 0x934   :  { %v6328_v47 = vpop.f32.mrf.mxu0 }
 0x935   :  { %6336 = vsyncpa [#allocation5], 1 }
 0x936   :  { %6337 = vsyncpa [#allocation7], 1 }

</bundles_post_ra>
